<compile_context>
chip_gen: v7x
topology: tpu7x:2x2x1
jax: 0.10.0
libtpu: 0.0.40
codegen_flags: <defaults>
</compile_context>

<pallas_src>
import functools
import math

import jax
import jax.numpy as jnp
from jax import lax
from jax.experimental import pallas as pl
from jax.experimental.pallas import tpu as pltpu

F32 = jnp.float32
LN_EPS = 1e-5


def _round_up(x, m):
    return (x + m - 1) // m * m


# ----------------------------------------------------------------------------
# In-kernel building blocks (pure values; everything stays in vregs/VMEM)
# ----------------------------------------------------------------------------
def _layernorm(x, g, b):
    """Row-wise LayerNorm over the last dim (biased variance, PyTorch semantics)."""
    mu = jnp.mean(x, axis=-1, keepdims=True)
    xc = x - mu
    var = jnp.mean(xc * xc, axis=-1, keepdims=True)
    return xc * lax.rsqrt(var + LN_EPS) * g + b


def _attention(Q, K, V, hsum, hexp, n_q, n_k, TB):
    """Batched MHA with batch on sublanes, heads on lanes, tiny token counts.

    Q: (n_q*TB, W) token-major; K, V: (n_k*TB, W) token-major.
    hsum: (W, H) per-head lane-sum indicator with the softmax scale folded in.
    hexp: (H, W) per-head lane-broadcast indicator.
    The softmax over the n_k (=3) keys is done element-wise across n_k score
    blocks of shape (n_q*TB, H): no cross-lane reductions, no head loop.
    """
    def tile_q(t):  # replicate one key/value token across the n_q query tokens
        return jnp.concatenate([t] * n_q, axis=0) if n_q > 1 else t

    scores = []
    for j in range(n_k):
        Kt = tile_q(K[j * TB:(j + 1) * TB, :])
        scores.append(jnp.dot(Q * Kt, hsum, preferred_element_type=F32))    # (n_q*TB, H)

    m = scores[0]
    for s in scores[1:]:
        m = jnp.maximum(m, s)
    es = [jnp.exp(s - m) for s in scores]
    den = es[0]
    for e in es[1:]:
        den = den + e
    inv = pl.reciprocal(den, approx=True)

    out = None
    for j in range(n_k):
        Vt = tile_q(V[j * TB:(j + 1) * TB, :])
        pj = jnp.dot(es[j] * inv, hexp, preferred_element_type=F32)          # (n_q*TB, W)
        out = pj * Vt if out is None else out + pj * Vt
    return out


# ----------------------------------------------------------------------------
# The fused kernel: one grid step == one TB-row batch tile
# ----------------------------------------------------------------------------
def _critic_kernel(s_ref, *rest, names):
    n = len(names)
    p = dict(zip(names, rest[:n]))
    o_ref = rest[n]

    TB = s_ref.shape[0]
    W = p["S"].shape[1]
    num_enc = p["enc_wqkv"].shape[0]
    num_dec = p["dec_wq"].shape[0]

    s_in = s_ref[...]                                     # (TB, s1_dim + s2_dim)

    # ---- fused Embedding_Res: 3 encoder tokens + decoder-query token ----
    # TODO(synk): Embedding_Res source not provided; assumed out = fc2(relu(fc1(x))) + fc_res(x).
    # TODO(synk): eb4(action) is skipped -- the critic path calls MergedModel with action=None.
    h = jnp.maximum(
        jnp.dot(s_in, p["emb_w1"][...], preferred_element_type=F32) + p["emb_b1"][...], 0.0)
    toks = (jnp.dot(h, p["emb_w2"][...], preferred_element_type=F32)
            + jnp.dot(s_in, p["emb_wr"][...], preferred_element_type=F32)
            + p["emb_b2"][...])                           # (TB, 4W) = [tok0 | tok1 | tok2 | query]

    x = jnp.concatenate(
        [toks[:, 0:W], toks[:, W:2 * W], toks[:, 2 * W:3 * W]], axis=0)      # (3TB, W)
    q_emb = toks[:, 3 * W:4 * W]                          # (TB, W)

    enc_hsum = p["enc_hsum"][...]; enc_hexp = p["enc_hexp"][...]
    dec_hsum = p["dec_hsum"][...]; dec_hexp = p["dec_hexp"][...]

    # ---- TransformerEncoder: post-LN, nhead=8, ReLU FF, eval (no dropout) ----
    for l in range(num_enc):
        qkv = jnp.dot(x, p["enc_wqkv"][l], preferred_element_type=F32) + p["enc_bqkv"][l]
        a = _attention(qkv[:, 0:W], qkv[:, W:2 * W], qkv[:, 2 * W:3 * W],
                       enc_hsum, enc_hexp, n_q=3, n_k=3, TB=TB)
        a = jnp.dot(a, p["enc_wo"][l], preferred_element_type=F32) + p["enc_bo"][l]
        x = _layernorm(x + a, p["enc_ln1g"][l], p["enc_ln1b"][l])
        ff = jnp.maximum(
            jnp.dot(x, p["enc_w1"][l], preferred_element_type=F32) + p["enc_b1"][l], 0.0)
        ff = jnp.dot(ff, p["enc_w2"][l], preferred_element_type=F32) + p["enc_b2"][l]
        x = _layernorm(x + ff, p["enc_ln2g"][l], p["enc_ln2b"][l])

    # ---- decoder: 2 Set-Transformer MABs (4 heads, ln=True); query = [S ; eb(state)] ----
    # TODO(synk): MAB source not provided; standard Set-Transformer MAB assumed
    #             (residual on the projected query, softmax scale 1/sqrt(net_width)).
    qry = jnp.concatenate(
        [jnp.broadcast_to(p["S"][...], (TB, W)), q_emb], axis=0)             # (2TB, W)
    for l in range(num_dec):
        Qp = jnp.dot(qry, p["dec_wq"][l], preferred_element_type=F32) + p["dec_bq"][l]
        kv = jnp.dot(x, p["dec_wkv"][l], preferred_element_type=F32) + p["dec_bkv"][l]
        A = _attention(Qp, kv[:, 0:W], kv[:, W:2 * W],
                       dec_hsum, dec_hexp, n_q=2, n_k=3, TB=TB)
        O = _layernorm(Qp + A, p["dec_ln0g"][l], p["dec_ln0b"][l])
        O = O + jnp.maximum(
            jnp.dot(O, p["dec_wo"][l], preferred_element_type=F32) + p["dec_bo"][l], 0.0)
        qry = _layernorm(O, p["dec_ln1g"][l], p["dec_ln1b"][l])

    # ---- FcModule on the flattened 2-token query + C4 value head ----
    # TODO(synk): FcModule source not provided; assumed 2-layer ReLU MLP (2W -> W -> W).
    q0 = qry[0:TB, :]
    q1 = qry[TB:2 * TB, :]
    hfc = jnp.maximum(
        jnp.dot(q0, p["fc1_wa"][...], preferred_element_type=F32)
        + jnp.dot(q1, p["fc1_wb"][...], preferred_element_type=F32)
        + p["fc1_b"][...], 0.0)
    x8 = jnp.maximum(
        jnp.dot(hfc, p["fc2_w"][...], preferred_element_type=F32) + p["fc2_b"][...], 0.0)

    # lane-dense output: (1, W) x (TB, W)^T -> one (1, TB) row per batch tile.
    v_row = lax.dot_general(p["c4_wr"][...], x8, (((1,), (1,)), ((), ())),
                            preferred_element_type=F32) + p["c4_b"][...]
    o_ref[...] = v_row.astype(o_ref.dtype)


# ----------------------------------------------------------------------------
# Wrapper: one pallas_call for the whole forward, batch tiled onto sublanes
# ----------------------------------------------------------------------------
def critic_forward(packed, s1, s2, *, tile_b=256):
    """v = C4(MergedModel(s1, s2)); fused single-kernel, batch-tiled implementation."""
    B = s1.shape[0]
    D = s1.shape[1] + s2.shape[1]
    W = packed["S"].shape[1]
    assert packed["emb_w1"].shape[0] == D, "packed params do not match input dims"

    TB = max(8, min(_round_up(tile_b, 8), _round_up(B, 8)))
    B_pad = _round_up(B, TB)
    num_tiles = B_pad // TB

    s_in = jnp.concatenate([s1.astype(F32), s2.astype(F32)], axis=1)
    if B_pad != B:
        s_in = jnp.pad(s_in, ((0, B_pad - B), (0, 0)))

    names = tuple(packed.keys())
    leaves = [packed[k] for k in names]

    def full_spec(a):
        zeros = (0,) * a.ndim
        return pl.BlockSpec(a.shape, lambda b: zeros)

    kernel = functools.partial(_critic_kernel, names=names)

    # ---- advisory cost estimate + VMEM budgeting ----
    num_enc = packed["enc_wqkv"].shape[0]
    num_dec = packed["dec_wq"].shape[0]
    HID = packed["emb_w1"].shape[1]
    weight_bytes = sum(int(a.size) * a.dtype.itemsize for a in leaves)
    macs = (D * HID + HID * 4 * W + D * 4 * W
            + num_enc * 3 * (3 * W * W + W * W + 4 * W * W)
            + num_dec * (2 * W * W + 3 * 2 * W * W + 2 * W * W)
            + 3 * W * W + W)
    cost = pl.CostEstimate(
        flops=int(2 * B_pad * macs),
        transcendentals=int(B_pad * (num_enc * 3 * 3 * 8 + num_dec * 2 * 3 * 4)),
        bytes_accessed=int(weight_bytes + s_in.size * 4 + B_pad * 4))

    cp_kwargs = dict(dimension_semantics=("parallel",))
    # Rough per-tile live activation footprint (f32).
    act_bytes = 4 * TB * (9 * W + 6 * W + 8 * W + HID + D)
    need = 2 * weight_bytes + 4 * act_bytes + 2 * TB * D * 4 + (1 << 20)
    if need > (14 << 20):
        # Raise scoped VMEM only when the real footprint needs it; stay under v7x's 64 MiB.
        cp_kwargs["vmem_limit_bytes"] = int(min(need, 56 << 20))

    out = pl.pallas_call(
        kernel,
        out_shape=jax.ShapeDtypeStruct((num_tiles, 1, TB), jnp.float32),
        grid=(num_tiles,),
        in_specs=[pl.BlockSpec((TB, D), lambda b: (b, 0))] + [full_spec(a) for a in leaves],
        out_specs=pl.BlockSpec((None, 1, TB), lambda b: (b, 0, 0)),
        compiler_params=pltpu.CompilerParams(**cp_kwargs),
        cost_estimate=cost,
    )(s_in, *leaves)
    return out.reshape(B_pad, 1)[:B]


# ----------------------------------------------------------------------------
# Module-like parameter init (mirrors the PyTorch __init__ shapes)
# ----------------------------------------------------------------------------
def init_params(key, s1_dim, s2_dim, W, num_enc=4, num_dec=2):
    keys = iter(jax.random.split(key, 256))

    def lin(fin, fout):
        w = jax.random.normal(next(keys), (fin, fout), F32) * (1.0 / math.sqrt(fin))
        b = jax.random.normal(next(keys), (fout,), F32) * 0.1
        return w, b

    def emb(fin, fout, hidden):
        p = {}
        p["w1"], p["b1"] = lin(fin, hidden)
        p["w2"], p["b2"] = lin(hidden, fout)
        p["wr"], p["br"] = lin(fin, fout)
        return p

    def enc_layer():
        p = {}
        for nme in ("q", "k", "v", "o"):
            p["w" + nme], p["b" + nme] = lin(W, W)
        p["w1"], p["b1"] = lin(W, 2 * W)          # dim_feedforward = 2 * net_width
        p["w2"], p["b2"] = lin(2 * W, W)
        for ln in ("ln1", "ln2"):
            p[ln + "_g"] = jnp.ones((W,), F32)
            p[ln + "_b"] = jnp.zeros((W,), F32)
        return p

    def mab_layer():
        p = {}
        for nme in ("q", "k", "v", "o"):
            p["w" + nme], p["b" + nme] = lin(W, W)
        for ln in ("ln0", "ln1"):
            p[ln + "_g"] = jnp.ones((W,), F32)
            p[ln + "_b"] = jnp.zeros((W,), F32)
        return p

    params = {
        "eb1": emb(s1_dim, W, 64),
        "eb2": emb(s2_dim - 4, W, 64),
        "eb3": emb(4, W, 64),
        "S": jax.random.normal(next(keys), (1, 1, W), F32) * (1.0 / math.sqrt(W)),
        "encoder": [enc_layer() for _ in range(num_enc)],
        "eb": emb(s1_dim + 2, W, 128),
        "decoder": [mab_layer() for _ in range(num_dec)],
    }
    fm = {}
    fm["w1"], fm["b1"] = lin(2 * W, W)            # 2 query tokens flattened -> net_width
    fm["w2"], fm["b2"] = lin(W, W)
    params["fc_module"] = fm
    params["C4_w"], params["C4_b"] = lin(W, 1)
    return params


# ----------------------------------------------------------------------------
# Kernel-friendly packing: fuse the 4 Embedding_Res modules into block weights,
# pack QKV / KV, fold softmax scales into the head indicator matrices,
# stack per-layer weights, and reshape biases to (1, N) rows.
# ----------------------------------------------------------------------------
def _head_matrices(W, H, scale):
    head_of_lane = jnp.arange(W, dtype=jnp.int32) // (W // H)
    ind = (head_of_lane[:, None] == jnp.arange(H, dtype=jnp.int32)[None, :]).astype(F32)
    return ind * jnp.asarray(scale, F32), ind.T       # hsum (W, H), hexp (H, W)


def pack_params(params):
    W = params["S"].shape[-1]
    assert W % 8 == 0, "net_width must be divisible by the 8 encoder heads"
    s1_dim = params["eb1"]["w1"].shape[0]
    s2_dim = params["eb2"]["w1"].shape[0] + 4
    D = s1_dim + s2_dim
    e1, e2, e3, eq = params["eb1"], params["eb2"], params["eb3"], params["eb"]
    h1, h2, h3, hq = (e1["w1"].shape[1], e2["w1"].shape[1], e3["w1"].shape[1], eq["w1"].shape[1])
    HID = h1 + h2 + h3 + hq
    row = lambda v: v.reshape(1, -1)

    pk = {}

    # ---- fused Embedding_Res block weights (tok0=eb1(s1), tok1=eb2(s2[:-4]),
    #      tok2=eb3(s2[-4:]), query=eb([s1 | s2[-3:-1]])) ----
    r_s1 = (0, s1_dim)
    r_s2a = (s1_dim, s1_dim + s2_dim - 4)
    r_s2b = (s1_dim + s2_dim - 4, D)
    r_cor = (s1_dim + s2_dim - 3, s1_dim + s2_dim - 1)
    c1, c2, c3, cq = (0, h1), (h1, h1 + h2), (h1 + h2, h1 + h2 + h3), (h1 + h2 + h3, HID)
    o0, o1, o2, oq = (0, W), (W, 2 * W), (2 * W, 3 * W), (3 * W, 4 * W)

    def put(mat, rr, cc, val):
        return mat.at[rr[0]:rr[1], cc[0]:cc[1]].set(val)

    w1 = jnp.zeros((D, HID), F32)
    w1 = put(w1, r_s1, c1, e1["w1"]); w1 = put(w1, r_s2a, c2, e2["w1"])
    w1 = put(w1, r_s2b, c3, e3["w1"])
    w1 = put(w1, r_s1, cq, eq["w1"][:s1_dim]); w1 = put(w1, r_cor, cq, eq["w1"][s1_dim:])
    pk["emb_w1"] = w1
    pk["emb_b1"] = row(jnp.concatenate([e1["b1"], e2["b1"], e3["b1"], eq["b1"]]))

    w2 = jnp.zeros((HID, 4 * W), F32)
    w2 = put(w2, c1, o0, e1["w2"]); w2 = put(w2, c2, o1, e2["w2"])
    w2 = put(w2, c3, o2, e3["w2"]); w2 = put(w2, cq, oq, eq["w2"])
    pk["emb_w2"] = w2

    wr = jnp.zeros((D, 4 * W), F32)
    wr = put(wr, r_s1, o0, e1["wr"]); wr = put(wr, r_s2a, o1, e2["wr"])
    wr = put(wr, r_s2b, o2, e3["wr"])
    wr = put(wr, r_s1, oq, eq["wr"][:s1_dim]); wr = put(wr, r_cor, oq, eq["wr"][s1_dim:])
    pk["emb_wr"] = wr
    pk["emb_b2"] = row(jnp.concatenate([e1["b2"] + e1["br"], e2["b2"] + e2["br"],
                                        e3["b2"] + e3["br"], eq["b2"] + eq["br"]]))

    pk["S"] = params["S"].reshape(1, W)

    # ---- encoder layers: packed QKV, stacked along a leading layer axis ----
    stk = lambda fn: jnp.stack([fn(lp) for lp in params["encoder"]], axis=0)
    pk["enc_wqkv"] = stk(lambda lp: jnp.concatenate([lp["wq"], lp["wk"], lp["wv"]], axis=1))
    pk["enc_bqkv"] = stk(lambda lp: jnp.concatenate([lp["bq"], lp["bk"], lp["bv"]]).reshape(1, -1))
    pk["enc_wo"] = stk(lambda lp: lp["wo"]); pk["enc_bo"] = stk(lambda lp: row(lp["bo"]))
    pk["enc_w1"] = stk(lambda lp: lp["w1"]); pk["enc_b1"] = stk(lambda lp: row(lp["b1"]))
    pk["enc_w2"] = stk(lambda lp: lp["w2"]); pk["enc_b2"] = stk(lambda lp: row(lp["b2"]))
    pk["enc_ln1g"] = stk(lambda lp: row(lp["ln1_g"])); pk["enc_ln1b"] = stk(lambda lp: row(lp["ln1_b"]))
    pk["enc_ln2g"] = stk(lambda lp: row(lp["ln2_g"])); pk["enc_ln2b"] = stk(lambda lp: row(lp["ln2_b"]))

    # ---- decoder MABs: packed K/V ----
    dst = lambda fn: jnp.stack([fn(lp) for lp in params["decoder"]], axis=0)
    pk["dec_wq"] = dst(lambda lp: lp["wq"]); pk["dec_bq"] = dst(lambda lp: row(lp["bq"]))
    pk["dec_wkv"] = dst(lambda lp: jnp.concatenate([lp["wk"], lp["wv"]], axis=1))
    pk["dec_bkv"] = dst(lambda lp: jnp.concatenate([lp["bk"], lp["bv"]]).reshape(1, -1))
    pk["dec_wo"] = dst(lambda lp: lp["wo"]); pk["dec_bo"] = dst(lambda lp: row(lp["bo"]))
    pk["dec_ln0g"] = dst(lambda lp: row(lp["ln0_g"])); pk["dec_ln0b"] = dst(lambda lp: row(lp["ln0_b"]))
    pk["dec_ln1g"] = dst(lambda lp: row(lp["ln1_g"])); pk["dec_ln1b"] = dst(lambda lp: row(lp["ln1_b"]))

    # ---- head split/merge indicator matrices (softmax scale folded into *_hsum) ----
    pk["enc_hsum"], pk["enc_hexp"] = _head_matrices(W, 8, 1.0 / math.sqrt(W // 8))
    pk["dec_hsum"], pk["dec_hexp"] = _head_matrices(W, 4, 1.0 / math.sqrt(W))

    # ---- FcModule (fc1 pre-split per query token) + C4 (stored as a lane row) ----
    fm = params["fc_module"]
    pk["fc1_wa"] = fm["w1"][:W]; pk["fc1_wb"] = fm["w1"][W:]; pk["fc1_b"] = row(fm["b1"])
    pk["fc2_w"] = fm["w2"]; pk["fc2_b"] = row(fm["b2"])
    pk["c4_wr"] = params["C4_w"].reshape(1, W)
    pk["c4_b"] = params["C4_b"].reshape(1, 1)
    return pk


# ----------------------------------------------------------------------------
# Pure-JAX reference (same assumed module structure) for a sanity check
# ----------------------------------------------------------------------------
def _ref_ln(x, g, b):
    mu = jnp.mean(x, -1, keepdims=True)
    var = jnp.mean((x - mu) ** 2, -1, keepdims=True)
    return (x - mu) / jnp.sqrt(var + LN_EPS) * g + b


def _ref_emb(x, p):
    h = jax.nn.relu(x @ p["w1"] + p["b1"])
    return (h @ p["w2"] + p["b2"] + x @ p["wr"] + p["br"])[:, None, :]


def _ref_mha(q, k, v, nheads, scale):
    Dh = q.shape[-1] // nheads
    outs = []
    for h in range(nheads):
        sl = slice(h * Dh, (h + 1) * Dh)
        s = jnp.einsum("bqd,bkd->bqk", q[..., sl], k[..., sl]) * scale
        outs.append(jnp.einsum("bqk,bkd->bqd", jax.nn.softmax(s, axis=-1), v[..., sl]))
    return jnp.concatenate(outs, axis=-1)


def critic_forward_ref(params, s1, s2):
    B = s1.shape[0]
    W = params["S"].shape[-1]
    x = jnp.concatenate([_ref_emb(s1, params["eb1"]),
                         _ref_emb(s2[:, :-4], params["eb2"]),
                         _ref_emb(s2[:, -4:], params["eb3"])], axis=1)
    c = s2[:, -3:-1]
    for p in params["encoder"]:
        q = x @ p["wq"] + p["bq"]; k = x @ p["wk"] + p["bk"]; v = x @ p["wv"] + p["bv"]
        a = _ref_mha(q, k, v, 8, 1.0 / math.sqrt(W // 8)) @ p["wo"] + p["bo"]
        x = _ref_ln(x + a, p["ln1_g"], p["ln1_b"])
        ff = jax.nn.relu(x @ p["w1"] + p["b1"]) @ p["w2"] + p["b2"]
        x = _ref_ln(x + ff, p["ln2_g"], p["ln2_b"])
    state = jnp.concatenate([s1, c], axis=1)
    query = jnp.concatenate([jnp.broadcast_to(params["S"], (B, 1, W)),
                             _ref_emb(state, params["eb"])], axis=1)
    for p in params["decoder"]:
        Q = query @ p["wq"] + p["bq"]
        K = x @ p["wk"] + p["bk"]; V = x @ p["wv"] + p["bv"]
        A = _ref_mha(Q, K, V, 4, 1.0 / math.sqrt(W))
        O = _ref_ln(Q + A, p["ln0_g"], p["ln0_b"])
        O = O + jax.nn.relu(O @ p["wo"] + p["bo"])
        query = _ref_ln(O, p["ln1_g"], p["ln1_b"])
    x7 = query.reshape(B, -1)
    fm = params["fc_module"]
    x8 = jax.nn.relu(jax.nn.relu(x7 @ fm["w1"] + fm["b1"]) @ fm["w2"] + fm["b2"])
    return x8 @ params["C4_w"] + params["C4_b"]


# ----------------------------------------------------------------------------
if __name__ == "__main__":
    B, s1_dim, s2_dim, W = 2, 8, 10, 32
    key = jax.random.PRNGKey(0)
    kp, k1, k2 = jax.random.split(key, 3)

    params = init_params(kp, s1_dim, s2_dim, W)
    packed = pack_params(params)
    s1 = jax.random.normal(k1, (B, s1_dim), F32)
    s2 = jax.random.normal(k2, (B, s2_dim), F32)

    v = jax.jit(critic_forward)(packed, s1, s2)
    jax.block_until_ready(v)
    assert v.shape == (B, 1) and v.dtype == jnp.float32

    # Sanity check: fused kernel vs. pure-JAX reference of the same module.
    with jax.default_matmul_precision("highest"):
        v_ref = jax.jit(critic_forward_ref)(params, s1, s2)
    err = float(jnp.max(jnp.abs(v - v_ref)))
    assert err < 5e-2, f"fused kernel mismatch vs reference: max abs err={err}"

    print("KERNEL_OK")
</pallas_src>

<mosaic_0001>
module attributes {stable_mosaic.version = 11 : i64} {
  func.func @_critic_kernel(%arg0: i32, %arg1: memref<8x18xf32, #tpu.memory_space<vmem>>, %arg2: memref<1x32xf32, #tpu.memory_space<vmem>>, %arg3: memref<1x1xf32, #tpu.memory_space<vmem>>, %arg4: memref<1x32xf32, #tpu.memory_space<vmem>>, %arg5: memref<2x1x64xf32, #tpu.memory_space<vmem>>, %arg6: memref<2x1x32xf32, #tpu.memory_space<vmem>>, %arg7: memref<2x1x32xf32, #tpu.memory_space<vmem>>, %arg8: memref<4x32xf32, #tpu.memory_space<vmem>>, %arg9: memref<32x4xf32, #tpu.memory_space<vmem>>, %arg10: memref<2x1x32xf32, #tpu.memory_space<vmem>>, %arg11: memref<2x1x32xf32, #tpu.memory_space<vmem>>, %arg12: memref<2x1x32xf32, #tpu.memory_space<vmem>>, %arg13: memref<2x1x32xf32, #tpu.memory_space<vmem>>, %arg14: memref<2x32x64xf32, #tpu.memory_space<vmem>>, %arg15: memref<2x32x32xf32, #tpu.memory_space<vmem>>, %arg16: memref<2x32x32xf32, #tpu.memory_space<vmem>>, %arg17: memref<1x320xf32, #tpu.memory_space<vmem>>, %arg18: memref<1x128xf32, #tpu.memory_space<vmem>>, %arg19: memref<18x320xf32, #tpu.memory_space<vmem>>, %arg20: memref<320x128xf32, #tpu.memory_space<vmem>>, %arg21: memref<18x128xf32, #tpu.memory_space<vmem>>, %arg22: memref<4x1x64xf32, #tpu.memory_space<vmem>>, %arg23: memref<4x1x32xf32, #tpu.memory_space<vmem>>, %arg24: memref<4x1x32xf32, #tpu.memory_space<vmem>>, %arg25: memref<4x1x96xf32, #tpu.memory_space<vmem>>, %arg26: memref<8x32xf32, #tpu.memory_space<vmem>>, %arg27: memref<32x8xf32, #tpu.memory_space<vmem>>, %arg28: memref<4x1x32xf32, #tpu.memory_space<vmem>>, %arg29: memref<4x1x32xf32, #tpu.memory_space<vmem>>, %arg30: memref<4x1x32xf32, #tpu.memory_space<vmem>>, %arg31: memref<4x1x32xf32, #tpu.memory_space<vmem>>, %arg32: memref<4x32x64xf32, #tpu.memory_space<vmem>>, %arg33: memref<4x64x32xf32, #tpu.memory_space<vmem>>, %arg34: memref<4x32x32xf32, #tpu.memory_space<vmem>>, %arg35: memref<4x32x96xf32, #tpu.memory_space<vmem>>, %arg36: memref<1x32xf32, #tpu.memory_space<vmem>>, %arg37: memref<32x32xf32, #tpu.memory_space<vmem>>, %arg38: memref<32x32xf32, #tpu.memory_space<vmem>>, %arg39: memref<1x32xf32, #tpu.memory_space<vmem>>, %arg40: memref<32x32xf32, #tpu.memory_space<vmem>>, %arg41: memref<1x1x8xf32, #tpu.memory_space<vmem>>) attributes {dimension_semantics = [#tpu.dimension_semantics<parallel>], iteration_bounds = array<i64: 1>, scalar_prefetch = 0 : i64, scratch_operands = 0 : i64, tpu.core_type = #tpu.core_type<tc>, window_params = [{transform_indices = @transform_0, window_bounds = array<i64: 8, 18>}, {pipeline_mode = #tpu.pipeline_mode<synchronous>, transform_indices = @transform_1, window_bounds = array<i64: 1, 32>}, {pipeline_mode = #tpu.pipeline_mode<synchronous>, transform_indices = @transform_2, window_bounds = array<i64: 1, 1>}, {pipeline_mode = #tpu.pipeline_mode<synchronous>, transform_indices = @transform_3, window_bounds = array<i64: 1, 32>}, {pipeline_mode = #tpu.pipeline_mode<synchronous>, transform_indices = @transform_4, window_bounds = array<i64: 2, 1, 64>}, {pipeline_mode = #tpu.pipeline_mode<synchronous>, transform_indices = @transform_5, window_bounds = array<i64: 2, 1, 32>}, {pipeline_mode = #tpu.pipeline_mode<synchronous>, transform_indices = @transform_6, window_bounds = array<i64: 2, 1, 32>}, {pipeline_mode = #tpu.pipeline_mode<synchronous>, transform_indices = @transform_7, window_bounds = array<i64: 4, 32>}, {pipeline_mode = #tpu.pipeline_mode<synchronous>, transform_indices = @transform_8, window_bounds = array<i64: 32, 4>}, {pipeline_mode = #tpu.pipeline_mode<synchronous>, transform_indices = @transform_9, window_bounds = array<i64: 2, 1, 32>}, {pipeline_mode = #tpu.pipeline_mode<synchronous>, transform_indices = @transform_10, window_bounds = array<i64: 2, 1, 32>}, {pipeline_mode = #tpu.pipeline_mode<synchronous>, transform_indices = @transform_11, window_bounds = array<i64: 2, 1, 32>}, {pipeline_mode = #tpu.pipeline_mode<synchronous>, transform_indices = @transform_12, window_bounds = array<i64: 2, 1, 32>}, {pipeline_mode = #tpu.pipeline_mode<synchronous>, transform_indices = @transform_13, window_bounds = array<i64: 2, 32, 64>}, {pipeline_mode = #tpu.pipeline_mode<synchronous>, transform_indices = @transform_14, window_bounds = array<i64: 2, 32, 32>}, {pipeline_mode = #tpu.pipeline_mode<synchronous>, transform_indices = @transform_15, window_bounds = array<i64: 2, 32, 32>}, {pipeline_mode = #tpu.pipeline_mode<synchronous>, transform_indices = @transform_16, window_bounds = array<i64: 1, 320>}, {pipeline_mode = #tpu.pipeline_mode<synchronous>, transform_indices = @transform_17, window_bounds = array<i64: 1, 128>}, {pipeline_mode = #tpu.pipeline_mode<synchronous>, transform_indices = @transform_18, window_bounds = array<i64: 18, 320>}, {pipeline_mode = #tpu.pipeline_mode<synchronous>, transform_indices = @transform_19, window_bounds = array<i64: 320, 128>}, {pipeline_mode = #tpu.pipeline_mode<synchronous>, transform_indices = @transform_20, window_bounds = array<i64: 18, 128>}, {pipeline_mode = #tpu.pipeline_mode<synchronous>, transform_indices = @transform_21, window_bounds = array<i64: 4, 1, 64>}, {pipeline_mode = #tpu.pipeline_mode<synchronous>, transform_indices = @transform_22, window_bounds = array<i64: 4, 1, 32>}, {pipeline_mode = #tpu.pipeline_mode<synchronous>, transform_indices = @transform_23, window_bounds = array<i64: 4, 1, 32>}, {pipeline_mode = #tpu.pipeline_mode<synchronous>, transform_indices = @transform_24, window_bounds = array<i64: 4, 1, 96>}, {pipeline_mode = #tpu.pipeline_mode<synchronous>, transform_indices = @transform_25, window_bounds = array<i64: 8, 32>}, {pipeline_mode = #tpu.pipeline_mode<synchronous>, transform_indices = @transform_26, window_bounds = array<i64: 32, 8>}, {pipeline_mode = #tpu.pipeline_mode<synchronous>, transform_indices = @transform_27, window_bounds = array<i64: 4, 1, 32>}, {pipeline_mode = #tpu.pipeline_mode<synchronous>, transform_indices = @transform_28, window_bounds = array<i64: 4, 1, 32>}, {pipeline_mode = #tpu.pipeline_mode<synchronous>, transform_indices = @transform_29, window_bounds = array<i64: 4, 1, 32>}, {pipeline_mode = #tpu.pipeline_mode<synchronous>, transform_indices = @transform_30, window_bounds = array<i64: 4, 1, 32>}, {pipeline_mode = #tpu.pipeline_mode<synchronous>, transform_indices = @transform_31, window_bounds = array<i64: 4, 32, 64>}, {pipeline_mode = #tpu.pipeline_mode<synchronous>, transform_indices = @transform_32, window_bounds = array<i64: 4, 64, 32>}, {pipeline_mode = #tpu.pipeline_mode<synchronous>, transform_indices = @transform_33, window_bounds = array<i64: 4, 32, 32>}, {pipeline_mode = #tpu.pipeline_mode<synchronous>, transform_indices = @transform_34, window_bounds = array<i64: 4, 32, 96>}, {pipeline_mode = #tpu.pipeline_mode<synchronous>, transform_indices = @transform_35, window_bounds = array<i64: 1, 32>}, {pipeline_mode = #tpu.pipeline_mode<synchronous>, transform_indices = @transform_36, window_bounds = array<i64: 32, 32>}, {pipeline_mode = #tpu.pipeline_mode<synchronous>, transform_indices = @transform_37, window_bounds = array<i64: 32, 32>}, {pipeline_mode = #tpu.pipeline_mode<synchronous>, transform_indices = @transform_38, window_bounds = array<i64: 1, 32>}, {pipeline_mode = #tpu.pipeline_mode<synchronous>, transform_indices = @transform_39, window_bounds = array<i64: 32, 32>}, {transform_indices = @transform_40, window_bounds = array<i64: 1, 1, 8>}]} {
    %c0 = arith.constant 0 : index
    %c0_0 = arith.constant 0 : index
    %0 = vector.load %arg1[%c0, %c0_0] : memref<8x18xf32, #tpu.memory_space<vmem>>, vector<8x18xf32>
    %c0_1 = arith.constant 0 : index
    %c0_2 = arith.constant 0 : index
    %1 = vector.load %arg19[%c0_1, %c0_2] : memref<18x320xf32, #tpu.memory_space<vmem>>, vector<18x320xf32>
    %cst = arith.constant dense<0.000000e+00> : vector<8x320xf32>
    %2 = tpu.matmul %0, %1, %cst {dimension_numbers = #tpu.dot_dimension_numbers<[1], [0], [0], [1], [0, 0, 1, 1], [], []>} : vector<8x18xf32>, vector<18x320xf32>, vector<8x320xf32> -> vector<8x320xf32>
    %c0_3 = arith.constant 0 : index
    %c0_4 = arith.constant 0 : index
    %3 = vector.load %arg17[%c0_3, %c0_4] : memref<1x320xf32, #tpu.memory_space<vmem>>, vector<1x320xf32>
    %4 = vector.broadcast %3 : vector<1x320xf32> to vector<8x320xf32>
    %5 = arith.addf %2, %4 : vector<8x320xf32>
    %cst_5 = arith.constant 0.000000e+00 : f32
    %6 = vector.broadcast %cst_5 : f32 to vector<8x320xf32>
    %7 = arith.maximumf %5, %6 : vector<8x320xf32>
    %c0_6 = arith.constant 0 : index
    %c0_7 = arith.constant 0 : index
    %8 = vector.load %arg20[%c0_6, %c0_7] : memref<320x128xf32, #tpu.memory_space<vmem>>, vector<320x128xf32>
    %cst_8 = arith.constant dense<0.000000e+00> : vector<8x128xf32>
    %9 = tpu.matmul %7, %8, %cst_8 {dimension_numbers = #tpu.dot_dimension_numbers<[1], [0], [0], [1], [0, 0, 1, 1], [], []>} : vector<8x320xf32>, vector<320x128xf32>, vector<8x128xf32> -> vector<8x128xf32>
    %c0_9 = arith.constant 0 : index
    %c0_10 = arith.constant 0 : index
    %10 = vector.load %arg21[%c0_9, %c0_10] : memref<18x128xf32, #tpu.memory_space<vmem>>, vector<18x128xf32>
    %cst_11 = arith.constant dense<0.000000e+00> : vector<8x128xf32>
    %11 = tpu.matmul %0, %10, %cst_11 {dimension_numbers = #tpu.dot_dimension_numbers<[1], [0], [0], [1], [0, 0, 1, 1], [], []>} : vector<8x18xf32>, vector<18x128xf32>, vector<8x128xf32> -> vector<8x128xf32>
    %12 = arith.addf %9, %11 : vector<8x128xf32>
    %c0_12 = arith.constant 0 : index
    %c0_13 = arith.constant 0 : index
    %13 = vector.load %arg18[%c0_12, %c0_13] : memref<1x128xf32, #tpu.memory_space<vmem>>, vector<1x128xf32>
    %14 = vector.broadcast %13 : vector<1x128xf32> to vector<8x128xf32>
    %15 = arith.addf %12, %14 : vector<8x128xf32>
    %16 = vector.extract_strided_slice %15 {offsets = [0, 0], sizes = [8, 32], strides = [1, 1]} : vector<8x128xf32> to vector<8x32xf32>
    %17 = vector.extract_strided_slice %15 {offsets = [0, 32], sizes = [8, 32], strides = [1, 1]} : vector<8x128xf32> to vector<8x32xf32>
    %18 = vector.extract_strided_slice %15 {offsets = [0, 64], sizes = [8, 32], strides = [1, 1]} : vector<8x128xf32> to vector<8x32xf32>
    %19 = tpu.concatenate %16, %17, %18 in 0 : vector<8x32xf32>, vector<8x32xf32>, vector<8x32xf32> -> vector<24x32xf32>
    %20 = vector.extract_strided_slice %15 {offsets = [0, 96], sizes = [8, 32], strides = [1, 1]} : vector<8x128xf32> to vector<8x32xf32>
    %c0_14 = arith.constant 0 : index
    %c0_15 = arith.constant 0 : index
    %21 = vector.load %arg27[%c0_14, %c0_15] : memref<32x8xf32, #tpu.memory_space<vmem>>, vector<32x8xf32>
    %c0_16 = arith.constant 0 : index
    %c0_17 = arith.constant 0 : index
    %22 = vector.load %arg26[%c0_16, %c0_17] : memref<8x32xf32, #tpu.memory_space<vmem>>, vector<8x32xf32>
    %c0_18 = arith.constant 0 : index
    %c0_19 = arith.constant 0 : index
    %23 = vector.load %arg9[%c0_18, %c0_19] : memref<32x4xf32, #tpu.memory_space<vmem>>, vector<32x4xf32>
    %c0_20 = arith.constant 0 : index
    %c0_21 = arith.constant 0 : index
    %24 = vector.load %arg8[%c0_20, %c0_21] : memref<4x32xf32, #tpu.memory_space<vmem>>, vector<4x32xf32>
    %c0_22 = arith.constant 0 : index
    %c0_23 = arith.constant 0 : index
    %c0_24 = arith.constant 0 : index
    %25 = vector.load %arg35[%c0_22, %c0_23, %c0_24] : memref<4x32x96xf32, #tpu.memory_space<vmem>>, vector<1x32x96xf32>
    %26 = vector.shape_cast %25 : vector<1x32x96xf32> to vector<32x96xf32>
    %cst_25 = arith.constant dense<0.000000e+00> : vector<24x96xf32>
    %27 = tpu.matmul %19, %26, %cst_25 {dimension_numbers = #tpu.dot_dimension_numbers<[1], [0], [0], [1], [0, 0, 1, 1], [], []>} : vector<24x32xf32>, vector<32x96xf32>, vector<24x96xf32> -> vector<24x96xf32>
    %c0_26 = arith.constant 0 : index
    %c0_27 = arith.constant 0 : index
    %c0_28 = arith.constant 0 : index
    %28 = vector.load %arg25[%c0_26, %c0_27, %c0_28] : memref<4x1x96xf32, #tpu.memory_space<vmem>>, vector<1x1x96xf32>
    %29 = vector.shape_cast %28 : vector<1x1x96xf32> to vector<1x96xf32>
    %30 = vector.broadcast %29 : vector<1x96xf32> to vector<24x96xf32>
    %31 = arith.addf %27, %30 : vector<24x96xf32>
    %32 = vector.extract_strided_slice %31 {offsets = [0, 0], sizes = [24, 32], strides = [1, 1]} : vector<24x96xf32> to vector<24x32xf32>
    %33 = vector.extract_strided_slice %31 {offsets = [0, 32], sizes = [24, 32], strides = [1, 1]} : vector<24x96xf32> to vector<24x32xf32>
    %34 = vector.extract_strided_slice %31 {offsets = [0, 64], sizes = [24, 32], strides = [1, 1]} : vector<24x96xf32> to vector<24x32xf32>
    %35 = vector.extract_strided_slice %33 {offsets = [0, 0], sizes = [8, 32], strides = [1, 1]} : vector<24x32xf32> to vector<8x32xf32>
    %36 = tpu.concatenate %35, %35, %35 in 0 : vector<8x32xf32>, vector<8x32xf32>, vector<8x32xf32> -> vector<24x32xf32>
    %37 = arith.mulf %32, %36 : vector<24x32xf32>
    %cst_29 = arith.constant dense<0.000000e+00> : vector<24x8xf32>
    %38 = tpu.matmul %37, %21, %cst_29 {dimension_numbers = #tpu.dot_dimension_numbers<[1], [0], [0], [1], [0, 0, 1, 1], [], []>} : vector<24x32xf32>, vector<32x8xf32>, vector<24x8xf32> -> vector<24x8xf32>
    %39 = vector.extract_strided_slice %33 {offsets = [8, 0], sizes = [8, 32], strides = [1, 1]} : vector<24x32xf32> to vector<8x32xf32>
    %40 = tpu.concatenate %39, %39, %39 in 0 : vector<8x32xf32>, vector<8x32xf32>, vector<8x32xf32> -> vector<24x32xf32>
    %41 = arith.mulf %32, %40 : vector<24x32xf32>
    %cst_30 = arith.constant dense<0.000000e+00> : vector<24x8xf32>
    %42 = tpu.matmul %41, %21, %cst_30 {dimension_numbers = #tpu.dot_dimension_numbers<[1], [0], [0], [1], [0, 0, 1, 1], [], []>} : vector<24x32xf32>, vector<32x8xf32>, vector<24x8xf32> -> vector<24x8xf32>
    %43 = vector.extract_strided_slice %33 {offsets = [16, 0], sizes = [8, 32], strides = [1, 1]} : vector<24x32xf32> to vector<8x32xf32>
    %44 = tpu.concatenate %43, %43, %43 in 0 : vector<8x32xf32>, vector<8x32xf32>, vector<8x32xf32> -> vector<24x32xf32>
    %45 = arith.mulf %32, %44 : vector<24x32xf32>
    %cst_31 = arith.constant dense<0.000000e+00> : vector<24x8xf32>
    %46 = tpu.matmul %45, %21, %cst_31 {dimension_numbers = #tpu.dot_dimension_numbers<[1], [0], [0], [1], [0, 0, 1, 1], [], []>} : vector<24x32xf32>, vector<32x8xf32>, vector<24x8xf32> -> vector<24x8xf32>
    %47 = arith.maximumf %38, %42 : vector<24x8xf32>
    %48 = arith.maximumf %47, %46 : vector<24x8xf32>
    %49 = arith.subf %38, %48 : vector<24x8xf32>
    %50 = math.exp %49 : vector<24x8xf32>
    %51 = arith.subf %42, %48 : vector<24x8xf32>
    %52 = math.exp %51 : vector<24x8xf32>
    %53 = arith.subf %46, %48 : vector<24x8xf32>
    %54 = math.exp %53 : vector<24x8xf32>
    %55 = arith.addf %50, %52 : vector<24x8xf32>
    %56 = arith.addf %55, %54 : vector<24x8xf32>
    %57 = tpu.reciprocal %56 {approx = true} : vector<24x8xf32> -> vector<24x8xf32>
    %58 = vector.extract_strided_slice %34 {offsets = [0, 0], sizes = [8, 32], strides = [1, 1]} : vector<24x32xf32> to vector<8x32xf32>
    %59 = tpu.concatenate %58, %58, %58 in 0 : vector<8x32xf32>, vector<8x32xf32>, vector<8x32xf32> -> vector<24x32xf32>
    %60 = arith.mulf %50, %57 : vector<24x8xf32>
    %cst_32 = arith.constant dense<0.000000e+00> : vector<24x32xf32>
    %61 = tpu.matmul %60, %22, %cst_32 {dimension_numbers = #tpu.dot_dimension_numbers<[1], [0], [0], [1], [0, 0, 1, 1], [], []>} : vector<24x8xf32>, vector<8x32xf32>, vector<24x32xf32> -> vector<24x32xf32>
    %62 = arith.mulf %61, %59 : vector<24x32xf32>
    %63 = vector.extract_strided_slice %34 {offsets = [8, 0], sizes = [8, 32], strides = [1, 1]} : vector<24x32xf32> to vector<8x32xf32>
    %64 = tpu.concatenate %63, %63, %63 in 0 : vector<8x32xf32>, vector<8x32xf32>, vector<8x32xf32> -> vector<24x32xf32>
    %65 = arith.mulf %52, %57 : vector<24x8xf32>
    %cst_33 = arith.constant dense<0.000000e+00> : vector<24x32xf32>
    %66 = tpu.matmul %65, %22, %cst_33 {dimension_numbers = #tpu.dot_dimension_numbers<[1], [0], [0], [1], [0, 0, 1, 1], [], []>} : vector<24x8xf32>, vector<8x32xf32>, vector<24x32xf32> -> vector<24x32xf32>
    %67 = arith.mulf %66, %64 : vector<24x32xf32>
    %68 = arith.addf %62, %67 : vector<24x32xf32>
    %69 = vector.extract_strided_slice %34 {offsets = [16, 0], sizes = [8, 32], strides = [1, 1]} : vector<24x32xf32> to vector<8x32xf32>
    %70 = tpu.concatenate %69, %69, %69 in 0 : vector<8x32xf32>, vector<8x32xf32>, vector<8x32xf32> -> vector<24x32xf32>
    %71 = arith.mulf %54, %57 : vector<24x8xf32>
    %cst_34 = arith.constant dense<0.000000e+00> : vector<24x32xf32>
    %72 = tpu.matmul %71, %22, %cst_34 {dimension_numbers = #tpu.dot_dimension_numbers<[1], [0], [0], [1], [0, 0, 1, 1], [], []>} : vector<24x8xf32>, vector<8x32xf32>, vector<24x32xf32> -> vector<24x32xf32>
    %73 = arith.mulf %72, %70 : vector<24x32xf32>
    %74 = arith.addf %68, %73 : vector<24x32xf32>
    %c0_35 = arith.constant 0 : index
    %c0_36 = arith.constant 0 : index
    %c0_37 = arith.constant 0 : index
    %75 = vector.load %arg34[%c0_35, %c0_36, %c0_37] : memref<4x32x32xf32, #tpu.memory_space<vmem>>, vector<1x32x32xf32>
    %76 = vector.shape_cast %75 : vector<1x32x32xf32> to vector<32x32xf32>
    %cst_38 = arith.constant dense<0.000000e+00> : vector<24x32xf32>
    %77 = tpu.matmul %74, %76, %cst_38 {dimension_numbers = #tpu.dot_dimension_numbers<[1], [0], [0], [1], [0, 0, 1, 1], [], []>} : vector<24x32xf32>, vector<32x32xf32>, vector<24x32xf32> -> vector<24x32xf32>
    %c0_39 = arith.constant 0 : index
    %c0_40 = arith.constant 0 : index
    %c0_41 = arith.constant 0 : index
    %78 = vector.load %arg24[%c0_39, %c0_40, %c0_41] : memref<4x1x32xf32, #tpu.memory_space<vmem>>, vector<1x1x32xf32>
    %79 = vector.shape_cast %78 : vector<1x1x32xf32> to vector<1x32xf32>
    %80 = vector.broadcast %79 : vector<1x32xf32> to vector<24x32xf32>
    %81 = arith.addf %77, %80 : vector<24x32xf32>
    %82 = arith.addf %19, %81 : vector<24x32xf32>
    %c0_42 = arith.constant 0 : index
    %c0_43 = arith.constant 0 : index
    %c0_44 = arith.constant 0 : index
    %83 = vector.load %arg29[%c0_42, %c0_43, %c0_44] : memref<4x1x32xf32, #tpu.memory_space<vmem>>, vector<1x1x32xf32>
    %84 = vector.shape_cast %83 : vector<1x1x32xf32> to vector<1x32xf32>
    %c0_45 = arith.constant 0 : index
    %c0_46 = arith.constant 0 : index
    %c0_47 = arith.constant 0 : index
    %85 = vector.load %arg28[%c0_45, %c0_46, %c0_47] : memref<4x1x32xf32, #tpu.memory_space<vmem>>, vector<1x1x32xf32>
    %86 = vector.shape_cast %85 : vector<1x1x32xf32> to vector<1x32xf32>
    %cst_48 = arith.constant dense<0.000000e+00> : vector<24xf32>
    %87 = vector.multi_reduction <add>, %82, %cst_48 [1] : vector<24x32xf32> to vector<24xf32>
    %88 = vector.shape_cast %87 : vector<24xf32> to vector<24x1xf32>
    %cst_49 = arith.constant 3.200000e+01 : f32
    %89 = vector.broadcast %cst_49 : f32 to vector<24x1xf32>
    %90 = arith.divf %88, %89 : vector<24x1xf32>
    %91 = vector.broadcast %90 : vector<24x1xf32> to vector<24x32xf32>
    %92 = arith.subf %82, %91 : vector<24x32xf32>
    %93 = arith.mulf %92, %92 : vector<24x32xf32>
    %cst_50 = arith.constant dense<0.000000e+00> : vector<24xf32>
    %94 = vector.multi_reduction <add>, %93, %cst_50 [1] : vector<24x32xf32> to vector<24xf32>
    %95 = vector.shape_cast %94 : vector<24xf32> to vector<24x1xf32>
    %cst_51 = arith.constant 3.200000e+01 : f32
    %96 = vector.broadcast %cst_51 : f32 to vector<24x1xf32>
    %97 = arith.divf %95, %96 : vector<24x1xf32>
    %cst_52 = arith.constant 9.99999974E-6 : f32
    %98 = vector.broadcast %cst_52 : f32 to vector<24x1xf32>
    %99 = arith.addf %97, %98 : vector<24x1xf32>
    %100 = math.rsqrt %99 : vector<24x1xf32>
    %101 = vector.broadcast %100 : vector<24x1xf32> to vector<24x32xf32>
    %102 = arith.mulf %92, %101 : vector<24x32xf32>
    %103 = vector.broadcast %84 : vector<1x32xf32> to vector<24x32xf32>
    %104 = arith.mulf %102, %103 : vector<24x32xf32>
    %105 = vector.broadcast %86 : vector<1x32xf32> to vector<24x32xf32>
    %106 = arith.addf %104, %105 : vector<24x32xf32>
    %c0_53 = arith.constant 0 : index
    %c0_54 = arith.constant 0 : index
    %c0_55 = arith.constant 0 : index
    %107 = vector.load %arg32[%c0_53, %c0_54, %c0_55] : memref<4x32x64xf32, #tpu.memory_space<vmem>>, vector<1x32x64xf32>
    %108 = vector.shape_cast %107 : vector<1x32x64xf32> to vector<32x64xf32>
    %cst_56 = arith.constant dense<0.000000e+00> : vector<24x64xf32>
    %109 = tpu.matmul %106, %108, %cst_56 {dimension_numbers = #tpu.dot_dimension_numbers<[1], [0], [0], [1], [0, 0, 1, 1], [], []>} : vector<24x32xf32>, vector<32x64xf32>, vector<24x64xf32> -> vector<24x64xf32>
    %c0_57 = arith.constant 0 : index
    %c0_58 = arith.constant 0 : index
    %c0_59 = arith.constant 0 : index
    %110 = vector.load %arg22[%c0_57, %c0_58, %c0_59] : memref<4x1x64xf32, #tpu.memory_space<vmem>>, vector<1x1x64xf32>
    %111 = vector.shape_cast %110 : vector<1x1x64xf32> to vector<1x64xf32>
    %112 = vector.broadcast %111 : vector<1x64xf32> to vector<24x64xf32>
    %113 = arith.addf %109, %112 : vector<24x64xf32>
    %cst_60 = arith.constant 0.000000e+00 : f32
    %114 = vector.broadcast %cst_60 : f32 to vector<24x64xf32>
    %115 = arith.maximumf %113, %114 : vector<24x64xf32>
    %c0_61 = arith.constant 0 : index
    %c0_62 = arith.constant 0 : index
    %c0_63 = arith.constant 0 : index
    %116 = vector.load %arg33[%c0_61, %c0_62, %c0_63] : memref<4x64x32xf32, #tpu.memory_space<vmem>>, vector<1x64x32xf32>
    %117 = vector.shape_cast %116 : vector<1x64x32xf32> to vector<64x32xf32>
    %cst_64 = arith.constant dense<0.000000e+00> : vector<24x32xf32>
    %118 = tpu.matmul %115, %117, %cst_64 {dimension_numbers = #tpu.dot_dimension_numbers<[1], [0], [0], [1], [0, 0, 1, 1], [], []>} : vector<24x64xf32>, vector<64x32xf32>, vector<24x32xf32> -> vector<24x32xf32>
    %c0_65 = arith.constant 0 : index
    %c0_66 = arith.constant 0 : index
    %c0_67 = arith.constant 0 : index
    %119 = vector.load %arg23[%c0_65, %c0_66, %c0_67] : memref<4x1x32xf32, #tpu.memory_space<vmem>>, vector<1x1x32xf32>
    %120 = vector.shape_cast %119 : vector<1x1x32xf32> to vector<1x32xf32>
    %121 = vector.broadcast %120 : vector<1x32xf32> to vector<24x32xf32>
    %122 = arith.addf %118, %121 : vector<24x32xf32>
    %123 = arith.addf %106, %122 : vector<24x32xf32>
    %c0_68 = arith.constant 0 : index
    %c0_69 = arith.constant 0 : index
    %c0_70 = arith.constant 0 : index
    %124 = vector.load %arg31[%c0_68, %c0_69, %c0_70] : memref<4x1x32xf32, #tpu.memory_space<vmem>>, vector<1x1x32xf32>
    %125 = vector.shape_cast %124 : vector<1x1x32xf32> to vector<1x32xf32>
    %c0_71 = arith.constant 0 : index
    %c0_72 = arith.constant 0 : index
    %c0_73 = arith.constant 0 : index
    %126 = vector.load %arg30[%c0_71, %c0_72, %c0_73] : memref<4x1x32xf32, #tpu.memory_space<vmem>>, vector<1x1x32xf32>
    %127 = vector.shape_cast %126 : vector<1x1x32xf32> to vector<1x32xf32>
    %cst_74 = arith.constant dense<0.000000e+00> : vector<24xf32>
    %128 = vector.multi_reduction <add>, %123, %cst_74 [1] : vector<24x32xf32> to vector<24xf32>
    %129 = vector.shape_cast %128 : vector<24xf32> to vector<24x1xf32>
    %cst_75 = arith.constant 3.200000e+01 : f32
    %130 = vector.broadcast %cst_75 : f32 to vector<24x1xf32>
    %131 = arith.divf %129, %130 : vector<24x1xf32>
    %132 = vector.broadcast %131 : vector<24x1xf32> to vector<24x32xf32>
    %133 = arith.subf %123, %132 : vector<24x32xf32>
    %134 = arith.mulf %133, %133 : vector<24x32xf32>
    %cst_76 = arith.constant dense<0.000000e+00> : vector<24xf32>
    %135 = vector.multi_reduction <add>, %134, %cst_76 [1] : vector<24x32xf32> to vector<24xf32>
    %136 = vector.shape_cast %135 : vector<24xf32> to vector<24x1xf32>
    %cst_77 = arith.constant 3.200000e+01 : f32
    %137 = vector.broadcast %cst_77 : f32 to vector<24x1xf32>
    %138 = arith.divf %136, %137 : vector<24x1xf32>
    %cst_78 = arith.constant 9.99999974E-6 : f32
    %139 = vector.broadcast %cst_78 : f32 to vector<24x1xf32>
    %140 = arith.addf %138, %139 : vector<24x1xf32>
    %141 = math.rsqrt %140 : vector<24x1xf32>
    %142 = vector.broadcast %141 : vector<24x1xf32> to vector<24x32xf32>
    %143 = arith.mulf %133, %142 : vector<24x32xf32>
    %144 = vector.broadcast %125 : vector<1x32xf32> to vector<24x32xf32>
    %145 = arith.mulf %143, %144 : vector<24x32xf32>
    %146 = vector.broadcast %127 : vector<1x32xf32> to vector<24x32xf32>
    %147 = arith.addf %145, %146 : vector<24x32xf32>
    %c1 = arith.constant 1 : index
    %c0_79 = arith.constant 0 : index
    %c0_80 = arith.constant 0 : index
    %148 = vector.load %arg35[%c1, %c0_79, %c0_80] : memref<4x32x96xf32, #tpu.memory_space<vmem>>, vector<1x32x96xf32>
    %149 = vector.shape_cast %148 : vector<1x32x96xf32> to vector<32x96xf32>
    %cst_81 = arith.constant dense<0.000000e+00> : vector<24x96xf32>
    %150 = tpu.matmul %147, %149, %cst_81 {dimension_numbers = #tpu.dot_dimension_numbers<[1], [0], [0], [1], [0, 0, 1, 1], [], []>} : vector<24x32xf32>, vector<32x96xf32>, vector<24x96xf32> -> vector<24x96xf32>
    %c1_82 = arith.constant 1 : index
    %c0_83 = arith.constant 0 : index
    %c0_84 = arith.constant 0 : index
    %151 = vector.load %arg25[%c1_82, %c0_83, %c0_84] : memref<4x1x96xf32, #tpu.memory_space<vmem>>, vector<1x1x96xf32>
    %152 = vector.shape_cast %151 : vector<1x1x96xf32> to vector<1x96xf32>
    %153 = vector.broadcast %152 : vector<1x96xf32> to vector<24x96xf32>
    %154 = arith.addf %150, %153 : vector<24x96xf32>
    %155 = vector.extract_strided_slice %154 {offsets = [0, 0], sizes = [24, 32], strides = [1, 1]} : vector<24x96xf32> to vector<24x32xf32>
    %156 = vector.extract_strided_slice %154 {offsets = [0, 32], sizes = [24, 32], strides = [1, 1]} : vector<24x96xf32> to vector<24x32xf32>
    %157 = vector.extract_strided_slice %154 {offsets = [0, 64], sizes = [24, 32], strides = [1, 1]} : vector<24x96xf32> to vector<24x32xf32>
    %158 = vector.extract_strided_slice %156 {offsets = [0, 0], sizes = [8, 32], strides = [1, 1]} : vector<24x32xf32> to vector<8x32xf32>
    %159 = tpu.concatenate %158, %158, %158 in 0 : vector<8x32xf32>, vector<8x32xf32>, vector<8x32xf32> -> vector<24x32xf32>
    %160 = arith.mulf %155, %159 : vector<24x32xf32>
    %cst_85 = arith.constant dense<0.000000e+00> : vector<24x8xf32>
    %161 = tpu.matmul %160, %21, %cst_85 {dimension_numbers = #tpu.dot_dimension_numbers<[1], [0], [0], [1], [0, 0, 1, 1], [], []>} : vector<24x32xf32>, vector<32x8xf32>, vector<24x8xf32> -> vector<24x8xf32>
    %162 = vector.extract_strided_slice %156 {offsets = [8, 0], sizes = [8, 32], strides = [1, 1]} : vector<24x32xf32> to vector<8x32xf32>
    %163 = tpu.concatenate %162, %162, %162 in 0 : vector<8x32xf32>, vector<8x32xf32>, vector<8x32xf32> -> vector<24x32xf32>
    %164 = arith.mulf %155, %163 : vector<24x32xf32>
    %cst_86 = arith.constant dense<0.000000e+00> : vector<24x8xf32>
    %165 = tpu.matmul %164, %21, %cst_86 {dimension_numbers = #tpu.dot_dimension_numbers<[1], [0], [0], [1], [0, 0, 1, 1], [], []>} : vector<24x32xf32>, vector<32x8xf32>, vector<24x8xf32> -> vector<24x8xf32>
    %166 = vector.extract_strided_slice %156 {offsets = [16, 0], sizes = [8, 32], strides = [1, 1]} : vector<24x32xf32> to vector<8x32xf32>
    %167 = tpu.concatenate %166, %166, %166 in 0 : vector<8x32xf32>, vector<8x32xf32>, vector<8x32xf32> -> vector<24x32xf32>
    %168 = arith.mulf %155, %167 : vector<24x32xf32>
    %cst_87 = arith.constant dense<0.000000e+00> : vector<24x8xf32>
    %169 = tpu.matmul %168, %21, %cst_87 {dimension_numbers = #tpu.dot_dimension_numbers<[1], [0], [0], [1], [0, 0, 1, 1], [], []>} : vector<24x32xf32>, vector<32x8xf32>, vector<24x8xf32> -> vector<24x8xf32>
    %170 = arith.maximumf %161, %165 : vector<24x8xf32>
    %171 = arith.maximumf %170, %169 : vector<24x8xf32>
    %172 = arith.subf %161, %171 : vector<24x8xf32>
    %173 = math.exp %172 : vector<24x8xf32>
    %174 = arith.subf %165, %171 : vector<24x8xf32>
    %175 = math.exp %174 : vector<24x8xf32>
    %176 = arith.subf %169, %171 : vector<24x8xf32>
    %177 = math.exp %176 : vector<24x8xf32>
    %178 = arith.addf %173, %175 : vector<24x8xf32>
    %179 = arith.addf %178, %177 : vector<24x8xf32>
    %180 = tpu.reciprocal %179 {approx = true} : vector<24x8xf32> -> vector<24x8xf32>
    %181 = vector.extract_strided_slice %157 {offsets = [0, 0], sizes = [8, 32], strides = [1, 1]} : vector<24x32xf32> to vector<8x32xf32>
    %182 = tpu.concatenate %181, %181, %181 in 0 : vector<8x32xf32>, vector<8x32xf32>, vector<8x32xf32> -> vector<24x32xf32>
    %183 = arith.mulf %173, %180 : vector<24x8xf32>
    %cst_88 = arith.constant dense<0.000000e+00> : vector<24x32xf32>
    %184 = tpu.matmul %183, %22, %cst_88 {dimension_numbers = #tpu.dot_dimension_numbers<[1], [0], [0], [1], [0, 0, 1, 1], [], []>} : vector<24x8xf32>, vector<8x32xf32>, vector<24x32xf32> -> vector<24x32xf32>
    %185 = arith.mulf %184, %182 : vector<24x32xf32>
    %186 = vector.extract_strided_slice %157 {offsets = [8, 0], sizes = [8, 32], strides = [1, 1]} : vector<24x32xf32> to vector<8x32xf32>
    %187 = tpu.concatenate %186, %186, %186 in 0 : vector<8x32xf32>, vector<8x32xf32>, vector<8x32xf32> -> vector<24x32xf32>
    %188 = arith.mulf %175, %180 : vector<24x8xf32>
    %cst_89 = arith.constant dense<0.000000e+00> : vector<24x32xf32>
    %189 = tpu.matmul %188, %22, %cst_89 {dimension_numbers = #tpu.dot_dimension_numbers<[1], [0], [0], [1], [0, 0, 1, 1], [], []>} : vector<24x8xf32>, vector<8x32xf32>, vector<24x32xf32> -> vector<24x32xf32>
    %190 = arith.mulf %189, %187 : vector<24x32xf32>
    %191 = arith.addf %185, %190 : vector<24x32xf32>
    %192 = vector.extract_strided_slice %157 {offsets = [16, 0], sizes = [8, 32], strides = [1, 1]} : vector<24x32xf32> to vector<8x32xf32>
    %193 = tpu.concatenate %192, %192, %192 in 0 : vector<8x32xf32>, vector<8x32xf32>, vector<8x32xf32> -> vector<24x32xf32>
    %194 = arith.mulf %177, %180 : vector<24x8xf32>
    %cst_90 = arith.constant dense<0.000000e+00> : vector<24x32xf32>
    %195 = tpu.matmul %194, %22, %cst_90 {dimension_numbers = #tpu.dot_dimension_numbers<[1], [0], [0], [1], [0, 0, 1, 1], [], []>} : vector<24x8xf32>, vector<8x32xf32>, vector<24x32xf32> -> vector<24x32xf32>
    %196 = arith.mulf %195, %193 : vector<24x32xf32>
    %197 = arith.addf %191, %196 : vector<24x32xf32>
    %c1_91 = arith.constant 1 : index
    %c0_92 = arith.constant 0 : index
    %c0_93 = arith.constant 0 : index
    %198 = vector.load %arg34[%c1_91, %c0_92, %c0_93] : memref<4x32x32xf32, #tpu.memory_space<vmem>>, vector<1x32x32xf32>
    %199 = vector.shape_cast %198 : vector<1x32x32xf32> to vector<32x32xf32>
    %cst_94 = arith.constant dense<0.000000e+00> : vector<24x32xf32>
    %200 = tpu.matmul %197, %199, %cst_94 {dimension_numbers = #tpu.dot_dimension_numbers<[1], [0], [0], [1], [0, 0, 1, 1], [], []>} : vector<24x32xf32>, vector<32x32xf32>, vector<24x32xf32> -> vector<24x32xf32>
    %c1_95 = arith.constant 1 : index
    %c0_96 = arith.constant 0 : index
    %c0_97 = arith.constant 0 : index
    %201 = vector.load %arg24[%c1_95, %c0_96, %c0_97] : memref<4x1x32xf32, #tpu.memory_space<vmem>>, vector<1x1x32xf32>
    %202 = vector.shape_cast %201 : vector<1x1x32xf32> to vector<1x32xf32>
    %203 = vector.broadcast %202 : vector<1x32xf32> to vector<24x32xf32>
    %204 = arith.addf %200, %203 : vector<24x32xf32>
    %205 = arith.addf %147, %204 : vector<24x32xf32>
    %c1_98 = arith.constant 1 : index
    %c0_99 = arith.constant 0 : index
    %c0_100 = arith.constant 0 : index
    %206 = vector.load %arg29[%c1_98, %c0_99, %c0_100] : memref<4x1x32xf32, #tpu.memory_space<vmem>>, vector<1x1x32xf32>
    %207 = vector.shape_cast %206 : vector<1x1x32xf32> to vector<1x32xf32>
    %c1_101 = arith.constant 1 : index
    %c0_102 = arith.constant 0 : index
    %c0_103 = arith.constant 0 : index
    %208 = vector.load %arg28[%c1_101, %c0_102, %c0_103] : memref<4x1x32xf32, #tpu.memory_space<vmem>>, vector<1x1x32xf32>
    %209 = vector.shape_cast %208 : vector<1x1x32xf32> to vector<1x32xf32>
    %cst_104 = arith.constant dense<0.000000e+00> : vector<24xf32>
    %210 = vector.multi_reduction <add>, %205, %cst_104 [1] : vector<24x32xf32> to vector<24xf32>
    %211 = vector.shape_cast %210 : vector<24xf32> to vector<24x1xf32>
    %cst_105 = arith.constant 3.200000e+01 : f32
    %212 = vector.broadcast %cst_105 : f32 to vector<24x1xf32>
    %213 = arith.divf %211, %212 : vector<24x1xf32>
    %214 = vector.broadcast %213 : vector<24x1xf32> to vector<24x32xf32>
    %215 = arith.subf %205, %214 : vector<24x32xf32>
    %216 = arith.mulf %215, %215 : vector<24x32xf32>
    %cst_106 = arith.constant dense<0.000000e+00> : vector<24xf32>
    %217 = vector.multi_reduction <add>, %216, %cst_106 [1] : vector<24x32xf32> to vector<24xf32>
    %218 = vector.shape_cast %217 : vector<24xf32> to vector<24x1xf32>
    %cst_107 = arith.constant 3.200000e+01 : f32
    %219 = vector.broadcast %cst_107 : f32 to vector<24x1xf32>
    %220 = arith.divf %218, %219 : vector<24x1xf32>
    %cst_108 = arith.constant 9.99999974E-6 : f32
    %221 = vector.broadcast %cst_108 : f32 to vector<24x1xf32>
    %222 = arith.addf %220, %221 : vector<24x1xf32>
    %223 = math.rsqrt %222 : vector<24x1xf32>
    %224 = vector.broadcast %223 : vector<24x1xf32> to vector<24x32xf32>
    %225 = arith.mulf %215, %224 : vector<24x32xf32>
    %226 = vector.broadcast %207 : vector<1x32xf32> to vector<24x32xf32>
    %227 = arith.mulf %225, %226 : vector<24x32xf32>
    %228 = vector.broadcast %209 : vector<1x32xf32> to vector<24x32xf32>
    %229 = arith.addf %227, %228 : vector<24x32xf32>
    %c1_109 = arith.constant 1 : index
    %c0_110 = arith.constant 0 : index
    %c0_111 = arith.constant 0 : index
    %230 = vector.load %arg32[%c1_109, %c0_110, %c0_111] : memref<4x32x64xf32, #tpu.memory_space<vmem>>, vector<1x32x64xf32>
    %231 = vector.shape_cast %230 : vector<1x32x64xf32> to vector<32x64xf32>
    %cst_112 = arith.constant dense<0.000000e+00> : vector<24x64xf32>
    %232 = tpu.matmul %229, %231, %cst_112 {dimension_numbers = #tpu.dot_dimension_numbers<[1], [0], [0], [1], [0, 0, 1, 1], [], []>} : vector<24x32xf32>, vector<32x64xf32>, vector<24x64xf32> -> vector<24x64xf32>
    %c1_113 = arith.constant 1 : index
    %c0_114 = arith.constant 0 : index
    %c0_115 = arith.constant 0 : index
    %233 = vector.load %arg22[%c1_113, %c0_114, %c0_115] : memref<4x1x64xf32, #tpu.memory_space<vmem>>, vector<1x1x64xf32>
    %234 = vector.shape_cast %233 : vector<1x1x64xf32> to vector<1x64xf32>
    %235 = vector.broadcast %234 : vector<1x64xf32> to vector<24x64xf32>
    %236 = arith.addf %232, %235 : vector<24x64xf32>
    %cst_116 = arith.constant 0.000000e+00 : f32
    %237 = vector.broadcast %cst_116 : f32 to vector<24x64xf32>
    %238 = arith.maximumf %236, %237 : vector<24x64xf32>
    %c1_117 = arith.constant 1 : index
    %c0_118 = arith.constant 0 : index
    %c0_119 = arith.constant 0 : index
    %239 = vector.load %arg33[%c1_117, %c0_118, %c0_119] : memref<4x64x32xf32, #tpu.memory_space<vmem>>, vector<1x64x32xf32>
    %240 = vector.shape_cast %239 : vector<1x64x32xf32> to vector<64x32xf32>
    %cst_120 = arith.constant dense<0.000000e+00> : vector<24x32xf32>
    %241 = tpu.matmul %238, %240, %cst_120 {dimension_numbers = #tpu.dot_dimension_numbers<[1], [0], [0], [1], [0, 0, 1, 1], [], []>} : vector<24x64xf32>, vector<64x32xf32>, vector<24x32xf32> -> vector<24x32xf32>
    %c1_121 = arith.constant 1 : index
    %c0_122 = arith.constant 0 : index
    %c0_123 = arith.constant 0 : index
    %242 = vector.load %arg23[%c1_121, %c0_122, %c0_123] : memref<4x1x32xf32, #tpu.memory_space<vmem>>, vector<1x1x32xf32>
    %243 = vector.shape_cast %242 : vector<1x1x32xf32> to vector<1x32xf32>
    %244 = vector.broadcast %243 : vector<1x32xf32> to vector<24x32xf32>
    %245 = arith.addf %241, %244 : vector<24x32xf32>
    %246 = arith.addf %229, %245 : vector<24x32xf32>
    %c1_124 = arith.constant 1 : index
    %c0_125 = arith.constant 0 : index
    %c0_126 = arith.constant 0 : index
    %247 = vector.load %arg31[%c1_124, %c0_125, %c0_126] : memref<4x1x32xf32, #tpu.memory_space<vmem>>, vector<1x1x32xf32>
    %248 = vector.shape_cast %247 : vector<1x1x32xf32> to vector<1x32xf32>
    %c1_127 = arith.constant 1 : index
    %c0_128 = arith.constant 0 : index
    %c0_129 = arith.constant 0 : index
    %249 = vector.load %arg30[%c1_127, %c0_128, %c0_129] : memref<4x1x32xf32, #tpu.memory_space<vmem>>, vector<1x1x32xf32>
    %250 = vector.shape_cast %249 : vector<1x1x32xf32> to vector<1x32xf32>
    %cst_130 = arith.constant dense<0.000000e+00> : vector<24xf32>
    %251 = vector.multi_reduction <add>, %246, %cst_130 [1] : vector<24x32xf32> to vector<24xf32>
    %252 = vector.shape_cast %251 : vector<24xf32> to vector<24x1xf32>
    %cst_131 = arith.constant 3.200000e+01 : f32
    %253 = vector.broadcast %cst_131 : f32 to vector<24x1xf32>
    %254 = arith.divf %252, %253 : vector<24x1xf32>
    %255 = vector.broadcast %254 : vector<24x1xf32> to vector<24x32xf32>
    %256 = arith.subf %246, %255 : vector<24x32xf32>
    %257 = arith.mulf %256, %256 : vector<24x32xf32>
    %cst_132 = arith.constant dense<0.000000e+00> : vector<24xf32>
    %258 = vector.multi_reduction <add>, %257, %cst_132 [1] : vector<24x32xf32> to vector<24xf32>
    %259 = vector.shape_cast %258 : vector<24xf32> to vector<24x1xf32>
    %cst_133 = arith.constant 3.200000e+01 : f32
    %260 = vector.broadcast %cst_133 : f32 to vector<24x1xf32>
    %261 = arith.divf %259, %260 : vector<24x1xf32>
    %cst_134 = arith.constant 9.99999974E-6 : f32
    %262 = vector.broadcast %cst_134 : f32 to vector<24x1xf32>
    %263 = arith.addf %261, %262 : vector<24x1xf32>
    %264 = math.rsqrt %263 : vector<24x1xf32>
    %265 = vector.broadcast %264 : vector<24x1xf32> to vector<24x32xf32>
    %266 = arith.mulf %256, %265 : vector<24x32xf32>
    %267 = vector.broadcast %248 : vector<1x32xf32> to vector<24x32xf32>
    %268 = arith.mulf %266, %267 : vector<24x32xf32>
    %269 = vector.broadcast %250 : vector<1x32xf32> to vector<24x32xf32>
    %270 = arith.addf %268, %269 : vector<24x32xf32>
    %c2 = arith.constant 2 : index
    %c0_135 = arith.constant 0 : index
    %c0_136 = arith.constant 0 : index
    %271 = vector.load %arg35[%c2, %c0_135, %c0_136] : memref<4x32x96xf32, #tpu.memory_space<vmem>>, vector<1x32x96xf32>
    %272 = vector.shape_cast %271 : vector<1x32x96xf32> to vector<32x96xf32>
    %cst_137 = arith.constant dense<0.000000e+00> : vector<24x96xf32>
    %273 = tpu.matmul %270, %272, %cst_137 {dimension_numbers = #tpu.dot_dimension_numbers<[1], [0], [0], [1], [0, 0, 1, 1], [], []>} : vector<24x32xf32>, vector<32x96xf32>, vector<24x96xf32> -> vector<24x96xf32>
    %c2_138 = arith.constant 2 : index
    %c0_139 = arith.constant 0 : index
    %c0_140 = arith.constant 0 : index
    %274 = vector.load %arg25[%c2_138, %c0_139, %c0_140] : memref<4x1x96xf32, #tpu.memory_space<vmem>>, vector<1x1x96xf32>
    %275 = vector.shape_cast %274 : vector<1x1x96xf32> to vector<1x96xf32>
    %276 = vector.broadcast %275 : vector<1x96xf32> to vector<24x96xf32>
    %277 = arith.addf %273, %276 : vector<24x96xf32>
    %278 = vector.extract_strided_slice %277 {offsets = [0, 0], sizes = [24, 32], strides = [1, 1]} : vector<24x96xf32> to vector<24x32xf32>
    %279 = vector.extract_strided_slice %277 {offsets = [0, 32], sizes = [24, 32], strides = [1, 1]} : vector<24x96xf32> to vector<24x32xf32>
    %280 = vector.extract_strided_slice %277 {offsets = [0, 64], sizes = [24, 32], strides = [1, 1]} : vector<24x96xf32> to vector<24x32xf32>
    %281 = vector.extract_strided_slice %279 {offsets = [0, 0], sizes = [8, 32], strides = [1, 1]} : vector<24x32xf32> to vector<8x32xf32>
    %282 = tpu.concatenate %281, %281, %281 in 0 : vector<8x32xf32>, vector<8x32xf32>, vector<8x32xf32> -> vector<24x32xf32>
    %283 = arith.mulf %278, %282 : vector<24x32xf32>
    %cst_141 = arith.constant dense<0.000000e+00> : vector<24x8xf32>
    %284 = tpu.matmul %283, %21, %cst_141 {dimension_numbers = #tpu.dot_dimension_numbers<[1], [0], [0], [1], [0, 0, 1, 1], [], []>} : vector<24x32xf32>, vector<32x8xf32>, vector<24x8xf32> -> vector<24x8xf32>
    %285 = vector.extract_strided_slice %279 {offsets = [8, 0], sizes = [8, 32], strides = [1, 1]} : vector<24x32xf32> to vector<8x32xf32>
    %286 = tpu.concatenate %285, %285, %285 in 0 : vector<8x32xf32>, vector<8x32xf32>, vector<8x32xf32> -> vector<24x32xf32>
    %287 = arith.mulf %278, %286 : vector<24x32xf32>
    %cst_142 = arith.constant dense<0.000000e+00> : vector<24x8xf32>
    %288 = tpu.matmul %287, %21, %cst_142 {dimension_numbers = #tpu.dot_dimension_numbers<[1], [0], [0], [1], [0, 0, 1, 1], [], []>} : vector<24x32xf32>, vector<32x8xf32>, vector<24x8xf32> -> vector<24x8xf32>
    %289 = vector.extract_strided_slice %279 {offsets = [16, 0], sizes = [8, 32], strides = [1, 1]} : vector<24x32xf32> to vector<8x32xf32>
    %290 = tpu.concatenate %289, %289, %289 in 0 : vector<8x32xf32>, vector<8x32xf32>, vector<8x32xf32> -> vector<24x32xf32>
    %291 = arith.mulf %278, %290 : vector<24x32xf32>
    %cst_143 = arith.constant dense<0.000000e+00> : vector<24x8xf32>
    %292 = tpu.matmul %291, %21, %cst_143 {dimension_numbers = #tpu.dot_dimension_numbers<[1], [0], [0], [1], [0, 0, 1, 1], [], []>} : vector<24x32xf32>, vector<32x8xf32>, vector<24x8xf32> -> vector<24x8xf32>
    %293 = arith.maximumf %284, %288 : vector<24x8xf32>
    %294 = arith.maximumf %293, %292 : vector<24x8xf32>
    %295 = arith.subf %284, %294 : vector<24x8xf32>
    %296 = math.exp %295 : vector<24x8xf32>
    %297 = arith.subf %288, %294 : vector<24x8xf32>
    %298 = math.exp %297 : vector<24x8xf32>
    %299 = arith.subf %292, %294 : vector<24x8xf32>
    %300 = math.exp %299 : vector<24x8xf32>
    %301 = arith.addf %296, %298 : vector<24x8xf32>
    %302 = arith.addf %301, %300 : vector<24x8xf32>
    %303 = tpu.reciprocal %302 {approx = true} : vector<24x8xf32> -> vector<24x8xf32>
    %304 = vector.extract_strided_slice %280 {offsets = [0, 0], sizes = [8, 32], strides = [1, 1]} : vector<24x32xf32> to vector<8x32xf32>
    %305 = tpu.concatenate %304, %304, %304 in 0 : vector<8x32xf32>, vector<8x32xf32>, vector<8x32xf32> -> vector<24x32xf32>
    %306 = arith.mulf %296, %303 : vector<24x8xf32>
    %cst_144 = arith.constant dense<0.000000e+00> : vector<24x32xf32>
    %307 = tpu.matmul %306, %22, %cst_144 {dimension_numbers = #tpu.dot_dimension_numbers<[1], [0], [0], [1], [0, 0, 1, 1], [], []>} : vector<24x8xf32>, vector<8x32xf32>, vector<24x32xf32> -> vector<24x32xf32>
    %308 = arith.mulf %307, %305 : vector<24x32xf32>
    %309 = vector.extract_strided_slice %280 {offsets = [8, 0], sizes = [8, 32], strides = [1, 1]} : vector<24x32xf32> to vector<8x32xf32>
    %310 = tpu.concatenate %309, %309, %309 in 0 : vector<8x32xf32>, vector<8x32xf32>, vector<8x32xf32> -> vector<24x32xf32>
    %311 = arith.mulf %298, %303 : vector<24x8xf32>
    %cst_145 = arith.constant dense<0.000000e+00> : vector<24x32xf32>
    %312 = tpu.matmul %311, %22, %cst_145 {dimension_numbers = #tpu.dot_dimension_numbers<[1], [0], [0], [1], [0, 0, 1, 1], [], []>} : vector<24x8xf32>, vector<8x32xf32>, vector<24x32xf32> -> vector<24x32xf32>
    %313 = arith.mulf %312, %310 : vector<24x32xf32>
    %314 = arith.addf %308, %313 : vector<24x32xf32>
    %315 = vector.extract_strided_slice %280 {offsets = [16, 0], sizes = [8, 32], strides = [1, 1]} : vector<24x32xf32> to vector<8x32xf32>
    %316 = tpu.concatenate %315, %315, %315 in 0 : vector<8x32xf32>, vector<8x32xf32>, vector<8x32xf32> -> vector<24x32xf32>
    %317 = arith.mulf %300, %303 : vector<24x8xf32>
    %cst_146 = arith.constant dense<0.000000e+00> : vector<24x32xf32>
    %318 = tpu.matmul %317, %22, %cst_146 {dimension_numbers = #tpu.dot_dimension_numbers<[1], [0], [0], [1], [0, 0, 1, 1], [], []>} : vector<24x8xf32>, vector<8x32xf32>, vector<24x32xf32> -> vector<24x32xf32>
    %319 = arith.mulf %318, %316 : vector<24x32xf32>
    %320 = arith.addf %314, %319 : vector<24x32xf32>
    %c2_147 = arith.constant 2 : index
    %c0_148 = arith.constant 0 : index
    %c0_149 = arith.constant 0 : index
    %321 = vector.load %arg34[%c2_147, %c0_148, %c0_149] : memref<4x32x32xf32, #tpu.memory_space<vmem>>, vector<1x32x32xf32>
    %322 = vector.shape_cast %321 : vector<1x32x32xf32> to vector<32x32xf32>
    %cst_150 = arith.constant dense<0.000000e+00> : vector<24x32xf32>
    %323 = tpu.matmul %320, %322, %cst_150 {dimension_numbers = #tpu.dot_dimension_numbers<[1], [0], [0], [1], [0, 0, 1, 1], [], []>} : vector<24x32xf32>, vector<32x32xf32>, vector<24x32xf32> -> vector<24x32xf32>
    %c2_151 = arith.constant 2 : index
    %c0_152 = arith.constant 0 : index
    %c0_153 = arith.constant 0 : index
    %324 = vector.load %arg24[%c2_151, %c0_152, %c0_153] : memref<4x1x32xf32, #tpu.memory_space<vmem>>, vector<1x1x32xf32>
    %325 = vector.shape_cast %324 : vector<1x1x32xf32> to vector<1x32xf32>
    %326 = vector.broadcast %325 : vector<1x32xf32> to vector<24x32xf32>
    %327 = arith.addf %323, %326 : vector<24x32xf32>
    %328 = arith.addf %270, %327 : vector<24x32xf32>
    %c2_154 = arith.constant 2 : index
    %c0_155 = arith.constant 0 : index
    %c0_156 = arith.constant 0 : index
    %329 = vector.load %arg29[%c2_154, %c0_155, %c0_156] : memref<4x1x32xf32, #tpu.memory_space<vmem>>, vector<1x1x32xf32>
    %330 = vector.shape_cast %329 : vector<1x1x32xf32> to vector<1x32xf32>
    %c2_157 = arith.constant 2 : index
    %c0_158 = arith.constant 0 : index
    %c0_159 = arith.constant 0 : index
    %331 = vector.load %arg28[%c2_157, %c0_158, %c0_159] : memref<4x1x32xf32, #tpu.memory_space<vmem>>, vector<1x1x32xf32>
    %332 = vector.shape_cast %331 : vector<1x1x32xf32> to vector<1x32xf32>
    %cst_160 = arith.constant dense<0.000000e+00> : vector<24xf32>
    %333 = vector.multi_reduction <add>, %328, %cst_160 [1] : vector<24x32xf32> to vector<24xf32>
    %334 = vector.shape_cast %333 : vector<24xf32> to vector<24x1xf32>
    %cst_161 = arith.constant 3.200000e+01 : f32
    %335 = vector.broadcast %cst_161 : f32 to vector<24x1xf32>
    %336 = arith.divf %334, %335 : vector<24x1xf32>
    %337 = vector.broadcast %336 : vector<24x1xf32> to vector<24x32xf32>
    %338 = arith.subf %328, %337 : vector<24x32xf32>
    %339 = arith.mulf %338, %338 : vector<24x32xf32>
    %cst_162 = arith.constant dense<0.000000e+00> : vector<24xf32>
    %340 = vector.multi_reduction <add>, %339, %cst_162 [1] : vector<24x32xf32> to vector<24xf32>
    %341 = vector.shape_cast %340 : vector<24xf32> to vector<24x1xf32>
    %cst_163 = arith.constant 3.200000e+01 : f32
    %342 = vector.broadcast %cst_163 : f32 to vector<24x1xf32>
    %343 = arith.divf %341, %342 : vector<24x1xf32>
    %cst_164 = arith.constant 9.99999974E-6 : f32
    %344 = vector.broadcast %cst_164 : f32 to vector<24x1xf32>
    %345 = arith.addf %343, %344 : vector<24x1xf32>
    %346 = math.rsqrt %345 : vector<24x1xf32>
    %347 = vector.broadcast %346 : vector<24x1xf32> to vector<24x32xf32>
    %348 = arith.mulf %338, %347 : vector<24x32xf32>
    %349 = vector.broadcast %330 : vector<1x32xf32> to vector<24x32xf32>
    %350 = arith.mulf %348, %349 : vector<24x32xf32>
    %351 = vector.broadcast %332 : vector<1x32xf32> to vector<24x32xf32>
    %352 = arith.addf %350, %351 : vector<24x32xf32>
    %c2_165 = arith.constant 2 : index
    %c0_166 = arith.constant 0 : index
    %c0_167 = arith.constant 0 : index
    %353 = vector.load %arg32[%c2_165, %c0_166, %c0_167] : memref<4x32x64xf32, #tpu.memory_space<vmem>>, vector<1x32x64xf32>
    %354 = vector.shape_cast %353 : vector<1x32x64xf32> to vector<32x64xf32>
    %cst_168 = arith.constant dense<0.000000e+00> : vector<24x64xf32>
    %355 = tpu.matmul %352, %354, %cst_168 {dimension_numbers = #tpu.dot_dimension_numbers<[1], [0], [0], [1], [0, 0, 1, 1], [], []>} : vector<24x32xf32>, vector<32x64xf32>, vector<24x64xf32> -> vector<24x64xf32>
    %c2_169 = arith.constant 2 : index
    %c0_170 = arith.constant 0 : index
    %c0_171 = arith.constant 0 : index
    %356 = vector.load %arg22[%c2_169, %c0_170, %c0_171] : memref<4x1x64xf32, #tpu.memory_space<vmem>>, vector<1x1x64xf32>
    %357 = vector.shape_cast %356 : vector<1x1x64xf32> to vector<1x64xf32>
    %358 = vector.broadcast %357 : vector<1x64xf32> to vector<24x64xf32>
    %359 = arith.addf %355, %358 : vector<24x64xf32>
    %cst_172 = arith.constant 0.000000e+00 : f32
    %360 = vector.broadcast %cst_172 : f32 to vector<24x64xf32>
    %361 = arith.maximumf %359, %360 : vector<24x64xf32>
    %c2_173 = arith.constant 2 : index
    %c0_174 = arith.constant 0 : index
    %c0_175 = arith.constant 0 : index
    %362 = vector.load %arg33[%c2_173, %c0_174, %c0_175] : memref<4x64x32xf32, #tpu.memory_space<vmem>>, vector<1x64x32xf32>
    %363 = vector.shape_cast %362 : vector<1x64x32xf32> to vector<64x32xf32>
    %cst_176 = arith.constant dense<0.000000e+00> : vector<24x32xf32>
    %364 = tpu.matmul %361, %363, %cst_176 {dimension_numbers = #tpu.dot_dimension_numbers<[1], [0], [0], [1], [0, 0, 1, 1], [], []>} : vector<24x64xf32>, vector<64x32xf32>, vector<24x32xf32> -> vector<24x32xf32>
    %c2_177 = arith.constant 2 : index
    %c0_178 = arith.constant 0 : index
    %c0_179 = arith.constant 0 : index
    %365 = vector.load %arg23[%c2_177, %c0_178, %c0_179] : memref<4x1x32xf32, #tpu.memory_space<vmem>>, vector<1x1x32xf32>
    %366 = vector.shape_cast %365 : vector<1x1x32xf32> to vector<1x32xf32>
    %367 = vector.broadcast %366 : vector<1x32xf32> to vector<24x32xf32>
    %368 = arith.addf %364, %367 : vector<24x32xf32>
    %369 = arith.addf %352, %368 : vector<24x32xf32>
    %c2_180 = arith.constant 2 : index
    %c0_181 = arith.constant 0 : index
    %c0_182 = arith.constant 0 : index
    %370 = vector.load %arg31[%c2_180, %c0_181, %c0_182] : memref<4x1x32xf32, #tpu.memory_space<vmem>>, vector<1x1x32xf32>
    %371 = vector.shape_cast %370 : vector<1x1x32xf32> to vector<1x32xf32>
    %c2_183 = arith.constant 2 : index
    %c0_184 = arith.constant 0 : index
    %c0_185 = arith.constant 0 : index
    %372 = vector.load %arg30[%c2_183, %c0_184, %c0_185] : memref<4x1x32xf32, #tpu.memory_space<vmem>>, vector<1x1x32xf32>
    %373 = vector.shape_cast %372 : vector<1x1x32xf32> to vector<1x32xf32>
    %cst_186 = arith.constant dense<0.000000e+00> : vector<24xf32>
    %374 = vector.multi_reduction <add>, %369, %cst_186 [1] : vector<24x32xf32> to vector<24xf32>
    %375 = vector.shape_cast %374 : vector<24xf32> to vector<24x1xf32>
    %cst_187 = arith.constant 3.200000e+01 : f32
    %376 = vector.broadcast %cst_187 : f32 to vector<24x1xf32>
    %377 = arith.divf %375, %376 : vector<24x1xf32>
    %378 = vector.broadcast %377 : vector<24x1xf32> to vector<24x32xf32>
    %379 = arith.subf %369, %378 : vector<24x32xf32>
    %380 = arith.mulf %379, %379 : vector<24x32xf32>
    %cst_188 = arith.constant dense<0.000000e+00> : vector<24xf32>
    %381 = vector.multi_reduction <add>, %380, %cst_188 [1] : vector<24x32xf32> to vector<24xf32>
    %382 = vector.shape_cast %381 : vector<24xf32> to vector<24x1xf32>
    %cst_189 = arith.constant 3.200000e+01 : f32
    %383 = vector.broadcast %cst_189 : f32 to vector<24x1xf32>
    %384 = arith.divf %382, %383 : vector<24x1xf32>
    %cst_190 = arith.constant 9.99999974E-6 : f32
    %385 = vector.broadcast %cst_190 : f32 to vector<24x1xf32>
    %386 = arith.addf %384, %385 : vector<24x1xf32>
    %387 = math.rsqrt %386 : vector<24x1xf32>
    %388 = vector.broadcast %387 : vector<24x1xf32> to vector<24x32xf32>
    %389 = arith.mulf %379, %388 : vector<24x32xf32>
    %390 = vector.broadcast %371 : vector<1x32xf32> to vector<24x32xf32>
    %391 = arith.mulf %389, %390 : vector<24x32xf32>
    %392 = vector.broadcast %373 : vector<1x32xf32> to vector<24x32xf32>
    %393 = arith.addf %391, %392 : vector<24x32xf32>
    %c3 = arith.constant 3 : index
    %c0_191 = arith.constant 0 : index
    %c0_192 = arith.constant 0 : index
    %394 = vector.load %arg35[%c3, %c0_191, %c0_192] : memref<4x32x96xf32, #tpu.memory_space<vmem>>, vector<1x32x96xf32>
    %395 = vector.shape_cast %394 : vector<1x32x96xf32> to vector<32x96xf32>
    %cst_193 = arith.constant dense<0.000000e+00> : vector<24x96xf32>
    %396 = tpu.matmul %393, %395, %cst_193 {dimension_numbers = #tpu.dot_dimension_numbers<[1], [0], [0], [1], [0, 0, 1, 1], [], []>} : vector<24x32xf32>, vector<32x96xf32>, vector<24x96xf32> -> vector<24x96xf32>
    %c3_194 = arith.constant 3 : index
    %c0_195 = arith.constant 0 : index
    %c0_196 = arith.constant 0 : index
    %397 = vector.load %arg25[%c3_194, %c0_195, %c0_196] : memref<4x1x96xf32, #tpu.memory_space<vmem>>, vector<1x1x96xf32>
    %398 = vector.shape_cast %397 : vector<1x1x96xf32> to vector<1x96xf32>
    %399 = vector.broadcast %398 : vector<1x96xf32> to vector<24x96xf32>
    %400 = arith.addf %396, %399 : vector<24x96xf32>
    %401 = vector.extract_strided_slice %400 {offsets = [0, 0], sizes = [24, 32], strides = [1, 1]} : vector<24x96xf32> to vector<24x32xf32>
    %402 = vector.extract_strided_slice %400 {offsets = [0, 32], sizes = [24, 32], strides = [1, 1]} : vector<24x96xf32> to vector<24x32xf32>
    %403 = vector.extract_strided_slice %400 {offsets = [0, 64], sizes = [24, 32], strides = [1, 1]} : vector<24x96xf32> to vector<24x32xf32>
    %404 = vector.extract_strided_slice %402 {offsets = [0, 0], sizes = [8, 32], strides = [1, 1]} : vector<24x32xf32> to vector<8x32xf32>
    %405 = tpu.concatenate %404, %404, %404 in 0 : vector<8x32xf32>, vector<8x32xf32>, vector<8x32xf32> -> vector<24x32xf32>
    %406 = arith.mulf %401, %405 : vector<24x32xf32>
    %cst_197 = arith.constant dense<0.000000e+00> : vector<24x8xf32>
    %407 = tpu.matmul %406, %21, %cst_197 {dimension_numbers = #tpu.dot_dimension_numbers<[1], [0], [0], [1], [0, 0, 1, 1], [], []>} : vector<24x32xf32>, vector<32x8xf32>, vector<24x8xf32> -> vector<24x8xf32>
    %408 = vector.extract_strided_slice %402 {offsets = [8, 0], sizes = [8, 32], strides = [1, 1]} : vector<24x32xf32> to vector<8x32xf32>
    %409 = tpu.concatenate %408, %408, %408 in 0 : vector<8x32xf32>, vector<8x32xf32>, vector<8x32xf32> -> vector<24x32xf32>
    %410 = arith.mulf %401, %409 : vector<24x32xf32>
    %cst_198 = arith.constant dense<0.000000e+00> : vector<24x8xf32>
    %411 = tpu.matmul %410, %21, %cst_198 {dimension_numbers = #tpu.dot_dimension_numbers<[1], [0], [0], [1], [0, 0, 1, 1], [], []>} : vector<24x32xf32>, vector<32x8xf32>, vector<24x8xf32> -> vector<24x8xf32>
    %412 = vector.extract_strided_slice %402 {offsets = [16, 0], sizes = [8, 32], strides = [1, 1]} : vector<24x32xf32> to vector<8x32xf32>
    %413 = tpu.concatenate %412, %412, %412 in 0 : vector<8x32xf32>, vector<8x32xf32>, vector<8x32xf32> -> vector<24x32xf32>
    %414 = arith.mulf %401, %413 : vector<24x32xf32>
    %cst_199 = arith.constant dense<0.000000e+00> : vector<24x8xf32>
    %415 = tpu.matmul %414, %21, %cst_199 {dimension_numbers = #tpu.dot_dimension_numbers<[1], [0], [0], [1], [0, 0, 1, 1], [], []>} : vector<24x32xf32>, vector<32x8xf32>, vector<24x8xf32> -> vector<24x8xf32>
    %416 = arith.maximumf %407, %411 : vector<24x8xf32>
    %417 = arith.maximumf %416, %415 : vector<24x8xf32>
    %418 = arith.subf %407, %417 : vector<24x8xf32>
    %419 = math.exp %418 : vector<24x8xf32>
    %420 = arith.subf %411, %417 : vector<24x8xf32>
    %421 = math.exp %420 : vector<24x8xf32>
    %422 = arith.subf %415, %417 : vector<24x8xf32>
    %423 = math.exp %422 : vector<24x8xf32>
    %424 = arith.addf %419, %421 : vector<24x8xf32>
    %425 = arith.addf %424, %423 : vector<24x8xf32>
    %426 = tpu.reciprocal %425 {approx = true} : vector<24x8xf32> -> vector<24x8xf32>
    %427 = vector.extract_strided_slice %403 {offsets = [0, 0], sizes = [8, 32], strides = [1, 1]} : vector<24x32xf32> to vector<8x32xf32>
    %428 = tpu.concatenate %427, %427, %427 in 0 : vector<8x32xf32>, vector<8x32xf32>, vector<8x32xf32> -> vector<24x32xf32>
    %429 = arith.mulf %419, %426 : vector<24x8xf32>
    %cst_200 = arith.constant dense<0.000000e+00> : vector<24x32xf32>
    %430 = tpu.matmul %429, %22, %cst_200 {dimension_numbers = #tpu.dot_dimension_numbers<[1], [0], [0], [1], [0, 0, 1, 1], [], []>} : vector<24x8xf32>, vector<8x32xf32>, vector<24x32xf32> -> vector<24x32xf32>
    %431 = arith.mulf %430, %428 : vector<24x32xf32>
    %432 = vector.extract_strided_slice %403 {offsets = [8, 0], sizes = [8, 32], strides = [1, 1]} : vector<24x32xf32> to vector<8x32xf32>
    %433 = tpu.concatenate %432, %432, %432 in 0 : vector<8x32xf32>, vector<8x32xf32>, vector<8x32xf32> -> vector<24x32xf32>
    %434 = arith.mulf %421, %426 : vector<24x8xf32>
    %cst_201 = arith.constant dense<0.000000e+00> : vector<24x32xf32>
    %435 = tpu.matmul %434, %22, %cst_201 {dimension_numbers = #tpu.dot_dimension_numbers<[1], [0], [0], [1], [0, 0, 1, 1], [], []>} : vector<24x8xf32>, vector<8x32xf32>, vector<24x32xf32> -> vector<24x32xf32>
    %436 = arith.mulf %435, %433 : vector<24x32xf32>
    %437 = arith.addf %431, %436 : vector<24x32xf32>
    %438 = vector.extract_strided_slice %403 {offsets = [16, 0], sizes = [8, 32], strides = [1, 1]} : vector<24x32xf32> to vector<8x32xf32>
    %439 = tpu.concatenate %438, %438, %438 in 0 : vector<8x32xf32>, vector<8x32xf32>, vector<8x32xf32> -> vector<24x32xf32>
    %440 = arith.mulf %423, %426 : vector<24x8xf32>
    %cst_202 = arith.constant dense<0.000000e+00> : vector<24x32xf32>
    %441 = tpu.matmul %440, %22, %cst_202 {dimension_numbers = #tpu.dot_dimension_numbers<[1], [0], [0], [1], [0, 0, 1, 1], [], []>} : vector<24x8xf32>, vector<8x32xf32>, vector<24x32xf32> -> vector<24x32xf32>
    %442 = arith.mulf %441, %439 : vector<24x32xf32>
    %443 = arith.addf %437, %442 : vector<24x32xf32>
    %c3_203 = arith.constant 3 : index
    %c0_204 = arith.constant 0 : index
    %c0_205 = arith.constant 0 : index
    %444 = vector.load %arg34[%c3_203, %c0_204, %c0_205] : memref<4x32x32xf32, #tpu.memory_space<vmem>>, vector<1x32x32xf32>
    %445 = vector.shape_cast %444 : vector<1x32x32xf32> to vector<32x32xf32>
    %cst_206 = arith.constant dense<0.000000e+00> : vector<24x32xf32>
    %446 = tpu.matmul %443, %445, %cst_206 {dimension_numbers = #tpu.dot_dimension_numbers<[1], [0], [0], [1], [0, 0, 1, 1], [], []>} : vector<24x32xf32>, vector<32x32xf32>, vector<24x32xf32> -> vector<24x32xf32>
    %c3_207 = arith.constant 3 : index
    %c0_208 = arith.constant 0 : index
    %c0_209 = arith.constant 0 : index
    %447 = vector.load %arg24[%c3_207, %c0_208, %c0_209] : memref<4x1x32xf32, #tpu.memory_space<vmem>>, vector<1x1x32xf32>
    %448 = vector.shape_cast %447 : vector<1x1x32xf32> to vector<1x32xf32>
    %449 = vector.broadcast %448 : vector<1x32xf32> to vector<24x32xf32>
    %450 = arith.addf %446, %449 : vector<24x32xf32>
    %451 = arith.addf %393, %450 : vector<24x32xf32>
    %c3_210 = arith.constant 3 : index
    %c0_211 = arith.constant 0 : index
    %c0_212 = arith.constant 0 : index
    %452 = vector.load %arg29[%c3_210, %c0_211, %c0_212] : memref<4x1x32xf32, #tpu.memory_space<vmem>>, vector<1x1x32xf32>
    %453 = vector.shape_cast %452 : vector<1x1x32xf32> to vector<1x32xf32>
    %c3_213 = arith.constant 3 : index
    %c0_214 = arith.constant 0 : index
    %c0_215 = arith.constant 0 : index
    %454 = vector.load %arg28[%c3_213, %c0_214, %c0_215] : memref<4x1x32xf32, #tpu.memory_space<vmem>>, vector<1x1x32xf32>
    %455 = vector.shape_cast %454 : vector<1x1x32xf32> to vector<1x32xf32>
    %cst_216 = arith.constant dense<0.000000e+00> : vector<24xf32>
    %456 = vector.multi_reduction <add>, %451, %cst_216 [1] : vector<24x32xf32> to vector<24xf32>
    %457 = vector.shape_cast %456 : vector<24xf32> to vector<24x1xf32>
    %cst_217 = arith.constant 3.200000e+01 : f32
    %458 = vector.broadcast %cst_217 : f32 to vector<24x1xf32>
    %459 = arith.divf %457, %458 : vector<24x1xf32>
    %460 = vector.broadcast %459 : vector<24x1xf32> to vector<24x32xf32>
    %461 = arith.subf %451, %460 : vector<24x32xf32>
    %462 = arith.mulf %461, %461 : vector<24x32xf32>
    %cst_218 = arith.constant dense<0.000000e+00> : vector<24xf32>
    %463 = vector.multi_reduction <add>, %462, %cst_218 [1] : vector<24x32xf32> to vector<24xf32>
    %464 = vector.shape_cast %463 : vector<24xf32> to vector<24x1xf32>
    %cst_219 = arith.constant 3.200000e+01 : f32
    %465 = vector.broadcast %cst_219 : f32 to vector<24x1xf32>
    %466 = arith.divf %464, %465 : vector<24x1xf32>
    %cst_220 = arith.constant 9.99999974E-6 : f32
    %467 = vector.broadcast %cst_220 : f32 to vector<24x1xf32>
    %468 = arith.addf %466, %467 : vector<24x1xf32>
    %469 = math.rsqrt %468 : vector<24x1xf32>
    %470 = vector.broadcast %469 : vector<24x1xf32> to vector<24x32xf32>
    %471 = arith.mulf %461, %470 : vector<24x32xf32>
    %472 = vector.broadcast %453 : vector<1x32xf32> to vector<24x32xf32>
    %473 = arith.mulf %471, %472 : vector<24x32xf32>
    %474 = vector.broadcast %455 : vector<1x32xf32> to vector<24x32xf32>
    %475 = arith.addf %473, %474 : vector<24x32xf32>
    %c3_221 = arith.constant 3 : index
    %c0_222 = arith.constant 0 : index
    %c0_223 = arith.constant 0 : index
    %476 = vector.load %arg32[%c3_221, %c0_222, %c0_223] : memref<4x32x64xf32, #tpu.memory_space<vmem>>, vector<1x32x64xf32>
    %477 = vector.shape_cast %476 : vector<1x32x64xf32> to vector<32x64xf32>
    %cst_224 = arith.constant dense<0.000000e+00> : vector<24x64xf32>
    %478 = tpu.matmul %475, %477, %cst_224 {dimension_numbers = #tpu.dot_dimension_numbers<[1], [0], [0], [1], [0, 0, 1, 1], [], []>} : vector<24x32xf32>, vector<32x64xf32>, vector<24x64xf32> -> vector<24x64xf32>
    %c3_225 = arith.constant 3 : index
    %c0_226 = arith.constant 0 : index
    %c0_227 = arith.constant 0 : index
    %479 = vector.load %arg22[%c3_225, %c0_226, %c0_227] : memref<4x1x64xf32, #tpu.memory_space<vmem>>, vector<1x1x64xf32>
    %480 = vector.shape_cast %479 : vector<1x1x64xf32> to vector<1x64xf32>
    %481 = vector.broadcast %480 : vector<1x64xf32> to vector<24x64xf32>
    %482 = arith.addf %478, %481 : vector<24x64xf32>
    %cst_228 = arith.constant 0.000000e+00 : f32
    %483 = vector.broadcast %cst_228 : f32 to vector<24x64xf32>
    %484 = arith.maximumf %482, %483 : vector<24x64xf32>
    %c3_229 = arith.constant 3 : index
    %c0_230 = arith.constant 0 : index
    %c0_231 = arith.constant 0 : index
    %485 = vector.load %arg33[%c3_229, %c0_230, %c0_231] : memref<4x64x32xf32, #tpu.memory_space<vmem>>, vector<1x64x32xf32>
    %486 = vector.shape_cast %485 : vector<1x64x32xf32> to vector<64x32xf32>
    %cst_232 = arith.constant dense<0.000000e+00> : vector<24x32xf32>
    %487 = tpu.matmul %484, %486, %cst_232 {dimension_numbers = #tpu.dot_dimension_numbers<[1], [0], [0], [1], [0, 0, 1, 1], [], []>} : vector<24x64xf32>, vector<64x32xf32>, vector<24x32xf32> -> vector<24x32xf32>
    %c3_233 = arith.constant 3 : index
    %c0_234 = arith.constant 0 : index
    %c0_235 = arith.constant 0 : index
    %488 = vector.load %arg23[%c3_233, %c0_234, %c0_235] : memref<4x1x32xf32, #tpu.memory_space<vmem>>, vector<1x1x32xf32>
    %489 = vector.shape_cast %488 : vector<1x1x32xf32> to vector<1x32xf32>
    %490 = vector.broadcast %489 : vector<1x32xf32> to vector<24x32xf32>
    %491 = arith.addf %487, %490 : vector<24x32xf32>
    %492 = arith.addf %475, %491 : vector<24x32xf32>
    %c3_236 = arith.constant 3 : index
    %c0_237 = arith.constant 0 : index
    %c0_238 = arith.constant 0 : index
    %493 = vector.load %arg31[%c3_236, %c0_237, %c0_238] : memref<4x1x32xf32, #tpu.memory_space<vmem>>, vector<1x1x32xf32>
    %494 = vector.shape_cast %493 : vector<1x1x32xf32> to vector<1x32xf32>
    %c3_239 = arith.constant 3 : index
    %c0_240 = arith.constant 0 : index
    %c0_241 = arith.constant 0 : index
    %495 = vector.load %arg30[%c3_239, %c0_240, %c0_241] : memref<4x1x32xf32, #tpu.memory_space<vmem>>, vector<1x1x32xf32>
    %496 = vector.shape_cast %495 : vector<1x1x32xf32> to vector<1x32xf32>
    %cst_242 = arith.constant dense<0.000000e+00> : vector<24xf32>
    %497 = vector.multi_reduction <add>, %492, %cst_242 [1] : vector<24x32xf32> to vector<24xf32>
    %498 = vector.shape_cast %497 : vector<24xf32> to vector<24x1xf32>
    %cst_243 = arith.constant 3.200000e+01 : f32
    %499 = vector.broadcast %cst_243 : f32 to vector<24x1xf32>
    %500 = arith.divf %498, %499 : vector<24x1xf32>
    %501 = vector.broadcast %500 : vector<24x1xf32> to vector<24x32xf32>
    %502 = arith.subf %492, %501 : vector<24x32xf32>
    %503 = arith.mulf %502, %502 : vector<24x32xf32>
    %cst_244 = arith.constant dense<0.000000e+00> : vector<24xf32>
    %504 = vector.multi_reduction <add>, %503, %cst_244 [1] : vector<24x32xf32> to vector<24xf32>
    %505 = vector.shape_cast %504 : vector<24xf32> to vector<24x1xf32>
    %cst_245 = arith.constant 3.200000e+01 : f32
    %506 = vector.broadcast %cst_245 : f32 to vector<24x1xf32>
    %507 = arith.divf %505, %506 : vector<24x1xf32>
    %cst_246 = arith.constant 9.99999974E-6 : f32
    %508 = vector.broadcast %cst_246 : f32 to vector<24x1xf32>
    %509 = arith.addf %507, %508 : vector<24x1xf32>
    %510 = math.rsqrt %509 : vector<24x1xf32>
    %511 = vector.broadcast %510 : vector<24x1xf32> to vector<24x32xf32>
    %512 = arith.mulf %502, %511 : vector<24x32xf32>
    %513 = vector.broadcast %494 : vector<1x32xf32> to vector<24x32xf32>
    %514 = arith.mulf %512, %513 : vector<24x32xf32>
    %515 = vector.broadcast %496 : vector<1x32xf32> to vector<24x32xf32>
    %516 = arith.addf %514, %515 : vector<24x32xf32>
    %c0_247 = arith.constant 0 : index
    %c0_248 = arith.constant 0 : index
    %517 = vector.load %arg2[%c0_247, %c0_248] : memref<1x32xf32, #tpu.memory_space<vmem>>, vector<1x32xf32>
    %518 = vector.shape_cast %517 : vector<1x32xf32> to vector<1x32xf32>
    %519 = vector.broadcast %518 : vector<1x32xf32> to vector<8x32xf32>
    %520 = tpu.concatenate %519, %20 in 0 : vector<8x32xf32>, vector<8x32xf32> -> vector<16x32xf32>
    %c0_249 = arith.constant 0 : index
    %c0_250 = arith.constant 0 : index
    %c0_251 = arith.constant 0 : index
    %521 = vector.load %arg16[%c0_249, %c0_250, %c0_251] : memref<2x32x32xf32, #tpu.memory_space<vmem>>, vector<1x32x32xf32>
    %522 = vector.shape_cast %521 : vector<1x32x32xf32> to vector<32x32xf32>
    %cst_252 = arith.constant dense<0.000000e+00> : vector<16x32xf32>
    %523 = tpu.matmul %520, %522, %cst_252 {dimension_numbers = #tpu.dot_dimension_numbers<[1], [0], [0], [1], [0, 0, 1, 1], [], []>} : vector<16x32xf32>, vector<32x32xf32>, vector<16x32xf32> -> vector<16x32xf32>
    %c0_253 = arith.constant 0 : index
    %c0_254 = arith.constant 0 : index
    %c0_255 = arith.constant 0 : index
    %524 = vector.load %arg7[%c0_253, %c0_254, %c0_255] : memref<2x1x32xf32, #tpu.memory_space<vmem>>, vector<1x1x32xf32>
    %525 = vector.shape_cast %524 : vector<1x1x32xf32> to vector<1x32xf32>
    %526 = vector.broadcast %525 : vector<1x32xf32> to vector<16x32xf32>
    %527 = arith.addf %523, %526 : vector<16x32xf32>
    %c0_256 = arith.constant 0 : index
    %c0_257 = arith.constant 0 : index
    %c0_258 = arith.constant 0 : index
    %528 = vector.load %arg14[%c0_256, %c0_257, %c0_258] : memref<2x32x64xf32, #tpu.memory_space<vmem>>, vector<1x32x64xf32>
    %529 = vector.shape_cast %528 : vector<1x32x64xf32> to vector<32x64xf32>
    %cst_259 = arith.constant dense<0.000000e+00> : vector<24x64xf32>
    %530 = tpu.matmul %516, %529, %cst_259 {dimension_numbers = #tpu.dot_dimension_numbers<[1], [0], [0], [1], [0, 0, 1, 1], [], []>} : vector<24x32xf32>, vector<32x64xf32>, vector<24x64xf32> -> vector<24x64xf32>
    %c0_260 = arith.constant 0 : index
    %c0_261 = arith.constant 0 : index
    %c0_262 = arith.constant 0 : index
    %531 = vector.load %arg5[%c0_260, %c0_261, %c0_262] : memref<2x1x64xf32, #tpu.memory_space<vmem>>, vector<1x1x64xf32>
    %532 = vector.shape_cast %531 : vector<1x1x64xf32> to vector<1x64xf32>
    %533 = vector.broadcast %532 : vector<1x64xf32> to vector<24x64xf32>
    %534 = arith.addf %530, %533 : vector<24x64xf32>
    %535 = vector.extract_strided_slice %534 {offsets = [0, 0], sizes = [24, 32], strides = [1, 1]} : vector<24x64xf32> to vector<24x32xf32>
    %536 = vector.extract_strided_slice %534 {offsets = [0, 32], sizes = [24, 32], strides = [1, 1]} : vector<24x64xf32> to vector<24x32xf32>
    %537 = vector.extract_strided_slice %535 {offsets = [0, 0], sizes = [8, 32], strides = [1, 1]} : vector<24x32xf32> to vector<8x32xf32>
    %538 = tpu.concatenate %537, %537 in 0 : vector<8x32xf32>, vector<8x32xf32> -> vector<16x32xf32>
    %539 = arith.mulf %527, %538 : vector<16x32xf32>
    %cst_263 = arith.constant dense<0.000000e+00> : vector<16x4xf32>
    %540 = tpu.matmul %539, %23, %cst_263 {dimension_numbers = #tpu.dot_dimension_numbers<[1], [0], [0], [1], [0, 0, 1, 1], [], []>} : vector<16x32xf32>, vector<32x4xf32>, vector<16x4xf32> -> vector<16x4xf32>
    %541 = vector.extract_strided_slice %535 {offsets = [8, 0], sizes = [8, 32], strides = [1, 1]} : vector<24x32xf32> to vector<8x32xf32>
    %542 = tpu.concatenate %541, %541 in 0 : vector<8x32xf32>, vector<8x32xf32> -> vector<16x32xf32>
    %543 = arith.mulf %527, %542 : vector<16x32xf32>
    %cst_264 = arith.constant dense<0.000000e+00> : vector<16x4xf32>
    %544 = tpu.matmul %543, %23, %cst_264 {dimension_numbers = #tpu.dot_dimension_numbers<[1], [0], [0], [1], [0, 0, 1, 1], [], []>} : vector<16x32xf32>, vector<32x4xf32>, vector<16x4xf32> -> vector<16x4xf32>
    %545 = vector.extract_strided_slice %535 {offsets = [16, 0], sizes = [8, 32], strides = [1, 1]} : vector<24x32xf32> to vector<8x32xf32>
    %546 = tpu.concatenate %545, %545 in 0 : vector<8x32xf32>, vector<8x32xf32> -> vector<16x32xf32>
    %547 = arith.mulf %527, %546 : vector<16x32xf32>
    %cst_265 = arith.constant dense<0.000000e+00> : vector<16x4xf32>
    %548 = tpu.matmul %547, %23, %cst_265 {dimension_numbers = #tpu.dot_dimension_numbers<[1], [0], [0], [1], [0, 0, 1, 1], [], []>} : vector<16x32xf32>, vector<32x4xf32>, vector<16x4xf32> -> vector<16x4xf32>
    %549 = arith.maximumf %540, %544 : vector<16x4xf32>
    %550 = arith.maximumf %549, %548 : vector<16x4xf32>
    %551 = arith.subf %540, %550 : vector<16x4xf32>
    %552 = math.exp %551 : vector<16x4xf32>
    %553 = arith.subf %544, %550 : vector<16x4xf32>
    %554 = math.exp %553 : vector<16x4xf32>
    %555 = arith.subf %548, %550 : vector<16x4xf32>
    %556 = math.exp %555 : vector<16x4xf32>
    %557 = arith.addf %552, %554 : vector<16x4xf32>
    %558 = arith.addf %557, %556 : vector<16x4xf32>
    %559 = tpu.reciprocal %558 {approx = true} : vector<16x4xf32> -> vector<16x4xf32>
    %560 = vector.extract_strided_slice %536 {offsets = [0, 0], sizes = [8, 32], strides = [1, 1]} : vector<24x32xf32> to vector<8x32xf32>
    %561 = tpu.concatenate %560, %560 in 0 : vector<8x32xf32>, vector<8x32xf32> -> vector<16x32xf32>
    %562 = arith.mulf %552, %559 : vector<16x4xf32>
    %cst_266 = arith.constant dense<0.000000e+00> : vector<16x32xf32>
    %563 = tpu.matmul %562, %24, %cst_266 {dimension_numbers = #tpu.dot_dimension_numbers<[1], [0], [0], [1], [0, 0, 1, 1], [], []>} : vector<16x4xf32>, vector<4x32xf32>, vector<16x32xf32> -> vector<16x32xf32>
    %564 = arith.mulf %563, %561 : vector<16x32xf32>
    %565 = vector.extract_strided_slice %536 {offsets = [8, 0], sizes = [8, 32], strides = [1, 1]} : vector<24x32xf32> to vector<8x32xf32>
    %566 = tpu.concatenate %565, %565 in 0 : vector<8x32xf32>, vector<8x32xf32> -> vector<16x32xf32>
    %567 = arith.mulf %554, %559 : vector<16x4xf32>
    %cst_267 = arith.constant dense<0.000000e+00> : vector<16x32xf32>
    %568 = tpu.matmul %567, %24, %cst_267 {dimension_numbers = #tpu.dot_dimension_numbers<[1], [0], [0], [1], [0, 0, 1, 1], [], []>} : vector<16x4xf32>, vector<4x32xf32>, vector<16x32xf32> -> vector<16x32xf32>
    %569 = arith.mulf %568, %566 : vector<16x32xf32>
    %570 = arith.addf %564, %569 : vector<16x32xf32>
    %571 = vector.extract_strided_slice %536 {offsets = [16, 0], sizes = [8, 32], strides = [1, 1]} : vector<24x32xf32> to vector<8x32xf32>
    %572 = tpu.concatenate %571, %571 in 0 : vector<8x32xf32>, vector<8x32xf32> -> vector<16x32xf32>
    %573 = arith.mulf %556, %559 : vector<16x4xf32>
    %cst_268 = arith.constant dense<0.000000e+00> : vector<16x32xf32>
    %574 = tpu.matmul %573, %24, %cst_268 {dimension_numbers = #tpu.dot_dimension_numbers<[1], [0], [0], [1], [0, 0, 1, 1], [], []>} : vector<16x4xf32>, vector<4x32xf32>, vector<16x32xf32> -> vector<16x32xf32>
    %575 = arith.mulf %574, %572 : vector<16x32xf32>
    %576 = arith.addf %570, %575 : vector<16x32xf32>
    %577 = arith.addf %527, %576 : vector<16x32xf32>
    %c0_269 = arith.constant 0 : index
    %c0_270 = arith.constant 0 : index
    %c0_271 = arith.constant 0 : index
    %578 = vector.load %arg11[%c0_269, %c0_270, %c0_271] : memref<2x1x32xf32, #tpu.memory_space<vmem>>, vector<1x1x32xf32>
    %579 = vector.shape_cast %578 : vector<1x1x32xf32> to vector<1x32xf32>
    %c0_272 = arith.constant 0 : index
    %c0_273 = arith.constant 0 : index
    %c0_274 = arith.constant 0 : index
    %580 = vector.load %arg10[%c0_272, %c0_273, %c0_274] : memref<2x1x32xf32, #tpu.memory_space<vmem>>, vector<1x1x32xf32>
    %581 = vector.shape_cast %580 : vector<1x1x32xf32> to vector<1x32xf32>
    %cst_275 = arith.constant dense<0.000000e+00> : vector<16xf32>
    %582 = vector.multi_reduction <add>, %577, %cst_275 [1] : vector<16x32xf32> to vector<16xf32>
    %583 = vector.shape_cast %582 : vector<16xf32> to vector<16x1xf32>
    %cst_276 = arith.constant 3.200000e+01 : f32
    %584 = vector.broadcast %cst_276 : f32 to vector<16x1xf32>
    %585 = arith.divf %583, %584 : vector<16x1xf32>
    %586 = vector.broadcast %585 : vector<16x1xf32> to vector<16x32xf32>
    %587 = arith.subf %577, %586 : vector<16x32xf32>
    %588 = arith.mulf %587, %587 : vector<16x32xf32>
    %cst_277 = arith.constant dense<0.000000e+00> : vector<16xf32>
    %589 = vector.multi_reduction <add>, %588, %cst_277 [1] : vector<16x32xf32> to vector<16xf32>
    %590 = vector.shape_cast %589 : vector<16xf32> to vector<16x1xf32>
    %cst_278 = arith.constant 3.200000e+01 : f32
    %591 = vector.broadcast %cst_278 : f32 to vector<16x1xf32>
    %592 = arith.divf %590, %591 : vector<16x1xf32>
    %cst_279 = arith.constant 9.99999974E-6 : f32
    %593 = vector.broadcast %cst_279 : f32 to vector<16x1xf32>
    %594 = arith.addf %592, %593 : vector<16x1xf32>
    %595 = math.rsqrt %594 : vector<16x1xf32>
    %596 = vector.broadcast %595 : vector<16x1xf32> to vector<16x32xf32>
    %597 = arith.mulf %587, %596 : vector<16x32xf32>
    %598 = vector.broadcast %579 : vector<1x32xf32> to vector<16x32xf32>
    %599 = arith.mulf %597, %598 : vector<16x32xf32>
    %600 = vector.broadcast %581 : vector<1x32xf32> to vector<16x32xf32>
    %601 = arith.addf %599, %600 : vector<16x32xf32>
    %c0_280 = arith.constant 0 : index
    %c0_281 = arith.constant 0 : index
    %c0_282 = arith.constant 0 : index
    %602 = vector.load %arg15[%c0_280, %c0_281, %c0_282] : memref<2x32x32xf32, #tpu.memory_space<vmem>>, vector<1x32x32xf32>
    %603 = vector.shape_cast %602 : vector<1x32x32xf32> to vector<32x32xf32>
    %cst_283 = arith.constant dense<0.000000e+00> : vector<16x32xf32>
    %604 = tpu.matmul %601, %603, %cst_283 {dimension_numbers = #tpu.dot_dimension_numbers<[1], [0], [0], [1], [0, 0, 1, 1], [], []>} : vector<16x32xf32>, vector<32x32xf32>, vector<16x32xf32> -> vector<16x32xf32>
    %c0_284 = arith.constant 0 : index
    %c0_285 = arith.constant 0 : index
    %c0_286 = arith.constant 0 : index
    %605 = vector.load %arg6[%c0_284, %c0_285, %c0_286] : memref<2x1x32xf32, #tpu.memory_space<vmem>>, vector<1x1x32xf32>
    %606 = vector.shape_cast %605 : vector<1x1x32xf32> to vector<1x32xf32>
    %607 = vector.broadcast %606 : vector<1x32xf32> to vector<16x32xf32>
    %608 = arith.addf %604, %607 : vector<16x32xf32>
    %cst_287 = arith.constant 0.000000e+00 : f32
    %609 = vector.broadcast %cst_287 : f32 to vector<16x32xf32>
    %610 = arith.maximumf %608, %609 : vector<16x32xf32>
    %611 = arith.addf %601, %610 : vector<16x32xf32>
    %c0_288 = arith.constant 0 : index
    %c0_289 = arith.constant 0 : index
    %c0_290 = arith.constant 0 : index
    %612 = vector.load %arg13[%c0_288, %c0_289, %c0_290] : memref<2x1x32xf32, #tpu.memory_space<vmem>>, vector<1x1x32xf32>
    %613 = vector.shape_cast %612 : vector<1x1x32xf32> to vector<1x32xf32>
    %c0_291 = arith.constant 0 : index
    %c0_292 = arith.constant 0 : index
    %c0_293 = arith.constant 0 : index
    %614 = vector.load %arg12[%c0_291, %c0_292, %c0_293] : memref<2x1x32xf32, #tpu.memory_space<vmem>>, vector<1x1x32xf32>
    %615 = vector.shape_cast %614 : vector<1x1x32xf32> to vector<1x32xf32>
    %cst_294 = arith.constant dense<0.000000e+00> : vector<16xf32>
    %616 = vector.multi_reduction <add>, %611, %cst_294 [1] : vector<16x32xf32> to vector<16xf32>
    %617 = vector.shape_cast %616 : vector<16xf32> to vector<16x1xf32>
    %cst_295 = arith.constant 3.200000e+01 : f32
    %618 = vector.broadcast %cst_295 : f32 to vector<16x1xf32>
    %619 = arith.divf %617, %618 : vector<16x1xf32>
    %620 = vector.broadcast %619 : vector<16x1xf32> to vector<16x32xf32>
    %621 = arith.subf %611, %620 : vector<16x32xf32>
    %622 = arith.mulf %621, %621 : vector<16x32xf32>
    %cst_296 = arith.constant dense<0.000000e+00> : vector<16xf32>
    %623 = vector.multi_reduction <add>, %622, %cst_296 [1] : vector<16x32xf32> to vector<16xf32>
    %624 = vector.shape_cast %623 : vector<16xf32> to vector<16x1xf32>
    %cst_297 = arith.constant 3.200000e+01 : f32
    %625 = vector.broadcast %cst_297 : f32 to vector<16x1xf32>
    %626 = arith.divf %624, %625 : vector<16x1xf32>
    %cst_298 = arith.constant 9.99999974E-6 : f32
    %627 = vector.broadcast %cst_298 : f32 to vector<16x1xf32>
    %628 = arith.addf %626, %627 : vector<16x1xf32>
    %629 = math.rsqrt %628 : vector<16x1xf32>
    %630 = vector.broadcast %629 : vector<16x1xf32> to vector<16x32xf32>
    %631 = arith.mulf %621, %630 : vector<16x32xf32>
    %632 = vector.broadcast %613 : vector<1x32xf32> to vector<16x32xf32>
    %633 = arith.mulf %631, %632 : vector<16x32xf32>
    %634 = vector.broadcast %615 : vector<1x32xf32> to vector<16x32xf32>
    %635 = arith.addf %633, %634 : vector<16x32xf32>
    %c1_299 = arith.constant 1 : index
    %c0_300 = arith.constant 0 : index
    %c0_301 = arith.constant 0 : index
    %636 = vector.load %arg16[%c1_299, %c0_300, %c0_301] : memref<2x32x32xf32, #tpu.memory_space<vmem>>, vector<1x32x32xf32>
    %637 = vector.shape_cast %636 : vector<1x32x32xf32> to vector<32x32xf32>
    %cst_302 = arith.constant dense<0.000000e+00> : vector<16x32xf32>
    %638 = tpu.matmul %635, %637, %cst_302 {dimension_numbers = #tpu.dot_dimension_numbers<[1], [0], [0], [1], [0, 0, 1, 1], [], []>} : vector<16x32xf32>, vector<32x32xf32>, vector<16x32xf32> -> vector<16x32xf32>
    %c1_303 = arith.constant 1 : index
    %c0_304 = arith.constant 0 : index
    %c0_305 = arith.constant 0 : index
    %639 = vector.load %arg7[%c1_303, %c0_304, %c0_305] : memref<2x1x32xf32, #tpu.memory_space<vmem>>, vector<1x1x32xf32>
    %640 = vector.shape_cast %639 : vector<1x1x32xf32> to vector<1x32xf32>
    %641 = vector.broadcast %640 : vector<1x32xf32> to vector<16x32xf32>
    %642 = arith.addf %638, %641 : vector<16x32xf32>
    %c1_306 = arith.constant 1 : index
    %c0_307 = arith.constant 0 : index
    %c0_308 = arith.constant 0 : index
    %643 = vector.load %arg14[%c1_306, %c0_307, %c0_308] : memref<2x32x64xf32, #tpu.memory_space<vmem>>, vector<1x32x64xf32>
    %644 = vector.shape_cast %643 : vector<1x32x64xf32> to vector<32x64xf32>
    %cst_309 = arith.constant dense<0.000000e+00> : vector<24x64xf32>
    %645 = tpu.matmul %516, %644, %cst_309 {dimension_numbers = #tpu.dot_dimension_numbers<[1], [0], [0], [1], [0, 0, 1, 1], [], []>} : vector<24x32xf32>, vector<32x64xf32>, vector<24x64xf32> -> vector<24x64xf32>
    %c1_310 = arith.constant 1 : index
    %c0_311 = arith.constant 0 : index
    %c0_312 = arith.constant 0 : index
    %646 = vector.load %arg5[%c1_310, %c0_311, %c0_312] : memref<2x1x64xf32, #tpu.memory_space<vmem>>, vector<1x1x64xf32>
    %647 = vector.shape_cast %646 : vector<1x1x64xf32> to vector<1x64xf32>
    %648 = vector.broadcast %647 : vector<1x64xf32> to vector<24x64xf32>
    %649 = arith.addf %645, %648 : vector<24x64xf32>
    %650 = vector.extract_strided_slice %649 {offsets = [0, 0], sizes = [24, 32], strides = [1, 1]} : vector<24x64xf32> to vector<24x32xf32>
    %651 = vector.extract_strided_slice %649 {offsets = [0, 32], sizes = [24, 32], strides = [1, 1]} : vector<24x64xf32> to vector<24x32xf32>
    %652 = vector.extract_strided_slice %650 {offsets = [0, 0], sizes = [8, 32], strides = [1, 1]} : vector<24x32xf32> to vector<8x32xf32>
    %653 = tpu.concatenate %652, %652 in 0 : vector<8x32xf32>, vector<8x32xf32> -> vector<16x32xf32>
    %654 = arith.mulf %642, %653 : vector<16x32xf32>
    %cst_313 = arith.constant dense<0.000000e+00> : vector<16x4xf32>
    %655 = tpu.matmul %654, %23, %cst_313 {dimension_numbers = #tpu.dot_dimension_numbers<[1], [0], [0], [1], [0, 0, 1, 1], [], []>} : vector<16x32xf32>, vector<32x4xf32>, vector<16x4xf32> -> vector<16x4xf32>
    %656 = vector.extract_strided_slice %650 {offsets = [8, 0], sizes = [8, 32], strides = [1, 1]} : vector<24x32xf32> to vector<8x32xf32>
    %657 = tpu.concatenate %656, %656 in 0 : vector<8x32xf32>, vector<8x32xf32> -> vector<16x32xf32>
    %658 = arith.mulf %642, %657 : vector<16x32xf32>
    %cst_314 = arith.constant dense<0.000000e+00> : vector<16x4xf32>
    %659 = tpu.matmul %658, %23, %cst_314 {dimension_numbers = #tpu.dot_dimension_numbers<[1], [0], [0], [1], [0, 0, 1, 1], [], []>} : vector<16x32xf32>, vector<32x4xf32>, vector<16x4xf32> -> vector<16x4xf32>
    %660 = vector.extract_strided_slice %650 {offsets = [16, 0], sizes = [8, 32], strides = [1, 1]} : vector<24x32xf32> to vector<8x32xf32>
    %661 = tpu.concatenate %660, %660 in 0 : vector<8x32xf32>, vector<8x32xf32> -> vector<16x32xf32>
    %662 = arith.mulf %642, %661 : vector<16x32xf32>
    %cst_315 = arith.constant dense<0.000000e+00> : vector<16x4xf32>
    %663 = tpu.matmul %662, %23, %cst_315 {dimension_numbers = #tpu.dot_dimension_numbers<[1], [0], [0], [1], [0, 0, 1, 1], [], []>} : vector<16x32xf32>, vector<32x4xf32>, vector<16x4xf32> -> vector<16x4xf32>
    %664 = arith.maximumf %655, %659 : vector<16x4xf32>
    %665 = arith.maximumf %664, %663 : vector<16x4xf32>
    %666 = arith.subf %655, %665 : vector<16x4xf32>
    %667 = math.exp %666 : vector<16x4xf32>
    %668 = arith.subf %659, %665 : vector<16x4xf32>
    %669 = math.exp %668 : vector<16x4xf32>
    %670 = arith.subf %663, %665 : vector<16x4xf32>
    %671 = math.exp %670 : vector<16x4xf32>
    %672 = arith.addf %667, %669 : vector<16x4xf32>
    %673 = arith.addf %672, %671 : vector<16x4xf32>
    %674 = tpu.reciprocal %673 {approx = true} : vector<16x4xf32> -> vector<16x4xf32>
    %675 = vector.extract_strided_slice %651 {offsets = [0, 0], sizes = [8, 32], strides = [1, 1]} : vector<24x32xf32> to vector<8x32xf32>
    %676 = tpu.concatenate %675, %675 in 0 : vector<8x32xf32>, vector<8x32xf32> -> vector<16x32xf32>
    %677 = arith.mulf %667, %674 : vector<16x4xf32>
    %cst_316 = arith.constant dense<0.000000e+00> : vector<16x32xf32>
    %678 = tpu.matmul %677, %24, %cst_316 {dimension_numbers = #tpu.dot_dimension_numbers<[1], [0], [0], [1], [0, 0, 1, 1], [], []>} : vector<16x4xf32>, vector<4x32xf32>, vector<16x32xf32> -> vector<16x32xf32>
    %679 = arith.mulf %678, %676 : vector<16x32xf32>
    %680 = vector.extract_strided_slice %651 {offsets = [8, 0], sizes = [8, 32], strides = [1, 1]} : vector<24x32xf32> to vector<8x32xf32>
    %681 = tpu.concatenate %680, %680 in 0 : vector<8x32xf32>, vector<8x32xf32> -> vector<16x32xf32>
    %682 = arith.mulf %669, %674 : vector<16x4xf32>
    %cst_317 = arith.constant dense<0.000000e+00> : vector<16x32xf32>
    %683 = tpu.matmul %682, %24, %cst_317 {dimension_numbers = #tpu.dot_dimension_numbers<[1], [0], [0], [1], [0, 0, 1, 1], [], []>} : vector<16x4xf32>, vector<4x32xf32>, vector<16x32xf32> -> vector<16x32xf32>
    %684 = arith.mulf %683, %681 : vector<16x32xf32>
    %685 = arith.addf %679, %684 : vector<16x32xf32>
    %686 = vector.extract_strided_slice %651 {offsets = [16, 0], sizes = [8, 32], strides = [1, 1]} : vector<24x32xf32> to vector<8x32xf32>
    %687 = tpu.concatenate %686, %686 in 0 : vector<8x32xf32>, vector<8x32xf32> -> vector<16x32xf32>
    %688 = arith.mulf %671, %674 : vector<16x4xf32>
    %cst_318 = arith.constant dense<0.000000e+00> : vector<16x32xf32>
    %689 = tpu.matmul %688, %24, %cst_318 {dimension_numbers = #tpu.dot_dimension_numbers<[1], [0], [0], [1], [0, 0, 1, 1], [], []>} : vector<16x4xf32>, vector<4x32xf32>, vector<16x32xf32> -> vector<16x32xf32>
    %690 = arith.mulf %689, %687 : vector<16x32xf32>
    %691 = arith.addf %685, %690 : vector<16x32xf32>
    %692 = arith.addf %642, %691 : vector<16x32xf32>
    %c1_319 = arith.constant 1 : index
    %c0_320 = arith.constant 0 : index
    %c0_321 = arith.constant 0 : index
    %693 = vector.load %arg11[%c1_319, %c0_320, %c0_321] : memref<2x1x32xf32, #tpu.memory_space<vmem>>, vector<1x1x32xf32>
    %694 = vector.shape_cast %693 : vector<1x1x32xf32> to vector<1x32xf32>
    %c1_322 = arith.constant 1 : index
    %c0_323 = arith.constant 0 : index
    %c0_324 = arith.constant 0 : index
    %695 = vector.load %arg10[%c1_322, %c0_323, %c0_324] : memref<2x1x32xf32, #tpu.memory_space<vmem>>, vector<1x1x32xf32>
    %696 = vector.shape_cast %695 : vector<1x1x32xf32> to vector<1x32xf32>
    %cst_325 = arith.constant dense<0.000000e+00> : vector<16xf32>
    %697 = vector.multi_reduction <add>, %692, %cst_325 [1] : vector<16x32xf32> to vector<16xf32>
    %698 = vector.shape_cast %697 : vector<16xf32> to vector<16x1xf32>
    %cst_326 = arith.constant 3.200000e+01 : f32
    %699 = vector.broadcast %cst_326 : f32 to vector<16x1xf32>
    %700 = arith.divf %698, %699 : vector<16x1xf32>
    %701 = vector.broadcast %700 : vector<16x1xf32> to vector<16x32xf32>
    %702 = arith.subf %692, %701 : vector<16x32xf32>
    %703 = arith.mulf %702, %702 : vector<16x32xf32>
    %cst_327 = arith.constant dense<0.000000e+00> : vector<16xf32>
    %704 = vector.multi_reduction <add>, %703, %cst_327 [1] : vector<16x32xf32> to vector<16xf32>
    %705 = vector.shape_cast %704 : vector<16xf32> to vector<16x1xf32>
    %cst_328 = arith.constant 3.200000e+01 : f32
    %706 = vector.broadcast %cst_328 : f32 to vector<16x1xf32>
    %707 = arith.divf %705, %706 : vector<16x1xf32>
    %cst_329 = arith.constant 9.99999974E-6 : f32
    %708 = vector.broadcast %cst_329 : f32 to vector<16x1xf32>
    %709 = arith.addf %707, %708 : vector<16x1xf32>
    %710 = math.rsqrt %709 : vector<16x1xf32>
    %711 = vector.broadcast %710 : vector<16x1xf32> to vector<16x32xf32>
    %712 = arith.mulf %702, %711 : vector<16x32xf32>
    %713 = vector.broadcast %694 : vector<1x32xf32> to vector<16x32xf32>
    %714 = arith.mulf %712, %713 : vector<16x32xf32>
    %715 = vector.broadcast %696 : vector<1x32xf32> to vector<16x32xf32>
    %716 = arith.addf %714, %715 : vector<16x32xf32>
    %c1_330 = arith.constant 1 : index
    %c0_331 = arith.constant 0 : index
    %c0_332 = arith.constant 0 : index
    %717 = vector.load %arg15[%c1_330, %c0_331, %c0_332] : memref<2x32x32xf32, #tpu.memory_space<vmem>>, vector<1x32x32xf32>
    %718 = vector.shape_cast %717 : vector<1x32x32xf32> to vector<32x32xf32>
    %cst_333 = arith.constant dense<0.000000e+00> : vector<16x32xf32>
    %719 = tpu.matmul %716, %718, %cst_333 {dimension_numbers = #tpu.dot_dimension_numbers<[1], [0], [0], [1], [0, 0, 1, 1], [], []>} : vector<16x32xf32>, vector<32x32xf32>, vector<16x32xf32> -> vector<16x32xf32>
    %c1_334 = arith.constant 1 : index
    %c0_335 = arith.constant 0 : index
    %c0_336 = arith.constant 0 : index
    %720 = vector.load %arg6[%c1_334, %c0_335, %c0_336] : memref<2x1x32xf32, #tpu.memory_space<vmem>>, vector<1x1x32xf32>
    %721 = vector.shape_cast %720 : vector<1x1x32xf32> to vector<1x32xf32>
    %722 = vector.broadcast %721 : vector<1x32xf32> to vector<16x32xf32>
    %723 = arith.addf %719, %722 : vector<16x32xf32>
    %cst_337 = arith.constant 0.000000e+00 : f32
    %724 = vector.broadcast %cst_337 : f32 to vector<16x32xf32>
    %725 = arith.maximumf %723, %724 : vector<16x32xf32>
    %726 = arith.addf %716, %725 : vector<16x32xf32>
    %c1_338 = arith.constant 1 : index
    %c0_339 = arith.constant 0 : index
    %c0_340 = arith.constant 0 : index
    %727 = vector.load %arg13[%c1_338, %c0_339, %c0_340] : memref<2x1x32xf32, #tpu.memory_space<vmem>>, vector<1x1x32xf32>
    %728 = vector.shape_cast %727 : vector<1x1x32xf32> to vector<1x32xf32>
    %c1_341 = arith.constant 1 : index
    %c0_342 = arith.constant 0 : index
    %c0_343 = arith.constant 0 : index
    %729 = vector.load %arg12[%c1_341, %c0_342, %c0_343] : memref<2x1x32xf32, #tpu.memory_space<vmem>>, vector<1x1x32xf32>
    %730 = vector.shape_cast %729 : vector<1x1x32xf32> to vector<1x32xf32>
    %cst_344 = arith.constant dense<0.000000e+00> : vector<16xf32>
    %731 = vector.multi_reduction <add>, %726, %cst_344 [1] : vector<16x32xf32> to vector<16xf32>
    %732 = vector.shape_cast %731 : vector<16xf32> to vector<16x1xf32>
    %cst_345 = arith.constant 3.200000e+01 : f32
    %733 = vector.broadcast %cst_345 : f32 to vector<16x1xf32>
    %734 = arith.divf %732, %733 : vector<16x1xf32>
    %735 = vector.broadcast %734 : vector<16x1xf32> to vector<16x32xf32>
    %736 = arith.subf %726, %735 : vector<16x32xf32>
    %737 = arith.mulf %736, %736 : vector<16x32xf32>
    %cst_346 = arith.constant dense<0.000000e+00> : vector<16xf32>
    %738 = vector.multi_reduction <add>, %737, %cst_346 [1] : vector<16x32xf32> to vector<16xf32>
    %739 = vector.shape_cast %738 : vector<16xf32> to vector<16x1xf32>
    %cst_347 = arith.constant 3.200000e+01 : f32
    %740 = vector.broadcast %cst_347 : f32 to vector<16x1xf32>
    %741 = arith.divf %739, %740 : vector<16x1xf32>
    %cst_348 = arith.constant 9.99999974E-6 : f32
    %742 = vector.broadcast %cst_348 : f32 to vector<16x1xf32>
    %743 = arith.addf %741, %742 : vector<16x1xf32>
    %744 = math.rsqrt %743 : vector<16x1xf32>
    %745 = vector.broadcast %744 : vector<16x1xf32> to vector<16x32xf32>
    %746 = arith.mulf %736, %745 : vector<16x32xf32>
    %747 = vector.broadcast %728 : vector<1x32xf32> to vector<16x32xf32>
    %748 = arith.mulf %746, %747 : vector<16x32xf32>
    %749 = vector.broadcast %730 : vector<1x32xf32> to vector<16x32xf32>
    %750 = arith.addf %748, %749 : vector<16x32xf32>
    %751 = vector.extract_strided_slice %750 {offsets = [0, 0], sizes = [8, 32], strides = [1, 1]} : vector<16x32xf32> to vector<8x32xf32>
    %752 = vector.extract_strided_slice %750 {offsets = [8, 0], sizes = [8, 32], strides = [1, 1]} : vector<16x32xf32> to vector<8x32xf32>
    %c0_349 = arith.constant 0 : index
    %c0_350 = arith.constant 0 : index
    %753 = vector.load %arg37[%c0_349, %c0_350] : memref<32x32xf32, #tpu.memory_space<vmem>>, vector<32x32xf32>
    %cst_351 = arith.constant dense<0.000000e+00> : vector<8x32xf32>
    %754 = tpu.matmul %751, %753, %cst_351 {dimension_numbers = #tpu.dot_dimension_numbers<[1], [0], [0], [1], [0, 0, 1, 1], [], []>} : vector<8x32xf32>, vector<32x32xf32>, vector<8x32xf32> -> vector<8x32xf32>
    %c0_352 = arith.constant 0 : index
    %c0_353 = arith.constant 0 : index
    %755 = vector.load %arg38[%c0_352, %c0_353] : memref<32x32xf32, #tpu.memory_space<vmem>>, vector<32x32xf32>
    %cst_354 = arith.constant dense<0.000000e+00> : vector<8x32xf32>
    %756 = tpu.matmul %752, %755, %cst_354 {dimension_numbers = #tpu.dot_dimension_numbers<[1], [0], [0], [1], [0, 0, 1, 1], [], []>} : vector<8x32xf32>, vector<32x32xf32>, vector<8x32xf32> -> vector<8x32xf32>
    %757 = arith.addf %754, %756 : vector<8x32xf32>
    %c0_355 = arith.constant 0 : index
    %c0_356 = arith.constant 0 : index
    %758 = vector.load %arg36[%c0_355, %c0_356] : memref<1x32xf32, #tpu.memory_space<vmem>>, vector<1x32xf32>
    %759 = vector.broadcast %758 : vector<1x32xf32> to vector<8x32xf32>
    %760 = arith.addf %757, %759 : vector<8x32xf32>
    %cst_357 = arith.constant 0.000000e+00 : f32
    %761 = vector.broadcast %cst_357 : f32 to vector<8x32xf32>
    %762 = arith.maximumf %760, %761 : vector<8x32xf32>
    %c0_358 = arith.constant 0 : index
    %c0_359 = arith.constant 0 : index
    %763 = vector.load %arg40[%c0_358, %c0_359] : memref<32x32xf32, #tpu.memory_space<vmem>>, vector<32x32xf32>
    %cst_360 = arith.constant dense<0.000000e+00> : vector<8x32xf32>
    %764 = tpu.matmul %762, %763, %cst_360 {dimension_numbers = #tpu.dot_dimension_numbers<[1], [0], [0], [1], [0, 0, 1, 1], [], []>} : vector<8x32xf32>, vector<32x32xf32>, vector<8x32xf32> -> vector<8x32xf32>
    %c0_361 = arith.constant 0 : index
    %c0_362 = arith.constant 0 : index
    %765 = vector.load %arg39[%c0_361, %c0_362] : memref<1x32xf32, #tpu.memory_space<vmem>>, vector<1x32xf32>
    %766 = vector.broadcast %765 : vector<1x32xf32> to vector<8x32xf32>
    %767 = arith.addf %764, %766 : vector<8x32xf32>
    %cst_363 = arith.constant 0.000000e+00 : f32
    %768 = vector.broadcast %cst_363 : f32 to vector<8x32xf32>
    %769 = arith.maximumf %767, %768 : vector<8x32xf32>
    %c0_364 = arith.constant 0 : index
    %c0_365 = arith.constant 0 : index
    %770 = vector.load %arg4[%c0_364, %c0_365] : memref<1x32xf32, #tpu.memory_space<vmem>>, vector<1x32xf32>
    %cst_366 = arith.constant dense<0.000000e+00> : vector<1x8xf32>
    %771 = tpu.matmul %770, %769, %cst_366 {dimension_numbers = #tpu.dot_dimension_numbers<[1], [1], [0], [0], [0, 0, 1, 0], [], []>} : vector<1x32xf32>, vector<8x32xf32>, vector<1x8xf32> -> vector<1x8xf32>
    %c0_367 = arith.constant 0 : index
    %c0_368 = arith.constant 0 : index
    %772 = vector.load %arg3[%c0_367, %c0_368] : memref<1x1xf32, #tpu.memory_space<vmem>>, vector<1x1xf32>
    %773 = vector.broadcast %772 : vector<1x1xf32> to vector<1x8xf32>
    %774 = arith.addf %771, %773 : vector<1x8xf32>
    %c0_369 = arith.constant 0 : index
    %c0_370 = arith.constant 0 : index
    %c0_371 = arith.constant 0 : index
    %775 = vector.load %arg41[%c0_369, %c0_370, %c0_371] : memref<1x1x8xf32, #tpu.memory_space<vmem>>, vector<1x1x8xf32>
    %776 = vector.shape_cast %775 : vector<1x1x8xf32> to vector<1x8xf32>
    %777 = vector.shape_cast %774 : vector<1x8xf32> to vector<1x1x8xf32>
    tpu.vector_store %arg41[%c0_369, %c0_370, %c0_371], %777 {strides = array<i32>} : memref<1x1x8xf32, #tpu.memory_space<vmem>>, vector<1x1x8xf32>,
    return
  }
  func.func @transform_0(%arg0: i32) -> (i32, i32) {
    %c0_i32 = arith.constant 0 : i32
    %c0_i32_0 = arith.constant 0 : i32
    return %arg0, %c0_i32 : i32, i32
  }
  func.func @transform_1(%arg0: i32) -> (i32, i32) {
    %c0_i32 = arith.constant 0 : i32
    %c0_i32_0 = arith.constant 0 : i32
    %c0_i32_1 = arith.constant 0 : i32
    return %c0_i32, %c0_i32_0 : i32, i32
  }
  func.func @transform_2(%arg0: i32) -> (i32, i32) {
    %c0_i32 = arith.constant 0 : i32
    %c0_i32_0 = arith.constant 0 : i32
    %c0_i32_1 = arith.constant 0 : i32
    return %c0_i32, %c0_i32_0 : i32, i32
  }
  func.func @transform_3(%arg0: i32) -> (i32, i32) {
    %c0_i32 = arith.constant 0 : i32
    %c0_i32_0 = arith.constant 0 : i32
    %c0_i32_1 = arith.constant 0 : i32
    return %c0_i32, %c0_i32_0 : i32, i32
  }
  func.func @transform_4(%arg0: i32) -> (i32, i32, i32) {
    %c0_i32 = arith.constant 0 : i32
    %c0_i32_0 = arith.constant 0 : i32
    %c0_i32_1 = arith.constant 0 : i32
    %c0_i32_2 = arith.constant 0 : i32
    return %c0_i32, %c0_i32_0, %c0_i32_1 : i32, i32, i32
  }
  func.func @transform_5(%arg0: i32) -> (i32, i32, i32) {
    %c0_i32 = arith.constant 0 : i32
    %c0_i32_0 = arith.constant 0 : i32
    %c0_i32_1 = arith.constant 0 : i32
    %c0_i32_2 = arith.constant 0 : i32
    return %c0_i32, %c0_i32_0, %c0_i32_1 : i32, i32, i32
  }
  func.func @transform_6(%arg0: i32) -> (i32, i32, i32) {
    %c0_i32 = arith.constant 0 : i32
    %c0_i32_0 = arith.constant 0 : i32
    %c0_i32_1 = arith.constant 0 : i32
    %c0_i32_2 = arith.constant 0 : i32
    return %c0_i32, %c0_i32_0, %c0_i32_1 : i32, i32, i32
  }
  func.func @transform_7(%arg0: i32) -> (i32, i32) {
    %c0_i32 = arith.constant 0 : i32
    %c0_i32_0 = arith.constant 0 : i32
    %c0_i32_1 = arith.constant 0 : i32
    return %c0_i32, %c0_i32_0 : i32, i32
  }
  func.func @transform_8(%arg0: i32) -> (i32, i32) {
    %c0_i32 = arith.constant 0 : i32
    %c0_i32_0 = arith.constant 0 : i32
    %c0_i32_1 = arith.constant 0 : i32
    return %c0_i32, %c0_i32_0 : i32, i32
  }
  func.func @transform_9(%arg0: i32) -> (i32, i32, i32) {
    %c0_i32 = arith.constant 0 : i32
    %c0_i32_0 = arith.constant 0 : i32
    %c0_i32_1 = arith.constant 0 : i32
    %c0_i32_2 = arith.constant 0 : i32
    return %c0_i32, %c0_i32_0, %c0_i32_1 : i32, i32, i32
  }
  func.func @transform_10(%arg0: i32) -> (i32, i32, i32) {
    %c0_i32 = arith.constant 0 : i32
    %c0_i32_0 = arith.constant 0 : i32
    %c0_i32_1 = arith.constant 0 : i32
    %c0_i32_2 = arith.constant 0 : i32
    return %c0_i32, %c0_i32_0, %c0_i32_1 : i32, i32, i32
  }
  func.func @transform_11(%arg0: i32) -> (i32, i32, i32) {
    %c0_i32 = arith.constant 0 : i32
    %c0_i32_0 = arith.constant 0 : i32
    %c0_i32_1 = arith.constant 0 : i32
    %c0_i32_2 = arith.constant 0 : i32
    return %c0_i32, %c0_i32_0, %c0_i32_1 : i32, i32, i32
  }
  func.func @transform_12(%arg0: i32) -> (i32, i32, i32) {
    %c0_i32 = arith.constant 0 : i32
    %c0_i32_0 = arith.constant 0 : i32
    %c0_i32_1 = arith.constant 0 : i32
    %c0_i32_2 = arith.constant 0 : i32
    return %c0_i32, %c0_i32_0, %c0_i32_1 : i32, i32, i32
  }
  func.func @transform_13(%arg0: i32) -> (i32, i32, i32) {
    %c0_i32 = arith.constant 0 : i32
    %c0_i32_0 = arith.constant 0 : i32
    %c0_i32_1 = arith.constant 0 : i32
    %c0_i32_2 = arith.constant 0 : i32
    return %c0_i32, %c0_i32_0, %c0_i32_1 : i32, i32, i32
  }
  func.func @transform_14(%arg0: i32) -> (i32, i32, i32) {
    %c0_i32 = arith.constant 0 : i32
    %c0_i32_0 = arith.constant 0 : i32
    %c0_i32_1 = arith.constant 0 : i32
    %c0_i32_2 = arith.constant 0 : i32
    return %c0_i32, %c0_i32_0, %c0_i32_1 : i32, i32, i32
  }
  func.func @transform_15(%arg0: i32) -> (i32, i32, i32) {
    %c0_i32 = arith.constant 0 : i32
    %c0_i32_0 = arith.constant 0 : i32
    %c0_i32_1 = arith.constant 0 : i32
    %c0_i32_2 = arith.constant 0 : i32
    return %c0_i32, %c0_i32_0, %c0_i32_1 : i32, i32, i32
  }
  func.func @transform_16(%arg0: i32) -> (i32, i32) {
    %c0_i32 = arith.constant 0 : i32
    %c0_i32_0 = arith.constant 0 : i32
    %c0_i32_1 = arith.constant 0 : i32
    return %c0_i32, %c0_i32_0 : i32, i32
  }
  func.func @transform_17(%arg0: i32) -> (i32, i32) {
    %c0_i32 = arith.constant 0 : i32
    %c0_i32_0 = arith.constant 0 : i32
    %c0_i32_1 = arith.constant 0 : i32
    return %c0_i32, %c0_i32_0 : i32, i32
  }
  func.func @transform_18(%arg0: i32) -> (i32, i32) {
    %c0_i32 = arith.constant 0 : i32
    %c0_i32_0 = arith.constant 0 : i32
    %c0_i32_1 = arith.constant 0 : i32
    return %c0_i32, %c0_i32_0 : i32, i32
  }
  func.func @transform_19(%arg0: i32) -> (i32, i32) {
    %c0_i32 = arith.constant 0 : i32
    %c0_i32_0 = arith.constant 0 : i32
    %c0_i32_1 = arith.constant 0 : i32
    return %c0_i32, %c0_i32_0 : i32, i32
  }
  func.func @transform_20(%arg0: i32) -> (i32, i32) {
    %c0_i32 = arith.constant 0 : i32
    %c0_i32_0 = arith.constant 0 : i32
    %c0_i32_1 = arith.constant 0 : i32
    return %c0_i32, %c0_i32_0 : i32, i32
  }
  func.func @transform_21(%arg0: i32) -> (i32, i32, i32) {
    %c0_i32 = arith.constant 0 : i32
    %c0_i32_0 = arith.constant 0 : i32
    %c0_i32_1 = arith.constant 0 : i32
    %c0_i32_2 = arith.constant 0 : i32
    return %c0_i32, %c0_i32_0, %c0_i32_1 : i32, i32, i32
  }
  func.func @transform_22(%arg0: i32) -> (i32, i32, i32) {
    %c0_i32 = arith.constant 0 : i32
    %c0_i32_0 = arith.constant 0 : i32
    %c0_i32_1 = arith.constant 0 : i32
    %c0_i32_2 = arith.constant 0 : i32
    return %c0_i32, %c0_i32_0, %c0_i32_1 : i32, i32, i32
  }
  func.func @transform_23(%arg0: i32) -> (i32, i32, i32) {
    %c0_i32 = arith.constant 0 : i32
    %c0_i32_0 = arith.constant 0 : i32
    %c0_i32_1 = arith.constant 0 : i32
    %c0_i32_2 = arith.constant 0 : i32
    return %c0_i32, %c0_i32_0, %c0_i32_1 : i32, i32, i32
  }
  func.func @transform_24(%arg0: i32) -> (i32, i32, i32) {
    %c0_i32 = arith.constant 0 : i32
    %c0_i32_0 = arith.constant 0 : i32
    %c0_i32_1 = arith.constant 0 : i32
    %c0_i32_2 = arith.constant 0 : i32
    return %c0_i32, %c0_i32_0, %c0_i32_1 : i32, i32, i32
  }
  func.func @transform_25(%arg0: i32) -> (i32, i32) {
    %c0_i32 = arith.constant 0 : i32
    %c0_i32_0 = arith.constant 0 : i32
    %c0_i32_1 = arith.constant 0 : i32
    return %c0_i32, %c0_i32_0 : i32, i32
  }
  func.func @transform_26(%arg0: i32) -> (i32, i32) {
    %c0_i32 = arith.constant 0 : i32
    %c0_i32_0 = arith.constant 0 : i32
    %c0_i32_1 = arith.constant 0 : i32
    return %c0_i32, %c0_i32_0 : i32, i32
  }
  func.func @transform_27(%arg0: i32) -> (i32, i32, i32) {
    %c0_i32 = arith.constant 0 : i32
    %c0_i32_0 = arith.constant 0 : i32
    %c0_i32_1 = arith.constant 0 : i32
    %c0_i32_2 = arith.constant 0 : i32
    return %c0_i32, %c0_i32_0, %c0_i32_1 : i32, i32, i32
  }
  func.func @transform_28(%arg0: i32) -> (i32, i32, i32) {
    %c0_i32 = arith.constant 0 : i32
    %c0_i32_0 = arith.constant 0 : i32
    %c0_i32_1 = arith.constant 0 : i32
    %c0_i32_2 = arith.constant 0 : i32
    return %c0_i32, %c0_i32_0, %c0_i32_1 : i32, i32, i32
  }
  func.func @transform_29(%arg0: i32) -> (i32, i32, i32) {
    %c0_i32 = arith.constant 0 : i32
    %c0_i32_0 = arith.constant 0 : i32
    %c0_i32_1 = arith.constant 0 : i32
    %c0_i32_2 = arith.constant 0 : i32
    return %c0_i32, %c0_i32_0, %c0_i32_1 : i32, i32, i32
  }
  func.func @transform_30(%arg0: i32) -> (i32, i32, i32) {
    %c0_i32 = arith.constant 0 : i32
    %c0_i32_0 = arith.constant 0 : i32
    %c0_i32_1 = arith.constant 0 : i32
    %c0_i32_2 = arith.constant 0 : i32
    return %c0_i32, %c0_i32_0, %c0_i32_1 : i32, i32, i32
  }
  func.func @transform_31(%arg0: i32) -> (i32, i32, i32) {
    %c0_i32 = arith.constant 0 : i32
    %c0_i32_0 = arith.constant 0 : i32
    %c0_i32_1 = arith.constant 0 : i32
    %c0_i32_2 = arith.constant 0 : i32
    return %c0_i32, %c0_i32_0, %c0_i32_1 : i32, i32, i32
  }
  func.func @transform_32(%arg0: i32) -> (i32, i32, i32) {
    %c0_i32 = arith.constant 0 : i32
    %c0_i32_0 = arith.constant 0 : i32
    %c0_i32_1 = arith.constant 0 : i32
    %c0_i32_2 = arith.constant 0 : i32
    return %c0_i32, %c0_i32_0, %c0_i32_1 : i32, i32, i32
  }
  func.func @transform_33(%arg0: i32) -> (i32, i32, i32) {
    %c0_i32 = arith.constant 0 : i32
    %c0_i32_0 = arith.constant 0 : i32
    %c0_i32_1 = arith.constant 0 : i32
    %c0_i32_2 = arith.constant 0 : i32
    return %c0_i32, %c0_i32_0, %c0_i32_1 : i32, i32, i32
  }
  func.func @transform_34(%arg0: i32) -> (i32, i32, i32) {
    %c0_i32 = arith.constant 0 : i32
    %c0_i32_0 = arith.constant 0 : i32
    %c0_i32_1 = arith.constant 0 : i32
    %c0_i32_2 = arith.constant 0 : i32
    return %c0_i32, %c0_i32_0, %c0_i32_1 : i32, i32, i32
  }
  func.func @transform_35(%arg0: i32) -> (i32, i32) {
    %c0_i32 = arith.constant 0 : i32
    %c0_i32_0 = arith.constant 0 : i32
    %c0_i32_1 = arith.constant 0 : i32
    return %c0_i32, %c0_i32_0 : i32, i32
  }
  func.func @transform_36(%arg0: i32) -> (i32, i32) {
    %c0_i32 = arith.constant 0 : i32
    %c0_i32_0 = arith.constant 0 : i32
    %c0_i32_1 = arith.constant 0 : i32
    return %c0_i32, %c0_i32_0 : i32, i32
  }
  func.func @transform_37(%arg0: i32) -> (i32, i32) {
    %c0_i32 = arith.constant 0 : i32
    %c0_i32_0 = arith.constant 0 : i32
    %c0_i32_1 = arith.constant 0 : i32
    return %c0_i32, %c0_i32_0 : i32, i32
  }
  func.func @transform_38(%arg0: i32) -> (i32, i32) {
    %c0_i32 = arith.constant 0 : i32
    %c0_i32_0 = arith.constant 0 : i32
    %c0_i32_1 = arith.constant 0 : i32
    return %c0_i32, %c0_i32_0 : i32, i32
  }
  func.func @transform_39(%arg0: i32) -> (i32, i32) {
    %c0_i32 = arith.constant 0 : i32
    %c0_i32_0 = arith.constant 0 : i32
    %c0_i32_1 = arith.constant 0 : i32
    return %c0_i32, %c0_i32_0 : i32, i32
  }
  func.func @transform_40(%arg0: i32) -> (i32, i32, i32) {
    %c0_i32 = arith.constant 0 : i32
    %c0_i32_0 = arith.constant 0 : i32
    %c0_i32_1 = arith.constant 0 : i32
    return %arg0, %c0_i32, %c0_i32_0 : i32, i32, i32
  }
}

</mosaic_0001>

<bundles_post_ra>
// kernel: critic_forward.1
= control target key start
LH: loop header
LB: loop body
LE: loop exit
PB: predicated region body
PF: predicated region fallthrough
CT: control target
= control target key end

     0   :  { %s10943_s6 = smov 1   ;;  %s10944_s10 = smov 2   ;;  %s12428_s0 = inlined_call_operand.smem [shape: u32[41], index: -1, kind: input, shape index: {}] }
   0x1   :  { %s11036_s5 = sld [smem:[%s12428_s0]]   ;;  %s10945_s14 = smov 3  }
   0x2   :  { %s11041_s9 = sld [smem:[%s12428_s0 + %s10943_s6]]   ;;  %s10946_s18 = smov 4  }
   0x3   :  { %s7958_s13 = sld [smem:[%s12428_s0 + %s10944_s10]]   ;;  %s10947_s22 = smov 5  }
   0x4   :  { %s11049_s17 = sld [smem:[%s12428_s0 + %s10945_s14]]   ;;  %s10948_s26 = smov 6  }
   0x5   :  { %s11054_s21 = sld [smem:[%s12428_s0 + %s10946_s18]]   ;;  %s10949_s30 = smov 7  }
   0x6   :  { %s11059_s25 = sld [smem:[%s12428_s0 + %s10947_s22]]   ;;  %s10950_s4 = smov 8  }
   0x7   :  { %12450 = sst [smem:[#allocation69_spill]] %s11036_s5  ;;  %s10951_s10 = smov 9  }
   0x8   :  { %12451 = sst [smem:[#allocation70_spill]] %s11041_s9  ;;  %s10952_s15 = smov 10  }
   0x9   :  { %s11064_s29 = sld [smem:[%s12428_s0 + %s10948_s26]]   ;;  %v86_v0 = vstv %s7958_s13  ;;  %s10953_s20 = smov 11  }
   0xa   :  { %s11069_s3 = sld [smem:[%s12428_s0 + %s10949_s30]]   ;;  %87 = vst [vmem:[#allocation2] sm:$0x1] %v86_v0  ;;  %s10954_s13 = smov 12  }
   0xb   :  { %12452 = sst [smem:[#allocation71_spill]] %s11054_s21  ;;  %s10955_s30 = smov 13  }
   0xc   :  { %s11074_s8 = sld [smem:[%s12428_s0 + %s10950_s4]]   ;;  %s10956_s6 = smov 14  }
   0xd   :  { %s11079_s14 = sld [smem:[%s12428_s0 + %s10951_s10]]   ;;  %s10957_s12 = smov 15  }
   0xe   :  { %s11084_s19 = sld [smem:[%s12428_s0 + %s10952_s15]]   ;;  %s10959_s26 = smov 17  }
   0xf   :  { %12453 = sst [smem:[#allocation72_spill]] %s11064_s29  ;;  %s10960_s2 = smov 18  }
  0x10   :  { %s11089_s24 = sld [smem:[%s12428_s0 + %s10953_s20]]   ;;  %s10958_s20 = smov 16  }
  0x11   :  { %s11094_s28 = sld [smem:[%s12428_s0 + %s10954_s13]]  }
  0x12   :  { %12454 = sst [smem:[#allocation73_spill]] %s11074_s8 }
  0x13   :  { %12455 = sst [smem:[#allocation74_spill]] %s11079_s14 }
  0x14   :  { %s11099_s4 = sld [smem:[%s12428_s0 + %s10955_s30]]  }
  0x15   :  { %s11104_s11 = sld [smem:[%s12428_s0 + %s10956_s6]]  }
  0x16   :  { %12456 = sst [smem:[#allocation75_spill]] %s11089_s24 }
  0x17   :  { %s11109_s18 = sld [smem:[%s12428_s0 + %s10957_s12]]   ;;  %s10961_s12 = smov 19  }
  0x18   :  { %s11114_s13 = sld [smem:[%s12428_s0 + %s10958_s20]]   ;;  %s10962_s20 = smov 20  }
  0x19   :  { %s11119_s1 = sld [smem:[%s12428_s0 + %s10959_s26]]   ;;  %s10963_s26 = smov 21  }
  0x1a   :  { %12457 = sst [smem:[#allocation76_spill]] %s11099_s4 }
  0x1b   :  { %s11124_s10 = sld [smem:[%s12428_s0 + %s10960_s2]]   ;;  %s10964_s2 = smov 22  }
  0x1c   :  { %s11129_s8 = sld [smem:[%s12428_s0 + %s10961_s12]]   ;;  %s10965_s12 = smov 23  }
  0x1d   :  { %12458 = sst [smem:[#allocation77_spill]] %s11109_s18 }
  0x1e   :  { %s11134_s5 = sld [smem:[%s12428_s0 + %s10962_s20]]   ;;  %s10966_s20 = smov 24  }
  0x1f   :  { %12459 = sst [smem:[#allocation78_spill]] %s11119_s1 }
  0x20   :  { %s11139_s1 = sld [smem:[%s12428_s0 + %s10963_s26]]   ;;  %s10967_s26 = smov 25  }
  0x21   :  { %s11144_s18 = sld [smem:[%s12428_s0 + %s10964_s2]]   ;;  %s10968_s2 = smov 26  }
  0x22   :  { %12460 = sst [smem:[#allocation79_spill]] %s11129_s8 }
  0x23   :  { %s11149_s8 = sld [smem:[%s12428_s0 + %s10965_s12]]   ;;  %s10969_s12 = smov 27  }
  0x24   :  { %12461 = sst [smem:[#allocation80_spill]] %s11134_s5 }
  0x25   :  { %s11154_s5 = sld [smem:[%s12428_s0 + %s10966_s20]]   ;;  %s10970_s20 = smov 28  }
  0x26   :  { %s11159_s4 = sld [smem:[%s12428_s0 + %s10967_s26]]   ;;  %s10971_s26 = smov 29  }
  0x27   :  { %12462 = sst [smem:[#allocation81_spill]] %s11144_s18 }
  0x28   :  { %s11164_s18 = sld [smem:[%s12428_s0 + %s10968_s2]]   ;;  %s10972_s2 = smov 30  }
  0x29   :  { %s11169_s24 = sld [smem:[%s12428_s0 + %s10969_s12]]   ;;  %s10973_s12 = smov 31  }
  0x2a   :  { %s11179_s14 = sld [smem:[%s12428_s0 + %s10971_s26]]   ;;  %s10975_s26 = smov 33  }
  0x2b   :  { %12463 = sst [smem:[#allocation82_spill]] %s11154_s5 }
  0x2c   :  { %s11174_s5 = sld [smem:[%s12428_s0 + %s10970_s20]]   ;;  %s10974_s20 = smov 32  }
  0x2d   :  { %s11194_s29 = sld [smem:[%s12428_s0 + %s10974_s20]]   ;;  %s10978_s20 = smov 36  }
  0x2e   :  { %12464 = sst [smem:[#allocation83_spill]] %s11164_s18 }
  0x2f   :  { %12465 = sst [smem:[#allocation84_spill]] %s11169_s24 }
  0x30   :  { %12466 = sst [smem:[#allocation85_spill]] %s11179_s14 }
  0x31   :  { %s11184_s18 = sld [smem:[%s12428_s0 + %s10972_s2]]   ;;  %s10976_s2 = smov 34  }
  0x32   :  { %s11189_s24 = sld [smem:[%s12428_s0 + %s10973_s12]]   ;;  %s10977_s12 = smov 35  }
  0x33   :  { %12468 = sst [smem:[#allocation87_spill]] %s11194_s29 }
  0x34   :  { %s11199_s14 = sld [smem:[%s12428_s0 + %s10975_s26]]   ;;  %s10979_s26 = smov 37  }
  0x35   :  { %s11204_s21 = sld [smem:[%s12428_s0 + %s10976_s2]]   ;;  %s10980_s2 = smov 38  }
  0x36   :  { %s11214_s29 = sld [smem:[%s12428_s0 + %s10978_s20]]   ;;  %s10982_s20 = smov 40  }
  0x37   :  { %s11224_s9 = sld [smem:[%s12428_s0 + %s10980_s2]]  }
  0x38   :  { %12467 = sst [smem:[#allocation86_spill]] %s11189_s24 }
  0x39   :  { %s11209_s24 = sld [smem:[%s12428_s0 + %s10977_s12]]   ;;  %s10981_s12 = smov 39  }
  0x3a   :  { %12469 = sst [smem:[#allocation88_spill]] %s11199_s14 }
  0x3b   :  { %s11219_s14 = sld [smem:[%s12428_s0 + %s10979_s26]]  }
  0x3c   :  { %12471 = sst [smem:[#allocation90_spill]] %s11214_s29 }
  0x3d   :  { %s11234_s29 = sld [smem:[%s12428_s0 + %s10982_s20]]  }
  0x3f   :  { %12470 = sst [smem:[#allocation89_spill]] %s11209_s24 }
  0x40   :  { %s11229_s24 = sld [smem:[%s12428_s0 + %s10981_s12]]  }
  0x41   :  { %88 = vsyncpa [#allocation4], 0 }
  0x42   :  { %89 = vsyncpa [#allocation6], 0 }
  0x43   :  { %90 = vsyncpa [#allocation9], 0 }
  0x44   :  { %91 = vsyncpa [#allocation12], 0 }
  0x45   :  { %92 = vsyncpa [#allocation15], 0 }
  0x46   :  { %93 = vsyncpa [#allocation18], 0 }
  0x47   :  { %94 = vsyncpa [#allocation21], 0 }
  0x48   :  { %95 = vsyncpa [#allocation24], 0 }
  0x49   :  { %96 = vsyncpa [#allocation27], 0 }
  0x4a   :  { %97 = vsyncpa [#allocation30], 0 }
  0x4b   :  { %98 = vsyncpa [#allocation33], 0 }
  0x4c   :  { %99 = vsyncpa [#allocation36], 0 }
  0x4d   :  { %100 = vsyncpa [#allocation39], 0 }
  0x4e   :  { %101 = vsyncpa [#allocation42], 0 }
  0x4f   :  { %102 = vsyncpa [#allocation45], 0 }
  0x50   :  { %103 = vsyncpa [#allocation48], 0 }
  0x51   :  { %104 = vsyncpa [#allocation51], 0  ;;  %s10983_s0 = smov [#allocation5]   ;;  %s10205_s27 = scalar_lea.hbm %s11049_s17, 16 }
  0x52   :  { %s125_s26 = sshll.u32 %s10983_s0, 4  ;;  %p10206_p0 = scmp.ne.s32.totalorder %s11049_s17, %s10205_s27  ;;  %s126_s26 = int_to_ptr.vmem [resolvable:$true] %s125_s26 }
  0x53   :  { %p10209_p1 = scmp.lt.u32.totalorder %s10205_s27, %s11049_s17 }
  0x55   :  { %p10211_p2 = pnand %p10209_p1, %p10206_p0 }
  0x57   :  { %10214 = shalt.err (!%p10211_p2)
}
  0x58   :  { %s10215_s30 = scalar_lea.vmem %s126_s26, 16  ;;  %s10219_s2 = scalar_lea.vmem %s126_s26, 32 }
  0x59   :  { %p10216_p3 = scmp.ne.s32.totalorder %s126_s26, %s10215_s30  ;;  %p10220_p4 = scmp.lt.s32.totalorder %s126_s26, %s126_s26 }
  0x5a   :  { %p10221_p5 = scmp.lt.s32.totalorder %s10219_s2, %s10215_s30 }
  0x5c   :  { %p10222_p6 = por %p10221_p5, %p10220_p4 }
  0x5e   :  { %p10223_p7 = pnand %p10222_p6, %p10216_p3 }
  0x60   :  { %10226 = shalt.err (!%p10223_p7)
}
  0x61   :  { %128 = dma.hbm_to_vmem [thread:$0]  %s11049_s17, 16, %s126_s26, [#allocation6]  }
  0x62   :  { %s10984_s6 = smov [#allocation8]   ;;  %s10985_s12 = smov [#allocation11]  }
  0x63   :  { %s146_s7 = sshll.u32 %s10984_s6, 4  ;;  %s171_s15 = sshll.u32 %s10985_s12, 4  ;;  %s147_s7 = int_to_ptr.vmem [resolvable:$true] %s146_s7  ;;  %s172_s15 = int_to_ptr.vmem [resolvable:$true] %s171_s15 }
  0x64   :  { %s10227_s16 = scalar_lea.hbm %s11059_s25, 32 }
  0x65   :  { %p10228_p8 = scmp.ne.s32.totalorder %s11059_s25, %s10227_s16  ;;  %p10231_p9 = scmp.lt.u32.totalorder %s10227_s16, %s11059_s25 }
  0x67   :  { %p10233_p10 = pnand %p10231_p9, %p10228_p8 }
  0x69   :  { %10236 = shalt.err (!%p10233_p10)
}
  0x6a   :  { %s10237_s20 = scalar_lea.vmem %s147_s7, 32  ;;  %p10242_p12 = scmp.lt.s32.totalorder %s147_s7, %s147_s7 }
  0x6b   :  { %p10238_p11 = scmp.ne.s32.totalorder %s147_s7, %s10237_s20  ;;  %p10243_p13 = scmp.lt.s32.totalorder %s10237_s20, %s10237_s20 }
  0x6d   :  { %p10244_p0 = por %p10243_p13, %p10242_p12 }
  0x6f   :  { %p10245_p1 = pnand %p10244_p0, %p10238_p11 }
  0x71   :  { %10248 = shalt.err (!%p10245_p1)
}
  0x72   :  { %s10986_s22 = smov 16   ;;  %s10987_s17 = smov 1  }
  0x73   :  { %152 = dma.hbm_to_vmem [thread:$0]  %s11059_s25, 32, %s147_s7, [#allocation9], %s10986_s22, %s10986_s22, %s10987_s17  }
  0x74   :  { %s10249_s23 = scalar_lea.hbm %s11069_s3, 64 }
  0x75   :  { %p10250_p2 = scmp.ne.s32.totalorder %s11069_s3, %s10249_s23  ;;  %p10253_p3 = scmp.lt.u32.totalorder %s10249_s23, %s11069_s3 }
  0x77   :  { %p10255_p4 = pnand %p10253_p3, %p10250_p2 }
  0x79   :  { %10258 = shalt.err (!%p10255_p4)
}
  0x7a   :  { %s10259_s0 = scalar_lea.vmem %s172_s15, 64  ;;  %p10264_p6 = scmp.lt.s32.totalorder %s172_s15, %s172_s15 }
  0x7b   :  { %p10260_p5 = scmp.ne.s32.totalorder %s172_s15, %s10259_s0  ;;  %p10265_p7 = scmp.lt.s32.totalorder %s10259_s0, %s10259_s0 }
  0x7d   :  { %p10266_p8 = por %p10265_p7, %p10264_p6 }
  0x7f   :  { %p10267_p9 = pnand %p10266_p8, %p10260_p5 }
  0x81   :  { %10270 = shalt.err (!%p10267_p9)
}
  0x82   :  { %174 = dma.hbm_to_vmem [thread:$0]  %s11069_s3, 64, %s172_s15, [#allocation12]  }
  0x83   :  { %s10988_s26 = smov [#allocation14]   ;;  %s10989_s27 = smov [#allocation17]  }
  0x84   :  { %s194_s25 = sshll.u32 %s10988_s26, 4  ;;  %s218_s30 = sshll.u32 %s10989_s27, 4  ;;  %s195_s25 = int_to_ptr.vmem [resolvable:$true] %s194_s25  ;;  %s219_s30 = int_to_ptr.vmem [resolvable:$true] %s218_s30 }
  0x85   :  { %s10271_s2 = scalar_lea.hbm %s11084_s19, 32 }
  0x86   :  { %p10272_p10 = scmp.ne.s32.totalorder %s11084_s19, %s10271_s2  ;;  %p10275_p11 = scmp.lt.u32.totalorder %s10271_s2, %s11084_s19 }
  0x88   :  { %p10277_p12 = pnand %p10275_p11, %p10272_p10 }
  0x8a   :  { %10280 = shalt.err (!%p10277_p12)
}
  0x8b   :  { %s10281_s6 = scalar_lea.vmem %s195_s25, 32  ;;  %p10286_p0 = scmp.lt.s32.totalorder %s195_s25, %s195_s25 }
  0x8c   :  { %p10282_p13 = scmp.ne.s32.totalorder %s195_s25, %s10281_s6  ;;  %p10287_p1 = scmp.lt.s32.totalorder %s10281_s6, %s10281_s6 }
  0x8e   :  { %p10288_p2 = por %p10287_p1, %p10286_p0 }
  0x90   :  { %p10289_p3 = pnand %p10288_p2, %p10282_p13 }
  0x92   :  { %10292 = shalt.err (!%p10289_p3)
}
  0x93   :  { %200 = dma.hbm_to_vmem [thread:$0]  %s11084_s19, 32, %s195_s25, [#allocation15], %s10986_s22, %s10986_s22, %s10987_s17  }
  0x94   :  { %s10293_s3 = scalar_lea.hbm %s11094_s28, 32 }
  0x95   :  { %p10294_p4 = scmp.ne.s32.totalorder %s11094_s28, %s10293_s3  ;;  %p10297_p5 = scmp.lt.u32.totalorder %s10293_s3, %s11094_s28 }
  0x97   :  { %p10299_p6 = pnand %p10297_p5, %p10294_p4 }
  0x99   :  { %10302 = shalt.err (!%p10299_p6)
}
  0x9a   :  { %s10303_s7 = scalar_lea.vmem %s219_s30, 32  ;;  %p10308_p8 = scmp.lt.s32.totalorder %s219_s30, %s219_s30 }
  0x9b   :  { %p10304_p7 = scmp.ne.s32.totalorder %s219_s30, %s10303_s7  ;;  %p10309_p9 = scmp.lt.s32.totalorder %s10303_s7, %s10303_s7 }
  0x9d   :  { %p10310_p10 = por %p10309_p9, %p10308_p8 }
  0x9f   :  { %p10311_p11 = pnand %p10310_p10, %p10304_p7 }
  0xa1   :  { %10314 = shalt.err (!%p10311_p11)
}
  0xa2   :  { %224 = dma.hbm_to_vmem [thread:$0]  %s11094_s28, 32, %s219_s30, [#allocation18], %s10986_s22, %s10986_s22, %s10987_s17  }
  0xa3   :  { %s10990_s19 = smov [#allocation20]   ;;  %s10991_s15 = smov [#allocation23]  }
  0xa4   :  { %s242_s12 = sshll.u32 %s10990_s19, 4  ;;  %s267_s16 = sshll.u32 %s10991_s15, 4  ;;  %s243_s12 = int_to_ptr.vmem [resolvable:$true] %s242_s12  ;;  %s268_s16 = int_to_ptr.vmem [resolvable:$true] %s267_s16 }
  0xa5   :  { %s10315_s20 = scalar_lea.hbm %s11104_s11, 1024 }
  0xa6   :  { %p10316_p12 = scmp.ne.s32.totalorder %s11104_s11, %s10315_s20  ;;  %p10319_p13 = scmp.lt.u32.totalorder %s10315_s20, %s11104_s11 }
  0xa8   :  { %p10321_p0 = pnand %p10319_p13, %p10316_p12 }
  0xaa   :  { %10324 = shalt.err (!%p10321_p0)
}
  0xab   :  { %s10325_s23 = scalar_lea.vmem %s243_s12, 1024  ;;  %p10330_p2 = scmp.lt.s32.totalorder %s243_s12, %s243_s12 }
  0xac   :  { %p10326_p1 = scmp.ne.s32.totalorder %s243_s12, %s10325_s23  ;;  %p10331_p3 = scmp.lt.s32.totalorder %s10325_s23, %s10325_s23 }
  0xae   :  { %p10332_p4 = por %p10331_p3, %p10330_p2 }
  0xb0   :  { %p10333_p5 = pnand %p10332_p4, %p10326_p1 }
  0xb2   :  { %10336 = shalt.err (!%p10333_p5)
}
  0xb3   :  { %s10992_s0 = smov 128   ;;  %s10993_s28 = smov 8  }
  0xb4   :  { %248 = dma.hbm_to_vmem [thread:$0]  %s11104_s11, 1024, %s243_s12, [#allocation21], %s10992_s0, %s10992_s0, %s10993_s28  }
  0xb5   :  { %s10337_s26 = scalar_lea.hbm %s11114_s13, 48 }
  0xb6   :  { %p10338_p6 = scmp.ne.s32.totalorder %s11114_s13, %s10337_s26  ;;  %p10341_p7 = scmp.lt.u32.totalorder %s10337_s26, %s11114_s13 }
  0xb8   :  { %p10343_p8 = pnand %p10341_p7, %p10338_p6 }
  0xba   :  { %10346 = shalt.err (!%p10343_p8)
}
  0xbb   :  { %s10347_s25 = scalar_lea.vmem %s268_s16, 48  ;;  %s10351_s27 = scalar_lea.vmem %s268_s16, 64 }
  0xbc   :  { %p10348_p9 = scmp.ne.s32.totalorder %s268_s16, %s10347_s25  ;;  %p10352_p10 = scmp.lt.s32.totalorder %s268_s16, %s268_s16 }
  0xbd   :  { %p10353_p11 = scmp.lt.s32.totalorder %s10351_s27, %s10347_s25 }
  0xbf   :  { %p10354_p12 = por %p10353_p11, %p10352_p10 }
  0xc1   :  { %p10355_p13 = pnand %p10354_p12, %p10348_p9 }
  0xc3   :  { %10358 = shalt.err (!%p10355_p13)
}
  0xc4   :  { %270 = dma.hbm_to_vmem [thread:$0]  %s11114_s13, 48, %s268_s16, [#allocation24]  }
  0xc5   :  { %s10994_s11 = smov [#allocation26]   ;;  %s10359_s2 = scalar_lea.hbm %s11124_s10, 1152 }
  0xc6   :  { %s286_s30 = sshll.u32 %s10994_s11, 4  ;;  %p10360_p0 = scmp.ne.s32.totalorder %s11124_s10, %s10359_s2  ;;  %s287_s30 = int_to_ptr.vmem [resolvable:$true] %s286_s30 }
  0xc7   :  { %p10363_p1 = scmp.lt.u32.totalorder %s10359_s2, %s11124_s10 }
  0xc9   :  { %p10365_p2 = pnand %p10363_p1, %p10360_p0 }
  0xcb   :  { %10368 = shalt.err (!%p10365_p2)
}
  0xcc   :  { %s10369_s6 = scalar_lea.vmem %s287_s30, 1152  ;;  %p10374_p4 = scmp.lt.s32.totalorder %s287_s30, %s287_s30 }
  0xcd   :  { %p10370_p3 = scmp.ne.s32.totalorder %s287_s30, %s10369_s6  ;;  %p10375_p5 = scmp.lt.s32.totalorder %s10369_s6, %s10369_s6 }
  0xcf   :  { %p10376_p6 = por %p10375_p5, %p10374_p4 }
  0xd1   :  { %p10377_p7 = pnand %p10376_p6, %p10370_p3 }
  0xd3   :  { %10380 = shalt.err (!%p10377_p7)
}
  0xd4   :  { %s10995_s3 = smov 384   ;;  %s10996_s13 = smov 24  }
  0xd5   :  { %292 = dma.hbm_to_vmem [thread:$0]  %s11124_s10, 1152, %s287_s30, [#allocation27], %s10995_s3, %s10995_s3, %s10996_s13  }
  0xd6   :  { %s10997_s7 = smov [#allocation29]   ;;  %s10998_s12 = smov [#allocation32]  }
  0xd7   :  { %s312_s19 = sshll.u32 %s10997_s7, 4  ;;  %s336_s15 = sshll.u32 %s10998_s12, 4  ;;  %s313_s19 = int_to_ptr.vmem [resolvable:$true] %s312_s19  ;;  %s11280_s15 = int_to_ptr.vmem [resolvable:$true] %s336_s15 }
  0xd8   :  { %s10381_s16 = scalar_lea.hbm %s11139_s1, 64 }
  0xd9   :  { %p10382_p8 = scmp.ne.s32.totalorder %s11139_s1, %s10381_s16  ;;  %p10385_p9 = scmp.lt.u32.totalorder %s10381_s16, %s11139_s1 }
  0xdb   :  { %p10387_p10 = pnand %p10385_p9, %p10382_p8 }
  0xdd   :  { %10390 = shalt.err (!%p10387_p10)
}
  0xde   :  { %s10391_s20 = scalar_lea.vmem %s313_s19, 64  ;;  %p10396_p12 = scmp.lt.s32.totalorder %s313_s19, %s313_s19 }
  0xdf   :  { %p10392_p11 = scmp.ne.s32.totalorder %s313_s19, %s10391_s20  ;;  %p10397_p13 = scmp.lt.s32.totalorder %s10391_s20, %s10391_s20 }
  0xe1   :  { %p10398_p0 = por %p10397_p13, %p10396_p12 }
  0xe3   :  { %p10399_p1 = pnand %p10398_p0, %p10392_p11 }
  0xe5   :  { %10402 = shalt.err (!%p10399_p1)
}
  0xe6   :  { %318 = dma.hbm_to_vmem [thread:$0]  %s11139_s1, 64, %s313_s19, [#allocation30], %s10986_s22, %s10986_s22, %s10987_s17  }
  0xe7   :  { %s10403_s10 = scalar_lea.hbm %s11149_s8, 64 }
  0xe8   :  { %p10404_p2 = scmp.ne.s32.totalorder %s11149_s8, %s10403_s10  ;;  %p10407_p3 = scmp.lt.u32.totalorder %s10403_s10, %s11149_s8 }
  0xea   :  { %p10409_p4 = pnand %p10407_p3, %p10404_p2 }
  0xec   :  { %10412 = shalt.err (!%p10409_p4)
}
  0xed   :  { %s10413_s23 = scalar_lea.vmem %s11280_s15, 64  ;;  %p10418_p6 = scmp.lt.s32.totalorder %s11280_s15, %s11280_s15 }
  0xee   :  { %p10414_p5 = scmp.ne.s32.totalorder %s11280_s15, %s10413_s23  ;;  %p10419_p7 = scmp.lt.s32.totalorder %s10413_s23, %s10413_s23 }
  0xf0   :  { %p10420_p8 = por %p10419_p7, %p10418_p6 }
  0xf2   :  { %p10421_p9 = pnand %p10420_p8, %p10414_p5 }
  0xf4   :  { %10424 = shalt.err (!%p10421_p9)
}
  0xf5   :  { %342 = dma.hbm_to_vmem [thread:$0]  %s11149_s8, 64, %s11280_s15, [#allocation33], %s10986_s22, %s10986_s22, %s10987_s17  }
  0xf6   :  { %s10999_s1 = smov [#allocation35]   ;;  %s11000_s25 = smov [#allocation38]  }
  0xf7   :  { %s361_s26 = sshll.u32 %s10999_s1, 4  ;;  %s384_s27 = sshll.u32 %s11000_s25, 4  ;;  %s362_s26 = int_to_ptr.vmem [resolvable:$true] %s361_s26  ;;  %s11301_s27 = int_to_ptr.vmem [resolvable:$true] %s384_s27 }
  0xf8   :  { %s10425_s11 = scalar_lea.hbm %s11159_s4, 128 }
  0xf9   :  { %p10426_p10 = scmp.ne.s32.totalorder %s11159_s4, %s10425_s11  ;;  %p10429_p11 = scmp.lt.u32.totalorder %s10425_s11, %s11159_s4 }
  0xfb   :  { %p10431_p12 = pnand %p10429_p11, %p10426_p10 }
  0xfd   :  { %10434 = shalt.err (!%p10431_p12)
}
  0xfe   :  { %s10435_s30 = scalar_lea.vmem %s362_s26, 128  ;;  %p10440_p0 = scmp.lt.s32.totalorder %s362_s26, %s362_s26 }
  0xff   :  { %p10436_p13 = scmp.ne.s32.totalorder %s362_s26, %s10435_s30  ;;  %p10441_p1 = scmp.lt.s32.totalorder %s10435_s30, %s10435_s30 }
 0x101   :  { %p10442_p2 = por %p10441_p1, %p10440_p0 }
 0x103   :  { %p10443_p3 = pnand %p10442_p2, %p10436_p13 }
 0x105   :  { %10446 = shalt.err (!%p10443_p3)
}
 0x106   :  { %364 = dma.hbm_to_vmem [thread:$0]  %s11159_s4, 128, %s362_s26, [#allocation36]  }
 0x107   :  { %s10447_s8 = scalar_lea.hbm %s11174_s5, 64 }
 0x108   :  { %p10448_p4 = scmp.ne.s32.totalorder %s11174_s5, %s10447_s8  ;;  %p10451_p5 = scmp.lt.u32.totalorder %s10447_s8, %s11174_s5 }
 0x10a   :  { %p10453_p6 = pnand %p10451_p5, %p10448_p4 }
 0x10c   :  { %10456 = shalt.err (!%p10453_p6)
}
 0x10d   :  { %s10457_s2 = scalar_lea.vmem %s11301_s27, 64  ;;  %p10462_p8 = scmp.lt.s32.totalorder %s11301_s27, %s11301_s27 }
 0x10e   :  { %p10458_p7 = scmp.ne.s32.totalorder %s11301_s27, %s10457_s2  ;;  %p10463_p9 = scmp.lt.s32.totalorder %s10457_s2, %s10457_s2 }
 0x110   :  { %p10464_p10 = por %p10463_p9, %p10462_p8 }
 0x112   :  { %p10465_p11 = pnand %p10464_p10, %p10458_p7 }
 0x114   :  { %10468 = shalt.err (!%p10465_p11)
}
 0x115   :  { %390 = dma.hbm_to_vmem [thread:$0]  %s11174_s5, 64, %s11301_s27, [#allocation39], %s10986_s22, %s10986_s22, %s10987_s17  }
 0x116   :  { %s11001_s4 = smov [#allocation41]   ;;  %s11002_s3 = smov [#allocation44]  }
 0x117   :  { %s408_s6 = sshll.u32 %s11001_s4, 4  ;;  %s436_s13 = sshll.u32 %s11002_s3, 4  ;;  %s409_s6 = int_to_ptr.vmem [resolvable:$true] %s408_s6  ;;  %s11319_s13 = int_to_ptr.vmem [resolvable:$true] %s436_s13 }
 0x118   :  { %s10469_s7 = scalar_lea.hbm %s11184_s18, 64 }
 0x119   :  { %p10470_p12 = scmp.ne.s32.totalorder %s11184_s18, %s10469_s7  ;;  %p10473_p13 = scmp.lt.u32.totalorder %s10469_s7, %s11184_s18 }
 0x11b   :  { %p10475_p0 = pnand %p10473_p13, %p10470_p12 }
 0x11d   :  { %10478 = shalt.err (!%p10475_p0)
}
 0x11e   :  { %s10479_s19 = scalar_lea.vmem %s409_s6, 64  ;;  %p10484_p2 = scmp.lt.s32.totalorder %s409_s6, %s409_s6 }
 0x11f   :  { %p10480_p1 = scmp.ne.s32.totalorder %s409_s6, %s10479_s19  ;;  %p10485_p3 = scmp.lt.s32.totalorder %s10479_s19, %s10479_s19 }
 0x121   :  { %p10486_p4 = por %p10485_p3, %p10484_p2 }
 0x123   :  { %p10487_p5 = pnand %p10486_p4, %p10480_p1 }
 0x125   :  { %10490 = shalt.err (!%p10487_p5)
}
 0x126   :  { %414 = dma.hbm_to_vmem [thread:$0]  %s11184_s18, 64, %s409_s6, [#allocation42], %s10986_s22, %s10986_s22, %s10987_s17  }
 0x127   :  { %s10491_s5 = scalar_lea.hbm %s11204_s21, 2048 }
 0x128   :  { %p10492_p6 = scmp.ne.s32.totalorder %s11204_s21, %s10491_s5  ;;  %p10495_p7 = scmp.lt.u32.totalorder %s10491_s5, %s11204_s21 }
 0x12a   :  { %p10497_p8 = pnand %p10495_p7, %p10492_p6 }
 0x12c   :  { %10500 = shalt.err (!%p10497_p8)
}
 0x12d   :  { %s10501_s12 = scalar_lea.vmem %s11319_s13, 2048  ;;  %p10506_p10 = scmp.lt.s32.totalorder %s11319_s13, %s11319_s13 }
 0x12e   :  { %p10502_p9 = scmp.ne.s32.totalorder %s11319_s13, %s10501_s12  ;;  %p10507_p11 = scmp.lt.s32.totalorder %s10501_s12, %s10501_s12 }
 0x130   :  { %p10508_p12 = por %p10507_p11, %p10506_p10 }
 0x132   :  { %p10509_p13 = pnand %p10508_p12, %p10502_p9 }
 0x134   :  { %10512 = shalt.err (!%p10509_p13)
}
 0x135   :  { %s12472_s18 = sld [smem:[#allocation90_spill]]  ;;  %s11003_s15 = smov [#allocation47]  }
 0x136   :  { %442 = dma.hbm_to_vmem [thread:$0]  %s11204_s21, 2048, %s11319_s13, [#allocation45], %s10992_s0, %s10992_s0, %s10993_s28  }
 0x137   :  { %s458_s16 = sshll.u32 %s11003_s15, 4  ;;  %s11004_s20 = smov [#allocation3]   ;;  %s459_s16 = int_to_ptr.vmem [resolvable:$true] %s458_s16 }
 0x138   :  { %s113_s10 = sshll.u32 %s11004_s20, 4  ;;  %s114_s10 = int_to_ptr.vmem [resolvable:$true] %s113_s10 }
 0x13b   :  { %s10513_s23 = scalar_lea.hbm %s12472_s18, 512 }
 0x13c   :  { %p10514_p0 = scmp.ne.s32.totalorder %s12472_s18, %s10513_s23  ;;  %p10517_p1 = scmp.lt.u32.totalorder %s10513_s23, %s12472_s18 }
 0x13e   :  { %p10519_p2 = pnand %p10517_p1, %p10514_p0 }
 0x140   :  { %10522 = shalt.err (!%p10519_p2)
}
 0x141   :  { %s10523_s1 = scalar_lea.vmem %s459_s16, 512  ;;  %p10528_p4 = scmp.lt.s32.totalorder %s459_s16, %s459_s16 }
 0x142   :  { %p10524_p3 = scmp.ne.s32.totalorder %s459_s16, %s10523_s1  ;;  %p10529_p5 = scmp.lt.s32.totalorder %s10523_s1, %s10523_s1 }
 0x144   :  { %p10530_p6 = por %p10529_p5, %p10528_p4 }
 0x146   :  { %p10531_p7 = pnand %p10530_p6, %p10524_p3 }
 0x148   :  { %10534 = shalt.err (!%p10531_p7)
}
 0x149   :  { %s12473_s21 = sld [smem:[#allocation70_spill]] }
 0x14a   :  { %464 = dma.hbm_to_vmem [thread:$0]  %s12472_s18, 512, %s459_s16, [#allocation48], %s10992_s0, %s10992_s0, %s10993_s28  }
 0x14f   :  { %s10535_s26 = scalar_lea.hbm %s12473_s21, 16 }
 0x150   :  { %p10536_p8 = scmp.ne.s32.totalorder %s12473_s21, %s10535_s26  ;;  %p10539_p9 = scmp.lt.u32.totalorder %s10535_s26, %s12473_s21 }
 0x152   :  { %p10541_p10 = pnand %p10539_p9, %p10536_p8 }
 0x154   :  { %10544 = shalt.err (!%p10541_p10)
}
 0x155   :  { %s10545_s25 = scalar_lea.vmem %s114_s10, 16  ;;  %s10549_s27 = scalar_lea.vmem %s114_s10, 32 }
 0x156   :  { %p10546_p11 = scmp.ne.s32.totalorder %s114_s10, %s10545_s25  ;;  %p10550_p12 = scmp.lt.s32.totalorder %s114_s10, %s114_s10 }
 0x157   :  { %p10551_p13 = scmp.lt.s32.totalorder %s10549_s27, %s10545_s25 }
 0x159   :  { %p10552_p0 = por %p10551_p13, %p10550_p12 }
 0x15b   :  { %p10553_p1 = pnand %p10552_p0, %p10546_p11 }
 0x15d   :  { %10556 = shalt.err (!%p10553_p1)
}
 0x15e   :  { %s12474_s11 = sld [smem:[#allocation71_spill]]  ;;  %s11005_s30 = smov [#allocation7]  }
 0x15f   :  { %116 = dma.hbm_to_vmem [thread:$0]  %s12473_s21, 16, %s114_s10, [#allocation4]  }
 0x160   :  { %s134_s8 = sshll.u32 %s11005_s30, 4  ;;  %s11006_s2 = smov [#allocation10]   ;;  %s135_s8 = int_to_ptr.vmem [resolvable:$true] %s134_s8 }
 0x161   :  { %s158_s4 = sshll.u32 %s11006_s2, 4  ;;  %s11351_s4 = int_to_ptr.vmem [resolvable:$true] %s158_s4 }
 0x164   :  { %s10557_s6 = scalar_lea.hbm %s12474_s11, 32 }
 0x165   :  { %p10558_p2 = scmp.ne.s32.totalorder %s12474_s11, %s10557_s6  ;;  %p10561_p3 = scmp.lt.u32.totalorder %s10557_s6, %s12474_s11 }
 0x167   :  { %p10563_p4 = pnand %p10561_p3, %p10558_p2 }
 0x169   :  { %10566 = shalt.err (!%p10563_p4)
}
 0x16a   :  { %s10567_s3 = scalar_lea.vmem %s135_s8, 32  ;;  %p10572_p6 = scmp.lt.s32.totalorder %s135_s8, %s135_s8 }
 0x16b   :  { %p10568_p5 = scmp.ne.s32.totalorder %s135_s8, %s10567_s3  ;;  %p10573_p7 = scmp.lt.s32.totalorder %s10567_s3, %s10567_s3 }
 0x16d   :  { %p10574_p8 = por %p10573_p7, %p10572_p6 }
 0x16f   :  { %p10575_p9 = pnand %p10574_p8, %p10568_p5 }
 0x171   :  { %10578 = shalt.err (!%p10575_p9)
}
 0x172   :  { %s12475_s13 = sld [smem:[#allocation72_spill]] }
 0x173   :  { %140 = dma.hbm_to_vmem [thread:$0]  %s12474_s11, 32, %s135_s8, [#allocation6], %s10986_s22, %s10986_s22, %s10987_s17  }
 0x178   :  { %s10579_s7 = scalar_lea.hbm %s12475_s13, 32 }
 0x179   :  { %p10580_p10 = scmp.ne.s32.totalorder %s12475_s13, %s10579_s7  ;;  %p10583_p11 = scmp.lt.u32.totalorder %s10579_s7, %s12475_s13 }
 0x17b   :  { %p10585_p12 = pnand %p10583_p11, %p10580_p10 }
 0x17d   :  { %10588 = shalt.err (!%p10585_p12)
}
 0x17e   :  { %s10589_s19 = scalar_lea.vmem %s11351_s4, 32  ;;  %p10594_p0 = scmp.lt.s32.totalorder %s11351_s4, %s11351_s4 }
 0x17f   :  { %p10590_p13 = scmp.ne.s32.totalorder %s11351_s4, %s10589_s19  ;;  %p10595_p1 = scmp.lt.s32.totalorder %s10589_s19, %s10589_s19 }
 0x181   :  { %p10596_p2 = por %p10595_p1, %p10594_p0 }
 0x183   :  { %p10597_p3 = pnand %p10596_p2, %p10590_p13 }
 0x185   :  { %10600 = shalt.err (!%p10597_p3)
}
 0x186   :  { %s12476_s5 = sld [smem:[#allocation74_spill]]  ;;  %s11007_s12 = smov [#allocation13]  }
 0x187   :  { %164 = dma.hbm_to_vmem [thread:$0]  %s12475_s13, 32, %s11351_s4, [#allocation9], %s10986_s22, %s10986_s22, %s10987_s17  }
 0x188   :  { %s182_s18 = sshll.u32 %s11007_s12, 4  ;;  %s11008_s15 = smov [#allocation16]   ;;  %s183_s18 = int_to_ptr.vmem [resolvable:$true] %s182_s18 }
 0x189   :  { %s206_s16 = sshll.u32 %s11008_s15, 4  ;;  %s11372_s16 = int_to_ptr.vmem [resolvable:$true] %s206_s16 }
 0x18c   :  { %s10601_s20 = scalar_lea.hbm %s12476_s5, 32 }
 0x18d   :  { %p10602_p4 = scmp.ne.s32.totalorder %s12476_s5, %s10601_s20  ;;  %p10605_p5 = scmp.lt.u32.totalorder %s10601_s20, %s12476_s5 }
 0x18f   :  { %p10607_p6 = pnand %p10605_p5, %p10602_p4 }
 0x191   :  { %10610 = shalt.err (!%p10607_p6)
}
 0x192   :  { %s10611_s10 = scalar_lea.vmem %s183_s18, 32  ;;  %p10616_p8 = scmp.lt.s32.totalorder %s183_s18, %s183_s18 }
 0x193   :  { %p10612_p7 = scmp.ne.s32.totalorder %s183_s18, %s10611_s10  ;;  %p10617_p9 = scmp.lt.s32.totalorder %s10611_s10, %s10611_s10 }
 0x195   :  { %p10618_p10 = por %p10617_p9, %p10616_p8 }
 0x197   :  { %p10619_p11 = pnand %p10618_p10, %p10612_p7 }
 0x199   :  { %10622 = shalt.err (!%p10619_p11)
}
 0x19a   :  { %s12477_s23 = sld [smem:[#allocation75_spill]] }
 0x19b   :  { %188 = dma.hbm_to_vmem [thread:$0]  %s12476_s5, 32, %s183_s18, [#allocation12], %s10986_s22, %s10986_s22, %s10987_s17  }
 0x1a0   :  { %s10623_s1 = scalar_lea.hbm %s12477_s23, 32 }
 0x1a1   :  { %p10624_p12 = scmp.ne.s32.totalorder %s12477_s23, %s10623_s1  ;;  %p10627_p13 = scmp.lt.u32.totalorder %s10623_s1, %s12477_s23 }
 0x1a3   :  { %p10629_p0 = pnand %p10627_p13, %p10624_p12 }
 0x1a5   :  { %10632 = shalt.err (!%p10629_p0)
}
 0x1a6   :  { %s10633_s21 = scalar_lea.vmem %s11372_s16, 32  ;;  %p10638_p2 = scmp.lt.s32.totalorder %s11372_s16, %s11372_s16 }
 0x1a7   :  { %p10634_p1 = scmp.ne.s32.totalorder %s11372_s16, %s10633_s21  ;;  %p10639_p3 = scmp.lt.s32.totalorder %s10633_s21, %s10633_s21 }
 0x1a9   :  { %p10640_p4 = por %p10639_p3, %p10638_p2 }
 0x1ab   :  { %p10641_p5 = pnand %p10640_p4, %p10634_p1 }
 0x1ad   :  { %10644 = shalt.err (!%p10641_p5)
}
 0x1ae   :  { %s12478_s26 = sld [smem:[#allocation76_spill]]  ;;  %s11009_s25 = smov [#allocation19]  }
 0x1af   :  { %212 = dma.hbm_to_vmem [thread:$0]  %s12477_s23, 32, %s11372_s16, [#allocation15], %s10986_s22, %s10986_s22, %s10987_s17  }
 0x1b0   :  { %s230_s27 = sshll.u32 %s11009_s25, 4  ;;  %s11010_s11 = smov [#allocation22]   ;;  %s231_s27 = int_to_ptr.vmem [resolvable:$true] %s230_s27 }
 0x1b1   :  { %s254_s30 = sshll.u32 %s11010_s11, 4  ;;  %s11393_s30 = int_to_ptr.vmem [resolvable:$true] %s254_s30 }
 0x1b4   :  { %s10645_s8 = scalar_lea.hbm %s12478_s26, 1024 }
 0x1b5   :  { %p10646_p6 = scmp.ne.s32.totalorder %s12478_s26, %s10645_s8  ;;  %p10649_p7 = scmp.lt.u32.totalorder %s10645_s8, %s12478_s26 }
 0x1b7   :  { %p10651_p8 = pnand %p10649_p7, %p10646_p6 }
 0x1b9   :  { %10654 = shalt.err (!%p10651_p8)
}
 0x1ba   :  { %s10655_s2 = scalar_lea.vmem %s231_s27, 1024  ;;  %p10660_p10 = scmp.lt.s32.totalorder %s231_s27, %s231_s27 }
 0x1bb   :  { %p10656_p9 = scmp.ne.s32.totalorder %s231_s27, %s10655_s2  ;;  %p10661_p11 = scmp.lt.s32.totalorder %s10655_s2, %s10655_s2 }
 0x1bd   :  { %p10662_p12 = por %p10661_p11, %p10660_p10 }
 0x1bf   :  { %p10663_p13 = pnand %p10662_p12, %p10656_p9 }
 0x1c1   :  { %10666 = shalt.err (!%p10663_p13)
}
 0x1c2   :  { %s12479_s4 = sld [smem:[#allocation77_spill]] }
 0x1c3   :  { %236 = dma.hbm_to_vmem [thread:$0]  %s12478_s26, 1024, %s231_s27, [#allocation18], %s10992_s0, %s10992_s0, %s10993_s28  }
 0x1c8   :  { %s10667_s6 = scalar_lea.hbm %s12479_s4, 1024 }
 0x1c9   :  { %p10668_p0 = scmp.ne.s32.totalorder %s12479_s4, %s10667_s6  ;;  %p10671_p1 = scmp.lt.u32.totalorder %s10667_s6, %s12479_s4 }
 0x1cb   :  { %p10673_p2 = pnand %p10671_p1, %p10668_p0 }
 0x1cd   :  { %10676 = shalt.err (!%p10673_p2)
}
 0x1ce   :  { %s10677_s3 = scalar_lea.vmem %s11393_s30, 1024  ;;  %p10682_p4 = scmp.lt.s32.totalorder %s11393_s30, %s11393_s30 }
 0x1cf   :  { %p10678_p3 = scmp.ne.s32.totalorder %s11393_s30, %s10677_s3  ;;  %p10683_p5 = scmp.lt.s32.totalorder %s10677_s3, %s10677_s3 }
 0x1d1   :  { %p10684_p6 = por %p10683_p5, %p10682_p4 }
 0x1d3   :  { %p10685_p7 = pnand %p10684_p6, %p10678_p3 }
 0x1d5   :  { %10688 = shalt.err (!%p10685_p7)
}
 0x1d6   :  { %s12480_s13 = sld [smem:[#allocation78_spill]]  ;;  %s11011_s7 = smov [#allocation25]  }
 0x1d7   :  { %260 = dma.hbm_to_vmem [thread:$0]  %s12479_s4, 1024, %s11393_s30, [#allocation21], %s10992_s0, %s10992_s0, %s10993_s28  }
 0x1d8   :  { %s277_s19 = sshll.u32 %s11011_s7, 4  ;;  %s11012_s5 = smov [#allocation28]   ;;  %s278_s19 = int_to_ptr.vmem [resolvable:$true] %s277_s19 }
 0x1d9   :  { %s300_s12 = sshll.u32 %s11012_s5, 4  ;;  %s11414_s12 = int_to_ptr.vmem [resolvable:$true] %s300_s12 }
 0x1dc   :  { %s10689_s18 = scalar_lea.hbm %s12480_s13, 16 }
 0x1dd   :  { %p10690_p8 = scmp.ne.s32.totalorder %s12480_s13, %s10689_s18  ;;  %p10693_p9 = scmp.lt.u32.totalorder %s10689_s18, %s12480_s13 }
 0x1df   :  { %p10695_p10 = pnand %p10693_p9, %p10690_p8 }
 0x1e1   :  { %10698 = shalt.err (!%p10695_p10)
}
 0x1e2   :  { %s10699_s15 = scalar_lea.vmem %s278_s19, 16  ;;  %s10703_s16 = scalar_lea.vmem %s278_s19, 32 }
 0x1e3   :  { %p10700_p11 = scmp.ne.s32.totalorder %s278_s19, %s10699_s15  ;;  %p10704_p12 = scmp.lt.s32.totalorder %s278_s19, %s278_s19 }
 0x1e4   :  { %p10705_p13 = scmp.lt.s32.totalorder %s10703_s16, %s10699_s15 }
 0x1e6   :  { %p10706_p0 = por %p10705_p13, %p10704_p12 }
 0x1e8   :  { %p10707_p1 = pnand %p10706_p0, %p10700_p11 }
 0x1ea   :  { %10710 = shalt.err (!%p10707_p1)
}
 0x1eb   :  { %s12481_s20 = sld [smem:[#allocation80_spill]] }
 0x1ec   :  { %280 = dma.hbm_to_vmem [thread:$0]  %s12480_s13, 16, %s278_s19, [#allocation24]  }
 0x1f1   :  { %s10711_s10 = scalar_lea.hbm %s12481_s20, 384 }
 0x1f2   :  { %p10712_p2 = scmp.ne.s32.totalorder %s12481_s20, %s10711_s10  ;;  %p10715_p3 = scmp.lt.u32.totalorder %s10711_s10, %s12481_s20 }
 0x1f4   :  { %p10717_p4 = pnand %p10715_p3, %p10712_p2 }
 0x1f6   :  { %10720 = shalt.err (!%p10717_p4)
}
 0x1f7   :  { %s10721_s23 = scalar_lea.vmem %s11414_s12, 384  ;;  %p10726_p6 = scmp.lt.s32.totalorder %s11414_s12, %s11414_s12 }
 0x1f8   :  { %p10722_p5 = scmp.ne.s32.totalorder %s11414_s12, %s10721_s23  ;;  %p10727_p7 = scmp.lt.s32.totalorder %s10721_s23, %s10721_s23 }
 0x1fa   :  { %p10728_p8 = por %p10727_p7, %p10726_p6 }
 0x1fc   :  { %p10729_p9 = pnand %p10728_p8, %p10722_p5 }
 0x1fe   :  { %10732 = shalt.err (!%p10729_p9)
}
 0x1ff   :  { %s12482_s1 = sld [smem:[#allocation81_spill]]  ;;  %s11013_s21 = smov [#allocation31]  }
 0x200   :  { %306 = dma.hbm_to_vmem [thread:$0]  %s12481_s20, 384, %s11414_s12, [#allocation27], %s10992_s0, %s10992_s0, %s10993_s28  }
 0x201   :  { %s324_s26 = sshll.u32 %s11013_s21, 4  ;;  %s11014_s25 = smov [#allocation34]   ;;  %s325_s26 = int_to_ptr.vmem [resolvable:$true] %s324_s26 }
 0x202   :  { %s348_s27 = sshll.u32 %s11014_s25, 4  ;;  %s11432_s27 = int_to_ptr.vmem [resolvable:$true] %s348_s27 }
 0x205   :  { %s10733_s11 = scalar_lea.hbm %s12482_s1, 64 }
 0x206   :  { %p10734_p10 = scmp.ne.s32.totalorder %s12482_s1, %s10733_s11  ;;  %p10737_p11 = scmp.lt.u32.totalorder %s10733_s11, %s12482_s1 }
 0x208   :  { %p10739_p12 = pnand %p10737_p11, %p10734_p10 }
 0x20a   :  { %10742 = shalt.err (!%p10739_p12)
}
 0x20b   :  { %s10743_s30 = scalar_lea.vmem %s325_s26, 64  ;;  %p10748_p0 = scmp.lt.s32.totalorder %s325_s26, %s325_s26 }
 0x20c   :  { %p10744_p13 = scmp.ne.s32.totalorder %s325_s26, %s10743_s30  ;;  %p10749_p1 = scmp.lt.s32.totalorder %s10743_s30, %s10743_s30 }
 0x20e   :  { %p10750_p2 = por %p10749_p1, %p10748_p0 }
 0x210   :  { %p10751_p3 = pnand %p10750_p2, %p10744_p13 }
 0x212   :  { %10754 = shalt.err (!%p10751_p3)
}
 0x213   :  { %s12483_s8 = sld [smem:[#allocation82_spill]] }
 0x214   :  { %330 = dma.hbm_to_vmem [thread:$0]  %s12482_s1, 64, %s325_s26, [#allocation30], %s10986_s22, %s10986_s22, %s10987_s17  }
 0x219   :  { %s10755_s2 = scalar_lea.hbm %s12483_s8, 64 }
 0x21a   :  { %p10756_p4 = scmp.ne.s32.totalorder %s12483_s8, %s10755_s2  ;;  %p10759_p5 = scmp.lt.u32.totalorder %s10755_s2, %s12483_s8 }
 0x21c   :  { %p10761_p6 = pnand %p10759_p5, %p10756_p4 }
 0x21e   :  { %10764 = shalt.err (!%p10761_p6)
}
 0x21f   :  { %s10765_s4 = scalar_lea.vmem %s11432_s27, 64  ;;  %p10770_p8 = scmp.lt.s32.totalorder %s11432_s27, %s11432_s27 }
 0x220   :  { %p10766_p7 = scmp.ne.s32.totalorder %s11432_s27, %s10765_s4  ;;  %p10771_p9 = scmp.lt.s32.totalorder %s10765_s4, %s10765_s4 }
 0x222   :  { %p10772_p10 = por %p10771_p9, %p10770_p8 }
 0x224   :  { %p10773_p11 = pnand %p10772_p10, %p10766_p7 }
 0x226   :  { %10776 = shalt.err (!%p10773_p11)
}
 0x227   :  { %s12484_s6 = sld [smem:[#allocation84_spill]]  ;;  %s11015_s3 = smov [#allocation37]  }
 0x228   :  { %354 = dma.hbm_to_vmem [thread:$0]  %s12483_s8, 64, %s11432_s27, [#allocation33], %s10986_s22, %s10986_s22, %s10987_s17  }
 0x229   :  { %s372_s13 = sshll.u32 %s11015_s3, 4  ;;  %s11016_s7 = smov [#allocation40]   ;;  %s373_s13 = int_to_ptr.vmem [resolvable:$true] %s372_s13 }
 0x22a   :  { %s396_s19 = sshll.u32 %s11016_s7, 4  ;;  %s11453_s19 = int_to_ptr.vmem [resolvable:$true] %s396_s19 }
 0x22d   :  { %s10777_s5 = scalar_lea.hbm %s12484_s6, 64 }
 0x22e   :  { %p10778_p12 = scmp.ne.s32.totalorder %s12484_s6, %s10777_s5  ;;  %p10781_p13 = scmp.lt.u32.totalorder %s10777_s5, %s12484_s6 }
 0x230   :  { %p10783_p0 = pnand %p10781_p13, %p10778_p12 }
 0x232   :  { %10786 = shalt.err (!%p10783_p0)
}
 0x233   :  { %s10787_s12 = scalar_lea.vmem %s373_s13, 64  ;;  %p10792_p2 = scmp.lt.s32.totalorder %s373_s13, %s373_s13 }
 0x234   :  { %p10788_p1 = scmp.ne.s32.totalorder %s373_s13, %s10787_s12  ;;  %p10793_p3 = scmp.lt.s32.totalorder %s10787_s12, %s10787_s12 }
 0x236   :  { %p10794_p4 = por %p10793_p3, %p10792_p2 }
 0x238   :  { %p10795_p5 = pnand %p10794_p4, %p10788_p1 }
 0x23a   :  { %10798 = shalt.err (!%p10795_p5)
}
 0x23b   :  { %s12485_s18 = sld [smem:[#allocation85_spill]] }
 0x23c   :  { %378 = dma.hbm_to_vmem [thread:$0]  %s12484_s6, 64, %s373_s13, [#allocation36], %s10986_s22, %s10986_s22, %s10987_s17  }
 0x241   :  { %s10799_s15 = scalar_lea.hbm %s12485_s18, 64 }
 0x242   :  { %p10800_p6 = scmp.ne.s32.totalorder %s12485_s18, %s10799_s15  ;;  %p10803_p7 = scmp.lt.u32.totalorder %s10799_s15, %s12485_s18 }
 0x244   :  { %p10805_p8 = pnand %p10803_p7, %p10800_p6 }
 0x246   :  { %10808 = shalt.err (!%p10805_p8)
}
 0x247   :  { %s10809_s16 = scalar_lea.vmem %s11453_s19, 64  ;;  %p10814_p10 = scmp.lt.s32.totalorder %s11453_s19, %s11453_s19 }
 0x248   :  { %p10810_p9 = scmp.ne.s32.totalorder %s11453_s19, %s10809_s16  ;;  %p10815_p11 = scmp.lt.s32.totalorder %s10809_s16, %s10809_s16 }
 0x24a   :  { %p10816_p12 = por %p10815_p11, %p10814_p10 }
 0x24c   :  { %p10817_p13 = pnand %p10816_p12, %p10810_p9 }
 0x24e   :  { %10820 = shalt.err (!%p10817_p13)
}
 0x24f   :  { %s12486_s20 = sld [smem:[#allocation88_spill]]  ;;  %s11017_s10 = smov [#allocation43]  }
 0x250   :  { %402 = dma.hbm_to_vmem [thread:$0]  %s12485_s18, 64, %s11453_s19, [#allocation39], %s10986_s22, %s10986_s22, %s10987_s17  }
 0x251   :  { %s424_s23 = sshll.u32 %s11017_s10, 4  ;;  %s11018_s1 = smov [#allocation46]   ;;  %s425_s23 = int_to_ptr.vmem [resolvable:$true] %s424_s23 }
 0x252   :  { %s449_s21 = sshll.u32 %s11018_s1, 4  ;;  %s450_s21 = int_to_ptr.vmem [resolvable:$true] %s449_s21 }
 0x255   :  { %s10821_s26 = scalar_lea.hbm %s12486_s20, 2048 }
 0x256   :  { %p10822_p0 = scmp.ne.s32.totalorder %s12486_s20, %s10821_s26  ;;  %p10825_p1 = scmp.lt.u32.totalorder %s10821_s26, %s12486_s20 }
 0x258   :  { %p10827_p2 = pnand %p10825_p1, %p10822_p0 }
 0x25a   :  { %10830 = shalt.err (!%p10827_p2)
}
 0x25b   :  { %s10831_s25 = scalar_lea.vmem %s425_s23, 2048  ;;  %p10836_p4 = scmp.lt.s32.totalorder %s425_s23, %s425_s23 }
 0x25c   :  { %p10832_p3 = scmp.ne.s32.totalorder %s425_s23, %s10831_s25  ;;  %p10837_p5 = scmp.lt.s32.totalorder %s10831_s25, %s10831_s25 }
 0x25e   :  { %p10838_p6 = por %p10837_p5, %p10836_p4 }
 0x260   :  { %p10839_p7 = pnand %p10838_p6, %p10832_p3 }
 0x262   :  { %10842 = shalt.err (!%p10839_p7)
}
 0x263   :  { %s12487_s22 = sld [smem:[#allocation89_spill]] }
 0x264   :  { %430 = dma.hbm_to_vmem [thread:$0]  %s12486_s20, 2048, %s425_s23, [#allocation42], %s10992_s0, %s10992_s0, %s10993_s28  }
 0x269   :  { %s10843_s17 = scalar_lea.hbm %s12487_s22, 16 }
 0x26a   :  { %p10844_p8 = scmp.ne.s32.totalorder %s12487_s22, %s10843_s17  ;;  %p10847_p9 = scmp.lt.u32.totalorder %s10843_s17, %s12487_s22 }
 0x26c   :  { %p10849_p10 = pnand %p10847_p9, %p10844_p8 }
 0x26e   :  { %10852 = shalt.err (!%p10849_p10)
}
 0x26f   :  { %s10853_s27 = scalar_lea.vmem %s450_s21, 16  ;;  %s10857_s11 = scalar_lea.vmem %s450_s21, 32 }
 0x270   :  { %p10854_p11 = scmp.ne.s32.totalorder %s450_s21, %s10853_s27  ;;  %p10858_p12 = scmp.lt.s32.totalorder %s450_s21, %s450_s21 }
 0x271   :  { %p10859_p13 = scmp.lt.s32.totalorder %s10857_s11, %s10853_s27 }
 0x273   :  { %p10860_p0 = por %p10859_p13, %p10858_p12 }
 0x275   :  { %p10861_p1 = pnand %p10860_p0, %p10854_p11 }
 0x277   :  { %10864 = shalt.err (!%p10861_p1)
}
 0x278   :  { %452 = dma.hbm_to_vmem [thread:$0]  %s12487_s22, 16, %s450_s21, [#allocation45]  }
 0x279   :  { %s11019_s30 = smov [#allocation49]   ;;  %s11020_s2 = smov [#allocation50]  }
 0x27a   :  { %s473_s8 = sshll.u32 %s11019_s30, 4  ;;  %s482_s4 = sshll.u32 %s11020_s2, 4  ;;  %s474_s8 = int_to_ptr.vmem [resolvable:$true] %s473_s8  ;;  %s11485_s4 = int_to_ptr.vmem [resolvable:$true] %s482_s4 }
 0x27b   :  { %s10865_s6 = scalar_lea.hbm %s11224_s9, 16 }
 0x27c   :  { %p10866_p2 = scmp.ne.s32.totalorder %s11224_s9, %s10865_s6  ;;  %p10869_p3 = scmp.lt.u32.totalorder %s10865_s6, %s11224_s9 }
 0x27e   :  { %p10871_p4 = pnand %p10869_p3, %p10866_p2 }
 0x280   :  { %10874 = shalt.err (!%p10871_p4)
}
 0x281   :  { %s10875_s3 = scalar_lea.vmem %s474_s8, 16  ;;  %s10879_s13 = scalar_lea.vmem %s474_s8, 32 }
 0x282   :  { %p10876_p5 = scmp.ne.s32.totalorder %s474_s8, %s10875_s3  ;;  %p10880_p6 = scmp.lt.s32.totalorder %s474_s8, %s474_s8 }
 0x283   :  { %p10881_p7 = scmp.lt.s32.totalorder %s10879_s13, %s10875_s3 }
 0x285   :  { %p10882_p8 = por %p10881_p7, %p10880_p6 }
 0x287   :  { %p10883_p9 = pnand %p10882_p8, %p10876_p5 }
 0x289   :  { %10886 = shalt.err (!%p10883_p9)
}
 0x28a   :  { %476 = dma.hbm_to_vmem [thread:$0]  %s11224_s9, 16, %s474_s8, [#allocation48]  }
 0x28b   :  { %s10887_s7 = scalar_lea.hbm %s11229_s24, 512 }
 0x28c   :  { %p10888_p10 = scmp.ne.s32.totalorder %s11229_s24, %s10887_s7  ;;  %p10891_p11 = scmp.lt.u32.totalorder %s10887_s7, %s11229_s24 }
 0x28e   :  { %p10893_p12 = pnand %p10891_p11, %p10888_p10 }
 0x290   :  { %10896 = shalt.err (!%p10893_p12)
}
 0x291   :  { %s10897_s19 = scalar_lea.vmem %s11485_s4, 512  ;;  %p10902_p0 = scmp.lt.s32.totalorder %s11485_s4, %s11485_s4 }
 0x292   :  { %p10898_p13 = scmp.ne.s32.totalorder %s11485_s4, %s10897_s19  ;;  %p10903_p1 = scmp.lt.s32.totalorder %s10897_s19, %s10897_s19 }
 0x294   :  { %p10904_p2 = por %p10903_p1, %p10902_p0 }
 0x296   :  { %p10905_p3 = pnand %p10904_p2, %p10898_p13 }
 0x298   :  { %10908 = shalt.err (!%p10905_p3)
}
 0x299   :  { %488 = dma.hbm_to_vmem [thread:$0]  %s11229_s24, 512, %s11485_s4, [#allocation51], %s10992_s0, %s10992_s0, %s10993_s28  }
 0x29a   :  { %10909 = dma.done.wait [#allocation4], 16  }
 0x29b   :  { %10910 = vsyncadd [#allocation4], 4294967280 }
 0x29c   :  { %10911 = dma.done.wait [#allocation6], 48  }
 0x29d   :  { %10912 = vsyncadd [#allocation6], 4294967248 }
 0x29e   :  { %10913 = dma.done.wait [#allocation9], 64  }
 0x29f   :  { %10914 = vsyncadd [#allocation9], 4294967232 }
 0x2a0   :  { %10915 = dma.done.wait [#allocation12], 96  }
 0x2a1   :  { %10916 = vsyncadd [#allocation12], 4294967200 }
 0x2a2   :  { %10917 = dma.done.wait [#allocation15], 64  }
 0x2a3   :  { %10918 = vsyncadd [#allocation15], 4294967232 }
 0x2a4   :  { %10919 = dma.done.wait [#allocation18], 1056  }
 0x2a5   :  { %10920 = vsyncadd [#allocation18], 4294966240 }
 0x2a6   :  { %10921 = dma.done.wait [#allocation21], 2048  }
 0x2a7   :  { %10922 = vsyncadd [#allocation21], 4294965248 }
 0x2a8   :  { %10923 = dma.done.wait [#allocation24], 64  }
 0x2a9   :  { %10924 = vsyncadd [#allocation24], 4294967232 }
 0x2aa   :  { %10925 = dma.done.wait [#allocation27], 1536  }
 0x2ab   :  { %10926 = vsyncadd [#allocation27], 4294965760 }
 0x2ac   :  { %10927 = dma.done.wait [#allocation30], 128  }
 0x2ad   :  { %10928 = vsyncadd [#allocation30], 4294967168 }
 0x2ae   :  { %10929 = dma.done.wait [#allocation33], 128  }
 0x2af   :  { %10930 = vsyncadd [#allocation33], 4294967168 }
 0x2b0   :  { %10931 = dma.done.wait [#allocation36], 192  }
 0x2b1   :  { %10932 = vsyncadd [#allocation36], 4294967104 }
 0x2b2   :  { %10933 = dma.done.wait [#allocation39], 128  }
 0x2b3   :  { %10934 = vsyncadd [#allocation39], 4294967168 }
 0x2b4   :  { %10935 = dma.done.wait [#allocation42], 2112  }
 0x2b5   :  { %10936 = vsyncadd [#allocation42], 4294965184 }
 0x2b6   :  { %10937 = dma.done.wait [#allocation45], 2064  }
 0x2b7   :  { %10938 = vsyncadd [#allocation45], 4294965232 }
 0x2b8   :  { %10939 = dma.done.wait [#allocation48], 528  }
 0x2b9   :  { %10940 = vsyncadd [#allocation48], 4294966768 }
 0x2ba   :  { %10941 = dma.done.wait [#allocation51], 512  }
 0x2bb   :  { %10942 = vsyncadd [#allocation51], 4294966784  ;;  %v11021_v1 = vmov 0.0   ;;  %v11022_v2 = vmov 0.0|0.0   ;;  %s12488_s9 = sld [smem:[#allocation79_spill]]  ;;  %vm11023_vm0 = vmmov 0  }
 0x2bc   :  { %690 = vmatprep.mubr.f32.mxu0 %v11021_v1  ;;  %9574 = vmatprep.subr.bf16.mxu1 %v11022_v2  ;;  %v587_v3 = vld [vmem:[#allocation26 + $0x8] sm:$0xff]  ;;  %v590_v4 = vld [vmem:[#allocation26 + $0x20] sm:$0xff]  ;;  %v589_v7 = vld [vmem:[#allocation26 + $0x18] sm:$0xff]  ;;  %s12489_s24 = sld [smem:[#allocation69_spill]]  ;;  %vm616_vm1 = vcmask 1041408   ;;  %vm612_vm2 = vcmask 146432  }
 0x2bd   :  { %8687 = vmatprep.mubr.msk.f32.mxu1 %vm11023_vm0, %v11021_v1  ;;  %v586_v5 = vld [vmem:[#allocation26] sm:$0xff]  ;;  %v9570_v6 = vpack.c.bf16 %v590_v4, %v587_v3  ;;  %v593_v9 = vld [vmem:[#allocation26 + $0x38] sm:$0x3]  ;;  %v588_v10 = vld [vmem:[#allocation26 + $0x10] sm:$0xff]  ;;  %vm886_vm3 = vcmask 523264   ;;  %s12490_s0 = sld [smem:[#allocation83_spill]] }
 0x2be   :  { %v9572_v8 = vpack.c.bf16 %v589_v7, %v586_v5  ;;  %v591_v11 = vld [vmem:[#allocation26 + $0x28] sm:$0xff]  ;;  %v592_v17 = vld [vmem:[#allocation26 + $0x30] sm:$0x3]  ;;  %v594_v21 = vld [vmem:[#allocation26 + $0x40] sm:$0x3]  ;;  %vm1066_vm4 = vcmask 261120  }
 0x2bf   :  { %9571 = vmatprep.subr.bf16.mxu0 %v9570_v6  ;;  %v9575_v12 = vpack.c.bf16 %v591_v11, %v588_v10  ;;  %v810_v27 = vld [vmem:[#allocation28] sm:$0xff]  ;;  %v811_v30 = vld [vmem:[#allocation28 + $0x8] sm:$0xff]  ;;  %v812_v40 = vld [vmem:[#allocation28 + $0x10] sm:$0x3]  ;;  %s11024_s28 = smov 96   ;;  %s11025_s5 = smov 64  }
 0x2c0   :  { %9573 = vmatpush1.bf16.msra.mxu0 %v9572_v8  ;;  %v9578_v31 = vpack.c.bf16 %v811_v30, %v810_v27  ;;  %vm1486_vm5 = vcmask 64512   ;;  %s12491_s12 = sld [smem:[#allocation86_spill]]  ;;  %s12492_s18 = sld [smem:[#allocation87_spill]]  ;;  %vm6219_vm6 = vcmask 1043456   ;;  %vm6212_vm7 = vcmask 31744  }
 0x2c1   :  { %v786_v13 = vld [vmem:[%s12488_s9 + $0x80] sm:$0xff]  ;;  %v787_v14 = vld [vmem:[%s12488_s9 + $0x88] sm:$0xff]  ;;  %7997 = vmatprep.subr.msk.mxu0 %vm616_vm1, %v593_v9  ;;  %9576 = vmatpush3.bf16.msra.mxu1 %v9575_v12  ;;  %v788_v18 = vld [vmem:[%s12488_s9 + $0x90] sm:$0xff]  ;;  %s11026_s15 = smov 32   ;;  %s12493_s16 = sld [smem:[#allocation73_spill]]  ;;  %vm7934_vm8 = vcmask 57344  }
 0x2c2   :  { %v770_v15 = vld [vmem:[%s12488_s9] sm:$0xff]  ;;  %v771_v16 = vld [vmem:[%s12488_s9 + $0x8] sm:$0xff]  ;;  %v789_v19 = vld [vmem:[%s12488_s9 + $0x98] sm:$0xff]  ;;  %8685 = vmatprep.subr.mxu1 %v11021_v1  ;;  %v9580_v22 = vpack.c.bf16 %v787_v14, %v786_v13 }
 0x2c3   :  { %v585_v20 = vld [vmem:[%s12489_s24] sm:$0xff]  ;;  %v9582_v23 = vpack.c.bf16 %v771_v16, %v770_v15  ;;  %v9584_v24 = vpack.c.bf16 %v789_v19, %v788_v18  ;;  %v772_v25 = vld [vmem:[%s12488_s9 + $0x10] sm:$0xff]  ;;  %v773_v26 = vld [vmem:[%s12488_s9 + $0x18] sm:$0xff]  ;;  %v597_v18 = vlaneseq }
 0x2c4   :  { %7998 = vmatpush1.msk.msra.mxu0 %vm616_vm1, %v592_v17  ;;  %v790_v28 = vld [vmem:[%s12488_s9 + $0xa0] sm:$0xff]  ;;  %v791_v29 = vld [vmem:[%s12488_s9 + $0xa8] sm:$0xff]  ;;  %v9586_v32 = vpack.c.bf16 %v773_v26, %v772_v25  ;;  %v792_v38 = vld [vmem:[%s12488_s9 + $0xb0] sm:$0xff] }
 0x2c5   :  { %7999 = vmatmul.mubr.msk.f32.vlgmr.msra.gmra.mrb[0].mxu0 %vm612_vm2, %v585_v20  ;;  %8686 = vmatpush3.msk.msra.mxu1 %vm616_vm1, %v594_v21  ;;  %v774_v33 = vld [vmem:[%s12488_s9 + $0x20] sm:$0xff]  ;;  %v9588_v34 = vpack.c.bf16 %v791_v29, %v790_v28  ;;  %v775_v35 = vld [vmem:[%s12488_s9 + $0x28] sm:$0xff]  ;;  %v793_v39 = vld [vmem:[%s12488_s9 + $0xb8] sm:$0xff]  ;;  %v11568_v19 = vshrl.u32 %v597_v18, 7 }
 0x2c6   :  { %8688 = vmatmul.mubr.msk.f32.vlgmr.msra.gmra.mrb[0].mxu1 %vm612_vm2, %v585_v20  ;;  %9581 = vmatprep.subr.bf16.mxu1 %v9580_v22  ;;  %v802_v36 = vld [vmem:[%s12488_s9 + $0x100] sm:$0xff]  ;;  %v803_v37 = vld [vmem:[%s12488_s9 + $0x108] sm:$0xff]  ;;  %v9590_v42 = vpack.c.bf16 %v775_v35, %v774_v33  ;;  %v9592_v43 = vpack.c.bf16 %v793_v39, %v792_v38  ;;  %v776_v44 = vld [vmem:[%s12488_s9 + $0x30] sm:$0xff] }
 0x2c7   :  { %9583 = vmatpush3.bf16.msra.mxu1 %v9582_v23  ;;  %9577 = vmatprep.subr.bf16.mxu0 %v11022_v2  ;;  %v9613_v41 = vpack.c.bf16 %v803_v37, %v802_v36  ;;  %v777_v45 = vld [vmem:[%s12488_s9 + $0x38] sm:$0xff]  ;;  %v794_v46 = vld [vmem:[%s12488_s9 + $0xc0] sm:$0xff]  ;;  %v795_v47 = vld [vmem:[%s12488_s9 + $0xc8] sm:$0xff]  ;;  %v603_v22 = vsub.s32 1, %v11568_v19  ;;  %v607_v23 = vsub.s32 2, %v11568_v19 }
 0x2c8   :  { %9585 = vmatprep.subr.bf16.mxu1 %v9584_v24  ;;  %9579 = vmatpush3.bf16.msra.mxu0 %v9578_v31  ;;  %v9594_v48 = vpack.c.bf16 %v777_v45, %v776_v44  ;;  %v9596_v49 = vpack.c.bf16 %v795_v47, %v794_v46  ;;  %v778_v50 = vld [vmem:[%s12488_s9 + $0x40] sm:$0xff]  ;;  %v779_v51 = vld [vmem:[%s12488_s9 + $0x48] sm:$0xff]  ;;  %v796_v52 = vld [vmem:[%s12488_s9 + $0xd0] sm:$0xff] }
 0x2c9   :  { %8694 = vmatprep.subr.mxu0 %v11021_v1  ;;  %8696 = vmatprep.mubr.msk.f32.mxu0 %vm11023_vm0, %v11021_v1  ;;  %v797_v53 = vld [vmem:[%s12488_s9 + $0xd8] sm:$0xff]  ;;  %v9598_v54 = vpack.c.bf16 %v779_v51, %v778_v50  ;;  %v780_v56 = vld [vmem:[%s12488_s9 + $0x50] sm:$0xff]  ;;  %v798_v58 = vld [vmem:[%s12488_s9 + $0xe0] sm:$0xff] }
 0x2ca   :  { %v9600_v55 = vpack.c.bf16 %v797_v53, %v796_v52  ;;  %v781_v57 = vld [vmem:[%s12488_s9 + $0x58] sm:$0xff]  ;;  %v799_v59 = vld [vmem:[%s12488_s9 + $0xe8] sm:$0xff]  ;;  %v782_v62 = vld [vmem:[%s12488_s9 + $0x60] sm:$0xff] }
 0x2cb   :  { %9587 = vmatpush3.bf16.msra.mxu1 %v9586_v32  ;;  %v9602_v60 = vpack.c.bf16 %v781_v57, %v780_v56  ;;  %v9604_v61 = vpack.c.bf16 %v799_v59, %v798_v58  ;;  %v783_v63 = vld [vmem:[%s12488_s9 + $0x68] sm:$0xff]  ;;  %v804_v0 = vld [vmem:[%s12488_s9 + $0x110] sm:$0xff]  ;;  %v805_v4 = vld [vmem:[%s12488_s9 + $0x118] sm:$0xff] }
 0x2cc   :  { %9589 = vmatprep.subr.bf16.mxu1 %v9588_v34  ;;  %8695 = vmatpush3.msk.msra.mxu0 %vm616_vm1, %v812_v40  ;;  %v9606_v3 = vpack.c.bf16 %v783_v63, %v782_v62  ;;  %v9616_v5 = vpack.c.bf16 %v805_v4, %v804_v0  ;;  %v800_v6 = vld [vmem:[%s12488_s9 + $0xf0] sm:$0xff]  ;;  %v801_v7 = vld [vmem:[%s12488_s9 + $0xf8] sm:$0xff]  ;;  %v806_v11 = vld [vmem:[%s12488_s9 + $0x120] sm:$0xff] }
 0x2cd   :  { %9612 = vmatprep.subr.bf16.mxu0 %v11022_v2  ;;  %8697 = vmatmul.mubr.msk.f32.vlgmr.msra.gmra.mrb[2].mxu0 %vm612_vm2, %v585_v20  ;;  %v9608_v8 = vpack.c.bf16 %v801_v7, %v800_v6  ;;  %v784_v9 = vld [vmem:[%s12488_s9 + $0x70] sm:$0xff]  ;;  %v785_v10 = vld [vmem:[%s12488_s9 + $0x78] sm:$0xff]  ;;  %v807_v13 = vld [vmem:[%s12488_s9 + $0x128] sm:$0xff]  ;;  %v599_v20 = vsub.s32 0, %v11568_v19 }
 0x2ce   :  { %9614 = vmatpush3.bf16.msra.mxu0 %v9613_v41  ;;  %8715 = vmatprep.mubr.msk.f32.mxu0 %vm11023_vm0, %v11021_v1  ;;  %v9610_v12 = vpack.c.bf16 %v785_v10, %v784_v9  ;;  %v9619_v14 = vpack.c.bf16 %v807_v13, %v806_v11  ;;  %v808_v15 = vld [vmem:[%s12488_s9 + $0x130] sm:$0xff]  ;;  %v809_v16 = vld [vmem:[%s12488_s9 + $0x138] sm:$0xff]  ;;  %v1055_v39 = vld [vmem:[#allocation44] sm:$0xff] }
 0x2cf   :  { %9591 = vmatpush3.bf16.msra.mxu1 %v9590_v42  ;;  %9615 = vmatprep.subr.bf16.mxu0 %v11022_v2  ;;  %v9622_v17 = vpack.c.bf16 %v809_v16, %v808_v15  ;;  %v595_v21 = vld [vmem:[#allocation23] sm:$0x7]  ;;  %v1056_v40 = vld [vmem:[#allocation44 + $0x8] sm:$0xff]  ;;  %v8005_v51 = vld [vmem:[#allocation25] ss:$0 sm:$0xff] }
 0x2d0   :  { %9593 = vmatprep.subr.bf16.mxu1 %v9592_v43  ;;  %v600_v24 = vrot.slane %v595_v21, %v599_v20  ;;  %v604_v25 = vrot.slane %v595_v21, %v603_v22  ;;  %v608_v26 = vrot.slane %v595_v21, %v607_v23  ;;  %v9625_v41 = vpack.c.bf16 %v1056_v40, %v1055_v39  ;;  %v1057_v42 = vld [vmem:[#allocation44 + $0x10] sm:$0xff]  ;;  %v1058_v43 = vld [vmem:[#allocation44 + $0x18] sm:$0xff]  ;;  %v8006_v62 = vld [vmem:[#allocation34] ss:$0 sm:$0xff] }
 0x2d1   :  { %v9628_v44 = vpack.c.bf16 %v1058_v43, %v1057_v42  ;;  %v1047_v59 = vld [vmem:[%s12490_s0 + $0x10] sm:$0xff] }
 0x2d2   :  { %9617 = vmatpush3.bf16.msra.mxu0 %v9616_v5 }
 0x2d3   :  { %9595 = vmatpush3.bf16.msra.mxu1 %v9594_v48  ;;  %9618 = vmatprep.subr.bf16.mxu0 %v11022_v2 }
 0x2d4   :  { %9597 = vmatprep.subr.bf16.mxu1 %v9596_v49 }
 0x2d6   :  { %9620 = vmatpush3.bf16.msra.mxu0 %v9619_v14 }
 0x2d7   :  { %9599 = vmatpush3.bf16.msra.mxu1 %v9598_v54  ;;  %9621 = vmatprep.subr.bf16.mxu0 %v11022_v2  ;;  %v1045_v54 = vld [vmem:[%s12490_s0] sm:$0xff] }
 0x2d8   :  { %9601 = vmatprep.subr.bf16.mxu1 %v9600_v55  ;;  %v1046_v55 = vld [vmem:[%s12490_s0 + $0x8] sm:$0xff] }
 0x2d9   :  { %v11594_v56 = vpack.c.bf16 %v1046_v55, %v1045_v54 }
 0x2da   :  { %9623 = vmatpush3.bf16.msra.mxu0 %v9622_v17 }
 0x2db   :  { %9603 = vmatpush3.bf16.msra.mxu1 %v9602_v60  ;;  %9624 = vmatprep.subr.bf16.mxu0 %v11022_v2  ;;  %v1048_v60 = vld [vmem:[%s12490_s0 + $0x18] sm:$0xff] }
 0x2dc   :  { %9605 = vmatprep.subr.bf16.mxu1 %v9604_v61  ;;  %v11614_v61 = vpack.c.bf16 %v1048_v60, %v1047_v59 }
 0x2df   :  { %9607 = vmatpush3.bf16.msra.mxu1 %v9606_v3 }
 0x2e0   :  { %9609 = vmatprep.subr.bf16.mxu1 %v9608_v8 }
 0x2e3   :  { %9611 = vmatpush3.bf16.msra.mxu1 %v9610_v12 }
 0x2e4   :  { %9630 = vmatprep.subr.bf16.mxu1 %v11022_v2 }
 0x398   :  { %v692_v27 = vpop.f32.mrb[0].mxu0 }
 0x399   :  { %v693_v28 = vadd.f32 %v692_v27, %v600_v24  ;;  %v694_v29 = vpop.f32.mrb[1].mxu0  ;;  %v763_v30 = vpop.f32.mrb[0].mxu1 }
 0x39a   :  { %v695_v31 = vadd.f32 %v694_v29, %v604_v25  ;;  %v764_v32 = vadd.f32 %v763_v30, %v608_v26  ;;  %v8689_v33 = vpop.f32.mrb[1].mxu1  ;;  %v11657_v30 = vld [vmem:[#allocation35] sm:$0xff] }
 0x39b   :  { %v767_v36 = vmax.f32 %v693_v28, 0.0 }
 0x39c   :  { %v768_v34 = vmax.f32 %v695_v31, 0.0  ;;  %v769_v35 = vmax.f32 %v764_v32, 0.0 }
 0x39e   :  { %954 = vmatprep.mubr.f32.mxu1 %v768_v34  ;;  %8716 = vmatmul.mubr.msk.f32.vlgmr.msra.gmra.mrb[4].mxu0 %vm886_vm3, %v769_v35 }
 0x39f   :  { %955 = vmatmul.mubr.f32.vlgmr.msra.gmra.mrb[2].mxu1 %v767_v36  ;;  %8726 = vmatprep.mubr.msk.f32.mxu0 %vm11023_vm0, %v11021_v1 }
 0x3a0   :  { %v882_v37 = vpop.f32.mrb[2].mxu0  ;;  %8743 = vmatprep.mubr.msk.f32.mxu1 %vm11023_vm0, %v11021_v1  ;;  %9626 = vmatpush3.bf16.msra.mxu0 %v9625_v41 }
 0x3a1   :  { %v8698_v38 = vpop.f32.mrb[3].mxu0  ;;  %9627 = vmatprep.subr.bf16.mxu0 %v11022_v2  ;;  %9632 = vmatpush3.bf16.msra.mxu1 %v11594_v56 }
 0x3a2   :  { %9633 = vmatprep.subr.bf16.mxu1 %v11022_v2 }
 0x3a4   :  { %9629 = vmatpush3.bf16.msra.mxu0 %v9628_v44 }
 0x3a5   :  { %9636 = vmatprep.subr.bf16.mxu0 %v11022_v2  ;;  %9635 = vmatpush3.bf16.msra.mxu1 %v11614_v61 }
 0x3a6   :  { %9642 = vmatprep.subr.bf16.mxu1 %v11022_v2 }
 0x471   :  { %v1026_v45 = vpop.f32.mrb[4].mxu0 }
 0x472   :  { %v8300_v46 = vpop.f32.mrb[2].mxu1  ;;  %v8717_v47 = vpop.f32.mrb[5].mxu0 }
 0x473   :  { %v8301_v48 = vpop.f32.mrb[3].mxu1 }
 0x474   :  { %v8302_v49 = vadd.f32 %v8301_v48, %v8300_v46 }
 0x476   :  { %v957_v50 = vadd.f32 %v8302_v49, %v882_v37 }
 0x478   :  { %v1027_v52 = vadd.f32 %v1026_v45, %v957_v50 }
 0x47a   :  { %v11582_v53 = vadd.f32 %v8005_v51, %v1027_v52 }
 0x47c   :  { %1039 = vrot.lane.b32.xlu0 %v11582_v53, %s11024_s28  ;;  %8727 = vmatmul.mubr.msk.f32.vlgmr.msra.gmra.mrb[6].mxu0 %vm1066_vm4, %v11582_v53 }
 0x47d   :  { %8729 = vmatprep.mubr.msk.f32.mxu0 %vm11023_vm0, %v11021_v1  ;;  %9638 = vmatpush3.bf16.msra.mxu0 %v11594_v56 }
 0x47e   :  { %9639 = vmatprep.subr.bf16.mxu0 %v11022_v2 }
 0x480   :  { %1042 = vrot.lane.b32.xlu0 %v11582_v53, %s11025_s5 }
 0x481   :  { %9641 = vmatpush3.bf16.msra.mxu0 %v11614_v61 }
 0x482   :  { %8786 = vmatprep.subr.mxu0 %v11021_v1 }
 0x4ee   :  { %v11600_v57 = vpop.permute.xlu0 %1039 }
 0x4ef   :  { %8730 = vmatmul.mubr.msk.f32.gmra.mrb[8].mxu0 %vm1066_vm4, %v11600_v57 }
 0x4f0   :  { %8732 = vmatprep.mubr.msk.f32.mxu0 %vm11023_vm0, %v11021_v1 }
 0x4f2   :  { %v11606_v58 = vpop.permute.xlu0 %1042 }
 0x4f3   :  { %8733 = vmatmul.mubr.msk.f32.gmra.mrb[10].mxu0 %vm1066_vm4, %v11606_v58 }
 0x4f4   :  { %8760 = vmatprep.mubr.msk.f32.mxu0 %vm11023_vm0, %v11021_v1 }
 0x54f   :  { %v1139_v63 = vpop.f32.mrb[6].mxu0 }
 0x550   :  { %v1140_v0 = vadd.f32 %v8006_v62, %v1139_v63  ;;  %v8728_v3 = vpop.f32.mrb[7].mxu0 }
 0x552   :  { %1154 = vrot.lane.b32.xlu1 %v1140_v0, %s11024_s28 }
 0x5c2   :  { %v1144_v4 = vpop.f32.mrb[8].mxu0 }
 0x5c3   :  { %v1145_v5 = vadd.f32 %v8006_v62, %v1144_v4  ;;  %v8731_v6 = vpop.f32.mrb[9].mxu0 }
 0x5c4   :  { %v1155_v7 = vpop.permute.xlu1 %1154 }
 0x5c5   :  { %v1157_v8 = vmul.f32 %v1155_v7, %v1140_v0  ;;  %1250 = vrot.lane.b32.xlu1 %v1145_v5, %s11024_s28  ;;  %v1158_v12 = vmul.f32 %v1155_v7, %v1145_v5 }
 0x5c6   :  { %v1149_v9 = vpop.f32.mrb[10].mxu0 }
 0x5c7   :  { %v1150_v10 = vadd.f32 %v8006_v62, %v1149_v9  ;;  %v8734_v11 = vpop.f32.mrb[11].mxu0  ;;  %8744 = vmatmul.mubr.msk.f32.vlgmr.msra.gmra.mrb[4].mxu1 %vm1066_vm4, %v1157_v8 }
 0x5c8   :  { %8746 = vmatprep.mubr.msk.f32.mxu1 %vm11023_vm0, %v11021_v1  ;;  %9644 = vmatpush3.bf16.msra.mxu1 %v11594_v56 }
 0x5c9   :  { %1576 = vrot.lane.b32.xlu1 %v1140_v0, %s11025_s5  ;;  %1346 = vrot.lane.b32.xlu0 %v1150_v10, %s11024_s28  ;;  %v1159_v13 = vmul.f32 %v1155_v7, %v1150_v10 }
 0x5ca   :  { %9645 = vmatprep.subr.bf16.mxu1 %v11022_v2 }
 0x5cb   :  { %8747 = vmatmul.mubr.msk.f32.gmra.mrb[6].mxu1 %vm1066_vm4, %v1158_v12 }
 0x5cc   :  { %8749 = vmatprep.mubr.msk.f32.mxu1 %vm11023_vm0, %v11021_v1  ;;  %9647 = vmatpush3.bf16.msra.mxu1 %v11614_v61 }
 0x5cd   :  { %1775 = vrot.lane.b32.xlu1 %v1150_v10, %s11025_s5  ;;  %1674 = vrot.lane.b32.xlu0 %v1145_v5, %s11025_s5 }
 0x5ce   :  { %8797 = vmatprep.subr.mxu1 %v11021_v1 }
 0x5cf   :  { %8750 = vmatmul.mubr.msk.f32.gmra.mrb[8].mxu1 %vm1066_vm4, %v1159_v13 }
 0x5d0   :  { %8777 = vmatprep.mubr.msk.f32.mxu1 %vm11023_vm0, %v11021_v1 }
 0x637   :  { %v1251_v14 = vpop.permute.xlu1 %1250 }
 0x638   :  { %v1253_v15 = vmul.f32 %v1251_v14, %v1140_v0  ;;  %v1254_v17 = vmul.f32 %v1251_v14, %v1145_v5  ;;  %v1255_v21 = vmul.f32 %v1251_v14, %v1150_v10 }
 0x63a   :  { %8761 = vmatmul.mubr.msk.f32.vlgmr.msra.gmra.mrb[12].mxu0 %vm1066_vm4, %v1253_v15 }
 0x63b   :  { %v1347_v16 = vpop.permute.xlu0 %1346  ;;  %8763 = vmatprep.mubr.msk.f32.mxu0 %vm11023_vm0, %v11021_v1  ;;  %8787 = vmatpush3.msra.mxu0 %v11657_v30 }
 0x63c   :  { %v1349_v18 = vmul.f32 %v1347_v16, %v1140_v0  ;;  %v1350_v22 = vmul.f32 %v1347_v16, %v1145_v5  ;;  %v1351_v23 = vmul.f32 %v1347_v16, %v1150_v10  ;;  %8808 = vmatprep.subr.mxu0 %v11021_v1 }
 0x63e   :  { %8764 = vmatmul.mubr.msk.f32.gmra.mrb[14].mxu0 %vm1066_vm4, %v1254_v17  ;;  %8778 = vmatmul.mubr.msk.f32.vlgmr.msra.gmra.mrb[10].mxu1 %vm1066_vm4, %v1349_v18 }
 0x63f   :  { %8766 = vmatprep.mubr.msk.f32.mxu0 %vm11023_vm0, %v11021_v1  ;;  %8780 = vmatprep.mubr.msk.f32.mxu1 %vm11023_vm0, %v11021_v1 }
 0x640   :  { %8798 = vmatpush3.msra.mxu1 %v11657_v30 }
 0x641   :  { %9648 = vmatprep.subr.bf16.mxu1 %v11022_v2 }
 0x642   :  { %8767 = vmatmul.mubr.msk.f32.gmra.mrb[16].mxu0 %vm1066_vm4, %v1255_v21  ;;  %8781 = vmatmul.mubr.msk.f32.gmra.mrb[12].mxu1 %vm1066_vm4, %v1350_v22 }
 0x643   :  { %8783 = vmatprep.mubr.msk.f32.mxu1 %vm11023_vm0, %v11021_v1  ;;  %8788 = vmatprep.mubr.msk.f32.mxu0 %vm11023_vm0, %v11021_v1 }
 0x646   :  { %8784 = vmatmul.mubr.msk.f32.gmra.mrb[14].mxu1 %vm1066_vm4, %v1351_v23 }
 0x647   :  { %8799 = vmatprep.mubr.msk.f32.mxu1 %vm11023_vm0, %v11021_v1 }
 0x69a   :  { %v1235_v24 = vpop.f32.mrb[4].mxu1 }
 0x69b   :  { %v8745_v25 = vpop.f32.mrb[5].mxu1 }
 0x69e   :  { %v1240_v26 = vpop.f32.mrb[6].mxu1 }
 0x69f   :  { %v8748_v27 = vpop.f32.mrb[7].mxu1 }
 0x6a2   :  { %v1245_v28 = vpop.f32.mrb[8].mxu1 }
 0x6a3   :  { %v8751_v29 = vpop.f32.mrb[9].mxu1 }
 0x70d   :  { %v1331_v31 = vpop.f32.mrb[12].mxu0 }
 0x70e   :  { %v1441_v32 = vmax.f32 %v1235_v24, %v1331_v31  ;;  %v8762_v33 = vpop.f32.mrb[13].mxu0 }
 0x711   :  { %v1336_v34 = vpop.f32.mrb[14].mxu0  ;;  %v1427_v35 = vpop.f32.mrb[10].mxu1 }
 0x712   :  { %v1442_v36 = vmax.f32 %v1240_v26, %v1336_v34  ;;  %v1444_v37 = vmax.f32 %v1441_v32, %v1427_v35  ;;  %v8765_v38 = vpop.f32.mrb[15].mxu0  ;;  %v8779_v39 = vpop.f32.mrb[11].mxu1 }
 0x714   :  { %v1447_v40 = vsub.f32 %v1235_v24, %v1444_v37  ;;  %v1456_v41 = vsub.f32 %v1331_v31, %v1444_v37  ;;  %v1465_v42 = vsub.f32 %v1427_v35, %v1444_v37 }
 0x715   :  { %v1341_v43 = vpop.f32.mrb[16].mxu0  ;;  %v1432_v44 = vpop.f32.mrb[12].mxu1 }
 0x716   :  { %v1450_v45 = vmul.f32 1.442695, %v1447_v40  ;;  %v1459_v46 = vmul.f32 1.442695, %v1456_v41  ;;  %v1443_v47 = vmax.f32 %v1245_v28, %v1341_v43  ;;  %v1468_v48 = vmul.f32 1.442695, %v1465_v42 }
 0x717   :  { %v1445_v49 = vmax.f32 %v1442_v36, %v1432_v44  ;;  %v8768_v50 = vpop.f32.mrb[17].mxu0  ;;  %v8782_v51 = vpop.f32.mrb[13].mxu1  ;;  %v1784_v40 = vld [vmem:[#allocation43] sm:$0xff]  ;;  %v1785_v41 = vld [vmem:[#allocation43 + $0x8] sm:$0xff] }
 0x718   :  { %10012 = vpow2.f32 %v1450_v45  ;;  %v9649_v42 = vpack.c.bf16 %v1785_v41, %v1784_v40 }
 0x719   :  { %10014 = vpow2.f32 %v1459_v46  ;;  %v1448_v52 = vsub.f32 %v1240_v26, %v1445_v49  ;;  %v1457_v54 = vsub.f32 %v1336_v34, %v1445_v49  ;;  %v1466_v55 = vsub.f32 %v1432_v44, %v1445_v49  ;;  %v1437_v59 = vpop.f32.mrb[14].mxu1  ;;  %v1787_v44 = vld [vmem:[#allocation43 + $0x18] sm:$0xff]  ;;  %v1577_v46 = vpop.permute.xlu1 %1576 }
 0x71a   :  { %v1446_v60 = vmax.f32 %v1443_v47, %v1437_v59  ;;  %v8785_v62 = vpop.f32.mrb[15].mxu1  ;;  %10016 = vpow2.f32 %v1468_v48  ;;  %v1675_v47 = vpop.permute.xlu0 %1674 }
 0x71b   :  { %v1452_v63 = vmul.f32 1.442695, %v1448_v52  ;;  %v1461_v0 = vmul.f32 1.442695, %v1457_v54  ;;  %v1470_v3 = vmul.f32 1.442695, %v1466_v55 }
 0x71c   :  { %v1449_v4 = vsub.f32 %v1245_v28, %v1446_v60  ;;  %v1458_v5 = vsub.f32 %v1341_v43, %v1446_v60  ;;  %v1467_v6 = vsub.f32 %v1437_v59, %v1446_v60  ;;  %v1786_v43 = vld [vmem:[#allocation43 + $0x10] sm:$0xff] }
 0x71d   :  { %10018 = vpow2.f32 %v1452_v63  ;;  %v9652_v45 = vpack.c.bf16 %v1787_v44, %v1786_v43 }
 0x71e   :  { %10020 = vpow2.f32 %v1461_v0  ;;  %v1454_v7 = vmul.f32 1.442695, %v1449_v4  ;;  %v1463_v8 = vmul.f32 1.442695, %v1458_v5  ;;  %v1472_v9 = vmul.f32 1.442695, %v1467_v6 }
 0x71f   :  { %10022 = vpow2.f32 %v1470_v3 }
 0x720   :  { %10024 = vpow2.f32 %v1454_v7 }
 0x721   :  { %10026 = vpow2.f32 %v1463_v8 }
 0x722   :  { %v10013_v10 = vpop.eup %10012  ;;  %10028 = vpow2.f32 %v1472_v9 }
 0x723   :  { %v10015_v11 = vpop.eup %10014 }
 0x724   :  { %v1474_v12 = vadd.f32 %v10015_v11, %v10013_v10  ;;  %v10017_v13 = vpop.eup %10016 }
 0x726   :  { %v1477_v14 = vadd.f32 %v10017_v13, %v1474_v12  ;;  %v1776_v12 = vpop.permute.xlu1 %1775 }
 0x727   :  { %v10019_v15 = vpop.eup %10018 }
 0x728   :  { %v10021_v16 = vpop.eup %10020  ;;  %10030 = vrcp.f32 %v1477_v14 }
 0x729   :  { %v10023_v17 = vpop.eup %10022  ;;  %v1475_v18 = vadd.f32 %v10021_v16, %v10019_v15 }
 0x72a   :  { %v10025_v21 = vpop.eup %10024 }
 0x72b   :  { %v10027_v22 = vpop.eup %10026  ;;  %v1478_v23 = vadd.f32 %v10023_v17, %v1475_v18 }
 0x72c   :  { %v1476_v24 = vadd.f32 %v10027_v22, %v10025_v21  ;;  %v10029_v25 = vpop.eup %10028 }
 0x72d   :  { %10032 = vrcp.f32 %v1478_v23 }
 0x72e   :  { %v1479_v26 = vadd.f32 %v10029_v25, %v1476_v24 }
 0x730   :  { %10034 = vrcp.f32 %v1479_v26 }
 0x732   :  { %v10031_v27 = vpop.eup %10030 }
 0x733   :  { %v1683_v28 = vmul.f32 %v10031_v27, %v10017_v13  ;;  %v1483_v29 = vmul.f32 %v10031_v27, %v10013_v10  ;;  %v1582_v31 = vmul.f32 %v10031_v27, %v10015_v11  ;;  %v8028_v27 = vld [vmem:[#allocation32] ss:$0 sm:$0xff] }
 0x735   :  { %8789 = vmatmul.mubr.msk.f32.vlgmr.msra.gmra.mrb[18].mxu0 %vm1486_vm5, %v1483_v29  ;;  %8800 = vmatmul.mubr.msk.f32.vlgmr.msra.gmra.mrb[16].mxu1 %vm1486_vm5, %v1582_v31 }
 0x736   :  { %8809 = vmatpush3.msra.mxu0 %v11657_v30  ;;  %8791 = vmatprep.mubr.msk.f32.mxu0 %vm11023_vm0, %v11021_v1 }
 0x737   :  { %v10033_v32 = vpop.eup %10032  ;;  %8802 = vmatprep.mubr.msk.f32.mxu1 %vm11023_vm0, %v11021_v1  ;;  %9654 = vmatprep.subr.bf16.mxu0 %v11022_v2 }
 0x738   :  { %v1484_v33 = vmul.f32 %v10033_v32, %v10019_v15  ;;  %v1583_v34 = vmul.f32 %v10033_v32, %v10021_v16  ;;  %v1684_v35 = vmul.f32 %v10033_v32, %v10023_v17  ;;  %9650 = vmatpush3.bf16.msra.mxu1 %v9649_v42 }
 0x739   :  { %9651 = vmatprep.subr.bf16.mxu1 %v11022_v2 }
 0x73a   :  { %v10035_v36 = vpop.eup %10034  ;;  %8792 = vmatmul.mubr.msk.f32.gmra.mrb[20].mxu0 %vm1486_vm5, %v1484_v33  ;;  %8803 = vmatmul.mubr.msk.f32.gmra.mrb[18].mxu1 %vm1486_vm5, %v1583_v34 }
 0x73b   :  { %8794 = vmatprep.mubr.msk.f32.mxu0 %vm11023_vm0, %v11021_v1  ;;  %8805 = vmatprep.mubr.msk.f32.mxu1 %vm11023_vm0, %v11021_v1  ;;  %v1485_v37 = vmul.f32 %v10035_v36, %v10025_v21  ;;  %v1584_v38 = vmul.f32 %v10035_v36, %v10027_v22  ;;  %v1685_v39 = vmul.f32 %v10035_v36, %v10029_v25 }
 0x73c   :  { %9653 = vmatpush3.bf16.msra.mxu1 %v9652_v45 }
 0x73d   :  { %9660 = vmatprep.subr.bf16.mxu1 %v11022_v2 }
 0x73e   :  { %8795 = vmatmul.mubr.msk.f32.gmra.mrb[22].mxu0 %vm1486_vm5, %v1485_v37  ;;  %8806 = vmatmul.mubr.msk.f32.gmra.mrb[20].mxu1 %vm1486_vm5, %v1584_v38 }
 0x73f   :  { %8810 = vmatprep.mubr.msk.f32.mxu0 %vm11023_vm0, %v11021_v1  ;;  %8827 = vmatprep.mubr.msk.f32.mxu1 %vm11023_vm0, %v11021_v1 }
 0x742   :  { %8811 = vmatmul.mubr.msk.f32.vlgmr.msra.gmra.mrb[24].mxu0 %vm1486_vm5, %v1683_v28 }
 0x743   :  { %8813 = vmatprep.mubr.msk.f32.mxu0 %vm11023_vm0, %v11021_v1 }
 0x746   :  { %8814 = vmatmul.mubr.msk.f32.gmra.mrb[26].mxu0 %vm1486_vm5, %v1684_v35 }
 0x747   :  { %8816 = vmatprep.mubr.msk.f32.mxu0 %vm11023_vm0, %v11021_v1 }
 0x74a   :  { %8817 = vmatmul.mubr.msk.f32.gmra.mrb[28].mxu0 %vm1486_vm5, %v1685_v39 }
 0x74b   :  { %8844 = vmatprep.mubr.msk.f32.mxu0 %vm11023_vm0, %v11021_v1 }
 0x808   :  { %v1562_v48 = vpop.f32.mrb[18].mxu0  ;;  %v1660_v49 = vpop.f32.mrb[16].mxu1 }
 0x809   :  { %v1579_v50 = vmul.f32 %v1577_v46, %v1562_v48  ;;  %v1677_v51 = vmul.f32 %v1675_v47, %v1660_v49  ;;  %v8790_v52 = vpop.f32.mrb[19].mxu0  ;;  %v8801_v54 = vpop.f32.mrb[17].mxu1 }
 0x80b   :  { %v1680_v55 = vadd.f32 %v1677_v51, %v1579_v50 }
 0x80d   :  { %v1567_v59 = vpop.f32.mrb[20].mxu0  ;;  %v1665_v60 = vpop.f32.mrb[18].mxu1 }
 0x80e   :  { %v1580_v62 = vmul.f32 %v1577_v46, %v1567_v59  ;;  %v1678_v63 = vmul.f32 %v1675_v47, %v1665_v60  ;;  %v8793_v0 = vpop.f32.mrb[21].mxu0  ;;  %v8804_v3 = vpop.f32.mrb[19].mxu1 }
 0x80f   :  { %v1949_v3 = vld [vmem:[%s12491_s12 + $0x10] sm:$0xff] }
 0x810   :  { %v1681_v4 = vadd.f32 %v1678_v63, %v1580_v62  ;;  %v1947_v62 = vld [vmem:[%s12491_s12] sm:$0xff]  ;;  %v1948_v63 = vld [vmem:[%s12491_s12 + $0x8] sm:$0xff] }
 0x811   :  { %v1572_v5 = vpop.f32.mrb[22].mxu0  ;;  %v1670_v6 = vpop.f32.mrb[20].mxu1  ;;  %v9655_v0 = vpack.c.bf16 %v1948_v63, %v1947_v62 }
 0x812   :  { %v1581_v7 = vmul.f32 %v1577_v46, %v1572_v5  ;;  %v1679_v8 = vmul.f32 %v1675_v47, %v1670_v6  ;;  %v8796_v9 = vpop.f32.mrb[23].mxu0  ;;  %v8807_v10 = vpop.f32.mrb[21].mxu1  ;;  %v2050_v6 = vld [vmem:[%s12492_s18] sm:$0xff] }
 0x813   :  { %9656 = vmatpush3.bf16.msra.mxu0 %v9655_v0  ;;  %v2053_v10 = vld [vmem:[%s12492_s18 + $0x18] sm:$0xff] }
 0x814   :  { %v1682_v11 = vadd.f32 %v1679_v8, %v1581_v7  ;;  %9657 = vmatprep.subr.bf16.mxu0 %v11022_v2  ;;  %v2051_v7 = vld [vmem:[%s12492_s18 + $0x8] sm:$0xff]  ;;  %v2052_v8 = vld [vmem:[%s12492_s18 + $0x10] sm:$0xff] }
 0x815   :  { %v1761_v13 = vpop.f32.mrb[24].mxu0  ;;  %v9661_v9 = vpack.c.bf16 %v2051_v7, %v2050_v6 }
 0x816   :  { %v1778_v14 = vmul.f32 %v1776_v12, %v1761_v13  ;;  %v8812_v15 = vpop.f32.mrb[25].mxu0  ;;  %v2055_v13 = vld [vmem:[%s12492_s18 + $0x28] sm:$0xff] }
 0x818   :  { %v1781_v16 = vadd.f32 %v1778_v14, %v1680_v55 }
 0x819   :  { %v1766_v17 = vpop.f32.mrb[26].mxu0 }
 0x81a   :  { %v1779_v18 = vmul.f32 %v1776_v12, %v1766_v17  ;;  %v8815_v21 = vpop.f32.mrb[27].mxu0  ;;  %8828 = vmatmul.mubr.msk.f32.vlgmr.msra.gmra.mrb[22].mxu1 %vm1066_vm4, %v1781_v16 }
 0x81b   :  { %8830 = vmatprep.mubr.msk.f32.mxu1 %vm11023_vm0, %v11021_v1  ;;  %9662 = vmatpush3.bf16.msra.mxu1 %v9661_v9 }
 0x81c   :  { %v1782_v22 = vadd.f32 %v1779_v18, %v1681_v4  ;;  %v1950_v4 = vld [vmem:[%s12491_s12 + $0x18] sm:$0xff]  ;;  %9663 = vmatprep.subr.bf16.mxu1 %v11022_v2 }
 0x81d   :  { %v1771_v23 = vpop.f32.mrb[28].mxu0  ;;  %v9658_v5 = vpack.c.bf16 %v1950_v4, %v1949_v3 }
 0x81e   :  { %v1780_v24 = vmul.f32 %v1776_v12, %v1771_v23  ;;  %v8818_v25 = vpop.f32.mrb[29].mxu0  ;;  %8831 = vmatmul.mubr.msk.f32.gmra.mrb[24].mxu1 %vm1066_vm4, %v1782_v22  ;;  %v2054_v12 = vld [vmem:[%s12492_s18 + $0x20] sm:$0xff] }
 0x81f   :  { %8833 = vmatprep.mubr.msk.f32.mxu1 %vm11023_vm0, %v11021_v1  ;;  %9659 = vmatpush3.bf16.msra.mxu0 %v9658_v5  ;;  %v9667_v14 = vpack.c.bf16 %v2055_v13, %v2054_v12 }
 0x820   :  { %v1783_v26 = vadd.f32 %v1780_v24, %v1682_v11  ;;  %9672 = vmatprep.subr.bf16.mxu0 %v11022_v2  ;;  %v9664_v11 = vpack.c.bf16 %v2053_v10, %v2052_v8 }
 0x822   :  { %8834 = vmatmul.mubr.msk.f32.gmra.mrb[26].mxu1 %vm1066_vm4, %v1783_v26 }
 0x823   :  { %8869 = vmatprep.mubr.msk.f32.mxu1 %vm11023_vm0, %v11021_v1  ;;  %9665 = vmatpush3.bf16.msra.mxu1 %v9664_v11 }
 0x824   :  { %9666 = vmatprep.subr.bf16.mxu1 %v11022_v2 }
 0x827   :  { %9668 = vmatpush3.bf16.msra.mxu1 %v9667_v14 }
 0x828   :  { %9669 = vmatprep.subr.bf16.mxu1 %v11022_v2 }
 0x8ed   :  { %v1870_v28 = vpop.f32.mrb[22].mxu1 }
 0x8ee   :  { %v1871_v29 = vadd.f32 %v8028_v27, %v1870_v28  ;;  %v8829_v31 = vpop.f32.mrb[23].mxu1 }
 0x8f0   :  { %v1884_v32 = vadd.f32 %v1871_v29, %v11582_v53  ;;  %v8033_v29 = vld [vmem:[#allocation37] ss:$0 sm:$0xff] }
 0x8f1   :  { %v1875_v33 = vpop.f32.mrb[24].mxu1 }
 0x8f2   :  { %v1876_v34 = vadd.f32 %v8028_v27, %v1875_v33  ;;  %v8832_v35 = vpop.f32.mrb[25].mxu1  ;;  %v1889_v36 = vsel %vm1066_vm4, %v1884_v32, 0.0 }
 0x8f3   :  { %1890 = vadd.xlane.f32.xlu0 %v1889_v36 }
 0x8f4   :  { %v1885_v37 = vadd.f32 %v1876_v34, %v11600_v57 }
 0x8f5   :  { %v1880_v38 = vpop.f32.mrb[26].mxu1 }
 0x8f6   :  { %v1881_v39 = vadd.f32 %v8028_v27, %v1880_v38  ;;  %v8835_v40 = vpop.f32.mrb[27].mxu1  ;;  %v1892_v41 = vsel %vm1066_vm4, %v1885_v37, 0.0  ;;  %v8032_v27 = vld [vmem:[#allocation38] ss:$0 sm:$0xff] }
 0x8f7   :  { %1893 = vadd.xlane.f32.xlu1 %v1892_v41  ;;  %v2056_v41 = vld [vmem:[%s12492_s18 + $0x30] sm:$0xff] }
 0x8f8   :  { %v1886_v42 = vadd.f32 %v1881_v39, %v11606_v58 }
 0x8fa   :  { %v1895_v43 = vsel %vm1066_vm4, %v1886_v42, 0.0 }
 0x8fb   :  { %1896 = vadd.xlane.f32.xlu0 %v1895_v43 }
 0x980   :  { %v1891_v44 = vpop.xlane.xlu0 %1890 }
 0x981   :  { %v1899_v45 = vmul.f32 0.03125, %v1891_v44  ;;  %v8034_v44 = vld [vmem:[#allocation29] ss:$0 sm:$0xff] }
 0x983   :  { %v1902_v46 = vsub.f32 %v1884_v32, %v1899_v45 }
 0x984   :  { %v1894_v47 = vpop.xlane.xlu1 %1893 }
 0x985   :  { %v1900_v48 = vmul.f32 0.03125, %v1894_v47  ;;  %v1905_v49 = vmul.f32 %v1902_v46, %v1902_v46 }
 0x987   :  { %v1903_v57 = vsub.f32 %v1885_v37, %v1900_v48  ;;  %v1908_v50 = vsel %vm1066_vm4, %v1905_v49, 0.0 }
 0x988   :  { %1909 = vadd.xlane.f32.xlu0 %v1908_v50  ;;  %v1897_v51 = vpop.xlane.xlu0 %1896 }
 0x989   :  { %v1901_v52 = vmul.f32 0.03125, %v1897_v51  ;;  %v1906_v58 = vmul.f32 %v1903_v57, %v1903_v57 }
 0x98b   :  { %v1904_v54 = vsub.f32 %v1886_v42, %v1901_v52  ;;  %v1911_v55 = vsel %vm1066_vm4, %v1906_v58, 0.0  ;;  %v2057_v42 = vld [vmem:[%s12492_s18 + $0x38] sm:$0xff] }
 0x98c   :  { %1912 = vadd.xlane.f32.xlu1 %v1911_v55  ;;  %v9670_v43 = vpack.c.bf16 %v2057_v42, %v2056_v41 }
 0x98d   :  { %v1907_v59 = vmul.f32 %v1904_v54, %v1904_v54 }
 0x98e   :  { %9671 = vmatpush3.bf16.msra.mxu1 %v9670_v43 }
 0x98f   :  { %v1914_v60 = vsel %vm1066_vm4, %v1907_v59, 0.0  ;;  %9684 = vmatprep.subr.bf16.mxu1 %v11022_v2  ;;  %v8038_v59 = vld [vmem:[#allocation31] ss:$0 sm:$0xff] }
 0x990   :  { %1915 = vadd.xlane.f32.xlu0 %v1914_v60 }
 0xa15   :  { %v1910_v15 = vpop.xlane.xlu0 %1909 }
 0xa16   :  { %v1917_v16 = vmul.f32 0.03125, %v1910_v15 }
 0xa18   :  { %v1920_v17 = vadd.f32 1e-05, %v1917_v16 }
 0xa19   :  { %v1913_v18 = vpop.xlane.xlu1 %1912 }
 0xa1a   :  { %10036 = vrsqrt.f32 %v1920_v17  ;;  %v1918_v21 = vmul.f32 0.03125, %v1913_v18 }
 0xa1c   :  { %v1921_v22 = vadd.f32 1e-05, %v1918_v21 }
 0xa1d   :  { %v1916_v23 = vpop.xlane.xlu0 %1915 }
 0xa1e   :  { %10038 = vrsqrt.f32 %v1921_v22  ;;  %v1919_v24 = vmul.f32 0.03125, %v1916_v23 }
 0xa20   :  { %v1922_v25 = vadd.f32 1e-05, %v1919_v24 }
 0xa22   :  { %10040 = vrsqrt.f32 %v1922_v25 }
 0xa24   :  { %v10037_v26 = vpop.eup %10036 }
 0xa25   :  { %v1926_v28 = vmul.f32 %v10037_v26, %v1902_v46 }
 0xa27   :  { %v1935_v31 = vmul.f32 %v8032_v27, %v1926_v28 }
 0xa28   :  { %v10039_v32 = vpop.eup %10038 }
 0xa29   :  { %v1944_v33 = vadd.f32 %v8033_v29, %v1935_v31  ;;  %v1927_v34 = vmul.f32 %v10039_v32, %v1903_v57  ;;  %v2217_v32 = vld [vmem:[#allocation44 + $0x20] sm:$0xff] }
 0xa2b   :  { %8845 = vmatmul.mubr.msk.f32.vlgmr.msra.gmra.mrb[30].mxu0 %vm1066_vm4, %v1944_v33  ;;  %v1936_v35 = vmul.f32 %v8032_v27, %v1927_v34 }
 0xa2c   :  { %v10041_v36 = vpop.eup %10040  ;;  %8847 = vmatprep.mubr.msk.f32.mxu0 %vm11023_vm0, %v11021_v1 }
 0xa2d   :  { %v1945_v37 = vadd.f32 %v8033_v29, %v1936_v35  ;;  %v1928_v38 = vmul.f32 %v10041_v36, %v1904_v54  ;;  %v2219_v35 = vld [vmem:[#allocation44 + $0x30] sm:$0xff]  ;;  %v2220_v36 = vld [vmem:[#allocation44 + $0x38] sm:$0xff] }
 0xa2f   :  { %8848 = vmatmul.mubr.msk.f32.gmra.mrb[32].mxu0 %vm1066_vm4, %v1945_v37  ;;  %v1937_v39 = vmul.f32 %v8032_v27, %v1928_v38 }
 0xa30   :  { %8850 = vmatprep.mubr.msk.f32.mxu0 %vm11023_vm0, %v11021_v1 }
 0xa31   :  { %v1946_v40 = vadd.f32 %v8033_v29, %v1937_v39 }
 0xa33   :  { %8851 = vmatmul.mubr.msk.f32.gmra.mrb[34].mxu0 %vm1066_vm4, %v1946_v40 }
 0xa34   :  { %8886 = vmatprep.mubr.msk.f32.mxu0 %vm11023_vm0, %v11021_v1 }
 0xafe   :  { %v2033_v45 = vpop.f32.mrb[30].mxu0 }
 0xaff   :  { %v2034_v46 = vadd.f32 %v8034_v44, %v2033_v45  ;;  %v8846_v47 = vpop.f32.mrb[31].mxu0 }
 0xb01   :  { %v2047_v48 = vmax.f32 %v2034_v46, 0.0 }
 0xb02   :  { %v2038_v49 = vpop.f32.mrb[32].mxu0 }
 0xb03   :  { %v2039_v57 = vadd.f32 %v8034_v44, %v2038_v49  ;;  %v8849_v50 = vpop.f32.mrb[33].mxu0  ;;  %8870 = vmatmul.mubr.msk.f32.vlgmr.msra.gmra.mrb[28].mxu1 %vm886_vm3, %v2047_v48  ;;  %v8042_v48 = vld [vmem:[#allocation41] ss:$0 sm:$0xff] }
 0xb04   :  { %8872 = vmatprep.mubr.msk.f32.mxu1 %vm11023_vm0, %v11021_v1  ;;  %9686 = vmatpush3.bf16.msra.mxu1 %v11594_v56 }
 0xb05   :  { %v2048_v51 = vmax.f32 %v2039_v57, 0.0  ;;  %9687 = vmatprep.subr.bf16.mxu1 %v11022_v2  ;;  %v8043_v57 = vld [vmem:[#allocation40] ss:$0 sm:$0xff] }
 0xb06   :  { %v2043_v52 = vpop.f32.mrb[34].mxu0 }
 0xb07   :  { %v2044_v58 = vadd.f32 %v8034_v44, %v2043_v52  ;;  %v8852_v54 = vpop.f32.mrb[35].mxu0  ;;  %8873 = vmatmul.mubr.msk.f32.gmra.mrb[30].mxu1 %vm886_vm3, %v2048_v51 }
 0xb08   :  { %8875 = vmatprep.mubr.msk.f32.mxu1 %vm11023_vm0, %v11021_v1  ;;  %9689 = vmatpush3.bf16.msra.mxu1 %v11614_v61 }
 0xb09   :  { %v2049_v55 = vmax.f32 %v2044_v58, 0.0  ;;  %8946 = vmatprep.subr.mxu1 %v11021_v1 }
 0xb0b   :  { %8876 = vmatmul.mubr.msk.f32.gmra.mrb[32].mxu1 %vm886_vm3, %v2049_v55 }
 0xb0c   :  { %8920 = vmatprep.mubr.msk.f32.mxu1 %vm11023_vm0, %v11021_v1 }
 0xbd6   :  { %v2140_v60 = vpop.f32.mrb[28].mxu1 }
 0xbd7   :  { %v2141_v62 = vadd.f32 %v8038_v59, %v2140_v60  ;;  %v8871_v63 = vpop.f32.mrb[29].mxu1 }
 0xbd9   :  { %v2154_v0 = vadd.f32 %v2141_v62, %v1944_v33  ;;  %v2218_v33 = vld [vmem:[#allocation44 + $0x28] sm:$0xff] }
 0xbda   :  { %v2145_v3 = vpop.f32.mrb[30].mxu1  ;;  %v9673_v34 = vpack.c.bf16 %v2218_v33, %v2217_v32 }
 0xbdb   :  { %v2146_v4 = vadd.f32 %v8038_v59, %v2145_v3  ;;  %v8874_v5 = vpop.f32.mrb[31].mxu1  ;;  %v2159_v6 = vsel %vm1066_vm4, %v2154_v0, 0.0 }
 0xbdc   :  { %2160 = vadd.xlane.f32.xlu1 %v2159_v6  ;;  %9674 = vmatpush3.bf16.msra.mxu0 %v9673_v34 }
 0xbdd   :  { %v2155_v7 = vadd.f32 %v2146_v4, %v1945_v37  ;;  %9675 = vmatprep.subr.bf16.mxu0 %v11022_v2  ;;  %v9676_v37 = vpack.c.bf16 %v2220_v36, %v2219_v35 }
 0xbde   :  { %v2150_v8 = vpop.f32.mrb[32].mxu1 }
 0xbdf   :  { %v2151_v9 = vadd.f32 %v8038_v59, %v2150_v8  ;;  %v8877_v10 = vpop.f32.mrb[33].mxu1  ;;  %v2162_v11 = vsel %vm1066_vm4, %v2155_v7, 0.0 }
 0xbe0   :  { %2163 = vadd.xlane.f32.xlu0 %v2162_v11  ;;  %9677 = vmatpush3.bf16.msra.mxu0 %v9676_v37 }
 0xbe1   :  { %v2156_v12 = vadd.f32 %v2151_v9, %v1946_v40  ;;  %9678 = vmatprep.subr.bf16.mxu0 %v11022_v2 }
 0xbe3   :  { %v2165_v13 = vsel %vm1066_vm4, %v2156_v12, 0.0 }
 0xbe4   :  { %2166 = vadd.xlane.f32.xlu1 %v2165_v13 }
 0xc69   :  { %v2161_v14 = vpop.xlane.xlu1 %2160 }
 0xc6a   :  { %v2168_v15 = vmul.f32 0.03125, %v2161_v14 }
 0xc6c   :  { %v2171_v16 = vsub.f32 %v2154_v0, %v2168_v15  ;;  %v8044_v0 = vld [vmem:[#allocation34 + $0x1] ss:$0 sm:$0xff] }
 0xc6d   :  { %v2164_v17 = vpop.xlane.xlu0 %2163 }
 0xc6e   :  { %v2169_v18 = vmul.f32 0.03125, %v2164_v17  ;;  %v2174_v21 = vmul.f32 %v2171_v16, %v2171_v16 }
 0xc70   :  { %v2172_v22 = vsub.f32 %v2155_v7, %v2169_v18  ;;  %v2177_v23 = vsel %vm1066_vm4, %v2174_v21, 0.0 }
 0xc71   :  { %2178 = vadd.xlane.f32.xlu0 %v2177_v23  ;;  %v2167_v24 = vpop.xlane.xlu1 %2166 }
 0xc72   :  { %v2170_v25 = vmul.f32 0.03125, %v2167_v24  ;;  %v2175_v26 = vmul.f32 %v2172_v22, %v2172_v22 }
 0xc74   :  { %v2173_v27 = vsub.f32 %v2156_v12, %v2170_v25  ;;  %v2180_v28 = vsel %vm1066_vm4, %v2175_v26, 0.0 }
 0xc75   :  { %2181 = vadd.xlane.f32.xlu1 %v2180_v28 }
 0xc76   :  { %v2176_v29 = vmul.f32 %v2173_v27, %v2173_v27 }
 0xc78   :  { %v2183_v31 = vsel %vm1066_vm4, %v2176_v29, 0.0 }
 0xc79   :  { %2184 = vadd.xlane.f32.xlu0 %v2183_v31 }
 0xcfe   :  { %v2179_v38 = vpop.xlane.xlu0 %2178 }
 0xcff   :  { %v2186_v39 = vmul.f32 0.03125, %v2179_v38 }
 0xd01   :  { %v2189_v40 = vadd.f32 1e-05, %v2186_v39 }
 0xd02   :  { %v2182_v41 = vpop.xlane.xlu1 %2181 }
 0xd03   :  { %10042 = vrsqrt.f32 %v2189_v40  ;;  %v2187_v42 = vmul.f32 0.03125, %v2182_v41 }
 0xd05   :  { %v2190_v43 = vadd.f32 1e-05, %v2187_v42 }
 0xd06   :  { %v2185_v44 = vpop.xlane.xlu0 %2184 }
 0xd07   :  { %10044 = vrsqrt.f32 %v2190_v43  ;;  %v2188_v45 = vmul.f32 0.03125, %v2185_v44 }
 0xd09   :  { %v2191_v46 = vadd.f32 1e-05, %v2188_v45 }
 0xd0b   :  { %10046 = vrsqrt.f32 %v2191_v46 }
 0xd0d   :  { %v10043_v47 = vpop.eup %10042 }
 0xd0e   :  { %v2195_v49 = vmul.f32 %v10043_v47, %v2171_v16 }
 0xd10   :  { %v2204_v50 = vmul.f32 %v8042_v48, %v2195_v49 }
 0xd11   :  { %v10045_v51 = vpop.eup %10044 }
 0xd12   :  { %v11760_v52 = vadd.f32 %v8043_v57, %v2204_v50  ;;  %v2196_v58 = vmul.f32 %v10045_v51, %v2172_v22 }
 0xd14   :  { %8887 = vmatmul.mubr.msk.f32.vlgmr.msra.gmra.mrb[36].mxu0 %vm1066_vm4, %v11760_v52  ;;  %v2205_v54 = vmul.f32 %v8042_v48, %v2196_v58 }
 0xd15   :  { %v10047_v55 = vpop.eup %10046  ;;  %8889 = vmatprep.mubr.msk.f32.mxu0 %vm11023_vm0, %v11021_v1  ;;  %9680 = vmatpush3.bf16.msra.mxu0 %v11594_v56 }
 0xd16   :  { %v11767_v59 = vadd.f32 %v8043_v57, %v2205_v54  ;;  %v2197_v60 = vmul.f32 %v10047_v55, %v2173_v27  ;;  %9681 = vmatprep.subr.bf16.mxu0 %v11022_v2 }
 0xd18   :  { %8890 = vmatmul.mubr.msk.f32.gmra.mrb[38].mxu0 %vm1066_vm4, %v11767_v59  ;;  %v2206_v62 = vmul.f32 %v8042_v48, %v2197_v60 }
 0xd19   :  { %8892 = vmatprep.mubr.msk.f32.mxu0 %vm11023_vm0, %v11021_v1  ;;  %9683 = vmatpush3.bf16.msra.mxu0 %v11614_v61 }
 0xd1a   :  { %v11775_v63 = vadd.f32 %v8043_v57, %v2206_v62  ;;  %9690 = vmatprep.subr.bf16.mxu0 %v11022_v2 }
 0xd1c   :  { %8893 = vmatmul.mubr.msk.f32.gmra.mrb[40].mxu0 %vm1066_vm4, %v11775_v63 }
 0xd1d   :  { %8903 = vmatprep.mubr.msk.f32.mxu0 %vm11023_vm0, %v11021_v1 }
 0xde7   :  { %v2304_v3 = vpop.f32.mrb[36].mxu0 }
 0xde8   :  { %v2305_v4 = vadd.f32 %v8044_v0, %v2304_v3  ;;  %v8888_v5 = vpop.f32.mrb[37].mxu0 }
 0xdea   :  { %2319 = vrot.lane.b32.xlu1 %v2305_v4, %s11024_s28 }
 0xdeb   :  { %v2309_v6 = vpop.f32.mrb[38].mxu0 }
 0xdec   :  { %v2310_v7 = vadd.f32 %v8044_v0, %v2309_v6  ;;  %v8891_v8 = vpop.f32.mrb[39].mxu0 }
 0xdee   :  { %2415 = vrot.lane.b32.xlu0 %v2310_v7, %s11024_s28 }
 0xdef   :  { %v2314_v9 = vpop.f32.mrb[40].mxu0 }
 0xdf0   :  { %v2315_v10 = vadd.f32 %v8044_v0, %v2314_v9  ;;  %v8894_v11 = vpop.f32.mrb[41].mxu0 }
 0xdf2   :  { %2838 = vrot.lane.b32.xlu0 %v2310_v7, %s11025_s5  ;;  %2511 = vrot.lane.b32.xlu1 %v2315_v10, %s11024_s28 }
 0xdf6   :  { %2740 = vrot.lane.b32.xlu1 %v2305_v4, %s11025_s5 }
 0xdfa   :  { %2939 = vrot.lane.b32.xlu1 %v2315_v10, %s11025_s5 }
 0xe5c   :  { %v2320_v12 = vpop.permute.xlu1 %2319 }
 0xe5d   :  { %v2322_v13 = vmul.f32 %v2320_v12, %v2305_v4  ;;  %v2323_v15 = vmul.f32 %v2320_v12, %v2310_v7  ;;  %v2324_v17 = vmul.f32 %v2320_v12, %v2315_v10 }
 0xe5f   :  { %8904 = vmatmul.mubr.msk.f32.vlgmr.msra.gmra.mrb[42].mxu0 %vm1066_vm4, %v2322_v13 }
 0xe60   :  { %9692 = vmatpush3.bf16.msra.mxu0 %v11594_v56  ;;  %v2416_v14 = vpop.permute.xlu0 %2415  ;;  %8906 = vmatprep.mubr.msk.f32.mxu0 %vm11023_vm0, %v11021_v1 }
 0xe61   :  { %v2418_v16 = vmul.f32 %v2416_v14, %v2305_v4  ;;  %9693 = vmatprep.subr.bf16.mxu0 %v11022_v2  ;;  %v2419_v18 = vmul.f32 %v2416_v14, %v2310_v7  ;;  %v2420_v22 = vmul.f32 %v2416_v14, %v2315_v10 }
 0xe63   :  { %8907 = vmatmul.mubr.msk.f32.gmra.mrb[44].mxu0 %vm1066_vm4, %v2323_v15  ;;  %8921 = vmatmul.mubr.msk.f32.vlgmr.msra.gmra.mrb[34].mxu1 %vm1066_vm4, %v2418_v16 }
 0xe64   :  { %8909 = vmatprep.mubr.msk.f32.mxu0 %vm11023_vm0, %v11021_v1  ;;  %8923 = vmatprep.mubr.msk.f32.mxu1 %vm11023_vm0, %v11021_v1  ;;  %v2512_v21 = vpop.permute.xlu1 %2511 }
 0xe65   :  { %9695 = vmatpush3.bf16.msra.mxu0 %v11614_v61  ;;  %8947 = vmatpush3.msra.mxu1 %v11657_v30  ;;  %v2514_v23 = vmul.f32 %v2512_v21, %v2305_v4  ;;  %v2515_v24 = vmul.f32 %v2512_v21, %v2310_v7  ;;  %v2516_v25 = vmul.f32 %v2512_v21, %v2315_v10 }
 0xe66   :  { %8957 = vmatprep.subr.mxu0 %v11021_v1  ;;  %8968 = vmatprep.subr.mxu1 %v11021_v1 }
 0xe67   :  { %8910 = vmatmul.mubr.msk.f32.gmra.mrb[46].mxu0 %vm1066_vm4, %v2324_v17  ;;  %8924 = vmatmul.mubr.msk.f32.gmra.mrb[36].mxu1 %vm1066_vm4, %v2419_v18 }
 0xe68   :  { %8926 = vmatprep.mubr.msk.f32.mxu1 %vm11023_vm0, %v11021_v1  ;;  %8937 = vmatprep.mubr.msk.f32.mxu0 %vm11023_vm0, %v11021_v1 }
 0xe6b   :  { %8927 = vmatmul.mubr.msk.f32.gmra.mrb[38].mxu1 %vm1066_vm4, %v2420_v22  ;;  %8938 = vmatmul.mubr.msk.f32.vlgmr.msra.gmra.mrb[48].mxu0 %vm1066_vm4, %v2514_v23 }
 0xe6c   :  { %8940 = vmatprep.mubr.msk.f32.mxu0 %vm11023_vm0, %v11021_v1  ;;  %8948 = vmatprep.mubr.msk.f32.mxu1 %vm11023_vm0, %v11021_v1 }
 0xe6d   :  { %8958 = vmatpush3.msra.mxu0 %v11657_v30 }
 0xe6e   :  { %9696 = vmatprep.subr.bf16.mxu0 %v11022_v2 }
 0xe6f   :  { %8941 = vmatmul.mubr.msk.f32.gmra.mrb[50].mxu0 %vm1066_vm4, %v2515_v24 }
 0xe70   :  { %8943 = vmatprep.mubr.msk.f32.mxu0 %vm11023_vm0, %v11021_v1 }
 0xe73   :  { %8944 = vmatmul.mubr.msk.f32.gmra.mrb[52].mxu0 %vm1066_vm4, %v2516_v25 }
 0xe74   :  { %8959 = vmatprep.mubr.msk.f32.mxu0 %vm11023_vm0, %v11021_v1 }
 0xf32   :  { %v2400_v26 = vpop.f32.mrb[42].mxu0 }
 0xf33   :  { %v8905_v27 = vpop.f32.mrb[43].mxu0 }
 0xf36   :  { %v2405_v28 = vpop.f32.mrb[44].mxu0  ;;  %v2496_v29 = vpop.f32.mrb[34].mxu1 }
 0xf37   :  { %v2606_v31 = vmax.f32 %v2400_v26, %v2496_v29  ;;  %v8908_v32 = vpop.f32.mrb[45].mxu0  ;;  %v8922_v33 = vpop.f32.mrb[35].mxu1 }
 0xf3a   :  { %v2410_v34 = vpop.f32.mrb[46].mxu0  ;;  %v2501_v35 = vpop.f32.mrb[36].mxu1 }
 0xf3b   :  { %v2607_v36 = vmax.f32 %v2405_v28, %v2501_v35  ;;  %v8911_v37 = vpop.f32.mrb[47].mxu0  ;;  %v8925_v38 = vpop.f32.mrb[37].mxu1 }
 0xf3e   :  { %v2506_v39 = vpop.f32.mrb[38].mxu1  ;;  %v2592_v40 = vpop.f32.mrb[48].mxu0 }
 0xf3f   :  { %v2608_v41 = vmax.f32 %v2410_v34, %v2506_v39  ;;  %v2609_v42 = vmax.f32 %v2606_v31, %v2592_v40  ;;  %v8928_v43 = vpop.f32.mrb[39].mxu1  ;;  %v8939_v44 = vpop.f32.mrb[49].mxu0 }
 0xf40   :  { %v2950_v43 = vld [vmem:[#allocation43 + $0x28] sm:$0xff] }
 0xf41   :  { %v2612_v45 = vsub.f32 %v2400_v26, %v2609_v42  ;;  %v2621_v46 = vsub.f32 %v2496_v29, %v2609_v42  ;;  %v2630_v47 = vsub.f32 %v2592_v40, %v2609_v42  ;;  %v2949_v42 = vld [vmem:[#allocation43 + $0x20] sm:$0xff] }
 0xf42   :  { %v2597_v48 = vpop.f32.mrb[50].mxu0  ;;  %v9697_v44 = vpack.c.bf16 %v2950_v43, %v2949_v42 }
 0xf43   :  { %v2615_v49 = vmul.f32 1.442695, %v2612_v45  ;;  %v2624_v57 = vmul.f32 1.442695, %v2621_v46  ;;  %v2610_v50 = vmax.f32 %v2607_v36, %v2597_v48  ;;  %v2633_v51 = vmul.f32 1.442695, %v2630_v47 }
 0xf44   :  { %v8942_v58 = vpop.f32.mrb[51].mxu0  ;;  %v2951_v45 = vld [vmem:[#allocation43 + $0x30] sm:$0xff]  ;;  %v2952_v46 = vld [vmem:[#allocation43 + $0x38] sm:$0xff] }
 0xf45   :  { %10048 = vpow2.f32 %v2615_v49  ;;  %v2613_v54 = vsub.f32 %v2405_v28, %v2610_v50  ;;  %v2622_v55 = vsub.f32 %v2501_v35, %v2610_v50  ;;  %v2631_v60 = vsub.f32 %v2597_v48, %v2610_v50  ;;  %v2839_v48 = vpop.permute.xlu0 %2838  ;;  %v2741_v49 = vpop.permute.xlu1 %2740 }
 0xf46   :  { %10050 = vpow2.f32 %v2624_v57  ;;  %v2602_v62 = vpop.f32.mrb[52].mxu0  ;;  %v9700_v47 = vpack.c.bf16 %v2952_v46, %v2951_v45 }
 0xf47   :  { %v2617_v0 = vmul.f32 1.442695, %v2613_v54  ;;  %v2626_v3 = vmul.f32 1.442695, %v2622_v55  ;;  %10052 = vpow2.f32 %v2633_v51  ;;  %v2635_v4 = vmul.f32 1.442695, %v2631_v60 }
 0xf48   :  { %v2611_v5 = vmax.f32 %v2608_v41, %v2602_v62  ;;  %v8945_v6 = vpop.f32.mrb[53].mxu0 }
 0xf49   :  { %10054 = vpow2.f32 %v2617_v0 }
 0xf4a   :  { %10056 = vpow2.f32 %v2626_v3  ;;  %v2614_v7 = vsub.f32 %v2410_v34, %v2611_v5  ;;  %v2623_v8 = vsub.f32 %v2506_v39, %v2611_v5  ;;  %v2632_v9 = vsub.f32 %v2602_v62, %v2611_v5 }
 0xf4b   :  { %10058 = vpow2.f32 %v2635_v4 }
 0xf4c   :  { %v2619_v10 = vmul.f32 1.442695, %v2614_v7  ;;  %v2628_v11 = vmul.f32 1.442695, %v2623_v8  ;;  %v2637_v12 = vmul.f32 1.442695, %v2632_v9 }
 0xf4e   :  { %10060 = vpow2.f32 %v2619_v10 }
 0xf4f   :  { %v10049_v13 = vpop.eup %10048  ;;  %10062 = vpow2.f32 %v2628_v11 }
 0xf50   :  { %v10051_v14 = vpop.eup %10050  ;;  %10064 = vpow2.f32 %v2637_v12 }
 0xf51   :  { %v2639_v15 = vadd.f32 %v10051_v14, %v10049_v13  ;;  %v10053_v16 = vpop.eup %10052 }
 0xf53   :  { %v10055_v17 = vpop.eup %10054  ;;  %v2642_v18 = vadd.f32 %v10053_v16, %v2639_v15  ;;  %v2940_v15 = vpop.permute.xlu1 %2939 }
 0xf54   :  { %v10057_v21 = vpop.eup %10056 }
 0xf55   :  { %10066 = vrcp.f32 %v2642_v18  ;;  %v2640_v22 = vadd.f32 %v10057_v21, %v10055_v17  ;;  %v10059_v23 = vpop.eup %10058 }
 0xf57   :  { %v2643_v24 = vadd.f32 %v10059_v23, %v2640_v22 }
 0xf58   :  { %v10061_v25 = vpop.eup %10060 }
 0xf59   :  { %v10063_v26 = vpop.eup %10062  ;;  %10068 = vrcp.f32 %v2643_v24 }
 0xf5a   :  { %v2641_v27 = vadd.f32 %v10063_v26, %v10061_v25  ;;  %v10065_v28 = vpop.eup %10064 }
 0xf5c   :  { %v2644_v29 = vadd.f32 %v10065_v28, %v2641_v27 }
 0xf5e   :  { %10070 = vrcp.f32 %v2644_v29 }
 0xf5f   :  { %v10067_v31 = vpop.eup %10066 }
 0xf60   :  { %v2847_v32 = vmul.f32 %v10067_v31, %v10053_v16  ;;  %v2648_v33 = vmul.f32 %v10067_v31, %v10049_v13  ;;  %v2746_v34 = vmul.f32 %v10067_v31, %v10051_v14  ;;  %v8066_v31 = vld [vmem:[#allocation32 + $0x1] ss:$0 sm:$0xff] }
 0xf62   :  { %8949 = vmatmul.mubr.msk.f32.vlgmr.msra.gmra.mrb[40].mxu1 %vm1486_vm5, %v2648_v33  ;;  %8960 = vmatmul.mubr.msk.f32.vlgmr.msra.gmra.mrb[54].mxu0 %vm1486_vm5, %v2746_v34 }
 0xf63   :  { %v10069_v35 = vpop.eup %10068  ;;  %8969 = vmatpush3.msra.mxu1 %v11657_v30  ;;  %8951 = vmatprep.mubr.msk.f32.mxu1 %vm11023_vm0, %v11021_v1 }
 0xf64   :  { %8962 = vmatprep.mubr.msk.f32.mxu0 %vm11023_vm0, %v11021_v1  ;;  %v2649_v36 = vmul.f32 %v10069_v35, %v10055_v17  ;;  %v2747_v37 = vmul.f32 %v10069_v35, %v10057_v21  ;;  %v2848_v38 = vmul.f32 %v10069_v35, %v10059_v23  ;;  %9702 = vmatprep.subr.bf16.mxu1 %v11022_v2 }
 0xf65   :  { %9698 = vmatpush3.bf16.msra.mxu0 %v9697_v44 }
 0xf66   :  { %8952 = vmatmul.mubr.msk.f32.gmra.mrb[42].mxu1 %vm1486_vm5, %v2649_v36  ;;  %8963 = vmatmul.mubr.msk.f32.gmra.mrb[56].mxu0 %vm1486_vm5, %v2747_v37 }
 0xf67   :  { %8954 = vmatprep.mubr.msk.f32.mxu1 %vm11023_vm0, %v11021_v1  ;;  %8965 = vmatprep.mubr.msk.f32.mxu0 %vm11023_vm0, %v11021_v1 }
 0xf68   :  { %v10071_v30 = vpop.eup %10070  ;;  %9699 = vmatprep.subr.bf16.mxu0 %v11022_v2 }
 0xf69   :  { %v2650_v39 = vmul.f32 %v10071_v30, %v10061_v25  ;;  %v2748_v40 = vmul.f32 %v10071_v30, %v10063_v26  ;;  %v2849_v41 = vmul.f32 %v10071_v30, %v10065_v28  ;;  %9701 = vmatpush3.bf16.msra.mxu0 %v9700_v47 }
 0xf6a   :  { %9708 = vmatprep.subr.bf16.mxu0 %v11022_v2 }
 0xf6b   :  { %8955 = vmatmul.mubr.msk.f32.gmra.mrb[44].mxu1 %vm1486_vm5, %v2650_v39  ;;  %8966 = vmatmul.mubr.msk.f32.gmra.mrb[58].mxu0 %vm1486_vm5, %v2748_v40 }
 0xf6c   :  { %8970 = vmatprep.mubr.msk.f32.mxu1 %vm11023_vm0, %v11021_v1  ;;  %8987 = vmatprep.mubr.msk.f32.mxu0 %vm11023_vm0, %v11021_v1 }
 0xf6f   :  { %8971 = vmatmul.mubr.msk.f32.vlgmr.msra.gmra.mrb[46].mxu1 %vm1486_vm5, %v2847_v32 }
 0xf70   :  { %8973 = vmatprep.mubr.msk.f32.mxu1 %vm11023_vm0, %v11021_v1 }
 0xf73   :  { %8974 = vmatmul.mubr.msk.f32.gmra.mrb[48].mxu1 %vm1486_vm5, %v2848_v38 }
 0xf74   :  { %8976 = vmatprep.mubr.msk.f32.mxu1 %vm11023_vm0, %v11021_v1 }
 0xf77   :  { %8977 = vmatmul.mubr.msk.f32.gmra.mrb[50].mxu1 %vm1486_vm5, %v2849_v41 }
 0xf78   :  { %9004 = vmatprep.mubr.msk.f32.mxu1 %vm11023_vm0, %v11021_v1 }
0x1035   :  { %v2726_v57 = vpop.f32.mrb[40].mxu1  ;;  %v2824_v50 = vpop.f32.mrb[54].mxu0 }
0x1036   :  { %v2743_v51 = vmul.f32 %v2741_v49, %v2726_v57  ;;  %v2841_v58 = vmul.f32 %v2839_v48, %v2824_v50  ;;  %v8950_v54 = vpop.f32.mrb[41].mxu1  ;;  %v8961_v55 = vpop.f32.mrb[55].mxu0 }
0x1038   :  { %v2844_v60 = vadd.f32 %v2841_v58, %v2743_v51 }
0x1039   :  { %v2731_v62 = vpop.f32.mrb[42].mxu1  ;;  %v2829_v0 = vpop.f32.mrb[56].mxu0 }
0x103a   :  { %v2744_v3 = vmul.f32 %v2741_v49, %v2731_v62  ;;  %v2842_v4 = vmul.f32 %v2839_v48, %v2829_v0  ;;  %v8953_v5 = vpop.f32.mrb[43].mxu1  ;;  %v8964_v6 = vpop.f32.mrb[57].mxu0  ;;  %v8072_v0 = vld [vmem:[%s12491_s12 + $0x20] sm:$0xff] }
0x103b   :  { %v8074_v5 = vld [vmem:[%s12491_s12 + $0x30] sm:$0xff]  ;;  %v8075_v6 = vld [vmem:[%s12491_s12 + $0x38] sm:$0xff] }
0x103c   :  { %v2845_v7 = vadd.f32 %v2842_v4, %v2744_v3  ;;  %v8073_v3 = vld [vmem:[%s12491_s12 + $0x28] sm:$0xff] }
0x103d   :  { %v9703_v4 = vpack.c.bf16 %v8073_v3, %v8072_v0 }
0x103e   :  { %v2736_v8 = vpop.f32.mrb[44].mxu1  ;;  %v2834_v9 = vpop.f32.mrb[58].mxu0 }
0x103f   :  { %v2745_v10 = vmul.f32 %v2741_v49, %v2736_v8  ;;  %v2843_v11 = vmul.f32 %v2839_v48, %v2834_v9  ;;  %v8956_v12 = vpop.f32.mrb[45].mxu1  ;;  %v8967_v13 = vpop.f32.mrb[59].mxu0  ;;  %9704 = vmatpush3.bf16.msra.mxu1 %v9703_v4  ;;  %v8080_v8 = vld [vmem:[%s12492_s18 + $0x40] sm:$0xff]  ;;  %v8081_v9 = vld [vmem:[%s12492_s18 + $0x48] sm:$0xff] }
0x1040   :  { %9705 = vmatprep.subr.bf16.mxu1 %v11022_v2  ;;  %v8083_v12 = vld [vmem:[%s12492_s18 + $0x58] sm:$0xff] }
0x1041   :  { %v2846_v14 = vadd.f32 %v2843_v11, %v2745_v10  ;;  %v8082_v10 = vld [vmem:[%s12492_s18 + $0x50] sm:$0xff]  ;;  %v9709_v11 = vpack.c.bf16 %v8081_v9, %v8080_v8 }
0x1042   :  { %v2925_v16 = vpop.f32.mrb[46].mxu1  ;;  %v9712_v13 = vpack.c.bf16 %v8083_v12, %v8082_v10 }
0x1043   :  { %v2942_v17 = vmul.f32 %v2940_v15, %v2925_v16  ;;  %v8972_v18 = vpop.f32.mrb[47].mxu1 }
0x1045   :  { %v2945_v21 = vadd.f32 %v2942_v17, %v2844_v60 }
0x1046   :  { %v2930_v22 = vpop.f32.mrb[48].mxu1 }
0x1047   :  { %v2943_v23 = vmul.f32 %v2940_v15, %v2930_v22  ;;  %v8975_v24 = vpop.f32.mrb[49].mxu1  ;;  %8988 = vmatmul.mubr.msk.f32.vlgmr.msra.gmra.mrb[60].mxu0 %vm1066_vm4, %v2945_v21 }
0x1048   :  { %8990 = vmatprep.mubr.msk.f32.mxu0 %vm11023_vm0, %v11021_v1  ;;  %9710 = vmatpush3.bf16.msra.mxu0 %v9709_v11 }
0x1049   :  { %v2946_v25 = vadd.f32 %v2943_v23, %v2845_v7  ;;  %v9706_v7 = vpack.c.bf16 %v8075_v6, %v8074_v5  ;;  %9711 = vmatprep.subr.bf16.mxu0 %v11022_v2 }
0x104a   :  { %v2935_v26 = vpop.f32.mrb[50].mxu1 }
0x104b   :  { %v2944_v27 = vmul.f32 %v2940_v15, %v2935_v26  ;;  %v8978_v28 = vpop.f32.mrb[51].mxu1  ;;  %8991 = vmatmul.mubr.msk.f32.gmra.mrb[62].mxu0 %vm1066_vm4, %v2946_v25  ;;  %9707 = vmatpush3.bf16.msra.mxu1 %v9706_v7  ;;  %v8085_v15 = vld [vmem:[%s12492_s18 + $0x68] sm:$0xff] }
0x104c   :  { %8993 = vmatprep.mubr.msk.f32.mxu0 %vm11023_vm0, %v11021_v1  ;;  %9720 = vmatprep.subr.bf16.mxu1 %v11022_v2 }
0x104d   :  { %v2947_v29 = vadd.f32 %v2944_v27, %v2846_v14  ;;  %v8084_v14 = vld [vmem:[%s12492_s18 + $0x60] sm:$0xff]  ;;  %9713 = vmatpush3.bf16.msra.mxu0 %v9712_v13 }
0x104e   :  { %v9715_v16 = vpack.c.bf16 %v8085_v15, %v8084_v14  ;;  %9714 = vmatprep.subr.bf16.mxu0 %v11022_v2 }
0x104f   :  { %8994 = vmatmul.mubr.msk.f32.gmra.mrb[64].mxu0 %vm1066_vm4, %v2947_v29  ;;  %v8070_v29 = vld [vmem:[#allocation38 + $0x1] ss:$0 sm:$0xff] }
0x1050   :  { %9029 = vmatprep.mubr.msk.f32.mxu0 %vm11023_vm0, %v11021_v1 }
0x1051   :  { %9716 = vmatpush3.bf16.msra.mxu0 %v9715_v16 }
0x1052   :  { %9717 = vmatprep.subr.bf16.mxu0 %v11022_v2 }
0x111a   :  { %v3036_v32 = vpop.f32.mrb[60].mxu0 }
0x111b   :  { %v3037_v33 = vadd.f32 %v8066_v31, %v3036_v32  ;;  %v8989_v34 = vpop.f32.mrb[61].mxu0  ;;  %v8071_v32 = vld [vmem:[#allocation37 + $0x1] ss:$0 sm:$0xff] }
0x111d   :  { %v3050_v35 = vadd.f32 %v3037_v33, %v11760_v52 }
0x111e   :  { %v3041_v36 = vpop.f32.mrb[62].mxu0 }
0x111f   :  { %v3042_v37 = vadd.f32 %v8066_v31, %v3041_v36  ;;  %v8992_v38 = vpop.f32.mrb[63].mxu0  ;;  %v3057_v30 = vsel %vm1066_vm4, %v3050_v35, 0.0 }
0x1120   :  { %3058 = vadd.xlane.f32.xlu0 %v3057_v30 }
0x1121   :  { %v3051_v39 = vadd.f32 %v3042_v37, %v11767_v59 }
0x1122   :  { %v3046_v40 = vpop.f32.mrb[64].mxu0 }
0x1123   :  { %v3047_v41 = vadd.f32 %v8066_v31, %v3046_v40  ;;  %v8995_v42 = vpop.f32.mrb[65].mxu0  ;;  %v3060_v43 = vsel %vm1066_vm4, %v3051_v39, 0.0 }
0x1124   :  { %3061 = vadd.xlane.f32.xlu1 %v3060_v43  ;;  %v8086_v42 = vld [vmem:[%s12492_s18 + $0x70] sm:$0xff]  ;;  %v8087_v43 = vld [vmem:[%s12492_s18 + $0x78] sm:$0xff] }
0x1125   :  { %v3052_v44 = vadd.f32 %v3047_v41, %v11775_v63 }
0x1127   :  { %v3063_v45 = vsel %vm1066_vm4, %v3052_v44, 0.0 }
0x1128   :  { %3064 = vadd.xlane.f32.xlu0 %v3063_v45  ;;  %v8076_v45 = vld [vmem:[#allocation29 + $0x1] ss:$0 sm:$0xff] }
0x11ad   :  { %v3059_v52 = vpop.xlane.xlu0 %3058 }
0x11ae   :  { %v3066_v46 = vmul.f32 0.03125, %v3059_v52 }
0x11b0   :  { %v3069_v47 = vsub.f32 %v3050_v35, %v3066_v46 }
0x11b1   :  { %v3062_v48 = vpop.xlane.xlu1 %3061 }
0x11b2   :  { %v3067_v49 = vmul.f32 0.03125, %v3062_v48  ;;  %v3072_v57 = vmul.f32 %v3069_v47, %v3069_v47 }
0x11b4   :  { %v3070_v59 = vsub.f32 %v3051_v39, %v3067_v49  ;;  %v3075_v50 = vsel %vm1066_vm4, %v3072_v57, 0.0 }
0x11b5   :  { %3076 = vadd.xlane.f32.xlu0 %v3075_v50  ;;  %v3065_v51 = vpop.xlane.xlu0 %3064 }
0x11b6   :  { %v3068_v58 = vmul.f32 0.03125, %v3065_v51  ;;  %v3073_v63 = vmul.f32 %v3070_v59, %v3070_v59 }
0x11b8   :  { %v3071_v54 = vsub.f32 %v3052_v44, %v3068_v58  ;;  %v3078_v55 = vsel %vm1066_vm4, %v3073_v63, 0.0  ;;  %v9718_v44 = vpack.c.bf16 %v8087_v43, %v8086_v42 }
0x11b9   :  { %3079 = vadd.xlane.f32.xlu1 %v3078_v55  ;;  %v8088_v55 = vld [vmem:[#allocation31 + $0x1] ss:$0 sm:$0xff] }
0x11ba   :  { %v3074_v60 = vmul.f32 %v3071_v54, %v3071_v54  ;;  %9719 = vmatpush3.bf16.msra.mxu0 %v9718_v44 }
0x11bb   :  { %9732 = vmatprep.subr.bf16.mxu0 %v11022_v2 }
0x11bc   :  { %v3081_v62 = vsel %vm1066_vm4, %v3074_v60, 0.0 }
0x11bd   :  { %3082 = vadd.xlane.f32.xlu0 %v3081_v62 }
0x1242   :  { %v3077_v17 = vpop.xlane.xlu0 %3076 }
0x1243   :  { %v3084_v18 = vmul.f32 0.03125, %v3077_v17 }
0x1245   :  { %v3087_v21 = vadd.f32 1e-05, %v3084_v18 }
0x1246   :  { %v3080_v22 = vpop.xlane.xlu1 %3079 }
0x1247   :  { %10072 = vrsqrt.f32 %v3087_v21  ;;  %v3085_v23 = vmul.f32 0.03125, %v3080_v22 }
0x1249   :  { %v3088_v24 = vadd.f32 1e-05, %v3085_v23 }
0x124a   :  { %v3083_v25 = vpop.xlane.xlu0 %3082 }
0x124b   :  { %10074 = vrsqrt.f32 %v3088_v24  ;;  %v3086_v26 = vmul.f32 0.03125, %v3083_v25 }
0x124d   :  { %v3089_v27 = vadd.f32 1e-05, %v3086_v26 }
0x124f   :  { %10076 = vrsqrt.f32 %v3089_v27 }
0x1251   :  { %v10073_v28 = vpop.eup %10072 }
0x1252   :  { %v3093_v31 = vmul.f32 %v10073_v28, %v3069_v47 }
0x1254   :  { %v3102_v33 = vmul.f32 %v8070_v29, %v3093_v31 }
0x1255   :  { %v10075_v34 = vpop.eup %10074 }
0x1256   :  { %v3111_v35 = vadd.f32 %v8071_v32, %v3102_v33  ;;  %v3094_v36 = vmul.f32 %v10075_v34, %v3070_v59  ;;  %v3390_v33 = vld [vmem:[#allocation44 + $0x40] sm:$0xff]  ;;  %v3391_v34 = vld [vmem:[#allocation44 + $0x48] sm:$0xff] }
0x1258   :  { %9005 = vmatmul.mubr.msk.f32.vlgmr.msra.gmra.mrb[52].mxu1 %vm1066_vm4, %v3111_v35  ;;  %v3103_v37 = vmul.f32 %v8070_v29, %v3094_v36  ;;  %v3392_v36 = vld [vmem:[#allocation44 + $0x50] sm:$0xff] }
0x1259   :  { %v10077_v38 = vpop.eup %10076  ;;  %9007 = vmatprep.mubr.msk.f32.mxu1 %vm11023_vm0, %v11021_v1 }
0x125a   :  { %v3112_v30 = vadd.f32 %v8071_v32, %v3103_v37  ;;  %v3095_v39 = vmul.f32 %v10077_v38, %v3071_v54  ;;  %v3393_v37 = vld [vmem:[#allocation44 + $0x58] sm:$0xff] }
0x125b   :  { %v9724_v38 = vpack.c.bf16 %v3393_v37, %v3392_v36 }
0x125c   :  { %9008 = vmatmul.mubr.msk.f32.gmra.mrb[54].mxu1 %vm1066_vm4, %v3112_v30  ;;  %v3104_v40 = vmul.f32 %v8070_v29, %v3095_v39 }
0x125d   :  { %9010 = vmatprep.mubr.msk.f32.mxu1 %vm11023_vm0, %v11021_v1 }
0x125e   :  { %v3113_v41 = vadd.f32 %v8071_v32, %v3104_v40 }
0x1260   :  { %9011 = vmatmul.mubr.msk.f32.gmra.mrb[56].mxu1 %vm1066_vm4, %v3113_v41 }
0x1261   :  { %9046 = vmatprep.mubr.msk.f32.mxu1 %vm11023_vm0, %v11021_v1 }
0x132b   :  { %v3202_v52 = vpop.f32.mrb[52].mxu1 }
0x132c   :  { %v3203_v46 = vadd.f32 %v8076_v45, %v3202_v52  ;;  %v9006_v47 = vpop.f32.mrb[53].mxu1 }
0x132d   :  { %v8092_v47 = vld [vmem:[#allocation41 + $0x1] ss:$0 sm:$0xff] }
0x132e   :  { %v3216_v48 = vmax.f32 %v3203_v46, 0.0 }
0x132f   :  { %v3207_v49 = vpop.f32.mrb[54].mxu1 }
0x1330   :  { %v3208_v57 = vadd.f32 %v8076_v45, %v3207_v49  ;;  %v9009_v59 = vpop.f32.mrb[55].mxu1  ;;  %9030 = vmatmul.mubr.msk.f32.vlgmr.msra.gmra.mrb[66].mxu0 %vm886_vm3, %v3216_v48  ;;  %v8093_v49 = vld [vmem:[#allocation40 + $0x1] ss:$0 sm:$0xff] }
0x1331   :  { %9032 = vmatprep.mubr.msk.f32.mxu0 %vm11023_vm0, %v11021_v1  ;;  %9734 = vmatpush3.bf16.msra.mxu0 %v11594_v56 }
0x1332   :  { %v3217_v50 = vmax.f32 %v3208_v57, 0.0  ;;  %9735 = vmatprep.subr.bf16.mxu0 %v11022_v2 }
0x1333   :  { %v3212_v51 = vpop.f32.mrb[56].mxu1 }
0x1334   :  { %v3213_v58 = vadd.f32 %v8076_v45, %v3212_v51  ;;  %v9012_v63 = vpop.f32.mrb[57].mxu1  ;;  %9033 = vmatmul.mubr.msk.f32.gmra.mrb[68].mxu0 %vm886_vm3, %v3217_v50 }
0x1335   :  { %9035 = vmatprep.mubr.msk.f32.mxu0 %vm11023_vm0, %v11021_v1  ;;  %9737 = vmatpush3.bf16.msra.mxu0 %v11614_v61 }
0x1336   :  { %v3218_v54 = vmax.f32 %v3213_v58, 0.0  ;;  %9106 = vmatprep.subr.mxu0 %v11021_v1 }
0x1338   :  { %9036 = vmatmul.mubr.msk.f32.gmra.mrb[70].mxu0 %vm886_vm3, %v3218_v54 }
0x1339   :  { %9080 = vmatprep.mubr.msk.f32.mxu0 %vm11023_vm0, %v11021_v1 }
0x1403   :  { %v3311_v60 = vpop.f32.mrb[66].mxu0 }
0x1404   :  { %v3312_v62 = vadd.f32 %v8088_v55, %v3311_v60  ;;  %v9031_v0 = vpop.f32.mrb[67].mxu0 }
0x1405   :  { %v8094_v0 = vld [vmem:[#allocation34 + $0x2] ss:$0 sm:$0xff] }
0x1406   :  { %v3325_v3 = vadd.f32 %v3312_v62, %v3111_v35  ;;  %v9721_v35 = vpack.c.bf16 %v3391_v34, %v3390_v33 }
0x1407   :  { %v3316_v4 = vpop.f32.mrb[68].mxu0 }
0x1408   :  { %v3317_v5 = vadd.f32 %v8088_v55, %v3316_v4  ;;  %v9034_v6 = vpop.f32.mrb[69].mxu0  ;;  %v3332_v7 = vsel %vm1066_vm4, %v3325_v3, 0.0  ;;  %9722 = vmatpush3.bf16.msra.mxu1 %v9721_v35 }
0x1409   :  { %3333 = vadd.xlane.f32.xlu1 %v3332_v7  ;;  %9723 = vmatprep.subr.bf16.mxu1 %v11022_v2 }
0x140a   :  { %v3326_v8 = vadd.f32 %v3317_v5, %v3112_v30 }
0x140b   :  { %v3321_v9 = vpop.f32.mrb[70].mxu0 }
0x140c   :  { %v3322_v10 = vadd.f32 %v8088_v55, %v3321_v9  ;;  %v9037_v11 = vpop.f32.mrb[71].mxu0  ;;  %v3335_v12 = vsel %vm1066_vm4, %v3326_v8, 0.0  ;;  %9725 = vmatpush3.bf16.msra.mxu1 %v9724_v38 }
0x140d   :  { %3336 = vadd.xlane.f32.xlu0 %v3335_v12  ;;  %9726 = vmatprep.subr.bf16.mxu1 %v11022_v2 }
0x140e   :  { %v3327_v13 = vadd.f32 %v3322_v10, %v3113_v41 }
0x1410   :  { %v3338_v14 = vsel %vm1066_vm4, %v3327_v13, 0.0 }
0x1411   :  { %3339 = vadd.xlane.f32.xlu1 %v3338_v14 }
0x1496   :  { %v3334_v15 = vpop.xlane.xlu1 %3333 }
0x1497   :  { %v3341_v16 = vmul.f32 0.03125, %v3334_v15 }
0x1499   :  { %v3344_v17 = vsub.f32 %v3325_v3, %v3341_v16 }
0x149a   :  { %v3337_v18 = vpop.xlane.xlu0 %3336 }
0x149b   :  { %v3342_v21 = vmul.f32 0.03125, %v3337_v18  ;;  %v3347_v22 = vmul.f32 %v3344_v17, %v3344_v17 }
0x149d   :  { %v3345_v23 = vsub.f32 %v3326_v8, %v3342_v21  ;;  %v3350_v24 = vsel %vm1066_vm4, %v3347_v22, 0.0  ;;  %v11960_v21 = vld [vmem:[#allocation35] sm:$0xff] }
0x149e   :  { %3351 = vadd.xlane.f32.xlu0 %v3350_v24  ;;  %v3340_v25 = vpop.xlane.xlu1 %3339 }
0x149f   :  { %v3343_v26 = vmul.f32 0.03125, %v3340_v25  ;;  %v3348_v27 = vmul.f32 %v3345_v23, %v3345_v23 }
0x14a1   :  { %v3346_v28 = vsub.f32 %v3327_v13, %v3343_v26  ;;  %v3353_v29 = vsel %vm1066_vm4, %v3348_v27, 0.0 }
0x14a2   :  { %3354 = vadd.xlane.f32.xlu1 %v3353_v29 }
0x14a3   :  { %v3349_v31 = vmul.f32 %v3346_v28, %v3346_v28 }
0x14a5   :  { %v3356_v32 = vsel %vm1066_vm4, %v3349_v31, 0.0 }
0x14a6   :  { %3357 = vadd.xlane.f32.xlu0 %v3356_v32 }
0x152b   :  { %v3352_v30 = vpop.xlane.xlu0 %3351 }
0x152c   :  { %v3359_v39 = vmul.f32 0.03125, %v3352_v30 }
0x152e   :  { %v3362_v40 = vadd.f32 1e-05, %v3359_v39 }
0x152f   :  { %v3355_v41 = vpop.xlane.xlu1 %3354 }
0x1530   :  { %10078 = vrsqrt.f32 %v3362_v40  ;;  %v3360_v42 = vmul.f32 0.03125, %v3355_v41 }
0x1532   :  { %v3363_v43 = vadd.f32 1e-05, %v3360_v42 }
0x1533   :  { %v3358_v44 = vpop.xlane.xlu0 %3357 }
0x1534   :  { %10080 = vrsqrt.f32 %v3363_v43  ;;  %v3361_v45 = vmul.f32 0.03125, %v3358_v44 }
0x1536   :  { %v3364_v52 = vadd.f32 1e-05, %v3361_v45 }
0x1538   :  { %10082 = vrsqrt.f32 %v3364_v52 }
0x153a   :  { %v10079_v46 = vpop.eup %10078 }
0x153b   :  { %v3368_v48 = vmul.f32 %v10079_v46, %v3344_v17 }
0x153d   :  { %v3377_v57 = vmul.f32 %v8092_v47, %v3368_v48 }
0x153e   :  { %v10081_v59 = vpop.eup %10080 }
0x153f   :  { %v11920_v50 = vadd.f32 %v8093_v49, %v3377_v57  ;;  %v3369_v51 = vmul.f32 %v10081_v59, %v3345_v23 }
0x1541   :  { %9047 = vmatmul.mubr.msk.f32.vlgmr.msra.gmra.mrb[58].mxu1 %vm1066_vm4, %v11920_v50  ;;  %v3378_v58 = vmul.f32 %v8092_v47, %v3369_v51 }
0x1542   :  { %v10083_v63 = vpop.eup %10082  ;;  %9049 = vmatprep.mubr.msk.f32.mxu1 %vm11023_vm0, %v11021_v1  ;;  %9728 = vmatpush3.bf16.msra.mxu1 %v11594_v56 }
0x1543   :  { %v11927_v54 = vadd.f32 %v8093_v49, %v3378_v58  ;;  %v3370_v55 = vmul.f32 %v10083_v63, %v3346_v28  ;;  %9729 = vmatprep.subr.bf16.mxu1 %v11022_v2 }
0x1545   :  { %9050 = vmatmul.mubr.msk.f32.gmra.mrb[60].mxu1 %vm1066_vm4, %v11927_v54  ;;  %v3379_v60 = vmul.f32 %v8092_v47, %v3370_v55 }
0x1546   :  { %9052 = vmatprep.mubr.msk.f32.mxu1 %vm11023_vm0, %v11021_v1  ;;  %9731 = vmatpush3.bf16.msra.mxu1 %v11614_v61 }
0x1547   :  { %v11935_v62 = vadd.f32 %v8093_v49, %v3379_v60  ;;  %9738 = vmatprep.subr.bf16.mxu1 %v11022_v2 }
0x1549   :  { %9053 = vmatmul.mubr.msk.f32.gmra.mrb[62].mxu1 %vm1066_vm4, %v11935_v62 }
0x154a   :  { %9063 = vmatprep.mubr.msk.f32.mxu1 %vm11023_vm0, %v11021_v1 }
0x1614   :  { %v3477_v3 = vpop.f32.mrb[58].mxu1 }
0x1615   :  { %v3478_v4 = vadd.f32 %v8094_v0, %v3477_v3  ;;  %v9048_v5 = vpop.f32.mrb[59].mxu1 }
0x1617   :  { %3492 = vrot.lane.b32.xlu1 %v3478_v4, %s11024_s28 }
0x1618   :  { %v3482_v6 = vpop.f32.mrb[60].mxu1 }
0x1619   :  { %v3483_v7 = vadd.f32 %v8094_v0, %v3482_v6  ;;  %v9051_v8 = vpop.f32.mrb[61].mxu1 }
0x161b   :  { %3588 = vrot.lane.b32.xlu0 %v3483_v7, %s11024_s28 }
0x161c   :  { %v3487_v9 = vpop.f32.mrb[62].mxu1 }
0x161d   :  { %v3488_v10 = vadd.f32 %v8094_v0, %v3487_v9  ;;  %v9054_v11 = vpop.f32.mrb[63].mxu1 }
0x161f   :  { %4011 = vrot.lane.b32.xlu0 %v3483_v7, %s11025_s5  ;;  %3684 = vrot.lane.b32.xlu1 %v3488_v10, %s11024_s28 }
0x1623   :  { %3913 = vrot.lane.b32.xlu1 %v3478_v4, %s11025_s5 }
0x1627   :  { %4112 = vrot.lane.b32.xlu1 %v3488_v10, %s11025_s5 }
0x1689   :  { %v3493_v12 = vpop.permute.xlu1 %3492 }
0x168a   :  { %v3495_v13 = vmul.f32 %v3493_v12, %v3478_v4  ;;  %v3496_v15 = vmul.f32 %v3493_v12, %v3483_v7  ;;  %v3497_v17 = vmul.f32 %v3493_v12, %v3488_v10 }
0x168c   :  { %9064 = vmatmul.mubr.msk.f32.vlgmr.msra.gmra.mrb[64].mxu1 %vm1066_vm4, %v3495_v13 }
0x168d   :  { %v3589_v14 = vpop.permute.xlu0 %3588  ;;  %9740 = vmatpush3.bf16.msra.mxu1 %v11594_v56  ;;  %9066 = vmatprep.mubr.msk.f32.mxu1 %vm11023_vm0, %v11021_v1 }
0x168e   :  { %v3591_v16 = vmul.f32 %v3589_v14, %v3478_v4  ;;  %9741 = vmatprep.subr.bf16.mxu1 %v11022_v2  ;;  %v3592_v18 = vmul.f32 %v3589_v14, %v3483_v7  ;;  %v3593_v23 = vmul.f32 %v3589_v14, %v3488_v10 }
0x1690   :  { %9067 = vmatmul.mubr.msk.f32.gmra.mrb[66].mxu1 %vm1066_vm4, %v3496_v15  ;;  %9081 = vmatmul.mubr.msk.f32.vlgmr.msra.gmra.mrb[72].mxu0 %vm1066_vm4, %v3591_v16 }
0x1691   :  { %9069 = vmatprep.mubr.msk.f32.mxu1 %vm11023_vm0, %v11021_v1  ;;  %9083 = vmatprep.mubr.msk.f32.mxu0 %vm11023_vm0, %v11021_v1  ;;  %v3685_v22 = vpop.permute.xlu1 %3684 }
0x1692   :  { %9743 = vmatpush3.bf16.msra.mxu1 %v11614_v61  ;;  %9107 = vmatpush3.msra.mxu0 %v11960_v21  ;;  %v3687_v24 = vmul.f32 %v3685_v22, %v3478_v4  ;;  %v3688_v25 = vmul.f32 %v3685_v22, %v3483_v7  ;;  %v3689_v26 = vmul.f32 %v3685_v22, %v3488_v10 }
0x1693   :  { %9117 = vmatprep.subr.mxu1 %v11021_v1  ;;  %9128 = vmatprep.subr.mxu0 %v11021_v1 }
0x1694   :  { %9070 = vmatmul.mubr.msk.f32.gmra.mrb[68].mxu1 %vm1066_vm4, %v3497_v17  ;;  %9084 = vmatmul.mubr.msk.f32.gmra.mrb[74].mxu0 %vm1066_vm4, %v3592_v18 }
0x1695   :  { %9086 = vmatprep.mubr.msk.f32.mxu0 %vm11023_vm0, %v11021_v1  ;;  %9097 = vmatprep.mubr.msk.f32.mxu1 %vm11023_vm0, %v11021_v1 }
0x1698   :  { %9087 = vmatmul.mubr.msk.f32.gmra.mrb[76].mxu0 %vm1066_vm4, %v3593_v23  ;;  %9098 = vmatmul.mubr.msk.f32.vlgmr.msra.gmra.mrb[70].mxu1 %vm1066_vm4, %v3687_v24 }
0x1699   :  { %9100 = vmatprep.mubr.msk.f32.mxu1 %vm11023_vm0, %v11021_v1  ;;  %9108 = vmatprep.mubr.msk.f32.mxu0 %vm11023_vm0, %v11021_v1 }
0x169a   :  { %9118 = vmatpush3.msra.mxu1 %v11960_v21 }
0x169b   :  { %9744 = vmatprep.subr.bf16.mxu1 %v11022_v2 }
0x169c   :  { %9101 = vmatmul.mubr.msk.f32.gmra.mrb[72].mxu1 %vm1066_vm4, %v3688_v25 }
0x169d   :  { %9103 = vmatprep.mubr.msk.f32.mxu1 %vm11023_vm0, %v11021_v1 }
0x16a0   :  { %9104 = vmatmul.mubr.msk.f32.gmra.mrb[74].mxu1 %vm1066_vm4, %v3689_v26 }
0x16a1   :  { %9119 = vmatprep.mubr.msk.f32.mxu1 %vm11023_vm0, %v11021_v1 }
0x175f   :  { %v3573_v27 = vpop.f32.mrb[64].mxu1 }
0x1760   :  { %v9065_v28 = vpop.f32.mrb[65].mxu1 }
0x1763   :  { %v3578_v29 = vpop.f32.mrb[66].mxu1  ;;  %v3669_v31 = vpop.f32.mrb[72].mxu0 }
0x1764   :  { %v3779_v32 = vmax.f32 %v3573_v27, %v3669_v31  ;;  %v9068_v33 = vpop.f32.mrb[67].mxu1  ;;  %v9082_v34 = vpop.f32.mrb[73].mxu0 }
0x1767   :  { %v3583_v35 = vpop.f32.mrb[68].mxu1  ;;  %v3674_v36 = vpop.f32.mrb[74].mxu0 }
0x1768   :  { %v3780_v37 = vmax.f32 %v3578_v29, %v3674_v36  ;;  %v9071_v38 = vpop.f32.mrb[69].mxu1  ;;  %v9085_v30 = vpop.f32.mrb[75].mxu0 }
0x176b   :  { %v3679_v39 = vpop.f32.mrb[76].mxu0  ;;  %v3765_v40 = vpop.f32.mrb[70].mxu1 }
0x176c   :  { %v3781_v41 = vmax.f32 %v3583_v35, %v3679_v39  ;;  %v3782_v42 = vmax.f32 %v3779_v32, %v3765_v40  ;;  %v9088_v43 = vpop.f32.mrb[77].mxu0  ;;  %v9099_v44 = vpop.f32.mrb[71].mxu1 }
0x176d   :  { %v4122_v43 = vld [vmem:[#allocation43 + $0x40] sm:$0xff]  ;;  %v4123_v44 = vld [vmem:[#allocation43 + $0x48] sm:$0xff] }
0x176e   :  { %v3785_v45 = vsub.f32 %v3573_v27, %v3782_v42  ;;  %v3794_v52 = vsub.f32 %v3669_v31, %v3782_v42  ;;  %v3803_v46 = vsub.f32 %v3765_v40, %v3782_v42 }
0x176f   :  { %v3770_v47 = vpop.f32.mrb[72].mxu1 }
0x1770   :  { %v3788_v48 = vmul.f32 1.442695, %v3785_v45  ;;  %v3797_v49 = vmul.f32 1.442695, %v3794_v52  ;;  %v3783_v57 = vmax.f32 %v3780_v37, %v3770_v47  ;;  %v3806_v59 = vmul.f32 1.442695, %v3803_v46 }
0x1771   :  { %v9102_v51 = vpop.f32.mrb[73].mxu1  ;;  %v9745_v45 = vpack.c.bf16 %v4123_v44, %v4122_v43  ;;  %v4124_v52 = vld [vmem:[#allocation43 + $0x50] sm:$0xff]  ;;  %v4125_v46 = vld [vmem:[#allocation43 + $0x58] sm:$0xff] }
0x1772   :  { %10084 = vpow2.f32 %v3788_v48  ;;  %v3786_v58 = vsub.f32 %v3578_v29, %v3783_v57  ;;  %v3795_v63 = vsub.f32 %v3674_v36, %v3783_v57  ;;  %v3804_v55 = vsub.f32 %v3770_v47, %v3783_v57  ;;  %v4012_v48 = vpop.permute.xlu0 %4011 }
0x1773   :  { %10086 = vpow2.f32 %v3797_v49  ;;  %v3775_v60 = vpop.f32.mrb[74].mxu1  ;;  %v9748_v47 = vpack.c.bf16 %v4125_v46, %v4124_v52  ;;  %v3914_v49 = vpop.permute.xlu1 %3913 }
0x1774   :  { %v3790_v0 = vmul.f32 1.442695, %v3786_v58  ;;  %v3799_v3 = vmul.f32 1.442695, %v3795_v63  ;;  %10088 = vpow2.f32 %v3806_v59  ;;  %v3808_v4 = vmul.f32 1.442695, %v3804_v55 }
0x1775   :  { %v3784_v5 = vmax.f32 %v3781_v41, %v3775_v60  ;;  %v9105_v6 = vpop.f32.mrb[75].mxu1 }
0x1776   :  { %10090 = vpow2.f32 %v3790_v0 }
0x1777   :  { %10092 = vpow2.f32 %v3799_v3  ;;  %v3787_v7 = vsub.f32 %v3583_v35, %v3784_v5  ;;  %v3796_v8 = vsub.f32 %v3679_v39, %v3784_v5  ;;  %v3805_v9 = vsub.f32 %v3775_v60, %v3784_v5 }
0x1778   :  { %10094 = vpow2.f32 %v3808_v4 }
0x1779   :  { %v3792_v10 = vmul.f32 1.442695, %v3787_v7  ;;  %v3801_v11 = vmul.f32 1.442695, %v3796_v8  ;;  %v3810_v12 = vmul.f32 1.442695, %v3805_v9 }
0x177b   :  { %10096 = vpow2.f32 %v3792_v10 }
0x177c   :  { %v10085_v13 = vpop.eup %10084  ;;  %10098 = vpow2.f32 %v3801_v11 }
0x177d   :  { %v10087_v14 = vpop.eup %10086  ;;  %10100 = vpow2.f32 %v3810_v12 }
0x177e   :  { %v3812_v15 = vadd.f32 %v10087_v14, %v10085_v13  ;;  %v10089_v16 = vpop.eup %10088 }
0x1780   :  { %v10091_v17 = vpop.eup %10090  ;;  %v3815_v18 = vadd.f32 %v10089_v16, %v3812_v15 }
0x1781   :  { %v10093_v22 = vpop.eup %10092 }
0x1782   :  { %10102 = vrcp.f32 %v3815_v18  ;;  %v3813_v23 = vadd.f32 %v10093_v22, %v10091_v17  ;;  %v10095_v24 = vpop.eup %10094 }
0x1784   :  { %v3816_v25 = vadd.f32 %v10095_v24, %v3813_v23 }
0x1785   :  { %v10097_v26 = vpop.eup %10096 }
0x1786   :  { %v10099_v27 = vpop.eup %10098  ;;  %10104 = vrcp.f32 %v3816_v25 }
0x1787   :  { %v3814_v28 = vadd.f32 %v10099_v27, %v10097_v26  ;;  %v10101_v29 = vpop.eup %10100 }
0x1789   :  { %v3817_v31 = vadd.f32 %v10101_v29, %v3814_v28 }
0x178b   :  { %10106 = vrcp.f32 %v3817_v31 }
0x178c   :  { %v10103_v32 = vpop.eup %10102 }
0x178d   :  { %v4020_v33 = vmul.f32 %v10103_v32, %v10089_v16  ;;  %v3821_v34 = vmul.f32 %v10103_v32, %v10085_v13  ;;  %v3919_v35 = vmul.f32 %v10103_v32, %v10087_v14  ;;  %v4113_v16 = vpop.permute.xlu1 %4112 }
0x178f   :  { %9109 = vmatmul.mubr.msk.f32.vlgmr.msra.gmra.mrb[78].mxu0 %vm1486_vm5, %v3821_v34  ;;  %9120 = vmatmul.mubr.msk.f32.vlgmr.msra.gmra.mrb[76].mxu1 %vm1486_vm5, %v3919_v35 }
0x1790   :  { %v10105_v36 = vpop.eup %10104  ;;  %9129 = vmatpush3.msra.mxu0 %v11960_v21  ;;  %9111 = vmatprep.mubr.msk.f32.mxu0 %vm11023_vm0, %v11021_v1 }
0x1791   :  { %9122 = vmatprep.mubr.msk.f32.mxu1 %vm11023_vm0, %v11021_v1  ;;  %v3822_v37 = vmul.f32 %v10105_v36, %v10091_v17  ;;  %v3920_v38 = vmul.f32 %v10105_v36, %v10093_v22  ;;  %v4021_v30 = vmul.f32 %v10105_v36, %v10095_v24  ;;  %9750 = vmatprep.subr.bf16.mxu0 %v11022_v2 }
0x1792   :  { %9746 = vmatpush3.bf16.msra.mxu1 %v9745_v45 }
0x1793   :  { %9112 = vmatmul.mubr.msk.f32.gmra.mrb[80].mxu0 %vm1486_vm5, %v3822_v37  ;;  %9123 = vmatmul.mubr.msk.f32.gmra.mrb[78].mxu1 %vm1486_vm5, %v3920_v38 }
0x1794   :  { %9114 = vmatprep.mubr.msk.f32.mxu0 %vm11023_vm0, %v11021_v1  ;;  %9125 = vmatprep.mubr.msk.f32.mxu1 %vm11023_vm0, %v11021_v1 }
0x1795   :  { %v10107_v39 = vpop.eup %10106  ;;  %9747 = vmatprep.subr.bf16.mxu1 %v11022_v2 }
0x1796   :  { %v3823_v40 = vmul.f32 %v10107_v39, %v10097_v26  ;;  %v3921_v41 = vmul.f32 %v10107_v39, %v10099_v27  ;;  %v4022_v42 = vmul.f32 %v10107_v39, %v10101_v29  ;;  %9749 = vmatpush3.bf16.msra.mxu1 %v9748_v47 }
0x1797   :  { %9756 = vmatprep.subr.bf16.mxu1 %v11022_v2 }
0x1798   :  { %9115 = vmatmul.mubr.msk.f32.gmra.mrb[82].mxu0 %vm1486_vm5, %v3823_v40  ;;  %9126 = vmatmul.mubr.msk.f32.gmra.mrb[80].mxu1 %vm1486_vm5, %v3921_v41 }
0x1799   :  { %9130 = vmatprep.mubr.msk.f32.mxu0 %vm11023_vm0, %v11021_v1  ;;  %9147 = vmatprep.mubr.msk.f32.mxu1 %vm11023_vm0, %v11021_v1 }
0x179c   :  { %9131 = vmatmul.mubr.msk.f32.vlgmr.msra.gmra.mrb[84].mxu0 %vm1486_vm5, %v4020_v33  ;;  %v8116_v33 = vld [vmem:[#allocation32 + $0x2] ss:$0 sm:$0xff] }
0x179d   :  { %9133 = vmatprep.mubr.msk.f32.mxu0 %vm11023_vm0, %v11021_v1 }
0x17a0   :  { %9134 = vmatmul.mubr.msk.f32.gmra.mrb[86].mxu0 %vm1486_vm5, %v4021_v30 }
0x17a1   :  { %9136 = vmatprep.mubr.msk.f32.mxu0 %vm11023_vm0, %v11021_v1 }
0x17a4   :  { %9137 = vmatmul.mubr.msk.f32.gmra.mrb[88].mxu0 %vm1486_vm5, %v4022_v42 }
0x17a5   :  { %9164 = vmatprep.mubr.msk.f32.mxu0 %vm11023_vm0, %v11021_v1 }
0x1862   :  { %v3899_v57 = vpop.f32.mrb[78].mxu0  ;;  %v3997_v59 = vpop.f32.mrb[76].mxu1 }
0x1863   :  { %v3916_v51 = vmul.f32 %v3914_v49, %v3899_v57  ;;  %v4014_v58 = vmul.f32 %v4012_v48, %v3997_v59  ;;  %v9110_v63 = vpop.f32.mrb[79].mxu0  ;;  %v9121_v55 = vpop.f32.mrb[77].mxu1 }
0x1865   :  { %v4017_v60 = vadd.f32 %v4014_v58, %v3916_v51 }
0x1866   :  { %v3904_v0 = vpop.f32.mrb[80].mxu0  ;;  %v4002_v3 = vpop.f32.mrb[78].mxu1 }
0x1867   :  { %v3917_v4 = vmul.f32 %v3914_v49, %v3904_v0  ;;  %v4015_v5 = vmul.f32 %v4012_v48, %v4002_v3  ;;  %v9113_v6 = vpop.f32.mrb[81].mxu0  ;;  %v9124_v7 = vpop.f32.mrb[79].mxu1 }
0x1868   :  { %v8124_v7 = vld [vmem:[%s12491_s12 + $0x50] sm:$0xff] }
0x1869   :  { %v4018_v8 = vadd.f32 %v4015_v5, %v3917_v4  ;;  %v8122_v4 = vld [vmem:[%s12491_s12 + $0x40] sm:$0xff]  ;;  %v8123_v5 = vld [vmem:[%s12491_s12 + $0x48] sm:$0xff] }
0x186a   :  { %v9751_v6 = vpack.c.bf16 %v8123_v5, %v8122_v4 }
0x186b   :  { %v3909_v9 = vpop.f32.mrb[82].mxu0  ;;  %v4007_v10 = vpop.f32.mrb[80].mxu1 }
0x186c   :  { %v3918_v11 = vmul.f32 %v3914_v49, %v3909_v9  ;;  %v4016_v12 = vmul.f32 %v4012_v48, %v4007_v10  ;;  %v9116_v13 = vpop.f32.mrb[83].mxu0  ;;  %v9127_v14 = vpop.f32.mrb[81].mxu1  ;;  %9752 = vmatpush3.bf16.msra.mxu0 %v9751_v6  ;;  %v8130_v10 = vld [vmem:[%s12492_s18 + $0x80] sm:$0xff] }
0x186d   :  { %9753 = vmatprep.subr.bf16.mxu0 %v11022_v2  ;;  %v8133_v14 = vld [vmem:[%s12492_s18 + $0x98] sm:$0xff] }
0x186e   :  { %v4019_v15 = vadd.f32 %v4016_v12, %v3918_v11  ;;  %v8131_v11 = vld [vmem:[%s12492_s18 + $0x88] sm:$0xff]  ;;  %v8132_v12 = vld [vmem:[%s12492_s18 + $0x90] sm:$0xff] }
0x186f   :  { %v4098_v17 = vpop.f32.mrb[84].mxu0  ;;  %v9757_v13 = vpack.c.bf16 %v8131_v11, %v8130_v10 }
0x1870   :  { %v4115_v18 = vmul.f32 %v4113_v16, %v4098_v17  ;;  %v9132_v22 = vpop.f32.mrb[85].mxu0  ;;  %v8135_v17 = vld [vmem:[%s12492_s18 + $0xa8] sm:$0xff] }
0x1872   :  { %v4118_v23 = vadd.f32 %v4115_v18, %v4017_v60 }
0x1873   :  { %v4103_v24 = vpop.f32.mrb[86].mxu0 }
0x1874   :  { %v4116_v25 = vmul.f32 %v4113_v16, %v4103_v24  ;;  %v9135_v26 = vpop.f32.mrb[87].mxu0  ;;  %9148 = vmatmul.mubr.msk.f32.vlgmr.msra.gmra.mrb[82].mxu1 %vm1066_vm4, %v4118_v23 }
0x1875   :  { %9150 = vmatprep.mubr.msk.f32.mxu1 %vm11023_vm0, %v11021_v1  ;;  %9758 = vmatpush3.bf16.msra.mxu1 %v9757_v13 }
0x1876   :  { %v4119_v27 = vadd.f32 %v4116_v25, %v4018_v8  ;;  %v8125_v8 = vld [vmem:[%s12491_s12 + $0x58] sm:$0xff]  ;;  %9759 = vmatprep.subr.bf16.mxu1 %v11022_v2 }
0x1877   :  { %v4108_v28 = vpop.f32.mrb[88].mxu0  ;;  %v9754_v9 = vpack.c.bf16 %v8125_v8, %v8124_v7 }
0x1878   :  { %v4117_v29 = vmul.f32 %v4113_v16, %v4108_v28  ;;  %v9138_v31 = vpop.f32.mrb[89].mxu0  ;;  %9151 = vmatmul.mubr.msk.f32.gmra.mrb[84].mxu1 %vm1066_vm4, %v4119_v27  ;;  %v8134_v16 = vld [vmem:[%s12492_s18 + $0xa0] sm:$0xff] }
0x1879   :  { %9153 = vmatprep.mubr.msk.f32.mxu1 %vm11023_vm0, %v11021_v1  ;;  %9755 = vmatpush3.bf16.msra.mxu0 %v9754_v9  ;;  %v9763_v18 = vpack.c.bf16 %v8135_v17, %v8134_v16 }
0x187a   :  { %v4120_v32 = vadd.f32 %v4117_v29, %v4019_v15  ;;  %9768 = vmatprep.subr.bf16.mxu0 %v11022_v2  ;;  %v9760_v15 = vpack.c.bf16 %v8133_v14, %v8132_v12 }
0x187c   :  { %9154 = vmatmul.mubr.msk.f32.gmra.mrb[86].mxu1 %vm1066_vm4, %v4120_v32 }
0x187d   :  { %9189 = vmatprep.mubr.msk.f32.mxu1 %vm11023_vm0, %v11021_v1  ;;  %9761 = vmatpush3.bf16.msra.mxu1 %v9760_v15 }
0x187e   :  { %9762 = vmatprep.subr.bf16.mxu1 %v11022_v2 }
0x1881   :  { %9764 = vmatpush3.bf16.msra.mxu1 %v9763_v18 }
0x1882   :  { %9765 = vmatprep.subr.bf16.mxu1 %v11022_v2 }
0x1947   :  { %v4209_v34 = vpop.f32.mrb[82].mxu1 }
0x1948   :  { %v4210_v35 = vadd.f32 %v8116_v33, %v4209_v34  ;;  %v9149_v36 = vpop.f32.mrb[83].mxu1 }
0x194a   :  { %v4223_v37 = vadd.f32 %v4210_v35, %v11920_v50  ;;  %v8121_v35 = vld [vmem:[#allocation37 + $0x2] ss:$0 sm:$0xff] }
0x194b   :  { %v4214_v38 = vpop.f32.mrb[84].mxu1 }
0x194c   :  { %v4215_v30 = vadd.f32 %v8116_v33, %v4214_v38  ;;  %v9152_v39 = vpop.f32.mrb[85].mxu1  ;;  %v4230_v40 = vsel %vm1066_vm4, %v4223_v37, 0.0 }
0x194d   :  { %4231 = vadd.xlane.f32.xlu0 %v4230_v40 }
0x194e   :  { %v4224_v41 = vadd.f32 %v4215_v30, %v11927_v54 }
0x194f   :  { %v4219_v42 = vpop.f32.mrb[86].mxu1 }
0x1950   :  { %v4220_v43 = vadd.f32 %v8116_v33, %v4219_v42  ;;  %v9155_v44 = vpop.f32.mrb[87].mxu1  ;;  %v4233_v45 = vsel %vm1066_vm4, %v4224_v41, 0.0  ;;  %v8120_v33 = vld [vmem:[#allocation38 + $0x2] ss:$0 sm:$0xff] }
0x1951   :  { %4234 = vadd.xlane.f32.xlu1 %v4233_v45  ;;  %v8136_v45 = vld [vmem:[%s12492_s18 + $0xb0] sm:$0xff] }
0x1952   :  { %v4225_v52 = vadd.f32 %v4220_v43, %v11935_v62 }
0x1954   :  { %v4236_v46 = vsel %vm1066_vm4, %v4225_v52, 0.0 }
0x1955   :  { %4237 = vadd.xlane.f32.xlu0 %v4236_v46 }
0x19da   :  { %v4232_v50 = vpop.xlane.xlu0 %4231 }
0x19db   :  { %v4239_v47 = vmul.f32 0.03125, %v4232_v50  ;;  %v8126_v50 = vld [vmem:[#allocation29 + $0x2] ss:$0 sm:$0xff] }
0x19dd   :  { %v4242_v48 = vsub.f32 %v4223_v37, %v4239_v47 }
0x19de   :  { %v4235_v49 = vpop.xlane.xlu1 %4234 }
0x19df   :  { %v4240_v57 = vmul.f32 0.03125, %v4235_v49  ;;  %v4245_v59 = vmul.f32 %v4242_v48, %v4242_v48 }
0x19e1   :  { %v4243_v54 = vsub.f32 %v4224_v41, %v4240_v57  ;;  %v4248_v51 = vsel %vm1066_vm4, %v4245_v59, 0.0 }
0x19e2   :  { %4249 = vadd.xlane.f32.xlu0 %v4248_v51  ;;  %v4238_v58 = vpop.xlane.xlu0 %4237 }
0x19e3   :  { %v4241_v63 = vmul.f32 0.03125, %v4238_v58  ;;  %v4246_v62 = vmul.f32 %v4243_v54, %v4243_v54 }
0x19e5   :  { %v4244_v55 = vsub.f32 %v4225_v52, %v4241_v63  ;;  %v4251_v60 = vsel %vm1066_vm4, %v4246_v62, 0.0  ;;  %v8137_v52 = vld [vmem:[%s12492_s18 + $0xb8] sm:$0xff] }
0x19e6   :  { %4252 = vadd.xlane.f32.xlu1 %v4251_v60  ;;  %v9766_v46 = vpack.c.bf16 %v8137_v52, %v8136_v45 }
0x19e7   :  { %v4247_v0 = vmul.f32 %v4244_v55, %v4244_v55 }
0x19e8   :  { %9767 = vmatpush3.bf16.msra.mxu1 %v9766_v46 }
0x19e9   :  { %v4254_v3 = vsel %vm1066_vm4, %v4247_v0, 0.0  ;;  %9780 = vmatprep.subr.bf16.mxu1 %v11022_v2  ;;  %v8138_v0 = vld [vmem:[#allocation31 + $0x2] ss:$0 sm:$0xff] }
0x19ea   :  { %4255 = vadd.xlane.f32.xlu0 %v4254_v3 }
0x1a6f   :  { %v4250_v22 = vpop.xlane.xlu0 %4249 }
0x1a70   :  { %v4257_v23 = vmul.f32 0.03125, %v4250_v22 }
0x1a72   :  { %v4260_v24 = vadd.f32 1e-05, %v4257_v23 }
0x1a73   :  { %v4253_v25 = vpop.xlane.xlu1 %4252 }
0x1a74   :  { %10108 = vrsqrt.f32 %v4260_v24  ;;  %v4258_v26 = vmul.f32 0.03125, %v4253_v25 }
0x1a76   :  { %v4261_v27 = vadd.f32 1e-05, %v4258_v26 }
0x1a77   :  { %v4256_v28 = vpop.xlane.xlu0 %4255 }
0x1a78   :  { %10110 = vrsqrt.f32 %v4261_v27  ;;  %v4259_v29 = vmul.f32 0.03125, %v4256_v28 }
0x1a7a   :  { %v4262_v31 = vadd.f32 1e-05, %v4259_v29 }
0x1a7c   :  { %10112 = vrsqrt.f32 %v4262_v31 }
0x1a7e   :  { %v10109_v32 = vpop.eup %10108 }
0x1a7f   :  { %v4266_v34 = vmul.f32 %v10109_v32, %v4242_v48 }
0x1a81   :  { %v4275_v36 = vmul.f32 %v8120_v33, %v4266_v34 }
0x1a82   :  { %v10111_v37 = vpop.eup %10110 }
0x1a83   :  { %v4284_v38 = vadd.f32 %v8121_v35, %v4275_v36  ;;  %v4267_v30 = vmul.f32 %v10111_v37, %v4243_v54  ;;  %v4563_v37 = vld [vmem:[#allocation44 + $0x60] sm:$0xff] }
0x1a85   :  { %9165 = vmatmul.mubr.msk.f32.vlgmr.msra.gmra.mrb[90].mxu0 %vm1066_vm4, %v4284_v38  ;;  %v4276_v39 = vmul.f32 %v8120_v33, %v4267_v30 }
0x1a86   :  { %v10113_v40 = vpop.eup %10112  ;;  %9167 = vmatprep.mubr.msk.f32.mxu0 %vm11023_vm0, %v11021_v1 }
0x1a87   :  { %v4285_v41 = vadd.f32 %v8121_v35, %v4276_v39  ;;  %v4268_v42 = vmul.f32 %v10113_v40, %v4244_v55  ;;  %v4565_v39 = vld [vmem:[#allocation44 + $0x70] sm:$0xff]  ;;  %v4566_v40 = vld [vmem:[#allocation44 + $0x78] sm:$0xff] }
0x1a89   :  { %9168 = vmatmul.mubr.msk.f32.gmra.mrb[92].mxu0 %vm1066_vm4, %v4285_v41  ;;  %v4277_v43 = vmul.f32 %v8120_v33, %v4268_v42 }
0x1a8a   :  { %9170 = vmatprep.mubr.msk.f32.mxu0 %vm11023_vm0, %v11021_v1 }
0x1a8b   :  { %v4286_v44 = vadd.f32 %v8121_v35, %v4277_v43 }
0x1a8d   :  { %9171 = vmatmul.mubr.msk.f32.gmra.mrb[94].mxu0 %vm1066_vm4, %v4286_v44 }
0x1a8e   :  { %9206 = vmatprep.mubr.msk.f32.mxu0 %vm11023_vm0, %v11021_v1 }
0x1b58   :  { %v4375_v47 = vpop.f32.mrb[90].mxu0 }
0x1b59   :  { %v4376_v48 = vadd.f32 %v8126_v50, %v4375_v47  ;;  %v9166_v49 = vpop.f32.mrb[91].mxu0 }
0x1b5b   :  { %v4389_v57 = vmax.f32 %v4376_v48, 0.0 }
0x1b5c   :  { %v4380_v59 = vpop.f32.mrb[92].mxu0 }
0x1b5d   :  { %v4381_v54 = vadd.f32 %v8126_v50, %v4380_v59  ;;  %v9169_v51 = vpop.f32.mrb[93].mxu0  ;;  %9190 = vmatmul.mubr.msk.f32.vlgmr.msra.gmra.mrb[88].mxu1 %vm886_vm3, %v4389_v57  ;;  %v8142_v57 = vld [vmem:[#allocation41 + $0x2] ss:$0 sm:$0xff] }
0x1b5e   :  { %9192 = vmatprep.mubr.msk.f32.mxu1 %vm11023_vm0, %v11021_v1  ;;  %9782 = vmatpush3.bf16.msra.mxu1 %v11594_v56 }
0x1b5f   :  { %v4390_v58 = vmax.f32 %v4381_v54, 0.0  ;;  %9783 = vmatprep.subr.bf16.mxu1 %v11022_v2  ;;  %v8143_v54 = vld [vmem:[#allocation40 + $0x2] ss:$0 sm:$0xff] }
0x1b60   :  { %v4385_v63 = vpop.f32.mrb[94].mxu0 }
0x1b61   :  { %v4386_v62 = vadd.f32 %v8126_v50, %v4385_v63  ;;  %v9172_v55 = vpop.f32.mrb[95].mxu0  ;;  %9193 = vmatmul.mubr.msk.f32.gmra.mrb[90].mxu1 %vm886_vm3, %v4390_v58 }
0x1b62   :  { %9195 = vmatprep.mubr.msk.f32.mxu1 %vm11023_vm0, %v11021_v1  ;;  %9785 = vmatpush3.bf16.msra.mxu1 %v11614_v61 }
0x1b63   :  { %v4391_v60 = vmax.f32 %v4386_v62, 0.0  ;;  %9266 = vmatprep.subr.mxu1 %v11021_v1 }
0x1b65   :  { %9196 = vmatmul.mubr.msk.f32.gmra.mrb[92].mxu1 %vm886_vm3, %v4391_v60 }
0x1b66   :  { %9240 = vmatprep.mubr.msk.f32.mxu1 %vm11023_vm0, %v11021_v1 }
0x1c30   :  { %v4484_v3 = vpop.f32.mrb[88].mxu1 }
0x1c31   :  { %v4485_v4 = vadd.f32 %v8138_v0, %v4484_v3  ;;  %v9191_v5 = vpop.f32.mrb[89].mxu1 }
0x1c33   :  { %v4498_v6 = vadd.f32 %v4485_v4, %v4284_v38  ;;  %v4564_v38 = vld [vmem:[#allocation44 + $0x68] sm:$0xff] }
0x1c34   :  { %v4489_v7 = vpop.f32.mrb[90].mxu1  ;;  %v9769_v30 = vpack.c.bf16 %v4564_v38, %v4563_v37 }
0x1c35   :  { %v4490_v8 = vadd.f32 %v8138_v0, %v4489_v7  ;;  %v9194_v9 = vpop.f32.mrb[91].mxu1  ;;  %v4505_v10 = vsel %vm1066_vm4, %v4498_v6, 0.0 }
0x1c36   :  { %4506 = vadd.xlane.f32.xlu1 %v4505_v10  ;;  %9770 = vmatpush3.bf16.msra.mxu0 %v9769_v30 }
0x1c37   :  { %v4499_v11 = vadd.f32 %v4490_v8, %v4285_v41  ;;  %9771 = vmatprep.subr.bf16.mxu0 %v11022_v2  ;;  %v9772_v41 = vpack.c.bf16 %v4566_v40, %v4565_v39 }
0x1c38   :  { %v4494_v12 = vpop.f32.mrb[92].mxu1 }
0x1c39   :  { %v4495_v13 = vadd.f32 %v8138_v0, %v4494_v12  ;;  %v9197_v14 = vpop.f32.mrb[93].mxu1  ;;  %v4508_v15 = vsel %vm1066_vm4, %v4499_v11, 0.0 }
0x1c3a   :  { %4509 = vadd.xlane.f32.xlu0 %v4508_v15  ;;  %9773 = vmatpush3.bf16.msra.mxu0 %v9772_v41 }
0x1c3b   :  { %v4500_v16 = vadd.f32 %v4495_v13, %v4286_v44  ;;  %9774 = vmatprep.subr.bf16.mxu0 %v11022_v2 }
0x1c3d   :  { %v4511_v17 = vsel %vm1066_vm4, %v4500_v16, 0.0 }
0x1c3e   :  { %4512 = vadd.xlane.f32.xlu1 %v4511_v17 }
0x1cc3   :  { %v4507_v18 = vpop.xlane.xlu1 %4506 }
0x1cc4   :  { %v4514_v22 = vmul.f32 0.03125, %v4507_v18 }
0x1cc6   :  { %v4517_v23 = vsub.f32 %v4498_v6, %v4514_v22  ;;  %v8144_v6 = vld [vmem:[#allocation34 + $0x3] ss:$0 sm:$0xff] }
0x1cc7   :  { %v4510_v24 = vpop.xlane.xlu0 %4509 }
0x1cc8   :  { %v4515_v25 = vmul.f32 0.03125, %v4510_v24  ;;  %v4520_v26 = vmul.f32 %v4517_v23, %v4517_v23 }
0x1cca   :  { %v4518_v27 = vsub.f32 %v4499_v11, %v4515_v25  ;;  %v4523_v28 = vsel %vm1066_vm4, %v4520_v26, 0.0 }
0x1ccb   :  { %4524 = vadd.xlane.f32.xlu0 %v4523_v28  ;;  %v4513_v29 = vpop.xlane.xlu1 %4512 }
0x1ccc   :  { %v4516_v31 = vmul.f32 0.03125, %v4513_v29  ;;  %v4521_v32 = vmul.f32 %v4518_v27, %v4518_v27 }
0x1cce   :  { %v4519_v33 = vsub.f32 %v4500_v16, %v4516_v31  ;;  %v4526_v34 = vsel %vm1066_vm4, %v4521_v32, 0.0 }
0x1ccf   :  { %4527 = vadd.xlane.f32.xlu1 %v4526_v34 }
0x1cd0   :  { %v4522_v35 = vmul.f32 %v4519_v33, %v4519_v33 }
0x1cd2   :  { %v4529_v36 = vsel %vm1066_vm4, %v4522_v35, 0.0 }
0x1cd3   :  { %4530 = vadd.xlane.f32.xlu0 %v4529_v36 }
0x1d58   :  { %v4525_v42 = vpop.xlane.xlu0 %4524 }
0x1d59   :  { %v4532_v43 = vmul.f32 0.03125, %v4525_v42 }
0x1d5b   :  { %v4535_v44 = vadd.f32 1e-05, %v4532_v43 }
0x1d5c   :  { %v4528_v45 = vpop.xlane.xlu1 %4527 }
0x1d5d   :  { %10114 = vrsqrt.f32 %v4535_v44  ;;  %v4533_v52 = vmul.f32 0.03125, %v4528_v45 }
0x1d5f   :  { %v4536_v46 = vadd.f32 1e-05, %v4533_v52 }
0x1d60   :  { %v4531_v50 = vpop.xlane.xlu0 %4530 }
0x1d61   :  { %10116 = vrsqrt.f32 %v4536_v46  ;;  %v4534_v47 = vmul.f32 0.03125, %v4531_v50 }
0x1d63   :  { %v4537_v48 = vadd.f32 1e-05, %v4534_v47 }
0x1d65   :  { %10118 = vrsqrt.f32 %v4537_v48 }
0x1d67   :  { %v10115_v49 = vpop.eup %10114 }
0x1d68   :  { %v4541_v59 = vmul.f32 %v10115_v49, %v4517_v23 }
0x1d6a   :  { %v4550_v51 = vmul.f32 %v8142_v57, %v4541_v59 }
0x1d6b   :  { %v10117_v58 = vpop.eup %10116 }
0x1d6c   :  { %v12082_v63 = vadd.f32 %v8143_v54, %v4550_v51  ;;  %v4542_v62 = vmul.f32 %v10117_v58, %v4518_v27 }
0x1d6e   :  { %9207 = vmatmul.mubr.msk.f32.vlgmr.msra.gmra.mrb[96].mxu0 %vm1066_vm4, %v12082_v63  ;;  %v4551_v55 = vmul.f32 %v8142_v57, %v4542_v62 }
0x1d6f   :  { %v10119_v60 = vpop.eup %10118  ;;  %9209 = vmatprep.mubr.msk.f32.mxu0 %vm11023_vm0, %v11021_v1  ;;  %9776 = vmatpush3.bf16.msra.mxu0 %v11594_v56 }
0x1d70   :  { %v12089_v0 = vadd.f32 %v8143_v54, %v4551_v55  ;;  %v4543_v3 = vmul.f32 %v10119_v60, %v4519_v33  ;;  %9777 = vmatprep.subr.bf16.mxu0 %v11022_v2 }
0x1d72   :  { %9210 = vmatmul.mubr.msk.f32.gmra.mrb[98].mxu0 %vm1066_vm4, %v12089_v0  ;;  %v4552_v4 = vmul.f32 %v8142_v57, %v4543_v3 }
0x1d73   :  { %9212 = vmatprep.mubr.msk.f32.mxu0 %vm11023_vm0, %v11021_v1  ;;  %9779 = vmatpush3.bf16.msra.mxu0 %v11614_v61 }
0x1d74   :  { %v12097_v5 = vadd.f32 %v8143_v54, %v4552_v4  ;;  %9786 = vmatprep.subr.bf16.mxu0 %v11022_v2 }
0x1d76   :  { %9213 = vmatmul.mubr.msk.f32.gmra.mrb[100].mxu0 %vm1066_vm4, %v12097_v5 }
0x1d77   :  { %9223 = vmatprep.mubr.msk.f32.mxu0 %vm11023_vm0, %v11021_v1 }
0x1e41   :  { %v4650_v7 = vpop.f32.mrb[96].mxu0 }
0x1e42   :  { %v4651_v8 = vadd.f32 %v8144_v6, %v4650_v7  ;;  %v9208_v9 = vpop.f32.mrb[97].mxu0 }
0x1e44   :  { %4665 = vrot.lane.b32.xlu1 %v4651_v8, %s11024_s28 }
0x1e45   :  { %v4655_v10 = vpop.f32.mrb[98].mxu0 }
0x1e46   :  { %v4656_v11 = vadd.f32 %v8144_v6, %v4655_v10  ;;  %v9211_v12 = vpop.f32.mrb[99].mxu0 }
0x1e48   :  { %4761 = vrot.lane.b32.xlu0 %v4656_v11, %s11024_s28 }
0x1e49   :  { %v4660_v13 = vpop.f32.mrb[100].mxu0 }
0x1e4a   :  { %v4661_v14 = vadd.f32 %v8144_v6, %v4660_v13  ;;  %v9214_v15 = vpop.f32.mrb[101].mxu0 }
0x1e4c   :  { %5184 = vrot.lane.b32.xlu0 %v4656_v11, %s11025_s5  ;;  %4857 = vrot.lane.b32.xlu1 %v4661_v14, %s11024_s28 }
0x1e50   :  { %5086 = vrot.lane.b32.xlu1 %v4651_v8, %s11025_s5 }
0x1e54   :  { %5285 = vrot.lane.b32.xlu1 %v4661_v14, %s11025_s5 }
0x1eb6   :  { %v4666_v16 = vpop.permute.xlu1 %4665 }
0x1eb7   :  { %v4668_v17 = vmul.f32 %v4666_v16, %v4651_v8  ;;  %v4669_v22 = vmul.f32 %v4666_v16, %v4656_v11  ;;  %v4670_v24 = vmul.f32 %v4666_v16, %v4661_v14 }
0x1eb9   :  { %9224 = vmatmul.mubr.msk.f32.vlgmr.msra.gmra.mrb[102].mxu0 %vm1066_vm4, %v4668_v17 }
0x1eba   :  { %9788 = vmatpush3.bf16.msra.mxu0 %v11594_v56  ;;  %v4762_v18 = vpop.permute.xlu0 %4761  ;;  %9226 = vmatprep.mubr.msk.f32.mxu0 %vm11023_vm0, %v11021_v1 }
0x1ebb   :  { %v4764_v23 = vmul.f32 %v4762_v18, %v4651_v8  ;;  %9789 = vmatprep.subr.bf16.mxu0 %v11022_v2  ;;  %v4765_v56 = vmul.f32 %v4762_v18, %v4656_v11  ;;  %v4766_v26 = vmul.f32 %v4762_v18, %v4661_v14 }
0x1ebd   :  { %9227 = vmatmul.mubr.msk.f32.gmra.mrb[104].mxu0 %vm1066_vm4, %v4669_v22  ;;  %9241 = vmatmul.mubr.msk.f32.vlgmr.msra.gmra.mrb[94].mxu1 %vm1066_vm4, %v4764_v23 }
0x1ebe   :  { %9229 = vmatprep.mubr.msk.f32.mxu0 %vm11023_vm0, %v11021_v1  ;;  %9243 = vmatprep.mubr.msk.f32.mxu1 %vm11023_vm0, %v11021_v1  ;;  %v4858_v25 = vpop.permute.xlu1 %4857 }
0x1ebf   :  { %9791 = vmatpush3.bf16.msra.mxu0 %v11614_v61  ;;  %9267 = vmatpush3.msra.mxu1 %v11960_v21  ;;  %v4860_v27 = vmul.f32 %v4858_v25, %v4651_v8  ;;  %v4861_v61 = vmul.f32 %v4858_v25, %v4656_v11  ;;  %v4862_v28 = vmul.f32 %v4858_v25, %v4661_v14 }
0x1ec0   :  { %9277 = vmatprep.subr.mxu0 %v11021_v1  ;;  %9288 = vmatprep.subr.mxu1 %v11021_v1 }
0x1ec1   :  { %9230 = vmatmul.mubr.msk.f32.gmra.mrb[106].mxu0 %vm1066_vm4, %v4670_v24  ;;  %9244 = vmatmul.mubr.msk.f32.gmra.mrb[96].mxu1 %vm1066_vm4, %v4765_v56 }
0x1ec2   :  { %9246 = vmatprep.mubr.msk.f32.mxu1 %vm11023_vm0, %v11021_v1  ;;  %9257 = vmatprep.mubr.msk.f32.mxu0 %vm11023_vm0, %v11021_v1 }
0x1ec5   :  { %9247 = vmatmul.mubr.msk.f32.gmra.mrb[98].mxu1 %vm1066_vm4, %v4766_v26  ;;  %9258 = vmatmul.mubr.msk.f32.vlgmr.msra.gmra.mrb[108].mxu0 %vm1066_vm4, %v4860_v27 }
0x1ec6   :  { %9260 = vmatprep.mubr.msk.f32.mxu0 %vm11023_vm0, %v11021_v1  ;;  %9268 = vmatprep.mubr.msk.f32.mxu1 %vm11023_vm0, %v11021_v1 }
0x1ec7   :  { %9278 = vmatpush3.msra.mxu0 %v11960_v21 }
0x1ec8   :  { %9792 = vmatprep.subr.bf16.mxu0 %v11022_v2 }
0x1ec9   :  { %9261 = vmatmul.mubr.msk.f32.gmra.mrb[110].mxu0 %vm1066_vm4, %v4861_v61 }
0x1eca   :  { %9263 = vmatprep.mubr.msk.f32.mxu0 %vm11023_vm0, %v11021_v1 }
0x1ecd   :  { %9264 = vmatmul.mubr.msk.f32.gmra.mrb[112].mxu0 %vm1066_vm4, %v4862_v28 }
0x1ece   :  { %9279 = vmatprep.mubr.msk.f32.mxu0 %vm11023_vm0, %v11021_v1 }
0x1f8c   :  { %v4746_v29 = vpop.f32.mrb[102].mxu0 }
0x1f8d   :  { %v9225_v31 = vpop.f32.mrb[103].mxu0 }
0x1f90   :  { %v4751_v32 = vpop.f32.mrb[104].mxu0  ;;  %v4842_v33 = vpop.f32.mrb[94].mxu1 }
0x1f91   :  { %v4952_v34 = vmax.f32 %v4746_v29, %v4842_v33  ;;  %v9228_v35 = vpop.f32.mrb[105].mxu0  ;;  %v9242_v36 = vpop.f32.mrb[95].mxu1 }
0x1f94   :  { %v4756_v37 = vpop.f32.mrb[106].mxu0  ;;  %v4847_v38 = vpop.f32.mrb[96].mxu1 }
0x1f95   :  { %v4953_v30 = vmax.f32 %v4751_v32, %v4847_v38  ;;  %v9231_v39 = vpop.f32.mrb[107].mxu0  ;;  %v9245_v40 = vpop.f32.mrb[97].mxu1 }
0x1f98   :  { %v4852_v41 = vpop.f32.mrb[98].mxu1  ;;  %v4938_v42 = vpop.f32.mrb[108].mxu0 }
0x1f99   :  { %v4954_v43 = vmax.f32 %v4756_v37, %v4852_v41  ;;  %v4955_v44 = vmax.f32 %v4952_v34, %v4938_v42  ;;  %v9248_v45 = vpop.f32.mrb[99].mxu1  ;;  %v9259_v52 = vpop.f32.mrb[109].mxu0 }
0x1f9a   :  { %v5297_v45 = vld [vmem:[#allocation43 + $0x70] sm:$0xff]  ;;  %v5298_v52 = vld [vmem:[#allocation43 + $0x78] sm:$0xff] }
0x1f9b   :  { %v4958_v46 = vsub.f32 %v4746_v29, %v4955_v44  ;;  %v4967_v50 = vsub.f32 %v4842_v33, %v4955_v44  ;;  %v4976_v47 = vsub.f32 %v4938_v42, %v4955_v44  ;;  %v5295_v42 = vld [vmem:[#allocation43 + $0x60] sm:$0xff] }
0x1f9c   :  { %v4943_v48 = vpop.f32.mrb[110].mxu0 }
0x1f9d   :  { %v4961_v49 = vmul.f32 1.442695, %v4958_v46  ;;  %v4970_v57 = vmul.f32 1.442695, %v4967_v50  ;;  %v4956_v59 = vmax.f32 %v4953_v30, %v4943_v48  ;;  %v4979_v54 = vmul.f32 1.442695, %v4976_v47  ;;  %v5185_v50 = vpop.permute.xlu0 %5184  ;;  %v5087_v47 = vpop.permute.xlu1 %5086 }
0x1f9e   :  { %v9262_v51 = vpop.f32.mrb[111].mxu0  ;;  %v9796_v46 = vpack.c.bf16 %v5298_v52, %v5297_v45 }
0x1f9f   :  { %10120 = vpow2.f32 %v4961_v49  ;;  %v4959_v58 = vsub.f32 %v4751_v32, %v4956_v59  ;;  %v4968_v62 = vsub.f32 %v4847_v38, %v4956_v59  ;;  %v4977_v55 = vsub.f32 %v4943_v48, %v4956_v59 }
0x1fa0   :  { %10122 = vpow2.f32 %v4970_v57  ;;  %v4948_v60 = vpop.f32.mrb[112].mxu0 }
0x1fa1   :  { %v4963_v3 = vmul.f32 1.442695, %v4959_v58  ;;  %v4972_v4 = vmul.f32 1.442695, %v4968_v62  ;;  %10124 = vpow2.f32 %v4979_v54  ;;  %v4981_v6 = vmul.f32 1.442695, %v4977_v55 }
0x1fa2   :  { %v4957_v7 = vmax.f32 %v4954_v43, %v4948_v60  ;;  %v9265_v8 = vpop.f32.mrb[113].mxu0  ;;  %v5296_v43 = vld [vmem:[#allocation43 + $0x68] sm:$0xff] }
0x1fa3   :  { %10126 = vpow2.f32 %v4963_v3  ;;  %v9793_v44 = vpack.c.bf16 %v5296_v43, %v5295_v42 }
0x1fa4   :  { %10128 = vpow2.f32 %v4972_v4  ;;  %v4960_v9 = vsub.f32 %v4756_v37, %v4957_v7  ;;  %v4969_v10 = vsub.f32 %v4852_v41, %v4957_v7  ;;  %v4978_v11 = vsub.f32 %v4948_v60, %v4957_v7 }
0x1fa5   :  { %10130 = vpow2.f32 %v4981_v6 }
0x1fa6   :  { %v4965_v12 = vmul.f32 1.442695, %v4960_v9  ;;  %v4974_v13 = vmul.f32 1.442695, %v4969_v10  ;;  %v4983_v14 = vmul.f32 1.442695, %v4978_v11 }
0x1fa8   :  { %10132 = vpow2.f32 %v4965_v12 }
0x1fa9   :  { %v10121_v15 = vpop.eup %10120  ;;  %10134 = vpow2.f32 %v4974_v13 }
0x1faa   :  { %v10123_v16 = vpop.eup %10122  ;;  %10136 = vpow2.f32 %v4983_v14 }
0x1fab   :  { %v4985_v17 = vadd.f32 %v10123_v16, %v10121_v15  ;;  %v10125_v18 = vpop.eup %10124 }
0x1fad   :  { %v10127_v22 = vpop.eup %10126  ;;  %v4988_v23 = vadd.f32 %v10125_v18, %v4985_v17 }
0x1fae   :  { %v10129_v24 = vpop.eup %10128 }
0x1faf   :  { %10138 = vrcp.f32 %v4988_v23  ;;  %v4986_v56 = vadd.f32 %v10129_v24, %v10127_v22  ;;  %v10131_v25 = vpop.eup %10130 }
0x1fb1   :  { %v4989_v26 = vadd.f32 %v10131_v25, %v4986_v56 }
0x1fb2   :  { %v10133_v27 = vpop.eup %10132 }
0x1fb3   :  { %v10135_v61 = vpop.eup %10134  ;;  %10140 = vrcp.f32 %v4989_v26 }
0x1fb4   :  { %v4987_v28 = vadd.f32 %v10135_v61, %v10133_v27  ;;  %v10137_v29 = vpop.eup %10136 }
0x1fb6   :  { %v4990_v31 = vadd.f32 %v10137_v29, %v4987_v28 }
0x1fb8   :  { %10142 = vrcp.f32 %v4990_v31 }
0x1fb9   :  { %v10139_v32 = vpop.eup %10138 }
0x1fba   :  { %v5193_v33 = vmul.f32 %v10139_v32, %v10125_v18  ;;  %v4994_v34 = vmul.f32 %v10139_v32, %v10121_v15  ;;  %v5092_v35 = vmul.f32 %v10139_v32, %v10123_v16  ;;  %v5286_v15 = vpop.permute.xlu1 %5285 }
0x1fbc   :  { %9269 = vmatmul.mubr.msk.f32.vlgmr.msra.gmra.mrb[100].mxu1 %vm1486_vm5, %v4994_v34  ;;  %9280 = vmatmul.mubr.msk.f32.vlgmr.msra.gmra.mrb[114].mxu0 %vm1486_vm5, %v5092_v35 }
0x1fbd   :  { %v10141_v36 = vpop.eup %10140  ;;  %9289 = vmatpush3.msra.mxu1 %v11960_v21  ;;  %9271 = vmatprep.mubr.msk.f32.mxu1 %vm11023_vm0, %v11021_v1 }
0x1fbe   :  { %9282 = vmatprep.mubr.msk.f32.mxu0 %vm11023_vm0, %v11021_v1  ;;  %v4995_v37 = vmul.f32 %v10141_v36, %v10127_v22  ;;  %v5093_v38 = vmul.f32 %v10141_v36, %v10129_v24  ;;  %v5194_v30 = vmul.f32 %v10141_v36, %v10131_v25  ;;  %9798 = vmatprep.subr.bf16.mxu1 %v11022_v2 }
0x1fbf   :  { %9794 = vmatpush3.bf16.msra.mxu0 %v9793_v44 }
0x1fc0   :  { %9272 = vmatmul.mubr.msk.f32.gmra.mrb[102].mxu1 %vm1486_vm5, %v4995_v37  ;;  %9283 = vmatmul.mubr.msk.f32.gmra.mrb[116].mxu0 %vm1486_vm5, %v5093_v38 }
0x1fc1   :  { %9274 = vmatprep.mubr.msk.f32.mxu1 %vm11023_vm0, %v11021_v1  ;;  %9285 = vmatprep.mubr.msk.f32.mxu0 %vm11023_vm0, %v11021_v1 }
0x1fc2   :  { %v10143_v21 = vpop.eup %10142  ;;  %9795 = vmatprep.subr.bf16.mxu0 %v11022_v2 }
0x1fc3   :  { %v4996_v39 = vmul.f32 %v10143_v21, %v10133_v27  ;;  %v5094_v40 = vmul.f32 %v10143_v21, %v10135_v61  ;;  %v5195_v41 = vmul.f32 %v10143_v21, %v10137_v29  ;;  %9797 = vmatpush3.bf16.msra.mxu0 %v9796_v46  ;;  %v8166_v29 = vld [vmem:[#allocation32 + $0x3] ss:$0 sm:$0xff] }
0x1fc4   :  { %9804 = vmatprep.subr.bf16.mxu0 %v11022_v2 }
0x1fc5   :  { %9275 = vmatmul.mubr.msk.f32.gmra.mrb[104].mxu1 %vm1486_vm5, %v4996_v39  ;;  %9286 = vmatmul.mubr.msk.f32.gmra.mrb[118].mxu0 %vm1486_vm5, %v5094_v40 }
0x1fc6   :  { %9290 = vmatprep.mubr.msk.f32.mxu1 %vm11023_vm0, %v11021_v1  ;;  %9307 = vmatprep.mubr.msk.f32.mxu0 %vm11023_vm0, %v11021_v1 }
0x1fc9   :  { %9291 = vmatmul.mubr.msk.f32.vlgmr.msra.gmra.mrb[106].mxu1 %vm1486_vm5, %v5193_v33 }
0x1fca   :  { %9293 = vmatprep.mubr.msk.f32.mxu1 %vm11023_vm0, %v11021_v1 }
0x1fcd   :  { %9294 = vmatmul.mubr.msk.f32.gmra.mrb[108].mxu1 %vm1486_vm5, %v5194_v30 }
0x1fce   :  { %9296 = vmatprep.mubr.msk.f32.mxu1 %vm11023_vm0, %v11021_v1 }
0x1fd1   :  { %9297 = vmatmul.mubr.msk.f32.gmra.mrb[110].mxu1 %vm1486_vm5, %v5195_v41 }
0x1fd2   :  { %9324 = vmatprep.mubr.msk.f32.mxu1 %vm11023_vm0, %v11021_v1 }
0x208f   :  { %v5072_v48 = vpop.f32.mrb[100].mxu1  ;;  %v5170_v49 = vpop.f32.mrb[114].mxu0 }
0x2090   :  { %v5089_v57 = vmul.f32 %v5087_v47, %v5072_v48  ;;  %v5187_v59 = vmul.f32 %v5185_v50, %v5170_v49  ;;  %v9270_v54 = vpop.f32.mrb[101].mxu1  ;;  %v9281_v51 = vpop.f32.mrb[115].mxu0 }
0x2092   :  { %v5190_v58 = vadd.f32 %v5187_v59, %v5089_v57 }
0x2093   :  { %v5077_v62 = vpop.f32.mrb[102].mxu1  ;;  %v5175_v55 = vpop.f32.mrb[116].mxu0 }
0x2094   :  { %v5090_v60 = vmul.f32 %v5087_v47, %v5077_v62  ;;  %v5188_v3 = vmul.f32 %v5185_v50, %v5175_v55  ;;  %v9273_v4 = vpop.f32.mrb[103].mxu1  ;;  %v9284_v6 = vpop.f32.mrb[117].mxu0  ;;  %v8173_v62 = vld [vmem:[%s12491_s12 + $0x68] sm:$0xff] }
0x2095   :  { %v8180_v6 = vld [vmem:[%s12492_s18 + $0xc0] sm:$0xff] }
0x2096   :  { %v5191_v7 = vadd.f32 %v5188_v3, %v5090_v60  ;;  %v8174_v60 = vld [vmem:[%s12491_s12 + $0x70] sm:$0xff]  ;;  %v8175_v3 = vld [vmem:[%s12491_s12 + $0x78] sm:$0xff] }
0x2097   :  { %v9802_v4 = vpack.c.bf16 %v8175_v3, %v8174_v60 }
0x2098   :  { %v5082_v8 = vpop.f32.mrb[104].mxu1  ;;  %v5180_v9 = vpop.f32.mrb[118].mxu0 }
0x2099   :  { %v5091_v10 = vmul.f32 %v5087_v47, %v5082_v8  ;;  %v5189_v11 = vmul.f32 %v5185_v50, %v5180_v9  ;;  %v9276_v12 = vpop.f32.mrb[105].mxu1  ;;  %v9287_v13 = vpop.f32.mrb[119].mxu0  ;;  %v8182_v8 = vld [vmem:[%s12492_s18 + $0xd0] sm:$0xff] }
0x209a   :  { %v8184_v12 = vld [vmem:[%s12492_s18 + $0xe0] sm:$0xff]  ;;  %v8185_v13 = vld [vmem:[%s12492_s18 + $0xe8] sm:$0xff] }
0x209b   :  { %v5192_v14 = vadd.f32 %v5189_v11, %v5091_v10  ;;  %v8183_v10 = vld [vmem:[%s12492_s18 + $0xd8] sm:$0xff] }
0x209c   :  { %v5271_v16 = vpop.f32.mrb[106].mxu1  ;;  %v9808_v11 = vpack.c.bf16 %v8183_v10, %v8182_v8 }
0x209d   :  { %v5288_v17 = vmul.f32 %v5286_v15, %v5271_v16  ;;  %v9292_v18 = vpop.f32.mrb[107].mxu1 }
0x209f   :  { %v5291_v22 = vadd.f32 %v5288_v17, %v5190_v58  ;;  %v8172_v58 = vld [vmem:[%s12491_s12 + $0x60] sm:$0xff] }
0x20a0   :  { %v5276_v23 = vpop.f32.mrb[108].mxu1  ;;  %v9799_v55 = vpack.c.bf16 %v8173_v62, %v8172_v58 }
0x20a1   :  { %v5289_v24 = vmul.f32 %v5286_v15, %v5276_v23  ;;  %v9295_v56 = vpop.f32.mrb[109].mxu1  ;;  %9308 = vmatmul.mubr.msk.f32.vlgmr.msra.gmra.mrb[120].mxu0 %vm1066_vm4, %v5291_v22 }
0x20a2   :  { %9310 = vmatprep.mubr.msk.f32.mxu0 %vm11023_vm0, %v11021_v1  ;;  %9800 = vmatpush3.bf16.msra.mxu1 %v9799_v55 }
0x20a3   :  { %v5292_v25 = vadd.f32 %v5289_v24, %v5191_v7  ;;  %9801 = vmatprep.subr.bf16.mxu1 %v11022_v2  ;;  %v8181_v7 = vld [vmem:[%s12492_s18 + $0xc8] sm:$0xff] }
0x20a4   :  { %v5281_v26 = vpop.f32.mrb[110].mxu1  ;;  %v9805_v9 = vpack.c.bf16 %v8181_v7, %v8180_v6 }
0x20a5   :  { %v5290_v27 = vmul.f32 %v5286_v15, %v5281_v26  ;;  %v9298_v61 = vpop.f32.mrb[111].mxu1  ;;  %9311 = vmatmul.mubr.msk.f32.gmra.mrb[122].mxu0 %vm1066_vm4, %v5292_v25 }
0x20a6   :  { %9313 = vmatprep.mubr.msk.f32.mxu0 %vm11023_vm0, %v11021_v1  ;;  %9803 = vmatpush3.bf16.msra.mxu1 %v9802_v4 }
0x20a7   :  { %v5293_v28 = vadd.f32 %v5290_v27, %v5192_v14  ;;  %9806 = vmatpush3.bf16.msra.mxu0 %v9805_v9  ;;  %v9811_v14 = vpack.c.bf16 %v8185_v13, %v8184_v12  ;;  %v8170_v27 = vld [vmem:[#allocation38 + $0x3] ss:$0 sm:$0xff] }
0x20a8   :  { %9807 = vmatprep.subr.bf16.mxu0 %v11022_v2 }
0x20a9   :  { %9314 = vmatmul.mubr.msk.f32.gmra.mrb[124].mxu0 %vm1066_vm4, %v5293_v28  ;;  %v8171_v28 = vld [vmem:[#allocation37 + $0x3] ss:$0 sm:$0xff] }
0x20aa   :  { %9349 = vmatprep.mubr.msk.f32.mxu0 %vm11023_vm0, %v11021_v1 }
0x20ab   :  { %9809 = vmatpush3.bf16.msra.mxu0 %v9808_v11 }
0x20ac   :  { %9810 = vmatprep.subr.bf16.mxu0 %v11022_v2 }
0x20af   :  { %9812 = vmatpush3.bf16.msra.mxu0 %v9811_v14 }
0x20b0   :  { %9813 = vmatprep.subr.bf16.mxu0 %v11022_v2 }
0x2174   :  { %v5382_v31 = vpop.f32.mrb[120].mxu0 }
0x2175   :  { %v5383_v32 = vadd.f32 %v8166_v29, %v5382_v31  ;;  %v9309_v33 = vpop.f32.mrb[121].mxu0 }
0x2177   :  { %v5396_v34 = vadd.f32 %v5383_v32, %v12082_v63 }
0x2178   :  { %v5387_v35 = vpop.f32.mrb[122].mxu0 }
0x2179   :  { %v5388_v36 = vadd.f32 %v8166_v29, %v5387_v35  ;;  %v9312_v37 = vpop.f32.mrb[123].mxu0  ;;  %v5403_v38 = vsel %vm1066_vm4, %v5396_v34, 0.0 }
0x217a   :  { %5404 = vadd.xlane.f32.xlu0 %v5403_v38 }
0x217b   :  { %v5397_v30 = vadd.f32 %v5388_v36, %v12089_v0 }
0x217c   :  { %v5392_v21 = vpop.f32.mrb[124].mxu0 }
0x217d   :  { %v5393_v39 = vadd.f32 %v8166_v29, %v5392_v21  ;;  %v9315_v40 = vpop.f32.mrb[125].mxu0  ;;  %v5406_v41 = vsel %vm1066_vm4, %v5397_v30, 0.0  ;;  %v8186_v21 = vld [vmem:[%s12492_s18 + $0xf0] sm:$0xff] }
0x217e   :  { %5407 = vadd.xlane.f32.xlu1 %v5406_v41  ;;  %v8176_v41 = vld [vmem:[#allocation29 + $0x3] ss:$0 sm:$0xff] }
0x217f   :  { %v5398_v42 = vadd.f32 %v5393_v39, %v12097_v5  ;;  %v8187_v39 = vld [vmem:[%s12492_s18 + $0xf8] sm:$0xff] }
0x2180   :  { %v9814_v40 = vpack.c.bf16 %v8187_v39, %v8186_v21 }
0x2181   :  { %v5409_v43 = vsel %vm1066_vm4, %v5398_v42, 0.0 }
0x2182   :  { %5410 = vadd.xlane.f32.xlu0 %v5409_v43  ;;  %9815 = vmatpush3.bf16.msra.mxu0 %v9814_v40 }
0x2207   :  { %v5405_v63 = vpop.xlane.xlu0 %5404 }
0x2208   :  { %v5412_v44 = vmul.f32 0.03125, %v5405_v63 }
0x220a   :  { %v5415_v45 = vsub.f32 %v5396_v34, %v5412_v44 }
0x220b   :  { %v5408_v52 = vpop.xlane.xlu1 %5407 }
0x220c   :  { %v5413_v46 = vmul.f32 0.03125, %v5408_v52  ;;  %v5418_v50 = vmul.f32 %v5415_v45, %v5415_v45 }
0x220e   :  { %v5416_v0 = vsub.f32 %v5397_v30, %v5413_v46  ;;  %v5421_v47 = vsel %vm1066_vm4, %v5418_v50, 0.0 }
0x220f   :  { %5422 = vadd.xlane.f32.xlu0 %v5421_v47  ;;  %v5411_v48 = vpop.xlane.xlu0 %5410 }
0x2210   :  { %v5414_v49 = vmul.f32 0.03125, %v5411_v48  ;;  %v5419_v5 = vmul.f32 %v5416_v0, %v5416_v0 }
0x2212   :  { %v5417_v57 = vsub.f32 %v5398_v42, %v5414_v49  ;;  %v5424_v59 = vsel %vm1066_vm4, %v5419_v5, 0.0  ;;  %v8188_v5 = vld [vmem:[#allocation31 + $0x3] ss:$0 sm:$0xff] }
0x2213   :  { %5425 = vadd.xlane.f32.xlu1 %v5424_v59 }
0x2214   :  { %v5420_v54 = vmul.f32 %v5417_v57, %v5417_v57 }
0x2216   :  { %v5427_v51 = vsel %vm1066_vm4, %v5420_v54, 0.0 }
0x2217   :  { %5428 = vadd.xlane.f32.xlu0 %v5427_v51 }
0x229c   :  { %v5423_v15 = vpop.xlane.xlu0 %5422 }
0x229d   :  { %v5430_v16 = vmul.f32 0.03125, %v5423_v15 }
0x229f   :  { %v5433_v17 = vadd.f32 1e-05, %v5430_v16 }
0x22a0   :  { %v5426_v18 = vpop.xlane.xlu1 %5425 }
0x22a1   :  { %10144 = vrsqrt.f32 %v5433_v17  ;;  %v5431_v22 = vmul.f32 0.03125, %v5426_v18 }
0x22a3   :  { %v5434_v23 = vadd.f32 1e-05, %v5431_v22 }
0x22a4   :  { %v5429_v24 = vpop.xlane.xlu0 %5428 }
0x22a5   :  { %10146 = vrsqrt.f32 %v5434_v23  ;;  %v5432_v56 = vmul.f32 0.03125, %v5429_v24 }
0x22a7   :  { %v5435_v25 = vadd.f32 1e-05, %v5432_v56 }
0x22a9   :  { %10148 = vrsqrt.f32 %v5435_v25 }
0x22ab   :  { %v10145_v26 = vpop.eup %10144 }
0x22ac   :  { %v5439_v61 = vmul.f32 %v10145_v26, %v5415_v45 }
0x22ae   :  { %v5448_v29 = vmul.f32 %v8170_v27, %v5439_v61  ;;  %v5743_v61 = vld [vmem:[#allocation22] sm:$0xff] }
0x22af   :  { %v10147_v31 = vpop.eup %10146 }
0x22b0   :  { %v5457_v32 = vadd.f32 %v8171_v28, %v5448_v29  ;;  %v5440_v33 = vmul.f32 %v10147_v31, %v5416_v0  ;;  %v5745_v31 = vld [vmem:[#allocation22 + $0x10] sm:$0xff] }
0x22b2   :  { %9325 = vmatmul.mubr.msk.f32.vlgmr.msra.gmra.mrb[112].mxu1 %vm1066_vm4, %v5457_v32  ;;  %v5449_v34 = vmul.f32 %v8170_v27, %v5440_v33 }
0x22b3   :  { %v10149_v35 = vpop.eup %10148  ;;  %9327 = vmatprep.mubr.msk.f32.mxu1 %vm11023_vm0, %v11021_v1 }
0x22b4   :  { %v5458_v36 = vadd.f32 %v8171_v28, %v5449_v34  ;;  %v5441_v37 = vmul.f32 %v10149_v35, %v5417_v57  ;;  %v8194_v34 = vld [vmem:[#allocation3] ss:$0 sm:$0xff] }
0x22b6   :  { %9328 = vmatmul.mubr.msk.f32.gmra.mrb[114].mxu1 %vm1066_vm4, %v5458_v36  ;;  %v5450_v38 = vmul.f32 %v8170_v27, %v5441_v37 }
0x22b7   :  { %9330 = vmatprep.mubr.msk.f32.mxu1 %vm11023_vm0, %v11021_v1 }
0x22b8   :  { %v5459_v30 = vadd.f32 %v8171_v28, %v5450_v38  ;;  %v5744_v28 = vld [vmem:[#allocation22 + $0x8] sm:$0xff]  ;;  %v5833_v38 = vld [vmem:[#allocation19] sm:$0xff] }
0x22b9   :  { %v9816_v29 = vpack.c.bf16 %v5744_v28, %v5743_v61 }
0x22ba   :  { %9331 = vmatmul.mubr.msk.f32.gmra.mrb[116].mxu1 %vm1066_vm4, %v5459_v30 }
0x22bb   :  { %9817 = vmatprep.subr.bf16.mxu1 %v9816_v29  ;;  %9366 = vmatprep.mubr.msk.f32.mxu1 %vm1066_vm4, %v8194_v34 }
0x22bc   :  { %9819 = vmatpush3.bf16.msra.mxu1 %v9816_v29 }
0x2385   :  { %v5548_v42 = vpop.f32.mrb[112].mxu1 }
0x2386   :  { %v5549_v43 = vadd.f32 %v8176_v41, %v5548_v42  ;;  %v9326_v63 = vpop.f32.mrb[113].mxu1  ;;  %v5835_v42 = vld [vmem:[#allocation19 + $0x10] sm:$0xff] }
0x2388   :  { %v5562_v44 = vmax.f32 %v5549_v43, 0.0  ;;  %v5836_v43 = vld [vmem:[#allocation19 + $0x18] sm:$0xff] }
0x2389   :  { %v5553_v45 = vpop.f32.mrb[114].mxu1 }
0x238a   :  { %v5554_v52 = vadd.f32 %v8176_v41, %v5553_v45  ;;  %v9329_v46 = vpop.f32.mrb[115].mxu1  ;;  %9350 = vmatmul.mubr.msk.f32.vlgmr.msra.gmra.mrb[126].mxu0 %vm886_vm3, %v5562_v44  ;;  %v9828_v45 = vpack.c.bf16 %v5836_v43, %v5835_v42 }
0x238b   :  { %9352 = vmatprep.mubr.msk.f32.mxu0 %vm11023_vm0, %v11021_v1 }
0x238c   :  { %v5563_v50 = vmax.f32 %v5554_v52, 0.0 }
0x238d   :  { %v5558_v0 = vpop.f32.mrb[116].mxu1 }
0x238e   :  { %v5559_v47 = vadd.f32 %v8176_v41, %v5558_v0  ;;  %v9332_v48 = vpop.f32.mrb[117].mxu1  ;;  %9353 = vmatmul.mubr.msk.f32.gmra.mrb[128].mxu0 %vm886_vm3, %v5563_v50  ;;  %v8192_v50 = vld [vmem:[#allocation41 + $0x3] ss:$0 sm:$0xff] }
0x238f   :  { %9355 = vmatprep.mubr.msk.f32.mxu0 %vm11023_vm0, %v11021_v1 }
0x2390   :  { %v5564_v49 = vmax.f32 %v5559_v47, 0.0  ;;  %v8193_v47 = vld [vmem:[#allocation40 + $0x3] ss:$0 sm:$0xff] }
0x2392   :  { %9356 = vmatmul.mubr.msk.f32.gmra.mrb[130].mxu0 %vm886_vm3, %v5564_v49 }
0x245d   :  { %v5657_v57 = vpop.f32.mrb[126].mxu0 }
0x245e   :  { %v5658_v59 = vadd.f32 %v8188_v5, %v5657_v57  ;;  %v9351_v54 = vpop.f32.mrb[127].mxu0 }
0x2460   :  { %v5671_v51 = vadd.f32 %v5658_v59, %v5457_v32  ;;  %v5746_v32 = vld [vmem:[#allocation22 + $0x18] sm:$0xff] }
0x2461   :  { %v5662_v58 = vpop.f32.mrb[128].mxu0  ;;  %v9820_v33 = vpack.c.bf16 %v5746_v32, %v5745_v31  ;;  %v12292_v32 = vld [vmem:[#allocation11] sm:$0xf] }
0x2462   :  { %v5663_v62 = vadd.f32 %v8188_v5, %v5662_v58  ;;  %v9354_v55 = vpop.f32.mrb[129].mxu0  ;;  %v5678_v60 = vsel %vm1066_vm4, %v5671_v51, 0.0 }
0x2463   :  { %5679 = vadd.xlane.f32.xlu1 %v5678_v60  ;;  %9821 = vmatprep.subr.bf16.mxu1 %v9820_v33  ;;  %v1050_v60 = vld [vmem:[%s12493_s16] sm:$0xff] }
0x2464   :  { %v5672_v3 = vadd.f32 %v5663_v62, %v5458_v36  ;;  %9823 = vmatpush3.bf16.msra.mxu1 %v9820_v33 }
0x2465   :  { %v5667_v4 = vpop.f32.mrb[130].mxu0  ;;  %9824 = vmatprep.subr.bf16.mxu1 %v11022_v2 }
0x2466   :  { %v5668_v6 = vadd.f32 %v8188_v5, %v5667_v4  ;;  %v9357_v7 = vpop.f32.mrb[131].mxu0  ;;  %v5681_v8 = vsel %vm1066_vm4, %v5672_v3, 0.0 }
0x2467   :  { %5682 = vadd.xlane.f32.xlu0 %v5681_v8  ;;  %v1053_v7 = vld [vmem:[%s12493_s16 + $0x18] sm:$0xff] }
0x2468   :  { %v5673_v9 = vadd.f32 %v5668_v6, %v5459_v30  ;;  %v5834_v30 = vld [vmem:[#allocation19 + $0x8] sm:$0xff]  ;;  %v1052_v6 = vld [vmem:[%s12493_s16 + $0x10] sm:$0xff] }
0x2469   :  { %v9825_v40 = vpack.c.bf16 %v5834_v30, %v5833_v38  ;;  %v12263_v8 = vpack.c.bf16 %v1053_v7, %v1052_v6 }
0x246a   :  { %v5684_v10 = vsel %vm1066_vm4, %v5673_v9, 0.0 }
0x246b   :  { %5685 = vadd.xlane.f32.xlu1 %v5684_v10 }
0x24f0   :  { %v5680_v11 = vpop.xlane.xlu1 %5679 }
0x24f1   :  { %v5687_v12 = vmul.f32 0.03125, %v5680_v11  ;;  %v8195_v11 = vld [vmem:[#allocation10] ss:$0 sm:$0xff] }
0x24f3   :  { %v5690_v13 = vsub.f32 %v5671_v51, %v5687_v12  ;;  %v8198_v12 = vld [vmem:[#allocation7] ss:$0 sm:$0xff] }
0x24f4   :  { %v5683_v14 = vpop.xlane.xlu0 %5682 }
0x24f5   :  { %v5688_v15 = vmul.f32 0.03125, %v5683_v14  ;;  %v5693_v16 = vmul.f32 %v5690_v13, %v5690_v13 }
0x24f7   :  { %v5691_v17 = vsub.f32 %v5672_v3, %v5688_v15  ;;  %v5696_v18 = vsel %vm1066_vm4, %v5693_v16, 0.0  ;;  %v1051_v3 = vld [vmem:[%s12493_s16 + $0x8] sm:$0xff] }
0x24f8   :  { %5697 = vadd.xlane.f32.xlu0 %v5696_v18  ;;  %v5686_v22 = vpop.xlane.xlu1 %5685  ;;  %v12255_v4 = vpack.c.bf16 %v1051_v3, %v1050_v60 }
0x24f9   :  { %v5689_v23 = vmul.f32 0.03125, %v5686_v22  ;;  %v5694_v24 = vmul.f32 %v5691_v17, %v5691_v17 }
0x24fa   :  { %9831 = vmatprep.subr.bf16.mxu0 %v12255_v4 }
0x24fb   :  { %v5692_v56 = vsub.f32 %v5673_v9, %v5689_v23  ;;  %v5699_v25 = vsel %vm1066_vm4, %v5694_v24, 0.0  ;;  %9833 = vmatpush3.bf16.msra.mxu0 %v12255_v4 }
0x24fc   :  { %5700 = vadd.xlane.f32.xlu1 %v5699_v25  ;;  %9835 = vmatprep.subr.bf16.mxu0 %v12263_v8 }
0x24fd   :  { %v5695_v26 = vmul.f32 %v5692_v56, %v5692_v56 }
0x24ff   :  { %v5702_v27 = vsel %vm1066_vm4, %v5695_v26, 0.0  ;;  %9837 = vmatpush3.bf16.msra.mxu0 %v12263_v8 }
0x2500   :  { %5703 = vadd.xlane.f32.xlu0 %v5702_v27  ;;  %9847 = vmatprep.subr.bf16.mxu0 %v12255_v4 }
0x250d   :  { %5741 = vrot.lane.b32.xlu1 %v11582_v53, %s11026_s15 }
0x2585   :  { %v5698_v35 = vpop.xlane.xlu0 %5697 }
0x2586   :  { %v5705_v36 = vmul.f32 0.03125, %v5698_v35 }
0x2588   :  { %v5708_v37 = vadd.f32 1e-05, %v5705_v36 }
0x2589   :  { %v5701_v21 = vpop.xlane.xlu1 %5700 }
0x258a   :  { %10150 = vrsqrt.f32 %v5708_v37  ;;  %v5706_v39 = vmul.f32 0.03125, %v5701_v21 }
0x258c   :  { %v5709_v41 = vadd.f32 1e-05, %v5706_v39 }
0x258d   :  { %v5704_v63 = vpop.xlane.xlu0 %5703  ;;  %v5742_v44 = vpop.permute.xlu1 %5741 }
0x258e   :  { %10152 = vrsqrt.f32 %v5709_v41  ;;  %v5707_v53 = vmul.f32 0.03125, %v5704_v63  ;;  %9367 = vmatmul.mubr.msk.f32.vlgmr.msra.gmra.mrb[118].mxu1 %vm1066_vm4, %v5742_v44 }
0x258f   :  { %9826 = vmatpush3.bf16.msra.mxu1 %v9825_v40  ;;  %9377 = vmatprep.mubr.msk.f32.mxu1 %vm11023_vm0, %v11021_v1 }
0x2590   :  { %v5710_v52 = vadd.f32 1e-05, %v5707_v53  ;;  %9827 = vmatprep.subr.bf16.mxu1 %v11022_v2 }
0x2592   :  { %10154 = vrsqrt.f32 %v5710_v52 }
0x2593   :  { %9829 = vmatpush3.bf16.msra.mxu1 %v9828_v45 }
0x2594   :  { %v10151_v46 = vpop.eup %10150  ;;  %9839 = vmatprep.subr.bf16.mxu1 %v12255_v4 }
0x2595   :  { %v5714_v0 = vmul.f32 %v10151_v46, %v5690_v13 }
0x2597   :  { %v5723_v48 = vmul.f32 %v8192_v50, %v5714_v0 }
0x2598   :  { %v10153_v49 = vpop.eup %10152 }
0x2599   :  { %v12237_v5 = vadd.f32 %v8193_v47, %v5723_v48  ;;  %v5715_v57 = vmul.f32 %v10153_v49, %v5691_v17 }
0x259b   :  { %9378 = vmatmul.mubr.msk.f32.vlgmr.msra.gmra.mrb[120].mxu1 %vm1066_vm4, %v12237_v5  ;;  %v5724_v59 = vmul.f32 %v8192_v50, %v5715_v57 }
0x259c   :  { %v10155_v54 = vpop.eup %10154  ;;  %9380 = vmatprep.mubr.msk.f32.mxu1 %vm11023_vm0, %v11021_v1  ;;  %9841 = vmatpush3.bf16.msra.mxu1 %v12255_v4 }
0x259d   :  { %v12243_v51 = vadd.f32 %v8193_v47, %v5724_v59  ;;  %v5716_v58 = vmul.f32 %v10155_v54, %v5692_v56  ;;  %9843 = vmatprep.subr.bf16.mxu1 %v12263_v8 }
0x259f   :  { %9381 = vmatmul.mubr.msk.f32.gmra.mrb[122].mxu1 %vm1066_vm4, %v12243_v51  ;;  %v5725_v62 = vmul.f32 %v8192_v50, %v5716_v58 }
0x25a0   :  { %9383 = vmatprep.mubr.msk.f32.mxu1 %vm11023_vm0, %v11021_v1  ;;  %9845 = vmatpush3.bf16.msra.mxu1 %v12263_v8 }
0x25a1   :  { %v12249_v55 = vadd.f32 %v8193_v47, %v5725_v62  ;;  %9419 = vmatprep.subr.msk.mxu1 %vm6219_vm6, %v12292_v32 }
0x25a3   :  { %9384 = vmatmul.mubr.msk.f32.gmra.mrb[124].mxu1 %vm1066_vm4, %v12249_v55 }
0x2661   :  { %v9368_v9 = vpop.f32.mrb[118].mxu1 }
0x2662   :  { %v5824_v10 = vpop.f32.mrb[119].mxu1  ;;  %v12270_v14 = vadd.f32 %v9368_v9, %v8195_v11 }
0x2663   :  { %v12272_v15 = vadd.f32 %v8195_v11, %v5824_v10 }
0x266e   :  { %v5919_v13 = vpop.f32.mrb[120].mxu1 }
0x266f   :  { %v5920_v16 = vadd.f32 %v8198_v12, %v5919_v13  ;;  %v9379_v17 = vpop.f32.mrb[121].mxu1 }
0x2671   :  { %v5933_v18 = vmul.f32 %v5920_v16, %v12272_v15  ;;  %v5934_v22 = vmul.f32 %v5920_v16, %v12270_v14  ;;  %6299 = vrot.lane.b32.xlu0 %v5920_v16, %s11024_s28 }
0x2672   :  { %v5924_v23 = vpop.f32.mrb[122].mxu1 }
0x2673   :  { %v5925_v24 = vadd.f32 %v8198_v12, %v5924_v23  ;;  %v9382_v56 = vpop.f32.mrb[123].mxu1  ;;  %9394 = vmatprep.mubr.msk.f32.mxu0 %vm1066_vm4, %v5933_v18 }
0x2674   :  { %9395 = vmatmul.mubr.msk.f32.vlgmr.msra.gmra.mrb[132].mxu0 %vm1066_vm4, %v5934_v22 }
0x2675   :  { %v6016_v25 = vmul.f32 %v5925_v24, %v12272_v15  ;;  %v6017_v26 = vmul.f32 %v5925_v24, %v12270_v14  ;;  %6388 = vrot.lane.b32.xlu1 %v5925_v24, %s11024_s28  ;;  %9849 = vmatpush3.bf16.msra.mxu0 %v12255_v4 }
0x2676   :  { %v5929_v27 = vpop.f32.mrb[124].mxu1  ;;  %9851 = vmatprep.subr.bf16.mxu0 %v12263_v8 }
0x2677   :  { %v5930_v61 = vadd.f32 %v8198_v12, %v5929_v27  ;;  %v9385_v28 = vpop.f32.mrb[125].mxu1  ;;  %9405 = vmatprep.mubr.msk.f32.mxu1 %vm1066_vm4, %v6016_v25 }
0x2678   :  { %9406 = vmatmul.mubr.msk.f32.vlgmr.msra.gmra.mrb[126].mxu1 %vm1066_vm4, %v6017_v26 }
0x2679   :  { %v6099_v29 = vmul.f32 %v5930_v61, %v12272_v15  ;;  %v6100_v31 = vmul.f32 %v5930_v61, %v12270_v14  ;;  %6479 = vrot.lane.b32.xlu1 %v5930_v61, %s11024_s28  ;;  %9853 = vmatpush3.bf16.msra.mxu0 %v12263_v8 }
0x267a   :  { %9424 = vmatprep.subr.msk.mxu0 %vm6219_vm6, %v12292_v32  ;;  %9420 = vmatpush3.msk.msra.mxu1 %vm6219_vm6, %v12292_v32 }
0x267b   :  { %9416 = vmatprep.mubr.msk.f32.mxu0 %vm1066_vm4, %v6099_v29  ;;  %9429 = vmatprep.subr.msk.mxu1 %vm6219_vm6, %v12292_v32 }
0x267c   :  { %9417 = vmatmul.mubr.msk.f32.vlgmr.msra.gmra.mrb[134].mxu0 %vm1066_vm4, %v6100_v31 }
0x267d   :  { %9425 = vmatpush3.msk.msra.mxu0 %vm6219_vm6, %v12292_v32 }
0x26e3   :  { %v6300_v22 = vpop.permute.xlu0 %6299 }
0x26e7   :  { %v6389_v18 = vpop.permute.xlu1 %6388 }
0x26eb   :  { %v6480_v31 = vpop.permute.xlu1 %6479 }
0x2747   :  { %v9396_v33 = vpop.f32.mrb[132].mxu0 }
0x2748   :  { %v6007_v34 = vpop.f32.mrb[133].mxu0 }
0x274b   :  { %v9407_v35 = vpop.f32.mrb[126].mxu1 }
0x274c   :  { %v6183_v36 = vmax.f32 %v9396_v33, %v9407_v35  ;;  %v6090_v37 = vpop.f32.mrb[127].mxu1 }
0x274d   :  { %v6182_v38 = vmax.f32 %v6007_v34, %v6090_v37 }
0x274f   :  { %v9418_v30 = vpop.f32.mrb[134].mxu0 }
0x2750   :  { %v6185_v21 = vmax.f32 %v6183_v36, %v9418_v30  ;;  %v6173_v39 = vpop.f32.mrb[135].mxu0 }
0x2751   :  { %v6184_v40 = vmax.f32 %v6182_v38, %v6173_v39 }
0x2752   :  { %v6187_v41 = vsub.f32 %v9396_v33, %v6185_v21  ;;  %v6193_v42 = vsub.f32 %v9407_v35, %v6185_v21  ;;  %v6199_v43 = vsub.f32 %v9418_v30, %v6185_v21 }
0x2753   :  { %v6186_v63 = vsub.f32 %v6007_v34, %v6184_v40  ;;  %v6192_v44 = vsub.f32 %v6090_v37, %v6184_v40  ;;  %v6198_v53 = vsub.f32 %v6173_v39, %v6184_v40 }
0x2754   :  { %v6190_v45 = vmul.f32 1.442695, %v6187_v41  ;;  %v6196_v52 = vmul.f32 1.442695, %v6193_v42  ;;  %v6202_v46 = vmul.f32 1.442695, %v6199_v43 }
0x2755   :  { %v6188_v50 = vmul.f32 1.442695, %v6186_v63  ;;  %v6194_v0 = vmul.f32 1.442695, %v6192_v44  ;;  %v6200_v47 = vmul.f32 1.442695, %v6198_v53 }
0x2756   :  { %10156 = vpow2.f32 %v6190_v45 }
0x2757   :  { %10158 = vpow2.f32 %v6196_v52 }
0x2758   :  { %10160 = vpow2.f32 %v6202_v46 }
0x2759   :  { %10162 = vpow2.f32 %v6188_v50 }
0x275a   :  { %10164 = vpow2.f32 %v6194_v0  ;;  %v6533_v0 = vld [vmem:[#allocation20 + $0x8] sm:$0xff] }
0x275b   :  { %10166 = vpow2.f32 %v6200_v47 }
0x2760   :  { %v10157_v48 = vpop.eup %10156 }
0x2761   :  { %v10159_v49 = vpop.eup %10158 }
0x2762   :  { %v10161_v57 = vpop.eup %10160  ;;  %v6205_v59 = vadd.f32 %v10159_v49, %v10157_v48 }
0x2763   :  { %v10163_v54 = vpop.eup %10162 }
0x2764   :  { %v10165_v58 = vpop.eup %10164  ;;  %v6207_v62 = vadd.f32 %v10161_v57, %v6205_v59 }
0x2765   :  { %v6204_v60 = vadd.f32 %v10165_v58, %v10163_v54  ;;  %v10167_v3 = vpop.eup %10166 }
0x2766   :  { %10168 = vrcp.f32 %v6207_v62 }
0x2767   :  { %v6206_v6 = vadd.f32 %v10167_v3, %v6204_v60 }
0x2769   :  { %10170 = vrcp.f32 %v6206_v6 }
0x2770   :  { %v10169_v7 = vpop.eup %10168 }
0x2771   :  { %v6211_v9 = vmul.f32 %v10169_v7, %v10157_v48  ;;  %v6305_v10 = vmul.f32 %v10169_v7, %v10159_v49  ;;  %v6396_v11 = vmul.f32 %v10169_v7, %v10161_v57  ;;  %v6534_v48 = vld [vmem:[#allocation20 + $0x10] sm:$0xff]  ;;  %v6535_v49 = vld [vmem:[#allocation20 + $0x18] sm:$0xff] }
0x2772   :  { %v9858_v57 = vpack.c.bf16 %v6535_v49, %v6534_v48  ;;  %v8217_v7 = vld [vmem:[#allocation14] ss:$0 sm:$0xff]  ;;  %v6674_v48 = vld [vmem:[#allocation22 + $0x28] sm:$0xff] }
0x2773   :  { %v10171_v12 = vpop.eup %10170 }
0x2774   :  { %v6210_v13 = vmul.f32 %v10171_v12, %v10163_v54  ;;  %v6304_v16 = vmul.f32 %v10171_v12, %v10165_v58  ;;  %v6395_v17 = vmul.f32 %v10171_v12, %v10167_v3 }
0x2776   :  { %9421 = vmatprep.mubr.msk.f32.mxu1 %vm6212_vm7, %v6210_v13  ;;  %9426 = vmatprep.mubr.msk.f32.mxu0 %vm6212_vm7, %v6304_v16 }
0x2777   :  { %9422 = vmatmul.mubr.msk.f32.vlgmr.msra.gmra.mrb[128].mxu1 %vm6212_vm7, %v6211_v9  ;;  %9427 = vmatmul.mubr.msk.f32.vlgmr.msra.gmra.mrb[136].mxu0 %vm6212_vm7, %v6305_v10  ;;  %v8218_v10 = vld [vmem:[#allocation13] ss:$0 sm:$0xff] }
0x2778   :  { %9430 = vmatpush3.msk.msra.mxu1 %vm6219_vm6, %v12292_v32  ;;  %9431 = vmatprep.mubr.msk.f32.mxu1 %vm6212_vm7, %v6395_v17  ;;  %v6767_v17 = vld [vmem:[#allocation19 + $0x20] sm:$0xff] }
0x277b   :  { %9432 = vmatmul.mubr.msk.f32.vlgmr.msra.gmra.mrb[130].mxu1 %vm6212_vm7, %v6396_v11 }
0x284a   :  { %v9423_v23 = vpop.f32.mrb[128].mxu1  ;;  %v9428_v24 = vpop.f32.mrb[136].mxu0 }
0x284b   :  { %v6303_v56 = vmul.f32 %v9423_v23, %v6300_v22  ;;  %v6392_v25 = vmul.f32 %v9428_v24, %v6389_v18  ;;  %v6289_v26 = vpop.f32.mrb[129].mxu1  ;;  %v6378_v27 = vpop.f32.mrb[137].mxu0 }
0x284c   :  { %v6302_v61 = vmul.f32 %v6300_v22, %v6289_v26  ;;  %v6391_v28 = vmul.f32 %v6389_v18, %v6378_v27  ;;  %v6768_v18 = vld [vmem:[#allocation19 + $0x28] sm:$0xff] }
0x284d   :  { %v6394_v29 = vadd.f32 %v6392_v25, %v6303_v56  ;;  %v9871_v23 = vpack.c.bf16 %v6768_v18, %v6767_v17  ;;  %v6769_v56 = vld [vmem:[#allocation19 + $0x30] sm:$0xff]  ;;  %v6770_v25 = vld [vmem:[#allocation19 + $0x38] sm:$0xff] }
0x284e   :  { %v6393_v33 = vadd.f32 %v6391_v28, %v6302_v61  ;;  %v9433_v34 = vpop.f32.mrb[130].mxu1  ;;  %v9874_v26 = vpack.c.bf16 %v6770_v25, %v6769_v56 }
0x284f   :  { %v6483_v35 = vmul.f32 %v9433_v34, %v6480_v31  ;;  %v6469_v36 = vpop.f32.mrb[131].mxu1 }
0x2850   :  { %v6482_v37 = vmul.f32 %v6480_v31, %v6469_v36 }
0x2851   :  { %v6485_v38 = vadd.f32 %v6483_v35, %v6394_v29 }
0x2852   :  { %v6484_v30 = vadd.f32 %v6482_v37, %v6393_v33 }
0x2853   :  { %v6487_v21 = vadd.f32 %v6485_v38, %v12270_v14 }
0x2854   :  { %v6486_v39 = vadd.f32 %v6484_v30, %v12272_v15  ;;  %v6532_v15 = vld [vmem:[#allocation20] sm:$0xff] }
0x2855   :  { %v6493_v40 = vsel %vm1066_vm4, %v6487_v21, 0.0  ;;  %v9854_v47 = vpack.c.bf16 %v6533_v0, %v6532_v15 }
0x2856   :  { %6494 = vadd.xlane.f32.xlu1 %v6493_v40  ;;  %v6490_v41 = vsel %vm1066_vm4, %v6486_v39, 0.0 }
0x2857   :  { %6491 = vadd.xlane.f32.xlu0 %v6490_v41  ;;  %9855 = vmatprep.subr.bf16.mxu0 %v9854_v47 }
0x2858   :  { %9857 = vmatpush3.bf16.msra.mxu0 %v9854_v47  ;;  %v6673_v47 = vld [vmem:[#allocation22 + $0x20] sm:$0xff] }
0x2859   :  { %9859 = vmatprep.subr.bf16.mxu0 %v9858_v57  ;;  %v9862_v49 = vpack.c.bf16 %v6674_v48, %v6673_v47 }
0x285b   :  { %9863 = vmatprep.subr.bf16.mxu1 %v9862_v49 }
0x285c   :  { %9861 = vmatpush3.bf16.msra.mxu0 %v9858_v57  ;;  %v6675_v57 = vld [vmem:[#allocation22 + $0x30] sm:$0xff]  ;;  %9865 = vmatpush3.bf16.msra.mxu1 %v9862_v49 }
0x285d   :  { %9870 = vmatprep.subr.bf16.mxu0 %v11022_v2 }
0x28e3   :  { %v6495_v42 = vpop.xlane.xlu1 %6494 }
0x28e4   :  { %v6497_v43 = vmul.f32 0.03125, %v6495_v42  ;;  %v6492_v63 = vpop.xlane.xlu0 %6491 }
0x28e5   :  { %v6496_v44 = vmul.f32 0.03125, %v6492_v63 }
0x28e6   :  { %v6499_v53 = vsub.f32 %v6487_v21, %v6497_v43 }
0x28e7   :  { %v6498_v45 = vsub.f32 %v6486_v39, %v6496_v44 }
0x28e8   :  { %v6501_v50 = vmul.f32 %v6499_v53, %v6499_v53 }
0x28e9   :  { %v6500_v52 = vmul.f32 %v6498_v45, %v6498_v45 }
0x28ea   :  { %v6505_v14 = vsel %vm1066_vm4, %v6501_v50, 0.0  ;;  %v8227_v50 = vld [vmem:[#allocation7 + $0x1] ss:$0 sm:$0xff] }
0x28eb   :  { %v6502_v46 = vsel %vm1066_vm4, %v6500_v52, 0.0 }
0x28ec   :  { %6503 = vadd.xlane.f32.xlu0 %v6502_v46 }
0x28f0   :  { %6506 = vadd.xlane.f32.xlu0 %v6505_v14 }
0x2979   :  { %v6504_v59 = vpop.xlane.xlu0 %6503 }
0x297a   :  { %v6508_v54 = vmul.f32 0.03125, %v6504_v59  ;;  %v6676_v59 = vld [vmem:[#allocation22 + $0x38] sm:$0xff] }
0x297c   :  { %v6510_v58 = vadd.f32 1e-05, %v6508_v54  ;;  %v9866_v54 = vpack.c.bf16 %v6676_v59, %v6675_v57 }
0x297d   :  { %v6507_v62 = vpop.xlane.xlu0 %6506 }
0x297e   :  { %10172 = vrsqrt.f32 %v6510_v58  ;;  %v6509_v60 = vmul.f32 0.03125, %v6507_v62  ;;  %9867 = vmatprep.subr.bf16.mxu1 %v9866_v54 }
0x297f   :  { %9869 = vmatpush3.bf16.msra.mxu1 %v9866_v54 }
0x2980   :  { %v6511_v3 = vadd.f32 1e-05, %v6509_v60  ;;  %9877 = vmatprep.subr.bf16.mxu1 %v12255_v4 }
0x2982   :  { %10174 = vrsqrt.f32 %v6511_v3 }
0x2988   :  { %v10173_v6 = vpop.eup %10172 }
0x2989   :  { %v6514_v9 = vmul.f32 %v10173_v6, %v6498_v45 }
0x298b   :  { %v6522_v11 = vmul.f32 %v8217_v7, %v6514_v9 }
0x298c   :  { %v10175_v12 = vpop.eup %10174 }
0x298d   :  { %v6515_v13 = vmul.f32 %v10175_v12, %v6499_v53  ;;  %v6530_v16 = vadd.f32 %v8218_v10, %v6522_v11 }
0x298f   :  { %v6523_v22 = vmul.f32 %v8217_v7, %v6515_v13  ;;  %9442 = vmatprep.mubr.msk.f32.mxu0 %vm1066_vm4, %v6530_v16 }
0x2991   :  { %v6531_v24 = vadd.f32 %v8218_v10, %v6523_v22  ;;  %v8222_v10 = vld [vmem:[#allocation17] ss:$0 sm:$0xff] }
0x2993   :  { %9443 = vmatmul.mubr.msk.f32.vlgmr.msra.gmra.mrb[138].mxu0 %vm1066_vm4, %v6531_v24 }
0x2994   :  { %9872 = vmatpush3.bf16.msra.mxu0 %v9871_v23  ;;  %9464 = vmatprep.mubr.msk.f32.mxu0 %vm11023_vm0, %v11021_v1 }
0x2995   :  { %9873 = vmatprep.subr.bf16.mxu0 %v11022_v2 }
0x2998   :  { %9875 = vmatpush3.bf16.msra.mxu0 %v9874_v26 }
0x2999   :  { %9893 = vmatprep.subr.bf16.mxu0 %v12255_v4 }
0x299b   :  { %9465 = vmatmul.mubr.msk.f32.vlgmr.msra.gmra.mrb[140].mxu0 %vm1066_vm4, %v12237_v5  ;;  %v8219_v5 = vld [vmem:[#allocation8] ss:$0 sm:$0xff] }
0x299c   :  { %9467 = vmatprep.mubr.msk.f32.mxu0 %vm11023_vm0, %v11021_v1  ;;  %9895 = vmatpush3.bf16.msra.mxu0 %v12255_v4 }
0x299d   :  { %9897 = vmatprep.subr.bf16.mxu0 %v12263_v8 }
0x299f   :  { %9468 = vmatmul.mubr.msk.f32.gmra.mrb[142].mxu0 %vm1066_vm4, %v12243_v51 }
0x29a0   :  { %9470 = vmatprep.mubr.msk.f32.mxu0 %vm11023_vm0, %v11021_v1  ;;  %9899 = vmatpush3.bf16.msra.mxu0 %v12263_v8 }
0x29a1   :  { %9511 = vmatprep.subr.msk.mxu0 %vm6219_vm6, %v12292_v32 }
0x29a3   :  { %9471 = vmatmul.mubr.msk.f32.gmra.mrb[144].mxu0 %vm1066_vm4, %v12249_v55 }
0x2a66   :  { %v9444_v27 = vpop.f32.mrb[138].mxu0 }
0x2a67   :  { %v6621_v61 = vadd.f32 %v9444_v27, %v8219_v5  ;;  %v6615_v28 = vpop.f32.mrb[139].mxu0 }
0x2a68   :  { %v6616_v29 = vadd.f32 %v8219_v5, %v6615_v28 }
0x2a69   :  { %v6625_v31 = vmax.f32 %v6621_v61, 0.0 }
0x2a6a   :  { %v6624_v33 = vmax.f32 %v6616_v29, 0.0 }
0x2a6b   :  { %v6627_v34 = vadd.f32 %v6625_v31, %v6531_v24  ;;  %v8224_v24 = vld [vmem:[#allocation10 + $0x1] ss:$0 sm:$0xff] }
0x2a6c   :  { %v6626_v51 = vadd.f32 %v6624_v33, %v6530_v16  ;;  %v8223_v16 = vld [vmem:[#allocation16] ss:$0 sm:$0xff] }
0x2a6d   :  { %v6633_v35 = vsel %vm1066_vm4, %v6627_v34, 0.0 }
0x2a6e   :  { %v6845_v36 = vpop.f32.mrb[140].mxu0  ;;  %6634 = vadd.xlane.f32.xlu0 %v6633_v35  ;;  %v6630_v37 = vsel %vm1066_vm4, %v6626_v51, 0.0 }
0x2a6f   :  { %v9466_v38 = vpop.f32.mrb[141].mxu0  ;;  %6631 = vadd.xlane.f32.xlu1 %v6630_v37  ;;  %v6846_v14 = vadd.f32 %v8227_v50, %v6845_v36 }
0x2a72   :  { %v6850_v30 = vpop.f32.mrb[142].mxu0 }
0x2a73   :  { %v9469_v21 = vpop.f32.mrb[143].mxu0  ;;  %v6851_v15 = vadd.f32 %v8227_v50, %v6850_v30 }
0x2a76   :  { %v6855_v55 = vpop.f32.mrb[144].mxu0 }
0x2a77   :  { %v9472_v39 = vpop.f32.mrb[145].mxu0  ;;  %v6856_v0 = vadd.f32 %v8227_v50, %v6855_v55 }
0x2afb   :  { %v6635_v40 = vpop.xlane.xlu0 %6634 }
0x2afc   :  { %v6637_v41 = vmul.f32 0.03125, %v6635_v40  ;;  %v6632_v42 = vpop.xlane.xlu1 %6631 }
0x2afd   :  { %v6636_v43 = vmul.f32 0.03125, %v6632_v42 }
0x2afe   :  { %v6639_v63 = vsub.f32 %v6627_v34, %v6637_v41 }
0x2aff   :  { %v6638_v44 = vsub.f32 %v6626_v51, %v6636_v43 }
0x2b00   :  { %v6641_v53 = vmul.f32 %v6639_v63, %v6639_v63 }
0x2b01   :  { %v6640_v45 = vmul.f32 %v6638_v44, %v6638_v44 }
0x2b02   :  { %v6645_v52 = vsel %vm1066_vm4, %v6641_v53, 0.0 }
0x2b03   :  { %6646 = vadd.xlane.f32.xlu0 %v6645_v52  ;;  %v6642_v46 = vsel %vm1066_vm4, %v6640_v45, 0.0 }
0x2b04   :  { %6643 = vadd.xlane.f32.xlu1 %v6642_v46 }
0x2b15   :  { %7220 = vrot.lane.b32.xlu1 %v6846_v14, %s11024_s28 }
0x2b19   :  { %7309 = vrot.lane.b32.xlu0 %v6851_v15, %s11024_s28  ;;  %7400 = vrot.lane.b32.xlu1 %v6856_v0, %s11024_s28 }
0x2b90   :  { %v6647_v58 = vpop.xlane.xlu0 %6646 }
0x2b91   :  { %v6649_v62 = vmul.f32 0.03125, %v6647_v58  ;;  %v6644_v60 = vpop.xlane.xlu1 %6643 }
0x2b92   :  { %v6648_v3 = vmul.f32 0.03125, %v6644_v60 }
0x2b93   :  { %v6651_v6 = vadd.f32 1e-05, %v6649_v62 }
0x2b94   :  { %v6650_v7 = vadd.f32 1e-05, %v6648_v3 }
0x2b95   :  { %10176 = vrsqrt.f32 %v6651_v6 }
0x2b96   :  { %10178 = vrsqrt.f32 %v6650_v7 }
0x2b9f   :  { %v10177_v9 = vpop.eup %10176 }
0x2ba0   :  { %v10179_v11 = vpop.eup %10178  ;;  %v6655_v12 = vmul.f32 %v10177_v9, %v6639_v63 }
0x2ba1   :  { %v6654_v13 = vmul.f32 %v10179_v11, %v6638_v44  ;;  %v7221_v11 = vpop.permute.xlu1 %7220 }
0x2ba2   :  { %v6663_v17 = vmul.f32 %v8222_v10, %v6655_v12  ;;  %v7310_v12 = vpop.permute.xlu0 %7309 }
0x2ba3   :  { %v6662_v18 = vmul.f32 %v8222_v10, %v6654_v13 }
0x2ba4   :  { %v6671_v23 = vadd.f32 %v8223_v16, %v6663_v17 }
0x2ba5   :  { %v6670_v22 = vadd.f32 %v8223_v16, %v6662_v18 }
0x2ba7   :  { %9453 = vmatprep.mubr.msk.f32.mxu1 %vm1066_vm4, %v6670_v22 }
0x2ba8   :  { %9454 = vmatmul.mubr.msk.f32.vlgmr.msra.gmra.mrb[132].mxu1 %vm1066_vm4, %v6671_v23 }
0x2ba9   :  { %9879 = vmatpush3.bf16.msra.mxu1 %v12255_v4 }
0x2baa   :  { %9881 = vmatprep.subr.bf16.mxu1 %v12263_v8 }
0x2bad   :  { %9883 = vmatpush3.bf16.msra.mxu1 %v12263_v8 }
0x2bae   :  { %9885 = vmatprep.subr.bf16.mxu1 %v12255_v4 }
0x2c7b   :  { %v9455_v56 = vpop.f32.mrb[132].mxu1 }
0x2c7c   :  { %v12354_v25 = vadd.f32 %v9455_v56, %v8224_v24  ;;  %v6757_v26 = vpop.f32.mrb[133].mxu1 }
0x2c7d   :  { %v12356_v5 = vadd.f32 %v8224_v24, %v6757_v26  ;;  %v7401_v26 = vpop.permute.xlu1 %7400 }
0x2c7e   :  { %v6860_v28 = vmul.f32 %v6846_v14, %v12354_v25  ;;  %v7026_v29 = vmul.f32 %v6856_v0, %v12354_v25  ;;  %v6943_v33 = vmul.f32 %v6851_v15, %v12354_v25 }
0x2c7f   :  { %v6859_v27 = vmul.f32 %v6846_v14, %v12356_v5  ;;  %v7025_v61 = vmul.f32 %v6856_v0, %v12356_v5  ;;  %v6942_v31 = vmul.f32 %v6851_v15, %v12356_v5 }
0x2c81   :  { %9481 = vmatprep.mubr.msk.f32.mxu1 %vm1066_vm4, %v6859_v27  ;;  %9503 = vmatprep.mubr.msk.f32.mxu0 %vm1066_vm4, %v7025_v61 }
0x2c82   :  { %9482 = vmatmul.mubr.msk.f32.vlgmr.msra.gmra.mrb[134].mxu1 %vm1066_vm4, %v6860_v28  ;;  %9504 = vmatmul.mubr.msk.f32.vlgmr.msra.gmra.mrb[146].mxu0 %vm1066_vm4, %v7026_v29 }
0x2c83   :  { %9887 = vmatpush3.bf16.msra.mxu1 %v12255_v4  ;;  %9492 = vmatprep.mubr.msk.f32.mxu1 %vm1066_vm4, %v6942_v31 }
0x2c84   :  { %9889 = vmatprep.subr.bf16.mxu1 %v12263_v8  ;;  %9512 = vmatpush3.msk.msra.mxu0 %vm6219_vm6, %v12292_v32 }
0x2c87   :  { %9891 = vmatpush3.bf16.msra.mxu1 %v12263_v8 }
0x2c88   :  { %9506 = vmatprep.subr.msk.mxu1 %vm6219_vm6, %v12292_v32 }
0x2c8a   :  { %9493 = vmatmul.mubr.msk.f32.vlgmr.msra.gmra.mrb[136].mxu1 %vm1066_vm4, %v6943_v33 }
0x2c8b   :  { %9507 = vmatpush3.msk.msra.mxu1 %vm6219_vm6, %v12292_v32 }
0x2c8c   :  { %9516 = vmatprep.subr.msk.mxu1 %vm6219_vm6, %v12292_v32 }
0x2d55   :  { %v9483_v4 = vpop.f32.mrb[134].mxu1  ;;  %v9505_v34 = vpop.f32.mrb[146].mxu0 }
0x2d56   :  { %v6933_v51 = vpop.f32.mrb[135].mxu1  ;;  %v7099_v35 = vpop.f32.mrb[147].mxu0 }
0x2d5d   :  { %v9494_v36 = vpop.f32.mrb[136].mxu1 }
0x2d5e   :  { %v7109_v37 = vmax.f32 %v9483_v4, %v9494_v36  ;;  %v7016_v8 = vpop.f32.mrb[137].mxu1 }
0x2d5f   :  { %v7108_v38 = vmax.f32 %v6933_v51, %v7016_v8 }
0x2d60   :  { %v7111_v30 = vmax.f32 %v7109_v37, %v9505_v34 }
0x2d61   :  { %v7110_v21 = vmax.f32 %v7108_v38, %v7099_v35 }
0x2d62   :  { %v7113_v55 = vsub.f32 %v9483_v4, %v7111_v30  ;;  %v7119_v39 = vsub.f32 %v9494_v36, %v7111_v30  ;;  %v7125_v40 = vsub.f32 %v9505_v34, %v7111_v30 }
0x2d63   :  { %v7112_v41 = vsub.f32 %v6933_v51, %v7110_v21  ;;  %v7118_v42 = vsub.f32 %v7016_v8, %v7110_v21  ;;  %v7124_v43 = vsub.f32 %v7099_v35, %v7110_v21 }
0x2d64   :  { %v7116_v63 = vmul.f32 1.442695, %v7113_v55  ;;  %v7122_v44 = vmul.f32 1.442695, %v7119_v39  ;;  %v7128_v53 = vmul.f32 1.442695, %v7125_v40 }
0x2d65   :  { %v7114_v45 = vmul.f32 1.442695, %v7112_v41  ;;  %v7120_v52 = vmul.f32 1.442695, %v7118_v42  ;;  %v7126_v46 = vmul.f32 1.442695, %v7124_v43 }
0x2d66   :  { %10180 = vpow2.f32 %v7116_v63  ;;  %v7457_v42 = vld [vmem:[#allocation20 + $0x28] sm:$0xff]  ;;  %v7458_v63 = vld [vmem:[#allocation20 + $0x30] sm:$0xff] }
0x2d67   :  { %10182 = vpow2.f32 %v7122_v44  ;;  %v7459_v44 = vld [vmem:[#allocation20 + $0x38] sm:$0xff] }
0x2d68   :  { %10184 = vpow2.f32 %v7128_v53  ;;  %v9904_v53 = vpack.c.bf16 %v7459_v44, %v7458_v63 }
0x2d69   :  { %10186 = vpow2.f32 %v7114_v45 }
0x2d6a   :  { %10188 = vpow2.f32 %v7120_v52 }
0x2d6b   :  { %10190 = vpow2.f32 %v7126_v46 }
0x2d70   :  { %v10181_v50 = vpop.eup %10180 }
0x2d71   :  { %v10183_v14 = vpop.eup %10182 }
0x2d72   :  { %v10185_v15 = vpop.eup %10184  ;;  %v7131_v0 = vadd.f32 %v10183_v14, %v10181_v50 }
0x2d73   :  { %v10187_v47 = vpop.eup %10186 }
0x2d74   :  { %v10189_v48 = vpop.eup %10188  ;;  %v7133_v49 = vadd.f32 %v10185_v15, %v7131_v0 }
0x2d75   :  { %v7130_v57 = vadd.f32 %v10189_v48, %v10187_v47  ;;  %v10191_v59 = vpop.eup %10190 }
0x2d76   :  { %10192 = vrcp.f32 %v7133_v49 }
0x2d77   :  { %v7132_v54 = vadd.f32 %v10191_v59, %v7130_v57 }
0x2d79   :  { %10194 = vrcp.f32 %v7132_v54 }
0x2d80   :  { %v10193_v58 = vpop.eup %10192 }
0x2d81   :  { %v7137_v62 = vmul.f32 %v10193_v58, %v10181_v50  ;;  %v7226_v60 = vmul.f32 %v10193_v58, %v10183_v14  ;;  %v7317_v3 = vmul.f32 %v10193_v58, %v10185_v15 }
0x2d83   :  { %v10195_v6 = vpop.eup %10194 }
0x2d84   :  { %v7136_v7 = vmul.f32 %v10195_v6, %v10187_v47  ;;  %v7225_v9 = vmul.f32 %v10195_v6, %v10189_v48  ;;  %v7316_v10 = vmul.f32 %v10195_v6, %v10191_v59  ;;  %v8246_v47 = vld [vmem:[#allocation14 + $0x1] ss:$0 sm:$0xff]  ;;  %v8247_v59 = vld [vmem:[#allocation13 + $0x1] ss:$0 sm:$0xff] }
0x2d86   :  { %9508 = vmatprep.mubr.msk.f32.mxu1 %vm6212_vm7, %v7136_v7  ;;  %9513 = vmatprep.mubr.msk.f32.mxu0 %vm6212_vm7, %v7225_v9 }
0x2d87   :  { %9509 = vmatmul.mubr.msk.f32.vlgmr.msra.gmra.mrb[138].mxu1 %vm6212_vm7, %v7137_v62  ;;  %9514 = vmatmul.mubr.msk.f32.vlgmr.msra.gmra.mrb[148].mxu0 %vm6212_vm7, %v7226_v60 }
0x2d88   :  { %9517 = vmatpush3.msk.msra.mxu1 %vm6219_vm6, %v12292_v32  ;;  %9518 = vmatprep.mubr.msk.f32.mxu1 %vm6212_vm7, %v7316_v10 }
0x2d89   :  { %9908 = vmatprep.subr.bf16.mxu1 %v11022_v2 }
0x2d8b   :  { %9519 = vmatmul.mubr.msk.f32.vlgmr.msra.gmra.mrb[140].mxu1 %vm6212_vm7, %v7317_v3  ;;  %v8248_v3 = vld [vmem:[#allocation8 + $0x1] ss:$0 sm:$0xff] }
0x2d8c   :  { %9540 = vmatprep.mubr.msk.f32.mxu1 %vm11023_vm0, %v11021_v1 }
0x2e5a   :  { %v9510_v13 = vpop.f32.mrb[138].mxu1  ;;  %v9515_v16 = vpop.f32.mrb[148].mxu0 }
0x2e5b   :  { %v7224_v17 = vmul.f32 %v9510_v13, %v7221_v11  ;;  %v7313_v18 = vmul.f32 %v9515_v16, %v7310_v12  ;;  %v7210_v22 = vpop.f32.mrb[139].mxu1  ;;  %v7299_v23 = vpop.f32.mrb[149].mxu0 }
0x2e5c   :  { %v7223_v24 = vmul.f32 %v7221_v11, %v7210_v22  ;;  %v7312_v56 = vmul.f32 %v7310_v12, %v7299_v23 }
0x2e5d   :  { %v7315_v32 = vadd.f32 %v7313_v18, %v7224_v17 }
0x2e5e   :  { %v7314_v27 = vadd.f32 %v7312_v56, %v7223_v24  ;;  %v9520_v61 = vpop.f32.mrb[140].mxu1 }
0x2e5f   :  { %v7404_v28 = vmul.f32 %v9520_v61, %v7401_v26  ;;  %v7390_v29 = vpop.f32.mrb[141].mxu1 }
0x2e60   :  { %v7403_v31 = vmul.f32 %v7401_v26, %v7390_v29 }
0x2e61   :  { %v7406_v33 = vadd.f32 %v7404_v28, %v7315_v32 }
0x2e62   :  { %v7405_v4 = vadd.f32 %v7403_v31, %v7314_v27  ;;  %v7603_v31 = vld [vmem:[%s11219_s14] sm:$0xff] }
0x2e63   :  { %v7408_v34 = vadd.f32 %v7406_v33, %v12354_v25  ;;  %v7604_v33 = vld [vmem:[%s11219_s14 + $0x8] sm:$0xff] }
0x2e64   :  { %v7407_v51 = vadd.f32 %v7405_v4, %v12356_v5  ;;  %v7456_v5 = vld [vmem:[#allocation20 + $0x20] sm:$0xff]  ;;  %v9909_v4 = vpack.c.bf16 %v7604_v33, %v7603_v31 }
0x2e65   :  { %v7416_v35 = vsel %vm1066_vm4, %v7408_v34, 0.0  ;;  %v9900_v43 = vpack.c.bf16 %v7457_v42, %v7456_v5 }
0x2e66   :  { %7417 = vadd.xlane.f32.xlu0 %v7416_v35  ;;  %v7413_v36 = vsel %vm1066_vm4, %v7407_v51, 0.0  ;;  %9910 = vmatpush3.bf16.msra.mxu1 %v9909_v4 }
0x2e67   :  { %7414 = vadd.xlane.f32.xlu1 %v7413_v36  ;;  %9901 = vmatprep.subr.bf16.mxu0 %v9900_v43  ;;  %v7605_v36 = vld [vmem:[%s11219_s14 + $0x10] sm:$0xff] }
0x2e68   :  { %9903 = vmatpush3.bf16.msra.mxu0 %v9900_v43  ;;  %9911 = vmatprep.subr.bf16.mxu1 %v11022_v2  ;;  %v8251_v43 = vld [vmem:[#allocation17 + $0x1] ss:$0 sm:$0xff] }
0x2e69   :  { %9905 = vmatprep.subr.bf16.mxu0 %v9904_v53 }
0x2e6c   :  { %9907 = vmatpush3.bf16.msra.mxu0 %v9904_v53 }
0x2e6d   :  { %9914 = vmatprep.subr.bf16.mxu0 %v11022_v2 }
0x2ef3   :  { %v7418_v37 = vpop.xlane.xlu0 %7417 }
0x2ef4   :  { %v7420_v8 = vmul.f32 0.03125, %v7418_v37  ;;  %v7415_v38 = vpop.xlane.xlu1 %7414  ;;  %v7606_v37 = vld [vmem:[%s11219_s14 + $0x18] sm:$0xff] }
0x2ef5   :  { %v7419_v30 = vmul.f32 0.03125, %v7415_v38  ;;  %v7601_v38 = vld [vmem:[#allocation47 + $0x10] sm:$0xff] }
0x2ef6   :  { %v7422_v21 = vsub.f32 %v7408_v34, %v7420_v8  ;;  %v7599_v34 = vld [vmem:[#allocation47] sm:$0xff]  ;;  %v9912_v8 = vpack.c.bf16 %v7606_v37, %v7605_v36 }
0x2ef7   :  { %v7421_v55 = vsub.f32 %v7407_v51, %v7419_v30  ;;  %v7600_v51 = vld [vmem:[#allocation47 + $0x8] sm:$0xff]  ;;  %v7602_v30 = vld [vmem:[#allocation47 + $0x18] sm:$0xff] }
0x2ef8   :  { %v7424_v39 = vmul.f32 %v7422_v21, %v7422_v21  ;;  %v9915_v35 = vpack.c.bf16 %v7600_v51, %v7599_v34  ;;  %9913 = vmatpush3.bf16.msra.mxu1 %v9912_v8 }
0x2ef9   :  { %v7423_v40 = vmul.f32 %v7421_v55, %v7421_v55  ;;  %9920 = vmatprep.subr.bf16.mxu1 %v11022_v2 }
0x2efa   :  { %v7428_v41 = vsel %vm1066_vm4, %v7424_v39, 0.0 }
0x2efb   :  { %7429 = vadd.xlane.f32.xlu1 %v7428_v41  ;;  %v7425_v25 = vsel %vm1066_vm4, %v7423_v40, 0.0 }
0x2efc   :  { %7426 = vadd.xlane.f32.xlu0 %v7425_v25 }
0x2f88   :  { %v7430_v45 = vpop.xlane.xlu1 %7429 }
0x2f89   :  { %v7432_v52 = vmul.f32 0.03125, %v7430_v45  ;;  %v7427_v46 = vpop.xlane.xlu0 %7426  ;;  %v8252_v45 = vld [vmem:[#allocation16 + $0x1] ss:$0 sm:$0xff] }
0x2f8a   :  { %v7431_v50 = vmul.f32 0.03125, %v7427_v46 }
0x2f8b   :  { %v7434_v14 = vadd.f32 1e-05, %v7432_v52 }
0x2f8c   :  { %v7433_v15 = vadd.f32 1e-05, %v7431_v50 }
0x2f8d   :  { %10196 = vrsqrt.f32 %v7434_v14 }
0x2f8e   :  { %10198 = vrsqrt.f32 %v7433_v15  ;;  %v7762_v15 = vld [vmem:[#allocation50] sm:$0xff] }
0x2f97   :  { %v10197_v0 = vpop.eup %10196 }
0x2f98   :  { %v10199_v48 = vpop.eup %10198  ;;  %v7438_v49 = vmul.f32 %v10197_v0, %v7422_v21  ;;  %v9918_v21 = vpack.c.bf16 %v7602_v30, %v7601_v38  ;;  %v7763_v0 = vld [vmem:[#allocation50 + $0x8] sm:$0xff] }
0x2f99   :  { %v7437_v57 = vmul.f32 %v10199_v48, %v7421_v55  ;;  %v7764_v48 = vld [vmem:[#allocation50 + $0x10] sm:$0xff] }
0x2f9a   :  { %v7446_v54 = vmul.f32 %v8246_v47, %v7438_v49  ;;  %v7765_v49 = vld [vmem:[#allocation50 + $0x18] sm:$0xff] }
0x2f9b   :  { %v7445_v58 = vmul.f32 %v8246_v47, %v7437_v57  ;;  %v9921_v47 = vpack.c.bf16 %v7763_v0, %v7762_v15  ;;  %v9924_v57 = vpack.c.bf16 %v7765_v49, %v7764_v48 }
0x2f9c   :  { %v7454_v60 = vadd.f32 %v8247_v59, %v7446_v54 }
0x2f9d   :  { %v7453_v62 = vadd.f32 %v8247_v59, %v7445_v58 }
0x2f9f   :  { %9529 = vmatprep.mubr.msk.f32.mxu0 %vm1066_vm4, %v7453_v62 }
0x2fa0   :  { %9530 = vmatmul.mubr.msk.f32.vlgmr.msra.gmra.mrb[150].mxu0 %vm1066_vm4, %v7454_v60 }
0x2fa1   :  { %9551 = vmatprep.mubr.msk.f32.mxu0 %vm11023_vm0, %v11021_v1  ;;  %9916 = vmatpush3.bf16.msra.mxu0 %v9915_v35 }
0x2fa2   :  { %9917 = vmatprep.subr.bf16.mxu0 %v11022_v2 }
0x2fa5   :  { %9919 = vmatpush3.bf16.msra.mxu0 %v9918_v21 }
0x2fa6   :  { %9565 = vmatprep.subr.mxu0 %v11021_v1 }
0x3073   :  { %v9531_v6 = vpop.f32.mrb[150].mxu0 }
0x3074   :  { %v7546_v7 = vadd.f32 %v9531_v6, %v8248_v3  ;;  %v7540_v9 = vpop.f32.mrb[151].mxu0 }
0x3075   :  { %v7541_v10 = vadd.f32 %v8248_v3, %v7540_v9  ;;  %v11027_v9 = vmov 0  }
0x3076   :  { %v7550_v11 = vmax.f32 %v7546_v7, 0.0  ;;  %10011 = vset.pattern.permute.xlu0 %v11027_v9 }
0x3077   :  { %v7549_v12 = vmax.f32 %v7541_v10, 0.0 }
0x3078   :  { %v7552_v13 = vadd.f32 %v7550_v11, %v7454_v60 }
0x3079   :  { %v7551_v16 = vadd.f32 %v7549_v12, %v7453_v62  ;;  %v8255_v62 = vld [vmem:[#allocation46] ss:$0 sm:$0xff] }
0x307a   :  { %v7560_v17 = vsel %vm1066_vm4, %v7552_v13, 0.0 }
0x307b   :  { %7561 = vadd.xlane.f32.xlu1 %v7560_v17  ;;  %v7557_v18 = vsel %vm1066_vm4, %v7551_v16, 0.0 }
0x307c   :  { %7558 = vadd.xlane.f32.xlu0 %v7557_v18 }
0x3108   :  { %v7562_v22 = vpop.xlane.xlu1 %7561 }
0x3109   :  { %v7564_v23 = vmul.f32 0.03125, %v7562_v22  ;;  %v7559_v24 = vpop.xlane.xlu0 %7558 }
0x310a   :  { %v7563_v56 = vmul.f32 0.03125, %v7559_v24 }
0x310b   :  { %v7566_v32 = vsub.f32 %v7552_v13, %v7564_v23 }
0x310c   :  { %v7565_v26 = vsub.f32 %v7551_v16, %v7563_v56  ;;  %v7847_v16 = vld [vmem:[#allocation5] sm:$0x1] }
0x310d   :  { %v7568_v27 = vmul.f32 %v7566_v32, %v7566_v32 }
0x310e   :  { %v7567_v61 = vmul.f32 %v7565_v26, %v7565_v26 }
0x310f   :  { %v7572_v28 = vsel %vm1066_vm4, %v7568_v27, 0.0 }
0x3110   :  { %7573 = vadd.xlane.f32.xlu1 %v7572_v28  ;;  %v7569_v29 = vsel %vm1066_vm4, %v7567_v61, 0.0 }
0x3111   :  { %7570 = vadd.xlane.f32.xlu0 %v7569_v29 }
0x319d   :  { %v7574_v55 = vpop.xlane.xlu1 %7573 }
0x319e   :  { %v7576_v39 = vmul.f32 0.03125, %v7574_v55  ;;  %v7571_v40 = vpop.xlane.xlu0 %7570 }
0x319f   :  { %v7575_v41 = vmul.f32 0.03125, %v7571_v40 }
0x31a0   :  { %v7578_v25 = vadd.f32 1e-05, %v7576_v39 }
0x31a1   :  { %v7577_v5 = vadd.f32 1e-05, %v7575_v41 }
0x31a2   :  { %10200 = vrsqrt.f32 %v7578_v25 }
0x31a3   :  { %10202 = vrsqrt.f32 %v7577_v5 }
0x31ac   :  { %v10201_v42 = vpop.eup %10200 }
0x31ad   :  { %v10203_v63 = vpop.eup %10202  ;;  %v7582_v44 = vmul.f32 %v10201_v42, %v7566_v32 }
0x31ae   :  { %v7581_v53 = vmul.f32 %v10203_v63, %v7565_v26 }
0x31af   :  { %v7590_v52 = vmul.f32 %v8251_v43, %v7582_v44 }
0x31b0   :  { %v7589_v46 = vmul.f32 %v8251_v43, %v7581_v53 }
0x31b1   :  { %v7598_v50 = vadd.f32 %v8252_v45, %v7590_v52 }
0x31b2   :  { %v7597_v14 = vadd.f32 %v8252_v45, %v7589_v46 }
0x31b3   :  { %9541 = vmatmul.mubr.msk.f32.vlgmr.msra.gmra.mrb[142].mxu1 %vm1066_vm4, %v7598_v50 }
0x31b4   :  { %9552 = vmatmul.mubr.msk.f32.vlgmr.msra.gmra.mrb[152].mxu0 %vm1066_vm4, %v7597_v14  ;;  %9562 = vmatprep.mubr.msk.f32.mxu1 %vm11023_vm0, %v11021_v1 }
0x31b5   :  { %9567 = vmatprep.mubr.msk.f32.mxu0 %vm11023_vm0, %v11021_v1  ;;  %9922 = vmatpush3.bf16.msra.mxu1 %v9921_v47  ;;  %v7848_v1 = vld [vmem:[#allocation2] sm:$0x1] }
0x31b6   :  { %9923 = vmatprep.subr.bf16.mxu1 %v11022_v2  ;;  %7851 = vperm.xlu0 %10011, %v7848_v1   ;;  %v8256_v2 = vld [vmem:[#allocation49] ss:$0 sm:$0xff] }
0x31b9   :  { %9925 = vmatpush3.bf16.msra.mxu1 %v9924_v57 }
0x3235   :  { %v7852_v17 = vpop.permute.xlu0 %7851 }
0x3236   :  { %v7857_v18 = vrot.slane %v7852_v17, %v599_v20 }
0x3286   :  { %v7676_v59 = vpop.f32.mrb[142].mxu1 }
0x3287   :  { %v9542_v54 = vpop.f32.mrb[143].mxu1  ;;  %v7749_v58 = vpop.f32.mrb[152].mxu0 }
0x3288   :  { %v7750_v60 = vadd.f32 %v7749_v58, %v7676_v59  ;;  %v9553_v3 = vpop.f32.mrb[153].mxu0 }
0x328a   :  { %v7760_v6 = vadd.f32 %v8255_v62, %v7750_v60 }
0x328c   :  { %v7761_v7 = vmax.f32 %v7760_v6, 0.0 }
0x328e   :  { %9563 = vmatmul.mubr.msk.f32.vlgmr.msra.gmra.mrb[144].mxu1 %vm1066_vm4, %v7761_v7 }
0x3361   :  { %v7842_v10 = vpop.f32.mrb[144].mxu1 }
0x3362   :  { %v7843_v11 = vadd.f32 %v8256_v2, %v7842_v10  ;;  %v9564_v12 = vpop.f32.mrb[145].mxu1 }
0x3364   :  { %v7846_v13 = vmax.f32 %v7843_v11, 0.0 }
0x3366   :  { %9566 = vmatpush3.xpose.msk.msra.mxu0 %vm1066_vm4, %v7846_v13 }
0x3369   :  { %9568 = vmatmul.mubr.msk.f32.vlgmr.msra.gmra.mrb[154].mxu0 %vm1066_vm4, %v7847_v16 }
0x343c   :  { %v7930_v22 = vpop.f32.mrb[154].mxu0 }
0x343d   :  { %v7931_v23 = vadd.f32 %v7930_v22, %v7857_v18  ;;  %v9569_v24 = vpop.f32.mrb[155].mxu0 }
0x343f   :  { %7935 = vst.msk [vmem:[%s11234_s29] sm:$0x1] %vm7934_vm8, %v7931_v23 }
0x3440   :  { %7940 = vsyncpa [#allocation4], 1 }
0x3441   :  { %7941 = vsyncpa [#allocation6], 1 }
0x3442   :  { %7942 = vsyncpa [#allocation9], 1 }
0x3443   :  { %7943 = vsyncpa [#allocation12], 1 }
0x3444   :  { %7944 = vsyncpa [#allocation15], 1 }
0x3445   :  { %7945 = vsyncpa [#allocation18], 1 }
0x3446   :  { %7946 = vsyncpa [#allocation21], 1 }
0x3447   :  { %7947 = vsyncpa [#allocation24], 1 }
0x3448   :  { %7948 = vsyncpa [#allocation27], 1 }
0x3449   :  { %7949 = vsyncpa [#allocation30], 1 }
0x344a   :  { %7950 = vsyncpa [#allocation33], 1 }
0x344b   :  { %7951 = vsyncpa [#allocation36], 1 }
0x344c   :  { %7952 = vsyncpa [#allocation39], 1 }
0x344d   :  { %7953 = vsyncpa [#allocation42], 1 }
0x344e   :  { %7954 = vsyncpa [#allocation45], 1 }
0x344f   :  { %7955 = vsyncpa [#allocation48], 1 }
0x3450   :  { %7956 = vsyncpa [#allocation51], 1 }

</bundles_post_ra>
